<compile_context>
chip_gen: v6e
topology: v6e:2x2x1
jax: 0.10.0
libtpu: 0.0.40
codegen_flags: <defaults>
</compile_context>

<pallas_src>
import numpy as np
import jax
import jax.numpy as jnp
from jax.experimental import pallas as pl
from jax.experimental.pallas import tpu as pltpu

NEG_SLOPE = 0.01  # F.leaky_relu default


def _lrelu(x):
    return jnp.where(x > 0, x, NEG_SLOPE * x)


# ----------------------------------------------------------------------------
# Fused forward kernel (one grid iteration == one Q branch)
# ----------------------------------------------------------------------------
def qnet_kernel(p1_ref, xu_ref, t_ref, s2_ref,
                w1_ref, b1_ref, w2_ref, b2_ref,
                fw1_ref, fb1_ref, fw2_ref, fb2_ref, fw3_ref, fb3_ref,
                fw4_ref, fb4_ref, fw5_ref, fb5_ref, fw6_ref, fb6_ref,
                fw7_ref, fb7_ref, fw8_ref, fb8_ref,
                o_ref):
    B = xu_ref.shape[0]
    n_k = w1_ref.shape[1]            # 9 kernel taps (3x3)
    c_mid = w1_ref.shape[2]          # 64 conv channels
    n_t = t_ref.shape[0] // n_k      # conv2 output spatial positions (16)

    w1 = w1_ref[0]                   # (9, 64)
    b1 = b1_ref[0]                   # (1, 64)
    w2 = w2_ref[0]                   # (576, 64)
    b2 = b2_ref[0]                   # (1, 64)
    T = t_ref[...]                   # (144, 324)  pool1 + conv2-im2col map
    s2 = s2_ref[...]                 # (16, 1)     pool2 weights

    feats = []
    for b in range(B):               # tiny static batch loop
        p1_b = p1_ref[b]             # (324, 9) conv1 im2col patches
        # conv1 (C_in = 1): 9 broadcast multiply-adds on the VPU.
        acc1 = p1_b[:, 0:1] * w1[0:1, :]
        for k in range(1, n_k):
            acc1 = acc1 + p1_b[:, k:k + 1] * w1[k:k + 1, :]
        a1 = _lrelu(acc1 + b1)       # (324, 64)
        # fused avgpool(3,3) + conv2 im2col: one MXU matmul with constant T.
        p2 = jnp.dot(T, a1, preferred_element_type=jnp.float32)   # (144, 64)
        # conv2: sum of 9 (16,64)x(64,64) matmuls (one per kernel tap).
        acc2 = jnp.dot(p2[0:n_t, :], w2[0:c_mid, :],
                       preferred_element_type=jnp.float32)
        for k in range(1, n_k):
            acc2 = acc2 + jnp.dot(p2[k * n_t:(k + 1) * n_t, :],
                                  w2[k * c_mid:(k + 1) * c_mid, :],
                                  preferred_element_type=jnp.float32)
        a2 = _lrelu(acc2 + b2)       # (16, 64)
        # avgpool(3,3) -> 1x1 : weighted reduction over the 9 valid rows.
        feats.append(jnp.sum(a2 * s2, axis=0, keepdims=True))     # (1, 64)
    # NOTE: torch flattens NCHW channel-major; spatial is 1x1 here so orders
    # coincide.  TODO(synk): general map sizes need channel-major reordering.
    feat = jnp.concatenate(feats, axis=0)                         # (B, 64)

    # TODO(synk): nn.Dropout(0.2) implemented as identity (eval-mode semantics).
    xu = xu_ref[...]
    dot = lambda a, wr: jnp.dot(a, wr[0], preferred_element_type=jnp.float32)
    x1 = _lrelu(dot(feat, fw1_ref) + fb1_ref[0])   # fc1 / fc9
    x1 = _lrelu(dot(x1, fw2_ref) + fb2_ref[0])     # fc2 / fc10
    x2 = _lrelu(dot(xu, fw3_ref) + fb3_ref[0])     # fc3 / fc11
    x2 = _lrelu(dot(x2, fw4_ref) + fb4_ref[0])     # fc4 / fc12
    x2 = _lrelu(dot(x2, fw5_ref) + fb5_ref[0])     # fc5 / fc13
    x3 = jnp.concatenate([x1, x2], axis=1)         # cat -> single fc6 dot
    x3 = _lrelu(dot(x3, fw6_ref) + fb6_ref[0])     # fc6 / fc14
    x3 = _lrelu(dot(x3, fw7_ref) + fb7_ref[0])     # fc7 / fc15
    q = dot(x3, fw8_ref) + fb8_ref[0]              # fc8 / fc16 (no activation)
    o_ref[0] = q                                   # (B, 1) into branch slot


# ----------------------------------------------------------------------------
# Host-side (trace-time) helpers: im2col of the raw map, pooling constants
# ----------------------------------------------------------------------------
def im2col_c1(x):
    """(B, H, W) single-channel map -> (B, (H-2)(W-2), 9), tap order (kh, kw)."""
    B, H, W = x.shape
    Ho, Wo = H - 2, W - 2
    cols = [x[:, i:i + Ho, j:j + Wo] for i in range(3) for j in range(3)]
    return jnp.stack(cols, axis=-1).reshape(B, Ho * Wo, 9)


def build_constants(H, W, c_mid=64):
    """Precompute (once) the pool1+conv2-im2col map T and the pool2 vector."""
    H1, W1 = H - 2, W - 2                             # conv1 output
    Hp1, Wp1 = (H1 - 3) // 3 + 1, (W1 - 3) // 3 + 1   # pool1 output
    H2, W2 = Hp1 - 2, Wp1 - 2                         # conv2 output
    Hp2, Wp2 = (H2 - 3) // 3 + 1, (W2 - 3) // 3 + 1   # pool2 output
    # TODO(synk): flatten for Hp2*Wp2 > 1 needs NCHW channel-major reordering.
    assert Hp2 == 1 and Wp2 == 1, "demo supports maps where pool2 output is 1x1"
    n_t = H2 * W2
    T = np.zeros((9 * n_t, H1 * W1), np.float32)
    for kh in range(3):
        for kw in range(3):
            kk = kh * 3 + kw
            for i in range(H2):
                for j in range(W2):
                    r = kk * n_t + i * W2 + j
                    ph, pw = i + kh, j + kw           # pooled-map position
                    for dh in range(3):
                        for dw in range(3):
                            T[r, (3 * ph + dh) * W1 + (3 * pw + dw)] = 1.0 / 9.0
    S2 = np.zeros((n_t, 1), np.float32)
    for i in range(3):
        for j in range(3):
            S2[i * W2 + j, 0] = 1.0 / 9.0
    conv_to_fc_size = c_mid * Hp2 * Wp2
    return T, S2, conv_to_fc_size


# ----------------------------------------------------------------------------
# Forward pass
# ----------------------------------------------------------------------------
def qnetwork_forward(state, action, params, T, S2):
    """state: (B, H+1, W, 1) f32; action: (B, num_actions). Returns (q1, q2)."""
    B = state.shape[0]
    # plane_state[:, 0:3] = state[:, 0, 0] (broadcast (B,1)->(B,3));
    # plane_state[:, 3]   = state[:, 0, 1, 0]   -- matches the torch indexing.
    plane_state = jnp.concatenate(
        [jnp.broadcast_to(state[:, 0, 0], (B, 3)), state[:, 0, 1, 0:1]], axis=1)
    xu = jnp.concatenate([plane_state, action], axis=1)   # (B, ni + na)
    # map_state = state[:, 1:] then NCHW permute in torch; kernels use NHWC,
    # which is exactly state[:, 1:] as stored (single channel -> drop it).
    map_hw = state[:, 1:, :, 0]                            # (B, H, W)
    p1 = im2col_c1(map_hw)                                 # (B, 324, 9), tiny

    shared = lambda a: pl.BlockSpec(a.shape, lambda i, n=a.ndim: (0,) * n)
    branch = lambda a: pl.BlockSpec((1,) + a.shape[1:], lambda i: (i, 0, 0))
    in_specs = ([shared(p1), shared(xu), shared(T), shared(S2)]
                + [branch(w) for w in params])

    out = pl.pallas_call(
        qnet_kernel,
        out_shape=jax.ShapeDtypeStruct((2, B, 1), jnp.float32),
        grid=(2,),                                   # branch A / branch B
        in_specs=in_specs,
        out_specs=pl.BlockSpec((1, B, 1), lambda i: (i, 0, 0)),
        compiler_params=pltpu.CompilerParams(dimension_semantics=("parallel",)),
    )(p1, xu, T, S2, *params)
    return out[0], out[1]


# ----------------------------------------------------------------------------
# Deterministic parameter initialization (synthetic; matches module shapes);
# the A and B branch weights are stacked along a leading axis of size 2.
# ----------------------------------------------------------------------------
def init_params(key, hidden_dim, num_inputs, num_actions, conv_to_fc_size):
    hd = hidden_dim
    keys = iter(jax.random.split(key, 64))

    def lin(fin, fout):  # xavier_uniform weight (stored (in,out)), zero bias
        bound = (6.0 / (fin + fout)) ** 0.5
        wa = jax.random.uniform(next(keys), (fin, fout), jnp.float32, -bound, bound)
        wb = jax.random.uniform(next(keys), (fin, fout), jnp.float32, -bound, bound)
        return jnp.stack([wa, wb], 0), jnp.zeros((2, 1, fout), jnp.float32)

    def conv(cin, cout):  # torch-shaped (cout,cin,3,3) -> (9*cin, cout)
        fan_in = cin * 9
        bd = 1.0 / (fan_in ** 0.5)

        def one(k):
            wt = jax.random.uniform(k, (cout, cin, 3, 3), jnp.float32, -bd, bd)
            return jnp.transpose(wt, (2, 3, 1, 0)).reshape(9 * cin, cout)

        wa = one(next(keys))
        ba = jax.random.uniform(next(keys), (1, cout), jnp.float32, -bd, bd)
        wb = one(next(keys))
        bb = jax.random.uniform(next(keys), (1, cout), jnp.float32, -bd, bd)
        return jnp.stack([wa, wb], 0), jnp.stack([ba, bb], 0)

    w1, b1 = conv(1, 64)                              # conv1 | conv3
    w2, b2 = conv(64, 64)                             # conv2 | conv4
    fw1, fb1 = lin(conv_to_fc_size, 2 * hd)           # fc1 | fc9
    fw2, fb2 = lin(2 * hd, hd)                        # fc2 | fc10
    fw3, fb3 = lin(num_inputs + num_actions, hd)      # fc3 | fc11
    fw4, fb4 = lin(hd, hd)                            # fc4 | fc12
    fw5, fb5 = lin(hd, hd)                            # fc5 | fc13
    fw6, fb6 = lin(2 * hd, hd)                        # fc6 | fc14
    fw7, fb7 = lin(hd, hd // 2)                       # fc7 | fc15
    fw8, fb8 = lin(hd // 2, 1)                        # fc8 | fc16
    return [w1, b1, w2, b2, fw1, fb1, fw2, fb2, fw3, fb3, fw4, fb4,
            fw5, fb5, fw6, fb6, fw7, fb7, fw8, fb8]


# ----------------------------------------------------------------------------
if __name__ == "__main__":
    B, H, W = 2, 20, 20          # map_input = (1, 20, 20)
    num_inputs, num_actions, hidden_dim = 4, 2, 32

    # Pooling / im2col constants: built exactly once on the host.
    T_np, S2_np, conv_to_fc_size = build_constants(H, W)
    T = jnp.asarray(T_np)
    S2 = jnp.asarray(S2_np)

    key = jax.random.PRNGKey(0)
    k_state, k_action, k_params = jax.random.split(key, 3)
    state = jax.random.uniform(k_state, (B, H + 1, W, 1), jnp.float32)
    action = jax.random.uniform(k_action, (B, num_actions), jnp.float32)
    params = init_params(k_params, hidden_dim, num_inputs, num_actions,
                         conv_to_fc_size)

    fwd = jax.jit(qnetwork_forward)
    q1, q2 = fwd(state, action, params, T, S2)
    jax.block_until_ready((q1, q2))
    assert q1.shape == (B, 1) and q2.shape == (B, 1)
    assert q1.dtype == jnp.float32 and q2.dtype == jnp.float32
    print("KERNEL_OK")
</pallas_src>

<mosaic_0001>
module attributes {stable_mosaic.version = 11 : i64} {
  func.func @qnet_kernel(%arg0: i32, %arg1: memref<2x324x9xf32, #tpu.memory_space<vmem>>, %arg2: memref<2x6xf32, #tpu.memory_space<vmem>>, %arg3: memref<144x324xf32, #tpu.memory_space<vmem>>, %arg4: memref<16x1xf32, #tpu.memory_space<vmem>>, %arg5: memref<1x9x64xf32, #tpu.memory_space<vmem>>, %arg6: memref<1x1x64xf32, #tpu.memory_space<vmem>>, %arg7: memref<1x576x64xf32, #tpu.memory_space<vmem>>, %arg8: memref<1x1x64xf32, #tpu.memory_space<vmem>>, %arg9: memref<1x64x64xf32, #tpu.memory_space<vmem>>, %arg10: memref<1x1x64xf32, #tpu.memory_space<vmem>>, %arg11: memref<1x64x32xf32, #tpu.memory_space<vmem>>, %arg12: memref<1x1x32xf32, #tpu.memory_space<vmem>>, %arg13: memref<1x6x32xf32, #tpu.memory_space<vmem>>, %arg14: memref<1x1x32xf32, #tpu.memory_space<vmem>>, %arg15: memref<1x32x32xf32, #tpu.memory_space<vmem>>, %arg16: memref<1x1x32xf32, #tpu.memory_space<vmem>>, %arg17: memref<1x32x32xf32, #tpu.memory_space<vmem>>, %arg18: memref<1x1x32xf32, #tpu.memory_space<vmem>>, %arg19: memref<1x64x32xf32, #tpu.memory_space<vmem>>, %arg20: memref<1x1x32xf32, #tpu.memory_space<vmem>>, %arg21: memref<1x32x16xf32, #tpu.memory_space<vmem>>, %arg22: memref<1x1x16xf32, #tpu.memory_space<vmem>>, %arg23: memref<1x16x1xf32, #tpu.memory_space<vmem>>, %arg24: memref<1x1x1xf32, #tpu.memory_space<vmem>>, %arg25: memref<1x2x1xf32, #tpu.memory_space<vmem>>) attributes {dimension_semantics = [#tpu.dimension_semantics<parallel>], iteration_bounds = array<i64: 2>, scalar_prefetch = 0 : i64, scratch_operands = 0 : i64, tpu.core_type = #tpu.core_type<tc>, window_params = [{pipeline_mode = #tpu.pipeline_mode<synchronous>, transform_indices = @transform_0, window_bounds = array<i64: 2, 324, 9>}, {pipeline_mode = #tpu.pipeline_mode<synchronous>, transform_indices = @transform_1, window_bounds = array<i64: 2, 6>}, {pipeline_mode = #tpu.pipeline_mode<synchronous>, transform_indices = @transform_2, window_bounds = array<i64: 144, 324>}, {pipeline_mode = #tpu.pipeline_mode<synchronous>, transform_indices = @transform_3, window_bounds = array<i64: 16, 1>}, {transform_indices = @transform_4, window_bounds = array<i64: 1, 9, 64>}, {transform_indices = @transform_5, window_bounds = array<i64: 1, 1, 64>}, {transform_indices = @transform_6, window_bounds = array<i64: 1, 576, 64>}, {transform_indices = @transform_7, window_bounds = array<i64: 1, 1, 64>}, {transform_indices = @transform_8, window_bounds = array<i64: 1, 64, 64>}, {transform_indices = @transform_9, window_bounds = array<i64: 1, 1, 64>}, {transform_indices = @transform_10, window_bounds = array<i64: 1, 64, 32>}, {transform_indices = @transform_11, window_bounds = array<i64: 1, 1, 32>}, {transform_indices = @transform_12, window_bounds = array<i64: 1, 6, 32>}, {transform_indices = @transform_13, window_bounds = array<i64: 1, 1, 32>}, {transform_indices = @transform_14, window_bounds = array<i64: 1, 32, 32>}, {transform_indices = @transform_15, window_bounds = array<i64: 1, 1, 32>}, {transform_indices = @transform_16, window_bounds = array<i64: 1, 32, 32>}, {transform_indices = @transform_17, window_bounds = array<i64: 1, 1, 32>}, {transform_indices = @transform_18, window_bounds = array<i64: 1, 64, 32>}, {transform_indices = @transform_19, window_bounds = array<i64: 1, 1, 32>}, {transform_indices = @transform_20, window_bounds = array<i64: 1, 32, 16>}, {transform_indices = @transform_21, window_bounds = array<i64: 1, 1, 16>}, {transform_indices = @transform_22, window_bounds = array<i64: 1, 16, 1>}, {transform_indices = @transform_23, window_bounds = array<i64: 1, 1, 1>}, {transform_indices = @transform_24, window_bounds = array<i64: 1, 2, 1>}]} {
    %c0 = arith.constant 0 : index
    %c0_0 = arith.constant 0 : index
    %c0_1 = arith.constant 0 : index
    %0 = vector.load %arg5[%c0, %c0_0, %c0_1] : memref<1x9x64xf32, #tpu.memory_space<vmem>>, vector<1x9x64xf32>
    %1 = vector.shape_cast %0 : vector<1x9x64xf32> to vector<9x64xf32>
    %c0_2 = arith.constant 0 : index
    %c0_3 = arith.constant 0 : index
    %c0_4 = arith.constant 0 : index
    %2 = vector.load %arg6[%c0_2, %c0_3, %c0_4] : memref<1x1x64xf32, #tpu.memory_space<vmem>>, vector<1x1x64xf32>
    %3 = vector.shape_cast %2 : vector<1x1x64xf32> to vector<1x64xf32>
    %c0_5 = arith.constant 0 : index
    %c0_6 = arith.constant 0 : index
    %c0_7 = arith.constant 0 : index
    %4 = vector.load %arg7[%c0_5, %c0_6, %c0_7] : memref<1x576x64xf32, #tpu.memory_space<vmem>>, vector<1x576x64xf32>
    %5 = vector.shape_cast %4 : vector<1x576x64xf32> to vector<576x64xf32>
    %c0_8 = arith.constant 0 : index
    %c0_9 = arith.constant 0 : index
    %c0_10 = arith.constant 0 : index
    %6 = vector.load %arg8[%c0_8, %c0_9, %c0_10] : memref<1x1x64xf32, #tpu.memory_space<vmem>>, vector<1x1x64xf32>
    %7 = vector.shape_cast %6 : vector<1x1x64xf32> to vector<1x64xf32>
    %c0_11 = arith.constant 0 : index
    %c0_12 = arith.constant 0 : index
    %8 = vector.load %arg3[%c0_11, %c0_12] : memref<144x324xf32, #tpu.memory_space<vmem>>, vector<144x324xf32>
    %c0_13 = arith.constant 0 : index
    %c0_14 = arith.constant 0 : index
    %9 = vector.load %arg4[%c0_13, %c0_14] : memref<16x1xf32, #tpu.memory_space<vmem>>, vector<16x1xf32>
    %c0_15 = arith.constant 0 : index
    %c0_16 = arith.constant 0 : index
    %c0_17 = arith.constant 0 : index
    %10 = vector.load %arg1[%c0_15, %c0_16, %c0_17] : memref<2x324x9xf32, #tpu.memory_space<vmem>>, vector<1x324x9xf32>
    %11 = vector.shape_cast %10 : vector<1x324x9xf32> to vector<324x9xf32>
    %12 = vector.extract_strided_slice %11 {offsets = [0, 0], sizes = [324, 1], strides = [1, 1]} : vector<324x9xf32> to vector<324x1xf32>
    %13 = vector.extract_strided_slice %1 {offsets = [0, 0], sizes = [1, 64], strides = [1, 1]} : vector<9x64xf32> to vector<1x64xf32>
    %14 = vector.broadcast %12 : vector<324x1xf32> to vector<324x64xf32>
    %15 = vector.broadcast %13 : vector<1x64xf32> to vector<324x64xf32>
    %16 = arith.mulf %14, %15 : vector<324x64xf32>
    %17 = vector.extract_strided_slice %11 {offsets = [0, 1], sizes = [324, 1], strides = [1, 1]} : vector<324x9xf32> to vector<324x1xf32>
    %18 = vector.extract_strided_slice %1 {offsets = [1, 0], sizes = [1, 64], strides = [1, 1]} : vector<9x64xf32> to vector<1x64xf32>
    %19 = vector.broadcast %17 : vector<324x1xf32> to vector<324x64xf32>
    %20 = vector.broadcast %18 : vector<1x64xf32> to vector<324x64xf32>
    %21 = arith.mulf %19, %20 : vector<324x64xf32>
    %22 = arith.addf %16, %21 : vector<324x64xf32>
    %23 = vector.extract_strided_slice %11 {offsets = [0, 2], sizes = [324, 1], strides = [1, 1]} : vector<324x9xf32> to vector<324x1xf32>
    %24 = vector.extract_strided_slice %1 {offsets = [2, 0], sizes = [1, 64], strides = [1, 1]} : vector<9x64xf32> to vector<1x64xf32>
    %25 = vector.broadcast %23 : vector<324x1xf32> to vector<324x64xf32>
    %26 = vector.broadcast %24 : vector<1x64xf32> to vector<324x64xf32>
    %27 = arith.mulf %25, %26 : vector<324x64xf32>
    %28 = arith.addf %22, %27 : vector<324x64xf32>
    %29 = vector.extract_strided_slice %11 {offsets = [0, 3], sizes = [324, 1], strides = [1, 1]} : vector<324x9xf32> to vector<324x1xf32>
    %30 = vector.extract_strided_slice %1 {offsets = [3, 0], sizes = [1, 64], strides = [1, 1]} : vector<9x64xf32> to vector<1x64xf32>
    %31 = vector.broadcast %29 : vector<324x1xf32> to vector<324x64xf32>
    %32 = vector.broadcast %30 : vector<1x64xf32> to vector<324x64xf32>
    %33 = arith.mulf %31, %32 : vector<324x64xf32>
    %34 = arith.addf %28, %33 : vector<324x64xf32>
    %35 = vector.extract_strided_slice %11 {offsets = [0, 4], sizes = [324, 1], strides = [1, 1]} : vector<324x9xf32> to vector<324x1xf32>
    %36 = vector.extract_strided_slice %1 {offsets = [4, 0], sizes = [1, 64], strides = [1, 1]} : vector<9x64xf32> to vector<1x64xf32>
    %37 = vector.broadcast %35 : vector<324x1xf32> to vector<324x64xf32>
    %38 = vector.broadcast %36 : vector<1x64xf32> to vector<324x64xf32>
    %39 = arith.mulf %37, %38 : vector<324x64xf32>
    %40 = arith.addf %34, %39 : vector<324x64xf32>
    %41 = vector.extract_strided_slice %11 {offsets = [0, 5], sizes = [324, 1], strides = [1, 1]} : vector<324x9xf32> to vector<324x1xf32>
    %42 = vector.extract_strided_slice %1 {offsets = [5, 0], sizes = [1, 64], strides = [1, 1]} : vector<9x64xf32> to vector<1x64xf32>
    %43 = vector.broadcast %41 : vector<324x1xf32> to vector<324x64xf32>
    %44 = vector.broadcast %42 : vector<1x64xf32> to vector<324x64xf32>
    %45 = arith.mulf %43, %44 : vector<324x64xf32>
    %46 = arith.addf %40, %45 : vector<324x64xf32>
    %47 = vector.extract_strided_slice %11 {offsets = [0, 6], sizes = [324, 1], strides = [1, 1]} : vector<324x9xf32> to vector<324x1xf32>
    %48 = vector.extract_strided_slice %1 {offsets = [6, 0], sizes = [1, 64], strides = [1, 1]} : vector<9x64xf32> to vector<1x64xf32>
    %49 = vector.broadcast %47 : vector<324x1xf32> to vector<324x64xf32>
    %50 = vector.broadcast %48 : vector<1x64xf32> to vector<324x64xf32>
    %51 = arith.mulf %49, %50 : vector<324x64xf32>
    %52 = arith.addf %46, %51 : vector<324x64xf32>
    %53 = vector.extract_strided_slice %11 {offsets = [0, 7], sizes = [324, 1], strides = [1, 1]} : vector<324x9xf32> to vector<324x1xf32>
    %54 = vector.extract_strided_slice %1 {offsets = [7, 0], sizes = [1, 64], strides = [1, 1]} : vector<9x64xf32> to vector<1x64xf32>
    %55 = vector.broadcast %53 : vector<324x1xf32> to vector<324x64xf32>
    %56 = vector.broadcast %54 : vector<1x64xf32> to vector<324x64xf32>
    %57 = arith.mulf %55, %56 : vector<324x64xf32>
    %58 = arith.addf %52, %57 : vector<324x64xf32>
    %59 = vector.extract_strided_slice %11 {offsets = [0, 8], sizes = [324, 1], strides = [1, 1]} : vector<324x9xf32> to vector<324x1xf32>
    %60 = vector.extract_strided_slice %1 {offsets = [8, 0], sizes = [1, 64], strides = [1, 1]} : vector<9x64xf32> to vector<1x64xf32>
    %61 = vector.broadcast %59 : vector<324x1xf32> to vector<324x64xf32>
    %62 = vector.broadcast %60 : vector<1x64xf32> to vector<324x64xf32>
    %63 = arith.mulf %61, %62 : vector<324x64xf32>
    %64 = arith.addf %58, %63 : vector<324x64xf32>
    %65 = vector.broadcast %3 : vector<1x64xf32> to vector<324x64xf32>
    %66 = arith.addf %64, %65 : vector<324x64xf32>
    %cst = arith.constant 0.000000e+00 : f32
    %67 = vector.broadcast %cst : f32 to vector<324x64xf32>
    %68 = arith.cmpf ogt, %66, %67 : vector<324x64xf32>
    %cst_18 = arith.constant 0.00999999977 : f32
    %69 = vector.broadcast %cst_18 : f32 to vector<324x64xf32>
    %70 = arith.mulf %69, %66 : vector<324x64xf32>
    %71 = arith.select %68, %66, %70 : vector<324x64xi1>, vector<324x64xf32>
    %cst_19 = arith.constant dense<0.000000e+00> : vector<144x64xf32>
    %72 = tpu.matmul %8, %71, %cst_19 {dimension_numbers = #tpu.dot_dimension_numbers<[1], [0], [0], [1], [0, 0, 1, 1], [], []>} : vector<144x324xf32>, vector<324x64xf32>, vector<144x64xf32> -> vector<144x64xf32>
    %73 = vector.extract_strided_slice %72 {offsets = [0, 0], sizes = [16, 64], strides = [1, 1]} : vector<144x64xf32> to vector<16x64xf32>
    %74 = vector.extract_strided_slice %5 {offsets = [0, 0], sizes = [64, 64], strides = [1, 1]} : vector<576x64xf32> to vector<64x64xf32>
    %cst_20 = arith.constant dense<0.000000e+00> : vector<16x64xf32>
    %75 = tpu.matmul %73, %74, %cst_20 {dimension_numbers = #tpu.dot_dimension_numbers<[1], [0], [0], [1], [0, 0, 1, 1], [], []>} : vector<16x64xf32>, vector<64x64xf32>, vector<16x64xf32> -> vector<16x64xf32>
    %76 = vector.extract_strided_slice %72 {offsets = [16, 0], sizes = [16, 64], strides = [1, 1]} : vector<144x64xf32> to vector<16x64xf32>
    %77 = vector.extract_strided_slice %5 {offsets = [64, 0], sizes = [64, 64], strides = [1, 1]} : vector<576x64xf32> to vector<64x64xf32>
    %cst_21 = arith.constant dense<0.000000e+00> : vector<16x64xf32>
    %78 = tpu.matmul %76, %77, %cst_21 {dimension_numbers = #tpu.dot_dimension_numbers<[1], [0], [0], [1], [0, 0, 1, 1], [], []>} : vector<16x64xf32>, vector<64x64xf32>, vector<16x64xf32> -> vector<16x64xf32>
    %79 = arith.addf %75, %78 : vector<16x64xf32>
    %80 = vector.extract_strided_slice %72 {offsets = [32, 0], sizes = [16, 64], strides = [1, 1]} : vector<144x64xf32> to vector<16x64xf32>
    %81 = vector.extract_strided_slice %5 {offsets = [128, 0], sizes = [64, 64], strides = [1, 1]} : vector<576x64xf32> to vector<64x64xf32>
    %cst_22 = arith.constant dense<0.000000e+00> : vector<16x64xf32>
    %82 = tpu.matmul %80, %81, %cst_22 {dimension_numbers = #tpu.dot_dimension_numbers<[1], [0], [0], [1], [0, 0, 1, 1], [], []>} : vector<16x64xf32>, vector<64x64xf32>, vector<16x64xf32> -> vector<16x64xf32>
    %83 = arith.addf %79, %82 : vector<16x64xf32>
    %84 = vector.extract_strided_slice %72 {offsets = [48, 0], sizes = [16, 64], strides = [1, 1]} : vector<144x64xf32> to vector<16x64xf32>
    %85 = vector.extract_strided_slice %5 {offsets = [192, 0], sizes = [64, 64], strides = [1, 1]} : vector<576x64xf32> to vector<64x64xf32>
    %cst_23 = arith.constant dense<0.000000e+00> : vector<16x64xf32>
    %86 = tpu.matmul %84, %85, %cst_23 {dimension_numbers = #tpu.dot_dimension_numbers<[1], [0], [0], [1], [0, 0, 1, 1], [], []>} : vector<16x64xf32>, vector<64x64xf32>, vector<16x64xf32> -> vector<16x64xf32>
    %87 = arith.addf %83, %86 : vector<16x64xf32>
    %88 = vector.extract_strided_slice %72 {offsets = [64, 0], sizes = [16, 64], strides = [1, 1]} : vector<144x64xf32> to vector<16x64xf32>
    %89 = vector.extract_strided_slice %5 {offsets = [256, 0], sizes = [64, 64], strides = [1, 1]} : vector<576x64xf32> to vector<64x64xf32>
    %cst_24 = arith.constant dense<0.000000e+00> : vector<16x64xf32>
    %90 = tpu.matmul %88, %89, %cst_24 {dimension_numbers = #tpu.dot_dimension_numbers<[1], [0], [0], [1], [0, 0, 1, 1], [], []>} : vector<16x64xf32>, vector<64x64xf32>, vector<16x64xf32> -> vector<16x64xf32>
    %91 = arith.addf %87, %90 : vector<16x64xf32>
    %92 = vector.extract_strided_slice %72 {offsets = [80, 0], sizes = [16, 64], strides = [1, 1]} : vector<144x64xf32> to vector<16x64xf32>
    %93 = vector.extract_strided_slice %5 {offsets = [320, 0], sizes = [64, 64], strides = [1, 1]} : vector<576x64xf32> to vector<64x64xf32>
    %cst_25 = arith.constant dense<0.000000e+00> : vector<16x64xf32>
    %94 = tpu.matmul %92, %93, %cst_25 {dimension_numbers = #tpu.dot_dimension_numbers<[1], [0], [0], [1], [0, 0, 1, 1], [], []>} : vector<16x64xf32>, vector<64x64xf32>, vector<16x64xf32> -> vector<16x64xf32>
    %95 = arith.addf %91, %94 : vector<16x64xf32>
    %96 = vector.extract_strided_slice %72 {offsets = [96, 0], sizes = [16, 64], strides = [1, 1]} : vector<144x64xf32> to vector<16x64xf32>
    %97 = vector.extract_strided_slice %5 {offsets = [384, 0], sizes = [64, 64], strides = [1, 1]} : vector<576x64xf32> to vector<64x64xf32>
    %cst_26 = arith.constant dense<0.000000e+00> : vector<16x64xf32>
    %98 = tpu.matmul %96, %97, %cst_26 {dimension_numbers = #tpu.dot_dimension_numbers<[1], [0], [0], [1], [0, 0, 1, 1], [], []>} : vector<16x64xf32>, vector<64x64xf32>, vector<16x64xf32> -> vector<16x64xf32>
    %99 = arith.addf %95, %98 : vector<16x64xf32>
    %100 = vector.extract_strided_slice %72 {offsets = [112, 0], sizes = [16, 64], strides = [1, 1]} : vector<144x64xf32> to vector<16x64xf32>
    %101 = vector.extract_strided_slice %5 {offsets = [448, 0], sizes = [64, 64], strides = [1, 1]} : vector<576x64xf32> to vector<64x64xf32>
    %cst_27 = arith.constant dense<0.000000e+00> : vector<16x64xf32>
    %102 = tpu.matmul %100, %101, %cst_27 {dimension_numbers = #tpu.dot_dimension_numbers<[1], [0], [0], [1], [0, 0, 1, 1], [], []>} : vector<16x64xf32>, vector<64x64xf32>, vector<16x64xf32> -> vector<16x64xf32>
    %103 = arith.addf %99, %102 : vector<16x64xf32>
    %104 = vector.extract_strided_slice %72 {offsets = [128, 0], sizes = [16, 64], strides = [1, 1]} : vector<144x64xf32> to vector<16x64xf32>
    %105 = vector.extract_strided_slice %5 {offsets = [512, 0], sizes = [64, 64], strides = [1, 1]} : vector<576x64xf32> to vector<64x64xf32>
    %cst_28 = arith.constant dense<0.000000e+00> : vector<16x64xf32>
    %106 = tpu.matmul %104, %105, %cst_28 {dimension_numbers = #tpu.dot_dimension_numbers<[1], [0], [0], [1], [0, 0, 1, 1], [], []>} : vector<16x64xf32>, vector<64x64xf32>, vector<16x64xf32> -> vector<16x64xf32>
    %107 = arith.addf %103, %106 : vector<16x64xf32>
    %108 = vector.broadcast %7 : vector<1x64xf32> to vector<16x64xf32>
    %109 = arith.addf %107, %108 : vector<16x64xf32>
    %cst_29 = arith.constant 0.000000e+00 : f32
    %110 = vector.broadcast %cst_29 : f32 to vector<16x64xf32>
    %111 = arith.cmpf ogt, %109, %110 : vector<16x64xf32>
    %cst_30 = arith.constant 0.00999999977 : f32
    %112 = vector.broadcast %cst_30 : f32 to vector<16x64xf32>
    %113 = arith.mulf %112, %109 : vector<16x64xf32>
    %114 = arith.select %111, %109, %113 : vector<16x64xi1>, vector<16x64xf32>
    %115 = vector.broadcast %9 : vector<16x1xf32> to vector<16x64xf32>
    %116 = arith.mulf %114, %115 : vector<16x64xf32>
    %cst_31 = arith.constant dense<0.000000e+00> : vector<64xf32>
    %117 = vector.multi_reduction <add>, %116, %cst_31 [0] : vector<16x64xf32> to vector<64xf32>
    %118 = vector.shape_cast %117 : vector<64xf32> to vector<1x64xf32>
    %c1 = arith.constant 1 : index
    %c0_32 = arith.constant 0 : index
    %c0_33 = arith.constant 0 : index
    %119 = vector.load %arg1[%c1, %c0_32, %c0_33] : memref<2x324x9xf32, #tpu.memory_space<vmem>>, vector<1x324x9xf32>
    %120 = vector.shape_cast %119 : vector<1x324x9xf32> to vector<324x9xf32>
    %121 = vector.extract_strided_slice %120 {offsets = [0, 0], sizes = [324, 1], strides = [1, 1]} : vector<324x9xf32> to vector<324x1xf32>
    %122 = vector.extract_strided_slice %1 {offsets = [0, 0], sizes = [1, 64], strides = [1, 1]} : vector<9x64xf32> to vector<1x64xf32>
    %123 = vector.broadcast %121 : vector<324x1xf32> to vector<324x64xf32>
    %124 = vector.broadcast %122 : vector<1x64xf32> to vector<324x64xf32>
    %125 = arith.mulf %123, %124 : vector<324x64xf32>
    %126 = vector.extract_strided_slice %120 {offsets = [0, 1], sizes = [324, 1], strides = [1, 1]} : vector<324x9xf32> to vector<324x1xf32>
    %127 = vector.extract_strided_slice %1 {offsets = [1, 0], sizes = [1, 64], strides = [1, 1]} : vector<9x64xf32> to vector<1x64xf32>
    %128 = vector.broadcast %126 : vector<324x1xf32> to vector<324x64xf32>
    %129 = vector.broadcast %127 : vector<1x64xf32> to vector<324x64xf32>
    %130 = arith.mulf %128, %129 : vector<324x64xf32>
    %131 = arith.addf %125, %130 : vector<324x64xf32>
    %132 = vector.extract_strided_slice %120 {offsets = [0, 2], sizes = [324, 1], strides = [1, 1]} : vector<324x9xf32> to vector<324x1xf32>
    %133 = vector.extract_strided_slice %1 {offsets = [2, 0], sizes = [1, 64], strides = [1, 1]} : vector<9x64xf32> to vector<1x64xf32>
    %134 = vector.broadcast %132 : vector<324x1xf32> to vector<324x64xf32>
    %135 = vector.broadcast %133 : vector<1x64xf32> to vector<324x64xf32>
    %136 = arith.mulf %134, %135 : vector<324x64xf32>
    %137 = arith.addf %131, %136 : vector<324x64xf32>
    %138 = vector.extract_strided_slice %120 {offsets = [0, 3], sizes = [324, 1], strides = [1, 1]} : vector<324x9xf32> to vector<324x1xf32>
    %139 = vector.extract_strided_slice %1 {offsets = [3, 0], sizes = [1, 64], strides = [1, 1]} : vector<9x64xf32> to vector<1x64xf32>
    %140 = vector.broadcast %138 : vector<324x1xf32> to vector<324x64xf32>
    %141 = vector.broadcast %139 : vector<1x64xf32> to vector<324x64xf32>
    %142 = arith.mulf %140, %141 : vector<324x64xf32>
    %143 = arith.addf %137, %142 : vector<324x64xf32>
    %144 = vector.extract_strided_slice %120 {offsets = [0, 4], sizes = [324, 1], strides = [1, 1]} : vector<324x9xf32> to vector<324x1xf32>
    %145 = vector.extract_strided_slice %1 {offsets = [4, 0], sizes = [1, 64], strides = [1, 1]} : vector<9x64xf32> to vector<1x64xf32>
    %146 = vector.broadcast %144 : vector<324x1xf32> to vector<324x64xf32>
    %147 = vector.broadcast %145 : vector<1x64xf32> to vector<324x64xf32>
    %148 = arith.mulf %146, %147 : vector<324x64xf32>
    %149 = arith.addf %143, %148 : vector<324x64xf32>
    %150 = vector.extract_strided_slice %120 {offsets = [0, 5], sizes = [324, 1], strides = [1, 1]} : vector<324x9xf32> to vector<324x1xf32>
    %151 = vector.extract_strided_slice %1 {offsets = [5, 0], sizes = [1, 64], strides = [1, 1]} : vector<9x64xf32> to vector<1x64xf32>
    %152 = vector.broadcast %150 : vector<324x1xf32> to vector<324x64xf32>
    %153 = vector.broadcast %151 : vector<1x64xf32> to vector<324x64xf32>
    %154 = arith.mulf %152, %153 : vector<324x64xf32>
    %155 = arith.addf %149, %154 : vector<324x64xf32>
    %156 = vector.extract_strided_slice %120 {offsets = [0, 6], sizes = [324, 1], strides = [1, 1]} : vector<324x9xf32> to vector<324x1xf32>
    %157 = vector.extract_strided_slice %1 {offsets = [6, 0], sizes = [1, 64], strides = [1, 1]} : vector<9x64xf32> to vector<1x64xf32>
    %158 = vector.broadcast %156 : vector<324x1xf32> to vector<324x64xf32>
    %159 = vector.broadcast %157 : vector<1x64xf32> to vector<324x64xf32>
    %160 = arith.mulf %158, %159 : vector<324x64xf32>
    %161 = arith.addf %155, %160 : vector<324x64xf32>
    %162 = vector.extract_strided_slice %120 {offsets = [0, 7], sizes = [324, 1], strides = [1, 1]} : vector<324x9xf32> to vector<324x1xf32>
    %163 = vector.extract_strided_slice %1 {offsets = [7, 0], sizes = [1, 64], strides = [1, 1]} : vector<9x64xf32> to vector<1x64xf32>
    %164 = vector.broadcast %162 : vector<324x1xf32> to vector<324x64xf32>
    %165 = vector.broadcast %163 : vector<1x64xf32> to vector<324x64xf32>
    %166 = arith.mulf %164, %165 : vector<324x64xf32>
    %167 = arith.addf %161, %166 : vector<324x64xf32>
    %168 = vector.extract_strided_slice %120 {offsets = [0, 8], sizes = [324, 1], strides = [1, 1]} : vector<324x9xf32> to vector<324x1xf32>
    %169 = vector.extract_strided_slice %1 {offsets = [8, 0], sizes = [1, 64], strides = [1, 1]} : vector<9x64xf32> to vector<1x64xf32>
    %170 = vector.broadcast %168 : vector<324x1xf32> to vector<324x64xf32>
    %171 = vector.broadcast %169 : vector<1x64xf32> to vector<324x64xf32>
    %172 = arith.mulf %170, %171 : vector<324x64xf32>
    %173 = arith.addf %167, %172 : vector<324x64xf32>
    %174 = vector.broadcast %3 : vector<1x64xf32> to vector<324x64xf32>
    %175 = arith.addf %173, %174 : vector<324x64xf32>
    %cst_34 = arith.constant 0.000000e+00 : f32
    %176 = vector.broadcast %cst_34 : f32 to vector<324x64xf32>
    %177 = arith.cmpf ogt, %175, %176 : vector<324x64xf32>
    %cst_35 = arith.constant 0.00999999977 : f32
    %178 = vector.broadcast %cst_35 : f32 to vector<324x64xf32>
    %179 = arith.mulf %178, %175 : vector<324x64xf32>
    %180 = arith.select %177, %175, %179 : vector<324x64xi1>, vector<324x64xf32>
    %cst_36 = arith.constant dense<0.000000e+00> : vector<144x64xf32>
    %181 = tpu.matmul %8, %180, %cst_36 {dimension_numbers = #tpu.dot_dimension_numbers<[1], [0], [0], [1], [0, 0, 1, 1], [], []>} : vector<144x324xf32>, vector<324x64xf32>, vector<144x64xf32> -> vector<144x64xf32>
    %182 = vector.extract_strided_slice %181 {offsets = [0, 0], sizes = [16, 64], strides = [1, 1]} : vector<144x64xf32> to vector<16x64xf32>
    %183 = vector.extract_strided_slice %5 {offsets = [0, 0], sizes = [64, 64], strides = [1, 1]} : vector<576x64xf32> to vector<64x64xf32>
    %cst_37 = arith.constant dense<0.000000e+00> : vector<16x64xf32>
    %184 = tpu.matmul %182, %183, %cst_37 {dimension_numbers = #tpu.dot_dimension_numbers<[1], [0], [0], [1], [0, 0, 1, 1], [], []>} : vector<16x64xf32>, vector<64x64xf32>, vector<16x64xf32> -> vector<16x64xf32>
    %185 = vector.extract_strided_slice %181 {offsets = [16, 0], sizes = [16, 64], strides = [1, 1]} : vector<144x64xf32> to vector<16x64xf32>
    %186 = vector.extract_strided_slice %5 {offsets = [64, 0], sizes = [64, 64], strides = [1, 1]} : vector<576x64xf32> to vector<64x64xf32>
    %cst_38 = arith.constant dense<0.000000e+00> : vector<16x64xf32>
    %187 = tpu.matmul %185, %186, %cst_38 {dimension_numbers = #tpu.dot_dimension_numbers<[1], [0], [0], [1], [0, 0, 1, 1], [], []>} : vector<16x64xf32>, vector<64x64xf32>, vector<16x64xf32> -> vector<16x64xf32>
    %188 = arith.addf %184, %187 : vector<16x64xf32>
    %189 = vector.extract_strided_slice %181 {offsets = [32, 0], sizes = [16, 64], strides = [1, 1]} : vector<144x64xf32> to vector<16x64xf32>
    %190 = vector.extract_strided_slice %5 {offsets = [128, 0], sizes = [64, 64], strides = [1, 1]} : vector<576x64xf32> to vector<64x64xf32>
    %cst_39 = arith.constant dense<0.000000e+00> : vector<16x64xf32>
    %191 = tpu.matmul %189, %190, %cst_39 {dimension_numbers = #tpu.dot_dimension_numbers<[1], [0], [0], [1], [0, 0, 1, 1], [], []>} : vector<16x64xf32>, vector<64x64xf32>, vector<16x64xf32> -> vector<16x64xf32>
    %192 = arith.addf %188, %191 : vector<16x64xf32>
    %193 = vector.extract_strided_slice %181 {offsets = [48, 0], sizes = [16, 64], strides = [1, 1]} : vector<144x64xf32> to vector<16x64xf32>
    %194 = vector.extract_strided_slice %5 {offsets = [192, 0], sizes = [64, 64], strides = [1, 1]} : vector<576x64xf32> to vector<64x64xf32>
    %cst_40 = arith.constant dense<0.000000e+00> : vector<16x64xf32>
    %195 = tpu.matmul %193, %194, %cst_40 {dimension_numbers = #tpu.dot_dimension_numbers<[1], [0], [0], [1], [0, 0, 1, 1], [], []>} : vector<16x64xf32>, vector<64x64xf32>, vector<16x64xf32> -> vector<16x64xf32>
    %196 = arith.addf %192, %195 : vector<16x64xf32>
    %197 = vector.extract_strided_slice %181 {offsets = [64, 0], sizes = [16, 64], strides = [1, 1]} : vector<144x64xf32> to vector<16x64xf32>
    %198 = vector.extract_strided_slice %5 {offsets = [256, 0], sizes = [64, 64], strides = [1, 1]} : vector<576x64xf32> to vector<64x64xf32>
    %cst_41 = arith.constant dense<0.000000e+00> : vector<16x64xf32>
    %199 = tpu.matmul %197, %198, %cst_41 {dimension_numbers = #tpu.dot_dimension_numbers<[1], [0], [0], [1], [0, 0, 1, 1], [], []>} : vector<16x64xf32>, vector<64x64xf32>, vector<16x64xf32> -> vector<16x64xf32>
    %200 = arith.addf %196, %199 : vector<16x64xf32>
    %201 = vector.extract_strided_slice %181 {offsets = [80, 0], sizes = [16, 64], strides = [1, 1]} : vector<144x64xf32> to vector<16x64xf32>
    %202 = vector.extract_strided_slice %5 {offsets = [320, 0], sizes = [64, 64], strides = [1, 1]} : vector<576x64xf32> to vector<64x64xf32>
    %cst_42 = arith.constant dense<0.000000e+00> : vector<16x64xf32>
    %203 = tpu.matmul %201, %202, %cst_42 {dimension_numbers = #tpu.dot_dimension_numbers<[1], [0], [0], [1], [0, 0, 1, 1], [], []>} : vector<16x64xf32>, vector<64x64xf32>, vector<16x64xf32> -> vector<16x64xf32>
    %204 = arith.addf %200, %203 : vector<16x64xf32>
    %205 = vector.extract_strided_slice %181 {offsets = [96, 0], sizes = [16, 64], strides = [1, 1]} : vector<144x64xf32> to vector<16x64xf32>
    %206 = vector.extract_strided_slice %5 {offsets = [384, 0], sizes = [64, 64], strides = [1, 1]} : vector<576x64xf32> to vector<64x64xf32>
    %cst_43 = arith.constant dense<0.000000e+00> : vector<16x64xf32>
    %207 = tpu.matmul %205, %206, %cst_43 {dimension_numbers = #tpu.dot_dimension_numbers<[1], [0], [0], [1], [0, 0, 1, 1], [], []>} : vector<16x64xf32>, vector<64x64xf32>, vector<16x64xf32> -> vector<16x64xf32>
    %208 = arith.addf %204, %207 : vector<16x64xf32>
    %209 = vector.extract_strided_slice %181 {offsets = [112, 0], sizes = [16, 64], strides = [1, 1]} : vector<144x64xf32> to vector<16x64xf32>
    %210 = vector.extract_strided_slice %5 {offsets = [448, 0], sizes = [64, 64], strides = [1, 1]} : vector<576x64xf32> to vector<64x64xf32>
    %cst_44 = arith.constant dense<0.000000e+00> : vector<16x64xf32>
    %211 = tpu.matmul %209, %210, %cst_44 {dimension_numbers = #tpu.dot_dimension_numbers<[1], [0], [0], [1], [0, 0, 1, 1], [], []>} : vector<16x64xf32>, vector<64x64xf32>, vector<16x64xf32> -> vector<16x64xf32>
    %212 = arith.addf %208, %211 : vector<16x64xf32>
    %213 = vector.extract_strided_slice %181 {offsets = [128, 0], sizes = [16, 64], strides = [1, 1]} : vector<144x64xf32> to vector<16x64xf32>
    %214 = vector.extract_strided_slice %5 {offsets = [512, 0], sizes = [64, 64], strides = [1, 1]} : vector<576x64xf32> to vector<64x64xf32>
    %cst_45 = arith.constant dense<0.000000e+00> : vector<16x64xf32>
    %215 = tpu.matmul %213, %214, %cst_45 {dimension_numbers = #tpu.dot_dimension_numbers<[1], [0], [0], [1], [0, 0, 1, 1], [], []>} : vector<16x64xf32>, vector<64x64xf32>, vector<16x64xf32> -> vector<16x64xf32>
    %216 = arith.addf %212, %215 : vector<16x64xf32>
    %217 = vector.broadcast %7 : vector<1x64xf32> to vector<16x64xf32>
    %218 = arith.addf %216, %217 : vector<16x64xf32>
    %cst_46 = arith.constant 0.000000e+00 : f32
    %219 = vector.broadcast %cst_46 : f32 to vector<16x64xf32>
    %220 = arith.cmpf ogt, %218, %219 : vector<16x64xf32>
    %cst_47 = arith.constant 0.00999999977 : f32
    %221 = vector.broadcast %cst_47 : f32 to vector<16x64xf32>
    %222 = arith.mulf %221, %218 : vector<16x64xf32>
    %223 = arith.select %220, %218, %222 : vector<16x64xi1>, vector<16x64xf32>
    %224 = vector.broadcast %9 : vector<16x1xf32> to vector<16x64xf32>
    %225 = arith.mulf %223, %224 : vector<16x64xf32>
    %cst_48 = arith.constant dense<0.000000e+00> : vector<64xf32>
    %226 = vector.multi_reduction <add>, %225, %cst_48 [0] : vector<16x64xf32> to vector<64xf32>
    %227 = vector.shape_cast %226 : vector<64xf32> to vector<1x64xf32>
    %228 = tpu.concatenate %118, %227 in 0 : vector<1x64xf32>, vector<1x64xf32> -> vector<2x64xf32>
    %c0_49 = arith.constant 0 : index
    %c0_50 = arith.constant 0 : index
    %229 = vector.load %arg2[%c0_49, %c0_50] : memref<2x6xf32, #tpu.memory_space<vmem>>, vector<2x6xf32>
    %c0_51 = arith.constant 0 : index
    %c0_52 = arith.constant 0 : index
    %c0_53 = arith.constant 0 : index
    %230 = vector.load %arg9[%c0_51, %c0_52, %c0_53] : memref<1x64x64xf32, #tpu.memory_space<vmem>>, vector<1x64x64xf32>
    %231 = vector.shape_cast %230 : vector<1x64x64xf32> to vector<64x64xf32>
    %cst_54 = arith.constant dense<0.000000e+00> : vector<2x64xf32>
    %232 = tpu.matmul %228, %231, %cst_54 {dimension_numbers = #tpu.dot_dimension_numbers<[1], [0], [0], [1], [0, 0, 1, 1], [], []>} : vector<2x64xf32>, vector<64x64xf32>, vector<2x64xf32> -> vector<2x64xf32>
    %c0_55 = arith.constant 0 : index
    %c0_56 = arith.constant 0 : index
    %c0_57 = arith.constant 0 : index
    %233 = vector.load %arg10[%c0_55, %c0_56, %c0_57] : memref<1x1x64xf32, #tpu.memory_space<vmem>>, vector<1x1x64xf32>
    %234 = vector.shape_cast %233 : vector<1x1x64xf32> to vector<1x64xf32>
    %235 = vector.broadcast %234 : vector<1x64xf32> to vector<2x64xf32>
    %236 = arith.addf %232, %235 : vector<2x64xf32>
    %cst_58 = arith.constant 0.000000e+00 : f32
    %237 = vector.broadcast %cst_58 : f32 to vector<2x64xf32>
    %238 = arith.cmpf ogt, %236, %237 : vector<2x64xf32>
    %cst_59 = arith.constant 0.00999999977 : f32
    %239 = vector.broadcast %cst_59 : f32 to vector<2x64xf32>
    %240 = arith.mulf %239, %236 : vector<2x64xf32>
    %241 = arith.select %238, %236, %240 : vector<2x64xi1>, vector<2x64xf32>
    %c0_60 = arith.constant 0 : index
    %c0_61 = arith.constant 0 : index
    %c0_62 = arith.constant 0 : index
    %242 = vector.load %arg11[%c0_60, %c0_61, %c0_62] : memref<1x64x32xf32, #tpu.memory_space<vmem>>, vector<1x64x32xf32>
    %243 = vector.shape_cast %242 : vector<1x64x32xf32> to vector<64x32xf32>
    %cst_63 = arith.constant dense<0.000000e+00> : vector<2x32xf32>
    %244 = tpu.matmul %241, %243, %cst_63 {dimension_numbers = #tpu.dot_dimension_numbers<[1], [0], [0], [1], [0, 0, 1, 1], [], []>} : vector<2x64xf32>, vector<64x32xf32>, vector<2x32xf32> -> vector<2x32xf32>
    %c0_64 = arith.constant 0 : index
    %c0_65 = arith.constant 0 : index
    %c0_66 = arith.constant 0 : index
    %245 = vector.load %arg12[%c0_64, %c0_65, %c0_66] : memref<1x1x32xf32, #tpu.memory_space<vmem>>, vector<1x1x32xf32>
    %246 = vector.shape_cast %245 : vector<1x1x32xf32> to vector<1x32xf32>
    %247 = vector.broadcast %246 : vector<1x32xf32> to vector<2x32xf32>
    %248 = arith.addf %244, %247 : vector<2x32xf32>
    %cst_67 = arith.constant 0.000000e+00 : f32
    %249 = vector.broadcast %cst_67 : f32 to vector<2x32xf32>
    %250 = arith.cmpf ogt, %248, %249 : vector<2x32xf32>
    %cst_68 = arith.constant 0.00999999977 : f32
    %251 = vector.broadcast %cst_68 : f32 to vector<2x32xf32>
    %252 = arith.mulf %251, %248 : vector<2x32xf32>
    %253 = arith.select %250, %248, %252 : vector<2x32xi1>, vector<2x32xf32>
    %c0_69 = arith.constant 0 : index
    %c0_70 = arith.constant 0 : index
    %c0_71 = arith.constant 0 : index
    %254 = vector.load %arg13[%c0_69, %c0_70, %c0_71] : memref<1x6x32xf32, #tpu.memory_space<vmem>>, vector<1x6x32xf32>
    %255 = vector.shape_cast %254 : vector<1x6x32xf32> to vector<6x32xf32>
    %cst_72 = arith.constant dense<0.000000e+00> : vector<2x32xf32>
    %256 = tpu.matmul %229, %255, %cst_72 {dimension_numbers = #tpu.dot_dimension_numbers<[1], [0], [0], [1], [0, 0, 1, 1], [], []>} : vector<2x6xf32>, vector<6x32xf32>, vector<2x32xf32> -> vector<2x32xf32>
    %c0_73 = arith.constant 0 : index
    %c0_74 = arith.constant 0 : index
    %c0_75 = arith.constant 0 : index
    %257 = vector.load %arg14[%c0_73, %c0_74, %c0_75] : memref<1x1x32xf32, #tpu.memory_space<vmem>>, vector<1x1x32xf32>
    %258 = vector.shape_cast %257 : vector<1x1x32xf32> to vector<1x32xf32>
    %259 = vector.broadcast %258 : vector<1x32xf32> to vector<2x32xf32>
    %260 = arith.addf %256, %259 : vector<2x32xf32>
    %cst_76 = arith.constant 0.000000e+00 : f32
    %261 = vector.broadcast %cst_76 : f32 to vector<2x32xf32>
    %262 = arith.cmpf ogt, %260, %261 : vector<2x32xf32>
    %cst_77 = arith.constant 0.00999999977 : f32
    %263 = vector.broadcast %cst_77 : f32 to vector<2x32xf32>
    %264 = arith.mulf %263, %260 : vector<2x32xf32>
    %265 = arith.select %262, %260, %264 : vector<2x32xi1>, vector<2x32xf32>
    %c0_78 = arith.constant 0 : index
    %c0_79 = arith.constant 0 : index
    %c0_80 = arith.constant 0 : index
    %266 = vector.load %arg15[%c0_78, %c0_79, %c0_80] : memref<1x32x32xf32, #tpu.memory_space<vmem>>, vector<1x32x32xf32>
    %267 = vector.shape_cast %266 : vector<1x32x32xf32> to vector<32x32xf32>
    %cst_81 = arith.constant dense<0.000000e+00> : vector<2x32xf32>
    %268 = tpu.matmul %265, %267, %cst_81 {dimension_numbers = #tpu.dot_dimension_numbers<[1], [0], [0], [1], [0, 0, 1, 1], [], []>} : vector<2x32xf32>, vector<32x32xf32>, vector<2x32xf32> -> vector<2x32xf32>
    %c0_82 = arith.constant 0 : index
    %c0_83 = arith.constant 0 : index
    %c0_84 = arith.constant 0 : index
    %269 = vector.load %arg16[%c0_82, %c0_83, %c0_84] : memref<1x1x32xf32, #tpu.memory_space<vmem>>, vector<1x1x32xf32>
    %270 = vector.shape_cast %269 : vector<1x1x32xf32> to vector<1x32xf32>
    %271 = vector.broadcast %270 : vector<1x32xf32> to vector<2x32xf32>
    %272 = arith.addf %268, %271 : vector<2x32xf32>
    %cst_85 = arith.constant 0.000000e+00 : f32
    %273 = vector.broadcast %cst_85 : f32 to vector<2x32xf32>
    %274 = arith.cmpf ogt, %272, %273 : vector<2x32xf32>
    %cst_86 = arith.constant 0.00999999977 : f32
    %275 = vector.broadcast %cst_86 : f32 to vector<2x32xf32>
    %276 = arith.mulf %275, %272 : vector<2x32xf32>
    %277 = arith.select %274, %272, %276 : vector<2x32xi1>, vector<2x32xf32>
    %c0_87 = arith.constant 0 : index
    %c0_88 = arith.constant 0 : index
    %c0_89 = arith.constant 0 : index
    %278 = vector.load %arg17[%c0_87, %c0_88, %c0_89] : memref<1x32x32xf32, #tpu.memory_space<vmem>>, vector<1x32x32xf32>
    %279 = vector.shape_cast %278 : vector<1x32x32xf32> to vector<32x32xf32>
    %cst_90 = arith.constant dense<0.000000e+00> : vector<2x32xf32>
    %280 = tpu.matmul %277, %279, %cst_90 {dimension_numbers = #tpu.dot_dimension_numbers<[1], [0], [0], [1], [0, 0, 1, 1], [], []>} : vector<2x32xf32>, vector<32x32xf32>, vector<2x32xf32> -> vector<2x32xf32>
    %c0_91 = arith.constant 0 : index
    %c0_92 = arith.constant 0 : index
    %c0_93 = arith.constant 0 : index
    %281 = vector.load %arg18[%c0_91, %c0_92, %c0_93] : memref<1x1x32xf32, #tpu.memory_space<vmem>>, vector<1x1x32xf32>
    %282 = vector.shape_cast %281 : vector<1x1x32xf32> to vector<1x32xf32>
    %283 = vector.broadcast %282 : vector<1x32xf32> to vector<2x32xf32>
    %284 = arith.addf %280, %283 : vector<2x32xf32>
    %cst_94 = arith.constant 0.000000e+00 : f32
    %285 = vector.broadcast %cst_94 : f32 to vector<2x32xf32>
    %286 = arith.cmpf ogt, %284, %285 : vector<2x32xf32>
    %cst_95 = arith.constant 0.00999999977 : f32
    %287 = vector.broadcast %cst_95 : f32 to vector<2x32xf32>
    %288 = arith.mulf %287, %284 : vector<2x32xf32>
    %289 = arith.select %286, %284, %288 : vector<2x32xi1>, vector<2x32xf32>
    %290 = tpu.concatenate %253, %289 in 1 : vector<2x32xf32>, vector<2x32xf32> -> vector<2x64xf32>
    %c0_96 = arith.constant 0 : index
    %c0_97 = arith.constant 0 : index
    %c0_98 = arith.constant 0 : index
    %291 = vector.load %arg19[%c0_96, %c0_97, %c0_98] : memref<1x64x32xf32, #tpu.memory_space<vmem>>, vector<1x64x32xf32>
    %292 = vector.shape_cast %291 : vector<1x64x32xf32> to vector<64x32xf32>
    %cst_99 = arith.constant dense<0.000000e+00> : vector<2x32xf32>
    %293 = tpu.matmul %290, %292, %cst_99 {dimension_numbers = #tpu.dot_dimension_numbers<[1], [0], [0], [1], [0, 0, 1, 1], [], []>} : vector<2x64xf32>, vector<64x32xf32>, vector<2x32xf32> -> vector<2x32xf32>
    %c0_100 = arith.constant 0 : index
    %c0_101 = arith.constant 0 : index
    %c0_102 = arith.constant 0 : index
    %294 = vector.load %arg20[%c0_100, %c0_101, %c0_102] : memref<1x1x32xf32, #tpu.memory_space<vmem>>, vector<1x1x32xf32>
    %295 = vector.shape_cast %294 : vector<1x1x32xf32> to vector<1x32xf32>
    %296 = vector.broadcast %295 : vector<1x32xf32> to vector<2x32xf32>
    %297 = arith.addf %293, %296 : vector<2x32xf32>
    %cst_103 = arith.constant 0.000000e+00 : f32
    %298 = vector.broadcast %cst_103 : f32 to vector<2x32xf32>
    %299 = arith.cmpf ogt, %297, %298 : vector<2x32xf32>
    %cst_104 = arith.constant 0.00999999977 : f32
    %300 = vector.broadcast %cst_104 : f32 to vector<2x32xf32>
    %301 = arith.mulf %300, %297 : vector<2x32xf32>
    %302 = arith.select %299, %297, %301 : vector<2x32xi1>, vector<2x32xf32>
    %c0_105 = arith.constant 0 : index
    %c0_106 = arith.constant 0 : index
    %c0_107 = arith.constant 0 : index
    %303 = vector.load %arg21[%c0_105, %c0_106, %c0_107] : memref<1x32x16xf32, #tpu.memory_space<vmem>>, vector<1x32x16xf32>
    %304 = vector.shape_cast %303 : vector<1x32x16xf32> to vector<32x16xf32>
    %cst_108 = arith.constant dense<0.000000e+00> : vector<2x16xf32>
    %305 = tpu.matmul %302, %304, %cst_108 {dimension_numbers = #tpu.dot_dimension_numbers<[1], [0], [0], [1], [0, 0, 1, 1], [], []>} : vector<2x32xf32>, vector<32x16xf32>, vector<2x16xf32> -> vector<2x16xf32>
    %c0_109 = arith.constant 0 : index
    %c0_110 = arith.constant 0 : index
    %c0_111 = arith.constant 0 : index
    %306 = vector.load %arg22[%c0_109, %c0_110, %c0_111] : memref<1x1x16xf32, #tpu.memory_space<vmem>>, vector<1x1x16xf32>
    %307 = vector.shape_cast %306 : vector<1x1x16xf32> to vector<1x16xf32>
    %308 = vector.broadcast %307 : vector<1x16xf32> to vector<2x16xf32>
    %309 = arith.addf %305, %308 : vector<2x16xf32>
    %cst_112 = arith.constant 0.000000e+00 : f32
    %310 = vector.broadcast %cst_112 : f32 to vector<2x16xf32>
    %311 = arith.cmpf ogt, %309, %310 : vector<2x16xf32>
    %cst_113 = arith.constant 0.00999999977 : f32
    %312 = vector.broadcast %cst_113 : f32 to vector<2x16xf32>
    %313 = arith.mulf %312, %309 : vector<2x16xf32>
    %314 = arith.select %311, %309, %313 : vector<2x16xi1>, vector<2x16xf32>
    %c0_114 = arith.constant 0 : index
    %c0_115 = arith.constant 0 : index
    %c0_116 = arith.constant 0 : index
    %315 = vector.load %arg23[%c0_114, %c0_115, %c0_116] : memref<1x16x1xf32, #tpu.memory_space<vmem>>, vector<1x16x1xf32>
    %316 = vector.shape_cast %315 : vector<1x16x1xf32> to vector<16x1xf32>
    %cst_117 = arith.constant dense<0.000000e+00> : vector<2x1xf32>
    %317 = tpu.matmul %314, %316, %cst_117 {dimension_numbers = #tpu.dot_dimension_numbers<[1], [0], [0], [1], [0, 0, 1, 1], [], []>} : vector<2x16xf32>, vector<16x1xf32>, vector<2x1xf32> -> vector<2x1xf32>
    %c0_118 = arith.constant 0 : index
    %c0_119 = arith.constant 0 : index
    %c0_120 = arith.constant 0 : index
    %318 = vector.load %arg24[%c0_118, %c0_119, %c0_120] : memref<1x1x1xf32, #tpu.memory_space<vmem>>, vector<1x1x1xf32>
    %319 = vector.shape_cast %318 : vector<1x1x1xf32> to vector<1x1xf32>
    %320 = vector.broadcast %319 : vector<1x1xf32> to vector<2x1xf32>
    %321 = arith.addf %317, %320 : vector<2x1xf32>
    %c0_121 = arith.constant 0 : index
    %c0_122 = arith.constant 0 : index
    %c0_123 = arith.constant 0 : index
    %322 = vector.load %arg25[%c0_121, %c0_122, %c0_123] : memref<1x2x1xf32, #tpu.memory_space<vmem>>, vector<1x2x1xf32>
    %323 = vector.shape_cast %322 : vector<1x2x1xf32> to vector<2x1xf32>
    %324 = vector.shape_cast %321 : vector<2x1xf32> to vector<1x2x1xf32>
    tpu.vector_store %arg25[%c0_121, %c0_122, %c0_123], %324 {strides = array<i32>} : memref<1x2x1xf32, #tpu.memory_space<vmem>>, vector<1x2x1xf32>,
    return
  }
  func.func @transform_0(%arg0: i32) -> (i32, i32, i32) {
    %c0_i32 = arith.constant 0 : i32
    %c0_i32_0 = arith.constant 0 : i32
    %c0_i32_1 = arith.constant 0 : i32
    %c0_i32_2 = arith.constant 0 : i32
    return %c0_i32, %c0_i32_0, %c0_i32_1 : i32, i32, i32
  }
  func.func @transform_1(%arg0: i32) -> (i32, i32) {
    %c0_i32 = arith.constant 0 : i32
    %c0_i32_0 = arith.constant 0 : i32
    %c0_i32_1 = arith.constant 0 : i32
    return %c0_i32, %c0_i32_0 : i32, i32
  }
  func.func @transform_2(%arg0: i32) -> (i32, i32) {
    %c0_i32 = arith.constant 0 : i32
    %c0_i32_0 = arith.constant 0 : i32
    %c0_i32_1 = arith.constant 0 : i32
    return %c0_i32, %c0_i32_0 : i32, i32
  }
  func.func @transform_3(%arg0: i32) -> (i32, i32) {
    %c0_i32 = arith.constant 0 : i32
    %c0_i32_0 = arith.constant 0 : i32
    %c0_i32_1 = arith.constant 0 : i32
    return %c0_i32, %c0_i32_0 : i32, i32
  }
  func.func @transform_4(%arg0: i32) -> (i32, i32, i32) {
    %c0_i32 = arith.constant 0 : i32
    %c0_i32_0 = arith.constant 0 : i32
    %c0_i32_1 = arith.constant 0 : i32
    return %arg0, %c0_i32, %c0_i32_0 : i32, i32, i32
  }
  func.func @transform_5(%arg0: i32) -> (i32, i32, i32) {
    %c0_i32 = arith.constant 0 : i32
    %c0_i32_0 = arith.constant 0 : i32
    %c0_i32_1 = arith.constant 0 : i32
    return %arg0, %c0_i32, %c0_i32_0 : i32, i32, i32
  }
  func.func @transform_6(%arg0: i32) -> (i32, i32, i32) {
    %c0_i32 = arith.constant 0 : i32
    %c0_i32_0 = arith.constant 0 : i32
    %c0_i32_1 = arith.constant 0 : i32
    return %arg0, %c0_i32, %c0_i32_0 : i32, i32, i32
  }
  func.func @transform_7(%arg0: i32) -> (i32, i32, i32) {
    %c0_i32 = arith.constant 0 : i32
    %c0_i32_0 = arith.constant 0 : i32
    %c0_i32_1 = arith.constant 0 : i32
    return %arg0, %c0_i32, %c0_i32_0 : i32, i32, i32
  }
  func.func @transform_8(%arg0: i32) -> (i32, i32, i32) {
    %c0_i32 = arith.constant 0 : i32
    %c0_i32_0 = arith.constant 0 : i32
    %c0_i32_1 = arith.constant 0 : i32
    return %arg0, %c0_i32, %c0_i32_0 : i32, i32, i32
  }
  func.func @transform_9(%arg0: i32) -> (i32, i32, i32) {
    %c0_i32 = arith.constant 0 : i32
    %c0_i32_0 = arith.constant 0 : i32
    %c0_i32_1 = arith.constant 0 : i32
    return %arg0, %c0_i32, %c0_i32_0 : i32, i32, i32
  }
  func.func @transform_10(%arg0: i32) -> (i32, i32, i32) {
    %c0_i32 = arith.constant 0 : i32
    %c0_i32_0 = arith.constant 0 : i32
    %c0_i32_1 = arith.constant 0 : i32
    return %arg0, %c0_i32, %c0_i32_0 : i32, i32, i32
  }
  func.func @transform_11(%arg0: i32) -> (i32, i32, i32) {
    %c0_i32 = arith.constant 0 : i32
    %c0_i32_0 = arith.constant 0 : i32
    %c0_i32_1 = arith.constant 0 : i32
    return %arg0, %c0_i32, %c0_i32_0 : i32, i32, i32
  }
  func.func @transform_12(%arg0: i32) -> (i32, i32, i32) {
    %c0_i32 = arith.constant 0 : i32
    %c0_i32_0 = arith.constant 0 : i32
    %c0_i32_1 = arith.constant 0 : i32
    return %arg0, %c0_i32, %c0_i32_0 : i32, i32, i32
  }
  func.func @transform_13(%arg0: i32) -> (i32, i32, i32) {
    %c0_i32 = arith.constant 0 : i32
    %c0_i32_0 = arith.constant 0 : i32
    %c0_i32_1 = arith.constant 0 : i32
    return %arg0, %c0_i32, %c0_i32_0 : i32, i32, i32
  }
  func.func @transform_14(%arg0: i32) -> (i32, i32, i32) {
    %c0_i32 = arith.constant 0 : i32
    %c0_i32_0 = arith.constant 0 : i32
    %c0_i32_1 = arith.constant 0 : i32
    return %arg0, %c0_i32, %c0_i32_0 : i32, i32, i32
  }
  func.func @transform_15(%arg0: i32) -> (i32, i32, i32) {
    %c0_i32 = arith.constant 0 : i32
    %c0_i32_0 = arith.constant 0 : i32
    %c0_i32_1 = arith.constant 0 : i32
    return %arg0, %c0_i32, %c0_i32_0 : i32, i32, i32
  }
  func.func @transform_16(%arg0: i32) -> (i32, i32, i32) {
    %c0_i32 = arith.constant 0 : i32
    %c0_i32_0 = arith.constant 0 : i32
    %c0_i32_1 = arith.constant 0 : i32
    return %arg0, %c0_i32, %c0_i32_0 : i32, i32, i32
  }
  func.func @transform_17(%arg0: i32) -> (i32, i32, i32) {
    %c0_i32 = arith.constant 0 : i32
    %c0_i32_0 = arith.constant 0 : i32
    %c0_i32_1 = arith.constant 0 : i32
    return %arg0, %c0_i32, %c0_i32_0 : i32, i32, i32
  }
  func.func @transform_18(%arg0: i32) -> (i32, i32, i32) {
    %c0_i32 = arith.constant 0 : i32
    %c0_i32_0 = arith.constant 0 : i32
    %c0_i32_1 = arith.constant 0 : i32
    return %arg0, %c0_i32, %c0_i32_0 : i32, i32, i32
  }
  func.func @transform_19(%arg0: i32) -> (i32, i32, i32) {
    %c0_i32 = arith.constant 0 : i32
    %c0_i32_0 = arith.constant 0 : i32
    %c0_i32_1 = arith.constant 0 : i32
    return %arg0, %c0_i32, %c0_i32_0 : i32, i32, i32
  }
  func.func @transform_20(%arg0: i32) -> (i32, i32, i32) {
    %c0_i32 = arith.constant 0 : i32
    %c0_i32_0 = arith.constant 0 : i32
    %c0_i32_1 = arith.constant 0 : i32
    return %arg0, %c0_i32, %c0_i32_0 : i32, i32, i32
  }
  func.func @transform_21(%arg0: i32) -> (i32, i32, i32) {
    %c0_i32 = arith.constant 0 : i32
    %c0_i32_0 = arith.constant 0 : i32
    %c0_i32_1 = arith.constant 0 : i32
    return %arg0, %c0_i32, %c0_i32_0 : i32, i32, i32
  }
  func.func @transform_22(%arg0: i32) -> (i32, i32, i32) {
    %c0_i32 = arith.constant 0 : i32
    %c0_i32_0 = arith.constant 0 : i32
    %c0_i32_1 = arith.constant 0 : i32
    return %arg0, %c0_i32, %c0_i32_0 : i32, i32, i32
  }
  func.func @transform_23(%arg0: i32) -> (i32, i32, i32) {
    %c0_i32 = arith.constant 0 : i32
    %c0_i32_0 = arith.constant 0 : i32
    %c0_i32_1 = arith.constant 0 : i32
    return %arg0, %c0_i32, %c0_i32_0 : i32, i32, i32
  }
  func.func @transform_24(%arg0: i32) -> (i32, i32, i32) {
    %c0_i32 = arith.constant 0 : i32
    %c0_i32_0 = arith.constant 0 : i32
    %c0_i32_1 = arith.constant 0 : i32
    return %arg0, %c0_i32, %c0_i32_0 : i32, i32, i32
  }
}

</mosaic_0001>

<bundles_post_ra>
// kernel: qnetwork_forward.1
= control target key start
LH: loop header
LB: loop body
LE: loop exit
PB: predicated region body
PF: predicated region fallthrough
CT: control target
= control target key end

     0   :  { %s16984_s0 = inlined_call_operand.vmem [shape: f32[2,324,9], index: 0, kind: input, shape index: {}]   ;;  %s16985_s1 = inlined_call_operand.vmem [shape: f32[2,6], index: 1, kind: input, shape index: {}]   ;;  %s16986_s2 = inlined_call_operand.vmem [shape: f32[144,324], index: 2, kind: input, shape index: {}]   ;;  %s16987_s3 = inlined_call_operand.vmem [shape: f32[16,1], index: 3, kind: input, shape index: {}]   ;;  %s16988_s4 = inlined_call_operand.vmem [shape: f32[2,9,64], index: 4, kind: input, shape index: {}]   ;;  %s16989_s5 = inlined_call_operand.vmem [shape: f32[2,1,64], index: 5, kind: input, shape index: {}]   ;;  %s16990_s6 = inlined_call_operand.vmem [shape: f32[2,576,64], index: 6, kind: input, shape index: {}]   ;;  %s16991_s7 = inlined_call_operand.vmem [shape: f32[2,1,64], index: 7, kind: input, shape index: {}]   ;;  %s16992_s8 = inlined_call_operand.vmem [shape: f32[2,64,64], index: 8, kind: input, shape index: {}]   ;;  %s16993_s9 = inlined_call_operand.vmem [shape: f32[2,1,64], index: 9, kind: input, shape index: {}]   ;;  %s16994_s10 = inlined_call_operand.vmem [shape: f32[2,64,32], index: 10, kind: input, shape index: {}]   ;;  %s16995_s11 = inlined_call_operand.vmem [shape: f32[2,1,32], index: 11, kind: input, shape index: {}]   ;;  %s16996_s12 = inlined_call_operand.vmem [shape: f32[2,6,32], index: 12, kind: input, shape index: {}]   ;;  %s16997_s13 = inlined_call_operand.vmem [shape: f32[2,1,32], index: 13, kind: input, shape index: {}]   ;;  %s16998_s14 = inlined_call_operand.vmem [shape: f32[2,32,32], index: 14, kind: input, shape index: {}]   ;;  %s16999_s15 = inlined_call_operand.vmem [shape: f32[2,1,32], index: 15, kind: input, shape index: {}]   ;;  %s17000_s16 = inlined_call_operand.vmem [shape: f32[2,32,32], index: 16, kind: input, shape index: {}]   ;;  %s17001_s17 = inlined_call_operand.vmem [shape: f32[2,1,32], index: 17, kind: input, shape index: {}]   ;;  %s17002_s18 = inlined_call_operand.vmem [shape: f32[2,64,32], index: 18, kind: input, shape index: {}]   ;;  %s17003_s19 = inlined_call_operand.vmem [shape: f32[2,1,32], index: 19, kind: input, shape index: {}]   ;;  %s17004_s20 = inlined_call_operand.vmem [shape: f32[2,32,16], index: 20, kind: input, shape index: {}]   ;;  %s17005_s21 = inlined_call_operand.vmem [shape: f32[2,1,16], index: 21, kind: input, shape index: {}]   ;;  %s17006_s22 = inlined_call_operand.vmem [shape: f32[2,16,1], index: 22, kind: input, shape index: {}]   ;;  %s17007_s23 = inlined_call_operand.vmem [shape: f32[2,1,1], index: 23, kind: input, shape index: {}]   ;;  %s17008_s24 = inlined_call_operand.vmem [shape: f32[2,2,1], index: 24, kind: output, shape index: {}]  }
   0x1   :  { %17071 = sst [smem:[#allocation257_spill]] %s16984_s0 }
   0x2   :  { %17072 = sst [smem:[#allocation258_spill]] %s16985_s1 }
   0x3   :  { %17073 = sst [smem:[#allocation259_spill]] %s16986_s2 }
   0x4   :  { %17074 = sst [smem:[#allocation260_spill]] %s16987_s3 }
   0x5   :  { %17075 = sst [smem:[#allocation261_spill]] %s16988_s4 }
   0x6   :  { %17076 = sst [smem:[#allocation262_spill]] %s16989_s5  ;;  %s11038_s5 = smov 0  }
   0x7   :  { %17077 = sst [smem:[#allocation263_spill]] %s16990_s6 }
   0x8   :  { %17078 = sst [smem:[#allocation264_spill]] %s16991_s7 }
   0x9   :  { %17079 = sst [smem:[#allocation265_spill]] %s16992_s8 }
   0xa LB: > { %s9257_s26 = sadd.s32 4294967295, %s10899_s5   ;;  %p9261_p0 = scmp.ge.s32.totalorder %s10899_s5, 1  ;;  %s10899_s5 = sphi %s11038_s5, %s34_s5  }
   0xb   : > { %p831_p1 = scmp.lt.s32.totalorder %s10899_s5, 3 }
   0xd   : > { %p832_p2 = pnand %p9261_p0, %p831_p1 }
   0xf   : > { %835 = sbr.rel (%p832_p2) target bundleno = 4191 (0x105f), region = 116 }
  0x14   : > { %s17080_s6 = sld [smem:[#allocation257_spill]]  ;;  %v17020_v2 = vmov 5   ;;  %v17012_v3 = vmov 0   ;;  %v17022_v25 = vmov 4   ;;  %v17014_v32 = vmov 1   ;;  %p970_p3 = scmp.lt.s32.totalorder %s9257_s26, 1 }
  0x15   : > { %10267 = vset.pattern.permute.xlu0 %v17020_v2  ;;  %10262 = vset.pattern.permute.xlu1 %v17012_v3  ;;  %v17018_v36 = vmov 6   ;;  %v17016_v61 = vmov 2   ;;  %v17024_v2 = vmov 8   ;;  %s17241_s8 = sld [smem:[#allocation261_spill]] }
  0x16   : > { %s18019_s26 = smov (!%p970_p3, %s9257_s26), 1  ;;  %s17256_s25 = sld [smem:[#allocation262_spill]] }
  0x17   : > { %s17053_s30 = sshll.u32 %s18019_s26, 4  ;;  %s17654_s0 = sld [smem:[#allocation259_spill]] }
  0x18   : > { %s10241_s27 = smul.u32 576, %s18019_s26  ;;  %s17745_s29 = sld [smem:[#allocation263_spill]] }
  0x19   : > { %s18014_s1 = sld [smem:[#allocation264_spill]]  ;;  %s9269_s2 = sshll.u32 %s18019_s26, 3 }
  0x1a   : > { %v11049_v0 = vld [vmem:[%s17080_s6 + $0x78] sm:$0xff]  ;;  %v11054_v1 = vld [vmem:[%s17080_s6 + $0x10] sm:$0xff]  ;;  %v11075_v6 = vld [vmem:[%s17080_s6 + $0x40] sm:$0xff]  ;;  %s1005_s3 = scalar_lea.vmem %s16996_s12, %s9269_s2  ;;  %s993_s2 = scalar_lea.vmem %s16993_s9, %s18019_s26 }
  0x1b   : > { %2537 = vperm.xlu0 %10267, %v11049_v0   ;;  %1238 = vperm.xlu1 %10262, %v11054_v1   ;;  %v11063_v4 = vld [vmem:[%s17080_s6 + $0x58] sm:$0xff]  ;;  %v11080_v7 = vld [vmem:[%s17080_s6 + $0x28] sm:$0xff]  ;;  %v11087_v8 = vld [vmem:[%s17080_s6 + $0x30] sm:$0xff]  ;;  %s11935_s4 = scalar_lea.vmem %s17241_s8, %s17053_s30 }
  0x1c   : > { %v11068_v5 = vld [vmem:[%s17080_s6 + $0x18] sm:$0xff]  ;;  %v11099_v10 = vld [vmem:[%s17080_s6 + $0x48] sm:$0xff]  ;;  %v11113_v12 = vld [vmem:[%s17080_s6 + $0xe0] sm:$0xff]  ;;  %s12057_s8 = scalar_lea.vmem %s17256_s25, %s18019_s26  ;;  %s17963_s25 = sld [smem:[#allocation260_spill]] }
  0x1d   : > { %v11092_v9 = vld [vmem:[%s17080_s6 + $0x38] sm:$0xff]  ;;  %v11118_v13 = vld [vmem:[%s17080_s6 + $0x68] sm:$0xff]  ;;  %v11132_v15 = vld [vmem:[%s17080_s6 + $0x140] sm:$0xf] }
  0x1e   : > { %v11106_v11 = vld [vmem:[%s17080_s6 + $0xf8] sm:$0xff]  ;;  %v11125_v14 = vld [vmem:[%s17080_s6 + $0xc8] sm:$0xff]  ;;  %v11156_v19 = vld [vmem:[%s17080_s6 + $0x130] sm:$0xff]  ;;  %s14454_s7 = scalar_lea.vmem %s17745_s29, %s10241_s27  ;;  %s16892_s29 = sshll.u32 %s18019_s26, 5 }
  0x1f   : > { %2521 = vperm.xlu0 %10267, %v11063_v4   ;;  %1243 = vperm.xlu1 %10262, %v11068_v5   ;;  %v11137_v16 = vld [vmem:[%s17080_s6 + $0x88] sm:$0xff]  ;;  %v11149_v18 = vld [vmem:[%s17080_s6 + $0x98] sm:$0xff]  ;;  %v11175_v22 = vld [vmem:[%s17080_s6 + $0x90] sm:$0xff]  ;;  %s985_s27 = scalar_lea.vmem %s18014_s1, %s18019_s26  ;;  %s1008_s1 = scalar_lea.vmem %s16997_s13, %s18019_s26 }
  0x20   : > { %v11144_v17 = vld [vmem:[%s17080_s6 + $0xa8] sm:$0xff]  ;;  %v11168_v21 = vld [vmem:[%s17080_s6 + $0xb8] sm:$0xff]  ;;  %v11200_v27 = vld [vmem:[%s17080_s6 + $0x20] sm:$0xff] }
  0x21   : > { %v11163_v20 = vld [vmem:[%s17080_s6 + $0x128] sm:$0xff]  ;;  %v11182_v23 = vld [vmem:[%s17080_s6 + $0xd8] sm:$0xff]  ;;  %v11232_v31 = vld [vmem:[%s17080_s6] sm:$0xff] }
  0x22   : > { %v11187_v24 = vld [vmem:[%s17080_s6 + $0x8] sm:$0xff]  ;;  %v11216_v29 = vld [vmem:[%s17080_s6 + $0x118] sm:$0xff]  ;;  %v11240_v33 = vld [vmem:[%s17080_s6 + $0xb0] sm:$0xff] }
  0x23   : > { %2509 = vperm.xlu0 %10267, %v11075_v6   ;;  %1253 = vperm.xlu1 %10262, %v11080_v7   ;;  %v11195_v26 = vld [vmem:[%s17080_s6 + $0xe8] sm:$0xff]  ;;  %v11225_v30 = vld [vmem:[%s17080_s6 + $0x138] sm:$0xff]  ;;  %v11253_v34 = vld [vmem:[%s17080_s6 + $0x110] sm:$0xff] }
  0x24   : > { %v11209_v28 = vld [vmem:[%s17080_s6 + $0x108] sm:$0xff]  ;;  %v11262_v35 = vld [vmem:[%s17080_s6 + $0x100] sm:$0xff]  ;;  %v11272_v37 = vld [vmem:[%s17080_s6 + $0x70] sm:$0xff] }
  0x25   : > { %v11319_v51 = vld [vmem:[%s17080_s6 + $0xc0] sm:$0xff] }
  0x27   : > { %2501 = vperm.xlu0 %10267, %v11087_v8   ;;  %1263 = vperm.xlu1 %10262, %v11092_v9  }
  0x2b   : > { %2489 = vperm.xlu0 %10267, %v11068_v5   ;;  %1273 = vperm.xlu1 %10262, %v11099_v10  }
  0x2f   : > { %2601 = vperm.xlu0 %10267, %v11106_v11   ;;  %1283 = vperm.xlu1 %10262, %v11063_v4  }
  0x33   : > { %2589 = vperm.xlu0 %10267, %v11113_v12   ;;  %1293 = vperm.xlu1 %10262, %v11118_v13  }
  0x37   : > { %2577 = vperm.xlu0 %10267, %v11125_v14   ;;  %1303 = vperm.xlu1 %10262, %v11049_v0  }
  0x3b   : > { %2637 = vperm.xlu0 %10267, %v11132_v15   ;;  %1313 = vperm.xlu1 %10262, %v11137_v16  }
  0x3f   : > { %2561 = vperm.xlu0 %10267, %v11144_v17   ;;  %1323 = vperm.xlu1 %10262, %v11149_v18  }
  0x43   : > { %2629 = vperm.xlu0 %10267, %v11156_v19   ;;  %1333 = vperm.xlu1 %10262, %v11144_v17  }
  0x47   : > { %2625 = vperm.xlu0 %10267, %v11163_v20   ;;  %1343 = vperm.xlu1 %10262, %v11168_v21  }
  0x4b   : > { %2549 = vperm.xlu0 %10267, %v11175_v22   ;;  %1353 = vperm.xlu1 %10262, %v11125_v14  }
  0x4f   : > { %10362 = vset.pattern.permute.xlu0 %v17022_v25  ;;  %1363 = vperm.xlu1 %10262, %v11182_v23  }
  0x50   : > { %2231 = vperm.xlu0 %10362, %v11187_v24  }
  0x53   : > { %1373 = vperm.xlu1 %10262, %v11195_v26  }
  0x54   : > { %2243 = vperm.xlu0 %10362, %v11200_v27  }
  0x57   : > { %1383 = vperm.xlu1 %10262, %v11106_v11  }
  0x58   : > { %2287 = vperm.xlu0 %10362, %v11049_v0  }
  0x5b   : > { %1393 = vperm.xlu1 %10262, %v11209_v28  }
  0x5c   : > { %2271 = vperm.xlu0 %10362, %v11063_v4  }
  0x5f   : > { %1403 = vperm.xlu1 %10262, %v11216_v29  }
  0x60   : > { %2259 = vperm.xlu0 %10362, %v11075_v6  }
  0x63   : > { %1413 = vperm.xlu1 %10262, %v11163_v20  }
  0x64   : > { %2351 = vperm.xlu0 %10362, %v11106_v11  }
  0x67   : > { %1423 = vperm.xlu1 %10262, %v11225_v30  }
  0x68   : > { %2339 = vperm.xlu0 %10362, %v11113_v12  }
  0x6b   : > { %10263 = vset.pattern.permute.xlu1 %v17014_v32 }
  0x6c   : > { %2327 = vperm.xlu0 %10362, %v11125_v14   ;;  %1477 = vperm.xlu1 %10263, %v11232_v31  }
  0x70   : > { %2315 = vperm.xlu0 %10362, %v11240_v33   ;;  %1485 = vperm.xlu1 %10263, %v11054_v1  }
  0x74   : > { %2311 = vperm.xlu0 %10362, %v11144_v17   ;;  %1489 = vperm.xlu1 %10263, %v11068_v5  }
  0x78   : > { %2303 = vperm.xlu0 %10362, %v11149_v18   ;;  %1497 = vperm.xlu1 %10263, %v11080_v7  }
  0x7c   : > { %2299 = vperm.xlu0 %10362, %v11175_v22   ;;  %1505 = vperm.xlu1 %10263, %v11092_v9  }
  0x80   : > { %2363 = vperm.xlu0 %10362, %v11253_v34   ;;  %1513 = vperm.xlu1 %10263, %v11099_v10  }
  0x84   : > { %2359 = vperm.xlu0 %10362, %v11209_v28   ;;  %1521 = vperm.xlu1 %10263, %v11063_v4  }
  0x88   : > { %2355 = vperm.xlu0 %10362, %v11262_v35   ;;  %1529 = vperm.xlu1 %10263, %v11118_v13  }
  0x8c   : > { %10376 = vset.pattern.permute.xlu0 %v17018_v36  ;;  %1537 = vperm.xlu1 %10263, %v11049_v0  }
  0x8d   : > { %2787 = vperm.xlu0 %10376, %v11049_v0  }
  0x90   : > { %1545 = vperm.xlu1 %10263, %v11137_v16  }
  0x91   : > { %2783 = vperm.xlu0 %10376, %v11272_v37  }
  0x94   : > { %1553 = vperm.xlu1 %10263, %v11149_v18  }
  0x95   : > { %2771 = vperm.xlu0 %10376, %v11063_v4  }
  0x96   : > { %v11278_v38 = vpop.permute.xlu1 %1238  ;;  %v11280_v39 = vpop.permute.xlu0 %2537 }
  0x98   : > { %1561 = vperm.xlu1 %10263, %v11144_v17  }
  0x99   : > { %2759 = vperm.xlu0 %10376, %v11075_v6  }
  0x9a   : > { %v11284_v40 = vpop.permute.xlu1 %1243  ;;  %v11286_v41 = vpop.permute.xlu0 %2521 }
  0x9c   : > { %1569 = vperm.xlu1 %10263, %v11168_v21  }
  0x9d   : > { %2747 = vperm.xlu0 %10376, %v11080_v7  }
  0x9e   : > { %v11290_v42 = vpop.permute.xlu1 %1253  ;;  %v11292_v43 = vpop.permute.xlu0 %2509 }
  0xa0   : > { %1577 = vperm.xlu1 %10263, %v11125_v14  }
  0xa1   : > { %2735 = vperm.xlu0 %10376, %v11054_v1  }
  0xa2   : > { %v11296_v44 = vpop.permute.xlu1 %1263  ;;  %v11298_v45 = vpop.permute.xlu0 %2501 }
  0xa4   : > { %1585 = vperm.xlu1 %10263, %v11182_v23  }
  0xa5   : > { %2851 = vperm.xlu0 %10376, %v11106_v11  }
  0xa6   : > { %v11302_v46 = vpop.permute.xlu1 %1273  ;;  %v11304_v47 = vpop.permute.xlu0 %2489 }
  0xa8   : > { %1593 = vperm.xlu1 %10263, %v11195_v26  }
  0xa9   : > { %2839 = vperm.xlu0 %10376, %v11113_v12  }
  0xaa   : > { %v11308_v48 = vpop.permute.xlu1 %1283  ;;  %v11310_v49 = vpop.permute.xlu0 %2601 }
  0xac   : > { %1601 = vperm.xlu1 %10263, %v11106_v11  }
  0xad   : > { %2827 = vperm.xlu0 %10376, %v11125_v14  }
  0xae   : > { %v11314_v50 = vpop.permute.xlu1 %1293  ;;  %v11321_v52 = vpop.permute.xlu0 %2589 }
  0xb0   : > { %1609 = vperm.xlu1 %10263, %v11209_v28  }
  0xb1   : > { %2823 = vperm.xlu0 %10376, %v11319_v51  }
  0xb2   : > { %v11325_v53 = vpop.permute.xlu1 %1303  ;;  %v11327_v54 = vpop.permute.xlu0 %2577 }
  0xb3   : > { %17081 = vst [vmem:[#allocation2_spill] sm:$0xff] %v11327_v54 }
  0xb4   : > { %1617 = vperm.xlu1 %10263, %v11216_v29  }
  0xb5   : > { %2887 = vperm.xlu0 %10376, %v11132_v15  }
  0xb6   : > { %v11331_v55 = vpop.permute.xlu1 %1313  ;;  %v11333_v56 = vpop.permute.xlu0 %2637 }
  0xb7   : > { %17082 = vst [vmem:[#allocation3_spill] sm:$0xff] %v11331_v55  ;;  %17083 = vst [vmem:[#allocation4_spill] sm:$0xff] %v11333_v56 }
  0xb8   : > { %1625 = vperm.xlu1 %10263, %v11163_v20  }
  0xb9   : > { %2875 = vperm.xlu0 %10376, %v11163_v20  }
  0xba   : > { %v11337_v57 = vpop.permute.xlu1 %1323  ;;  %v11339_v58 = vpop.permute.xlu0 %2561 }
  0xbb   : > { %17084 = vst [vmem:[#allocation5_spill] sm:$0xff] %v11337_v57  ;;  %17085 = vst [vmem:[#allocation6_spill] sm:$0xff] %v11339_v58 }
  0xbc   : > { %1633 = vperm.xlu1 %10263, %v11225_v30  }
  0xbd   : > { %2799 = vperm.xlu0 %10376, %v11175_v22  }
  0xbe   : > { %v11343_v59 = vpop.permute.xlu1 %1333  ;;  %v11345_v60 = vpop.permute.xlu0 %2629 }
  0xbf   : > { %17086 = vst [vmem:[#allocation7_spill] sm:$0xff] %v11343_v59  ;;  %17087 = vst [vmem:[#allocation8_spill] sm:$0xff] %v11345_v60 }
  0xc0   : > { %10264 = vset.pattern.permute.xlu1 %v17016_v61 }
  0xc1   : > { %2795 = vperm.xlu0 %10376, %v11137_v16   ;;  %1727 = vperm.xlu1 %10264, %v11232_v31  }
  0xc2   : > { %v11350_v62 = vpop.permute.xlu1 %1343  ;;  %v11352_v63 = vpop.permute.xlu0 %2625 }
  0xc3   : > { %17088 = vst [vmem:[#allocation9_spill] sm:$0xff] %v11350_v62  ;;  %17089 = vst [vmem:[#allocation10_spill] sm:$0xff] %v11352_v63 }
  0xc5   : > { %2863 = vperm.xlu0 %10376, %v11253_v34   ;;  %1735 = vperm.xlu1 %10264, %v11054_v1  }
  0xc6   : > { %v11356_v3 = vpop.permute.xlu1 %1353  ;;  %v11358_v32 = vpop.permute.xlu0 %2549 }
  0xc7   : > { %17090 = vst [vmem:[#allocation11_spill] sm:$0xff] %v11356_v3  ;;  %17091 = vst [vmem:[#allocation12_spill] sm:$0xff] %v11358_v32 }
  0xc9   : > { %2859 = vperm.xlu0 %10376, %v11209_v28   ;;  %1739 = vperm.xlu1 %10264, %v11068_v5  }
  0xca   : > { %v11362_v61 = vpop.permute.xlu1 %1363 }
  0xcb   : > { %17092 = vst [vmem:[#allocation13_spill] sm:$0xff] %v11362_v61  ;;  %v11364_v36 = vpop.permute.xlu0 %2231 }
  0xcd   : > { %10382 = vset.pattern.permute.xlu0 %v17024_v2  ;;  %1747 = vperm.xlu1 %10264, %v11080_v7  }
  0xce   : > { %v11368_v25 = vpop.permute.xlu1 %1373  ;;  %3283 = vperm.xlu0 %10382, %v11272_v37  }
  0xcf   : > { %v11371_v55 = vpop.permute.xlu0 %2243 }
  0xd0   : > { %17093 = vst [vmem:[#allocation14_spill] sm:$0xff] %v11371_v55 }
  0xd1   : > { %1755 = vperm.xlu1 %10264, %v11092_v9  }
  0xd2   : > { %v11374_v63 = vpop.permute.xlu1 %1383  ;;  %3271 = vperm.xlu0 %10382, %v11063_v4  }
  0xd3   : > { %17094 = vst [vmem:[#allocation15_spill] sm:$0xff] %v11374_v63  ;;  %v11377_v32 = vpop.permute.xlu0 %2287  ;;  %v17026_v63 = vmov 7  }
  0xd5   : > { %1763 = vperm.xlu1 %10264, %v11099_v10  }
  0xd6   : > { %v11380_v57 = vpop.permute.xlu1 %1393  ;;  %3263 = vperm.xlu0 %10382, %v11099_v10  }
  0xd7   : > { %17095 = vst [vmem:[#allocation16_spill] sm:$0xff] %v11380_v57  ;;  %v11383_v2 = vpop.permute.xlu0 %2271 }
  0xd9   : > { %1771 = vperm.xlu1 %10264, %v11063_v4  }
  0xda   : > { %v11386_v60 = vpop.permute.xlu1 %1403  ;;  %3251 = vperm.xlu0 %10382, %v11087_v8  }
  0xdb   : > { %17096 = vst [vmem:[#allocation17_spill] sm:$0xff] %v11386_v60  ;;  %v11389_v58 = vpop.permute.xlu0 %2259 }
  0xdc   : > { %17097 = vst [vmem:[#allocation18_spill] sm:$0xff] %v11389_v58 }
  0xdd   : > { %1779 = vperm.xlu1 %10264, %v11118_v13  }
  0xde   : > { %v11392_v59 = vpop.permute.xlu1 %1413  ;;  %3235 = vperm.xlu0 %10382, %v11054_v1  }
  0xdf   : > { %17098 = vst [vmem:[#allocation19_spill] sm:$0xff] %v11392_v59  ;;  %v11395_v56 = vpop.permute.xlu0 %2351 }
  0xe0   : > { %17099 = vst [vmem:[#allocation20_spill] sm:$0xff] %v11395_v56 }
  0xe1   : > { %1787 = vperm.xlu1 %10264, %v11049_v0  }
  0xe2   : > { %v11398_v57 = vpop.permute.xlu1 %1423  ;;  %3351 = vperm.xlu0 %10382, %v11106_v11  }
  0xe3   : > { %17100 = vst [vmem:[#allocation21_spill] sm:$0xff] %v11398_v57  ;;  %v11401_v62 = vpop.permute.xlu0 %2339 }
  0xe4   : > { %17101 = vst [vmem:[#allocation22_spill] sm:$0xff] %v11401_v62 }
  0xe5   : > { %1795 = vperm.xlu1 %10264, %v11137_v16  }
  0xe6   : > { %3339 = vperm.xlu0 %10382, %v11113_v12  }
  0xe7   : > { %v11405_v60 = vpop.permute.xlu1 %1477  ;;  %v11407_v54 = vpop.permute.xlu0 %2327 }
  0xe8   : > { %17102 = vst [vmem:[#allocation23_spill] sm:$0xff] %v11405_v60  ;;  %17103 = vst [vmem:[#allocation24_spill] sm:$0xff] %v11407_v54 }
  0xe9   : > { %1803 = vperm.xlu1 %10264, %v11149_v18  }
  0xea   : > { %3327 = vperm.xlu0 %10382, %v11125_v14  }
  0xeb   : > { %v11411_v59 = vpop.permute.xlu1 %1485  ;;  %v11413_v3 = vpop.permute.xlu0 %2315 }
  0xec   : > { %17104 = vst [vmem:[#allocation25_spill] sm:$0xff] %v11413_v3 }
  0xed   : > { %1811 = vperm.xlu1 %10264, %v11144_v17  }
  0xee   : > { %3387 = vperm.xlu0 %10382, %v11132_v15  }
  0xef   : > { %v11417_v57 = vpop.permute.xlu1 %1489  ;;  %v11419_v61 = vpop.permute.xlu0 %2311 }
  0xf0   : > { %17105 = vst [vmem:[#allocation26_spill] sm:$0xff] %v11417_v57  ;;  %17106 = vst [vmem:[#allocation27_spill] sm:$0xff] %v11419_v61  ;;  %v17028_v57 = vmov 3  }
  0xf1   : > { %1819 = vperm.xlu1 %10264, %v11168_v21  }
  0xf2   : > { %3311 = vperm.xlu0 %10382, %v11144_v17  }
  0xf3   : > { %v11423_v54 = vpop.permute.xlu1 %1497  ;;  %v11425_v62 = vpop.permute.xlu0 %2303 }
  0xf4   : > { %17107 = vst [vmem:[#allocation28_spill] sm:$0xff] %v11423_v54  ;;  %17108 = vst [vmem:[#allocation29_spill] sm:$0xff] %v11425_v62 }
  0xf5   : > { %1827 = vperm.xlu1 %10264, %v11125_v14  }
  0xf6   : > { %3299 = vperm.xlu0 %10382, %v11175_v22  }
  0xf7   : > { %v11429_v3 = vpop.permute.xlu1 %1505  ;;  %v11431_v60 = vpop.permute.xlu0 %2299 }
  0xf8   : > { %17109 = vst [vmem:[#allocation30_spill] sm:$0xff] %v11429_v3  ;;  %17110 = vst [vmem:[#allocation31_spill] sm:$0xff] %v11431_v60 }
  0xf9   : > { %1835 = vperm.xlu1 %10264, %v11182_v23  }
  0xfa   : > { %3295 = vperm.xlu0 %10382, %v11137_v16  }
  0xfb   : > { %v11435_v61 = vpop.permute.xlu1 %1513  ;;  %v11437_v56 = vpop.permute.xlu0 %2363 }
  0xfc   : > { %17111 = vst [vmem:[#allocation32_spill] sm:$0xff] %v11435_v61  ;;  %17112 = vst [vmem:[#allocation33_spill] sm:$0xff] %v11437_v56 }
  0xfd   : > { %1843 = vperm.xlu1 %10264, %v11195_v26  }
  0xfe   : > { %3355 = vperm.xlu0 %10382, %v11262_v35  }
  0xff   : > { %v11441_v62 = vpop.permute.xlu1 %1521  ;;  %v11443_v58 = vpop.permute.xlu0 %2359 }
 0x100   : > { %17113 = vst [vmem:[#allocation34_spill] sm:$0xff] %v11443_v58 }
 0x101   : > { %1851 = vperm.xlu1 %10264, %v11106_v11  }
 0x102   : > { %10387 = vset.pattern.permute.xlu0 %v17026_v63 }
 0x103   : > { %3033 = vperm.xlu0 %10387, %v11272_v37   ;;  %v11448_v60 = vpop.permute.xlu1 %1529  ;;  %v11450_v55 = vpop.permute.xlu0 %2355 }
 0x104   : > { %17114 = vst [vmem:[#allocation35_spill] sm:$0xff] %v11448_v60  ;;  %17115 = vst [vmem:[#allocation36_spill] sm:$0xff] %v11450_v55 }
 0x105   : > { %1859 = vperm.xlu1 %10264, %v11209_v28  }
 0x107   : > { %3021 = vperm.xlu0 %10387, %v11063_v4   ;;  %v11454_v56 = vpop.permute.xlu1 %1537 }
 0x108   : > { %v11456_v61 = vpop.permute.xlu0 %2787 }
 0x109   : > { %1867 = vperm.xlu1 %10264, %v11216_v29  }
 0x10b   : > { %3005 = vperm.xlu0 %10387, %v11092_v9   ;;  %v11460_v58 = vpop.permute.xlu1 %1545 }
 0x10c   : > { %17116 = vst [vmem:[#allocation37_spill] sm:$0xff] %v11460_v58  ;;  %v11462_v63 = vpop.permute.xlu0 %2783 }
 0x10d   : > { %17117 = vst [vmem:[#allocation38_spill] sm:$0xff] %v11462_v63  ;;  %1875 = vperm.xlu1 %10264, %v11163_v20  }
 0x10f   : > { %2993 = vperm.xlu0 %10387, %v11200_v27   ;;  %v11466_v55 = vpop.permute.xlu1 %1553 }
 0x110   : > { %17118 = vst [vmem:[#allocation39_spill] sm:$0xff] %v11466_v55  ;;  %v11468_v60 = vpop.permute.xlu0 %2771 }
 0x111   : > { %17119 = vst [vmem:[#allocation40_spill] sm:$0xff] %v11468_v60  ;;  %1883 = vperm.xlu1 %10264, %v11225_v30  }
 0x113   : > { %2985 = vperm.xlu0 %10387, %v11054_v1   ;;  %v11472_v3 = vpop.permute.xlu1 %1561 }
 0x114   : > { %17120 = vst [vmem:[#allocation41_spill] sm:$0xff] %v11472_v3  ;;  %v11474_v54 = vpop.permute.xlu0 %2759 }
 0x115   : > { %17121 = vst [vmem:[#allocation42_spill] sm:$0xff] %v11474_v54  ;;  %10265 = vset.pattern.permute.xlu1 %v17028_v57 }
 0x116   : > { %1977 = vperm.xlu1 %10265, %v11232_v31  }
 0x117   : > { %3101 = vperm.xlu0 %10387, %v11106_v11   ;;  %v11479_v58 = vpop.permute.xlu1 %1569 }
 0x118   : > { %17122 = vst [vmem:[#allocation43_spill] sm:$0xff] %v11479_v58  ;;  %v11481_v55 = vpop.permute.xlu0 %2747 }
 0x119   : > { %17123 = vst [vmem:[#allocation44_spill] sm:$0xff] %v11481_v55 }
 0x11a   : > { %1985 = vperm.xlu1 %10265, %v11054_v1  }
 0x11b   : > { %3089 = vperm.xlu0 %10387, %v11113_v12   ;;  %v11485_v63 = vpop.permute.xlu1 %1577 }
 0x11c   : > { %17124 = vst [vmem:[#allocation45_spill] sm:$0xff] %v11485_v63  ;;  %v11487_v3 = vpop.permute.xlu0 %2735 }
 0x11d   : > { %17125 = vst [vmem:[#allocation46_spill] sm:$0xff] %v11487_v3 }
 0x11e   : > { %1989 = vperm.xlu1 %10265, %v11068_v5  }
 0x11f   : > { %3065 = vperm.xlu0 %10387, %v11240_v33   ;;  %v11491_v57 = vpop.permute.xlu1 %1585 }
 0x120   : > { %17126 = vst [vmem:[#allocation47_spill] sm:$0xff] %v11491_v57  ;;  %v11493_v54 = vpop.permute.xlu0 %2851  ;;  %v11508_v57 = vld [vmem:[%s17080_s6 + $0x120] sm:$0xff] }
 0x121   : > { %17127 = vst [vmem:[#allocation48_spill] sm:$0xff] %v11493_v54 }
 0x122   : > { %1997 = vperm.xlu1 %10265, %v11080_v7  }
 0x123   : > { %3061 = vperm.xlu0 %10387, %v11144_v17   ;;  %v11497_v58 = vpop.permute.xlu1 %1593 }
 0x124   : > { %17128 = vst [vmem:[#allocation49_spill] sm:$0xff] %v11497_v58  ;;  %v11499_v55 = vpop.permute.xlu0 %2839 }
 0x125   : > { %17129 = vst [vmem:[#allocation50_spill] sm:$0xff] %v11499_v55 }
 0x126   : > { %2005 = vperm.xlu1 %10265, %v11092_v9  }
 0x127   : > { %3125 = vperm.xlu0 %10387, %v11163_v20   ;;  %v11503_v63 = vpop.permute.xlu1 %1601 }
 0x128   : > { %17130 = vst [vmem:[#allocation51_spill] sm:$0xff] %v11503_v63  ;;  %v11510_v54 = vpop.permute.xlu0 %2827 }
 0x129   : > { %17131 = vst [vmem:[#allocation52_spill] sm:$0xff] %v11510_v54 }
 0x12a   : > { %2013 = vperm.xlu1 %10265, %v11099_v10  }
 0x12b   : > { %3121 = vperm.xlu0 %10387, %v11508_v57   ;;  %v11514_v3 = vpop.permute.xlu1 %1609 }
 0x12c   : > { %17132 = vst [vmem:[#allocation53_spill] sm:$0xff] %v11514_v3  ;;  %v11516_v55 = vpop.permute.xlu0 %2823  ;;  %v9336_v3 = vld [vmem:[%s17080_s6 + $0x1c0] sm:$0xff] }
 0x12d   : > { %17133 = vst [vmem:[#allocation54_spill] sm:$0xff] %v11516_v55 }
 0x12e   : > { %2021 = vperm.xlu1 %10265, %v11063_v4  }
 0x12f   : > { %3109 = vperm.xlu0 %10387, %v11209_v28   ;;  %v11520_v58 = vpop.permute.xlu1 %1617 }
 0x130   : > { %17134 = vst [vmem:[#allocation55_spill] sm:$0xff] %v11520_v58  ;;  %v11522_v63 = vpop.permute.xlu0 %2887 }
 0x131   : > { %17135 = vst [vmem:[#allocation56_spill] sm:$0xff] %v11522_v63  ;;  %v17140_v63 = vmov 3  }
 0x132   : > { %2029 = vperm.xlu1 %10265, %v11118_v13  }
 0x133   : > { %3105 = vperm.xlu0 %10387, %v11262_v35   ;;  %v11526_v54 = vpop.permute.xlu1 %1625 }
 0x134   : > { %17136 = vst [vmem:[#allocation57_spill] sm:$0xff] %v11526_v54  ;;  %v11531_v60 = vpop.permute.xlu0 %2875 }
 0x135   : > { %17137 = vst [vmem:[#allocation58_spill] sm:$0xff] %v11531_v60 }
 0x136   : > { %2037 = vperm.xlu1 %10265, %v11049_v0  }
 0x137   : > { %6619 = vperm.xlu0 %10387, %v9336_v3   ;;  %v11534_v4 = vpop.permute.xlu1 %1633 }
 0x138   : > { %17138 = vst [vmem:[#allocation59_spill] sm:$0xff] %v11534_v4  ;;  %v11536_v58 = vpop.permute.xlu0 %2799 }
 0x139   : > { %17139 = vst [vmem:[#allocation60_spill] sm:$0xff] %v11536_v58 }
 0x13a   : > { %2045 = vperm.xlu1 %10265, %v11137_v16  }
 0x13b   : > { %10410 = vset.pattern.permute.xlu0 %v17140_v63 }
 0x13c   : > { %1981 = vperm.xlu0 %10410, %v11187_v24   ;;  %v11541_v54 = vpop.permute.xlu1 %1727  ;;  %v11543_v55 = vpop.permute.xlu0 %2795 }
 0x13d   : > { %17141 = vst [vmem:[#allocation61_spill] sm:$0xff] %v11541_v54  ;;  %17142 = vst [vmem:[#allocation62_spill] sm:$0xff] %v11543_v55 }
 0x13e   : > { %2053 = vperm.xlu1 %10265, %v11149_v18   ;;  %v11564_v18 = vld [vmem:[%s17080_s6 + $0x50] sm:$0xff] }
 0x140   : > { %1993 = vperm.xlu0 %10410, %v11200_v27   ;;  %v11547_v60 = vpop.permute.xlu1 %1735  ;;  %v11549_v3 = vpop.permute.xlu0 %2863 }
 0x141   : > { %17143 = vst [vmem:[#allocation63_spill] sm:$0xff] %v11547_v60  ;;  %17144 = vst [vmem:[#allocation64_spill] sm:$0xff] %v11549_v3  ;;  %v17193_v60 = vmov 1  }
 0x142   : > { %2061 = vperm.xlu1 %10265, %v11144_v17  }
 0x144   : > { %2001 = vperm.xlu0 %10410, %v11087_v8   ;;  %v11553_v16 = vpop.permute.xlu1 %1739  ;;  %v11555_v58 = vpop.permute.xlu0 %2859 }
 0x145   : > { %17145 = vst [vmem:[#allocation65_spill] sm:$0xff] %v11553_v16  ;;  %17146 = vst [vmem:[#allocation66_spill] sm:$0xff] %v11555_v58 }
 0x146   : > { %2069 = vperm.xlu1 %10265, %v11168_v21   ;;  %v11575_v21 = vld [vmem:[%s17080_s6 + $0x60] sm:$0xff] }
 0x148   : > { %2009 = vperm.xlu0 %10410, %v11075_v6   ;;  %v11559_v55 = vpop.permute.xlu1 %1747 }
 0x149   : > { %17147 = vst [vmem:[#allocation67_spill] sm:$0xff] %v11559_v55  ;;  %v11566_v3 = vpop.permute.xlu0 %3283  ;;  %v17190_v55 = vmov 6  }
 0x14a   : > { %17148 = vst [vmem:[#allocation68_spill] sm:$0xff] %v11566_v3  ;;  %2077 = vperm.xlu1 %10265, %v11125_v14   ;;  %v11592_v3 = vld [vmem:[%s17080_s6 + $0x80] sm:$0xff] }
 0x14c   : > { %2017 = vperm.xlu0 %10410, %v11564_v18   ;;  %v11570_v17 = vpop.permute.xlu1 %1755 }
 0x14d   : > { %17149 = vst [vmem:[#allocation69_spill] sm:$0xff] %v11570_v17  ;;  %v11577_v58 = vpop.permute.xlu0 %3271 }
 0x14e   : > { %17150 = vst [vmem:[#allocation70_spill] sm:$0xff] %v11577_v58  ;;  %2085 = vperm.xlu1 %10265, %v11182_v23   ;;  %v11609_v58 = vld [vmem:[%s17080_s6 + $0xa0] sm:$0xff] }
 0x150   : > { %2025 = vperm.xlu0 %10410, %v11575_v21   ;;  %v11581_v63 = vpop.permute.xlu1 %1763 }
 0x151   : > { %17151 = vst [vmem:[#allocation71_spill] sm:$0xff] %v11581_v63  ;;  %v11583_v4 = vpop.permute.xlu0 %3263 }
 0x152   : > { %17152 = vst [vmem:[#allocation72_spill] sm:$0xff] %v11583_v4  ;;  %2093 = vperm.xlu1 %10265, %v11195_v26  }
 0x154   : > { %2033 = vperm.xlu0 %10410, %v11272_v37   ;;  %v11587_v14 = vpop.permute.xlu1 %1771 }
 0x155   : > { %v11594_v54 = vpop.permute.xlu0 %3251 }
 0x156   : > { %17153 = vst [vmem:[#allocation73_spill] sm:$0xff] %v11594_v54  ;;  %2101 = vperm.xlu1 %10265, %v11106_v11  }
 0x158   : > { %2041 = vperm.xlu0 %10410, %v11592_v3   ;;  %v11598_v23 = vpop.permute.xlu1 %1779 }
 0x159   : > { %17154 = vst [vmem:[#allocation74_spill] sm:$0xff] %v11598_v23  ;;  %v11600_v4 = vpop.permute.xlu0 %3235 }
 0x15a   : > { %17155 = vst [vmem:[#allocation75_spill] sm:$0xff] %v11600_v4  ;;  %2109 = vperm.xlu1 %10265, %v11209_v28  }
 0x15c   : > { %2049 = vperm.xlu0 %10410, %v11175_v22   ;;  %v11604_v26 = vpop.permute.xlu1 %1787 }
 0x15d   : > { %v11611_v54 = vpop.permute.xlu0 %3351 }
 0x15e   : > { %17156 = vst [vmem:[#allocation76_spill] sm:$0xff] %v11611_v54  ;;  %2117 = vperm.xlu1 %10265, %v11216_v29   ;;  %v11632_v29 = vld [vmem:[%s17080_s6 + $0xd0] sm:$0xff] }
 0x160   : > { %2057 = vperm.xlu0 %10410, %v11609_v58   ;;  %v11615_v11 = vpop.permute.xlu1 %1795 }
 0x161   : > { %17157 = vst [vmem:[#allocation77_spill] sm:$0xff] %v11615_v11  ;;  %v11617_v4 = vpop.permute.xlu0 %3339 }
 0x162   : > { %17158 = vst [vmem:[#allocation78_spill] sm:$0xff] %v11617_v4  ;;  %2125 = vperm.xlu1 %10265, %v11163_v20   ;;  %v17163_v20 = vmov 4  }
 0x164   : > { %2065 = vperm.xlu0 %10410, %v11240_v33   ;;  %v11621_v28 = vpop.permute.xlu1 %1803 }
 0x165   : > { %17159 = vst [vmem:[#allocation79_spill] sm:$0xff] %v11621_v28  ;;  %v11623_v23 = vpop.permute.xlu0 %3327 }
 0x166   : > { %17160 = vst [vmem:[#allocation80_spill] sm:$0xff] %v11623_v23  ;;  %2133 = vperm.xlu1 %10265, %v11225_v30  }
 0x168   : > { %2073 = vperm.xlu0 %10410, %v11319_v51   ;;  %v11627_v54 = vpop.permute.xlu1 %1811 }
 0x169   : > { %17161 = vst [vmem:[#allocation81_spill] sm:$0xff] %v11627_v54  ;;  %v11634_v11 = vpop.permute.xlu0 %3387 }
 0x16a   : > { %17162 = vst [vmem:[#allocation82_spill] sm:$0xff] %v11634_v11  ;;  %10266 = vset.pattern.permute.xlu1 %v17163_v20  ;;  %v11650_v11 = vld [vmem:[%s17080_s6 + $0xf0] sm:$0xff] }
 0x16b   : > { %2227 = vperm.xlu1 %10266, %v11232_v31  }
 0x16c   : > { %2081 = vperm.xlu0 %10410, %v11632_v29   ;;  %v11639_v28 = vpop.permute.xlu1 %1819 }
 0x16d   : > { %17164 = vst [vmem:[#allocation83_spill] sm:$0xff] %v11639_v28  ;;  %v11641_v30 = vpop.permute.xlu0 %3311 }
 0x16e   : > { %17165 = vst [vmem:[#allocation84_spill] sm:$0xff] %v11641_v30 }
 0x16f   : > { %2235 = vperm.xlu1 %10266, %v11054_v1  }
 0x170   : > { %2089 = vperm.xlu0 %10410, %v11113_v12   ;;  %v11645_v54 = vpop.permute.xlu1 %1827 }
 0x171   : > { %17166 = vst [vmem:[#allocation85_spill] sm:$0xff] %v11645_v54  ;;  %v11652_v23 = vpop.permute.xlu0 %3299 }
 0x172   : > { %17167 = vst [vmem:[#allocation86_spill] sm:$0xff] %v11652_v23 }
 0x173   : > { %2239 = vperm.xlu1 %10266, %v11068_v5  }
 0x174   : > { %2097 = vperm.xlu0 %10410, %v11650_v11   ;;  %v11656_v28 = vpop.permute.xlu1 %1835 }
 0x175   : > { %17168 = vst [vmem:[#allocation87_spill] sm:$0xff] %v11656_v28  ;;  %v11658_v30 = vpop.permute.xlu0 %3295  ;;  %v17176_v28 = vmov 5  }
 0x176   : > { %17169 = vst [vmem:[#allocation88_spill] sm:$0xff] %v11658_v30 }
 0x177   : > { %2247 = vperm.xlu1 %10266, %v11080_v7  }
 0x178   : > { %2105 = vperm.xlu0 %10410, %v11262_v35   ;;  %v11662_v1 = vpop.permute.xlu1 %1843 }
 0x179   : > { %17170 = vst [vmem:[#allocation89_spill] sm:$0xff] %v11662_v1  ;;  %v11664_v54 = vpop.permute.xlu0 %3355 }
 0x17a   : > { %17171 = vst [vmem:[#allocation90_spill] sm:$0xff] %v11664_v54 }
 0x17b   : > { %2283 = vperm.xlu1 %10266, %v11272_v37  }
 0x17c   : > { %2113 = vperm.xlu0 %10410, %v11253_v34   ;;  %v11668_v23 = vpop.permute.xlu1 %1851 }
 0x17d   : > { %17172 = vst [vmem:[#allocation91_spill] sm:$0xff] %v11668_v23 }
 0x17e   : > { %v11670_v5 = vpop.permute.xlu0 %3033 }
 0x17f   : > { %17173 = vst [vmem:[#allocation92_spill] sm:$0xff] %v11670_v5  ;;  %2279 = vperm.xlu1 %10266, %v11118_v13  }
 0x180   : > { %2121 = vperm.xlu0 %10410, %v11508_v57   ;;  %v11674_v30 = vpop.permute.xlu1 %1859 }
 0x181   : > { %17174 = vst [vmem:[#allocation93_spill] sm:$0xff] %v11674_v30  ;;  %v9345_v30 = vld [vmem:[%s17080_s6 + $0x208] sm:$0xff] }
 0x182   : > { %v11676_v7 = vpop.permute.xlu0 %3021 }
 0x183   : > { %17175 = vst [vmem:[#allocation94_spill] sm:$0xff] %v11676_v7  ;;  %10268 = vset.pattern.permute.xlu1 %v17176_v28 }
 0x184   : > { %2129 = vperm.xlu0 %10410, %v11156_v19   ;;  %2533 = vperm.xlu1 %10268, %v11272_v37   ;;  %v11681_v54 = vpop.permute.xlu1 %1867 }
 0x185   : > { %17177 = vst [vmem:[#allocation95_spill] sm:$0xff] %v11681_v54  ;;  %v9344_v54 = vld [vmem:[%s17080_s6 + $0x200] sm:$0xff] }
 0x186   : > { %v11683_v4 = vpop.permute.xlu0 %3005 }
 0x187   : > { %17178 = vst [vmem:[#allocation96_spill] sm:$0xff] %v11683_v4 }
 0x188   : > { %2137 = vperm.xlu0 %10410, %v11132_v15   ;;  %10269 = vset.pattern.permute.xlu1 %v17163_v20  ;;  %v11687_v5 = vpop.permute.xlu1 %1875 }
 0x189   : > { %17179 = vst [vmem:[#allocation97_spill] sm:$0xff] %v11687_v5  ;;  %2275 = vperm.xlu1 %10269, %v11575_v21  }
 0x18a   : > { %v11693_v1 = vpop.permute.xlu0 %2993 }
 0x18b   : > { %17180 = vst [vmem:[#allocation98_spill] sm:$0xff] %v11693_v1  ;;  %v11709_v1 = vld [vmem:[%s17080_s6 + $0x1f8] sm:$0xff] }
 0x18c   : > { %5671 = vperm.xlu0 %10410, %v9345_v30   ;;  %v11695_v63 = vpop.permute.xlu1 %1883  ;;  %v17184_v30 = vmov 7  }
 0x18d   : > { %17181 = vst [vmem:[#allocation99_spill] sm:$0xff] %v11695_v63  ;;  %10270 = vset.pattern.permute.xlu1 %v17176_v28 }
 0x18e   : > { %2529 = vperm.xlu1 %10270, %v11118_v13   ;;  %v11702_v5 = vpop.permute.xlu0 %2985 }
 0x18f   : > { %17182 = vst [vmem:[#allocation100_spill] sm:$0xff] %v11702_v5  ;;  %v11733_v5 = vld [vmem:[%s17080_s6 + $0x1e0] sm:$0xff] }
 0x190   : > { %5667 = vperm.xlu0 %10410, %v9344_v54   ;;  %v11721_v54 = vld [vmem:[%s17080_s6 + $0x1e8] sm:$0xff] }
 0x191   : > { %v11704_v4 = vpop.permute.xlu1 %1977 }
 0x192   : > { %17183 = vst [vmem:[#allocation101_spill] sm:$0xff] %v11704_v4  ;;  %10271 = vset.pattern.permute.xlu1 %v17184_v30  ;;  %v11712_v63 = vpop.permute.xlu0 %3101 }
 0x193   : > { %17185 = vst [vmem:[#allocation102_spill] sm:$0xff] %v11712_v63  ;;  %3037 = vperm.xlu1 %10271, %v11049_v0  }
 0x194   : > { %5663 = vperm.xlu0 %10410, %v11709_v1  }
 0x195   : > { %v11716_v17 = vpop.permute.xlu1 %1985 }
 0x196   : > { %17186 = vst [vmem:[#allocation103_spill] sm:$0xff] %v11716_v17  ;;  %v11723_v4 = vpop.permute.xlu0 %3089 }
 0x197   : > { %17187 = vst [vmem:[#allocation104_spill] sm:$0xff] %v11723_v4  ;;  %10272 = vset.pattern.permute.xlu1 %v17176_v28 }
 0x198   : > { %5655 = vperm.xlu0 %10410, %v11721_v54   ;;  %2525 = vperm.xlu1 %10272, %v11575_v21  }
 0x199   : > { %v11728_v63 = vpop.permute.xlu1 %1989 }
 0x19a   : > { %17188 = vst [vmem:[#allocation105_spill] sm:$0xff] %v11728_v63  ;;  %v11735_v17 = vpop.permute.xlu0 %3065  ;;  %v17194_v63 = vmov 8  }
 0x19b   : > { %17189 = vst [vmem:[#allocation106_spill] sm:$0xff] %v11735_v17 }
 0x19c   : > { %5651 = vperm.xlu0 %10410, %v11733_v5   ;;  %10273 = vset.pattern.permute.xlu1 %v17190_v55 }
 0x19d   : > { %2779 = vperm.xlu1 %10273, %v11118_v13   ;;  %v11740_v4 = vpop.permute.xlu1 %1997 }
 0x19e   : > { %17191 = vst [vmem:[#allocation107_spill] sm:$0xff] %v11740_v4  ;;  %v11742_v16 = vpop.permute.xlu0 %3061 }
 0x19f   : > { %17192 = vst [vmem:[#allocation108_spill] sm:$0xff] %v11742_v16  ;;  %v17030_v16 = vmov 0.0  }
 0x1a0   : > { %10559 = vset.pattern.permute.xlu0 %v17193_v60  ;;  %3705 = vmatprep.subr.mxu0 %v17030_v16 }
 0x1a1   : > { %1481 = vperm.xlu0 %10559, %v11187_v24   ;;  %10274 = vset.pattern.permute.xlu1 %v17194_v63  ;;  %v11747_v7 = vpop.permute.xlu1 %2005 }
 0x1a2   : > { %17195 = vst [vmem:[#allocation109_spill] sm:$0xff] %v11747_v7  ;;  %3287 = vperm.xlu1 %10274, %v11049_v0   ;;  %v11750_v17 = vpop.permute.xlu0 %3125 }
 0x1a3   : > { %17196 = vst [vmem:[#allocation110_spill] sm:$0xff] %v11750_v17 }
 0x1a5   : > { %1493 = vperm.xlu0 %10559, %v11200_v27   ;;  %v11753_v23 = vpop.permute.xlu1 %2013 }
 0x1a6   : > { %17197 = vst [vmem:[#allocation111_spill] sm:$0xff] %v11753_v23  ;;  %10275 = vset.pattern.permute.xlu1 %v17163_v20  ;;  %v11756_v4 = vpop.permute.xlu0 %3121 }
 0x1a7   : > { %17198 = vst [vmem:[#allocation112_spill] sm:$0xff] %v11756_v4  ;;  %2267 = vperm.xlu1 %10275, %v11564_v18  }
 0x1a9   : > { %1501 = vperm.xlu0 %10559, %v11087_v8   ;;  %v11761_v24 = vpop.permute.xlu1 %2021 }
 0x1aa   : > { %v11763_v0 = vpop.permute.xlu0 %3109 }
 0x1ab   : > { %17199 = vst [vmem:[#allocation113_spill] sm:$0xff] %v11763_v0  ;;  %10276 = vset.pattern.permute.xlu1 %v17190_v55 }
 0x1ac   : > { %2775 = vperm.xlu1 %10276, %v11575_v21  }
 0x1ad   : > { %1509 = vperm.xlu0 %10559, %v11075_v6   ;;  %v11768_v27 = vpop.permute.xlu1 %2029 }
 0x1ae   : > { %17200 = vst [vmem:[#allocation114_spill] sm:$0xff] %v11768_v27  ;;  %v11770_v4 = vpop.permute.xlu0 %3105 }
 0x1af   : > { %17201 = vst [vmem:[#allocation115_spill] sm:$0xff] %v11770_v4 }
 0x1b0   : > { %10277 = vset.pattern.permute.xlu1 %v17184_v30 }
 0x1b1   : > { %1517 = vperm.xlu0 %10559, %v11564_v18   ;;  %3029 = vperm.xlu1 %10277, %v11118_v13   ;;  %v11775_v16 = vpop.permute.xlu1 %2037 }
 0x1b2   : > { %v11777_v17 = vpop.permute.xlu0 %6619 }
 0x1b3   : > { %17202 = vst [vmem:[#allocation116_spill] sm:$0xff] %v11777_v17 }
 0x1b5   : > { %1525 = vperm.xlu0 %10559, %v11575_v21   ;;  %10278 = vset.pattern.permute.xlu1 %v17163_v20  ;;  %v11781_v0 = vpop.permute.xlu1 %2045 }
 0x1b6   : > { %17203 = vst [vmem:[#allocation117_spill] sm:$0xff] %v11781_v0  ;;  %2263 = vperm.xlu1 %10278, %v11099_v10  }
 0x1b7   : > { %v11784_v60 = vpop.permute.xlu0 %1981 }
 0x1b8   : > { %17204 = vst [vmem:[#allocation118_spill] sm:$0xff] %v11784_v60 }
 0x1b9   : > { %1533 = vperm.xlu0 %10559, %v11272_v37   ;;  %v11787_v4 = vpop.permute.xlu1 %2053 }
 0x1ba   : > { %17205 = vst [vmem:[#allocation119_spill] sm:$0xff] %v11787_v4  ;;  %10279 = vset.pattern.permute.xlu1 %v17176_v28 }
 0x1bb   : > { %2517 = vperm.xlu1 %10279, %v11564_v18   ;;  %v11791_v23 = vpop.permute.xlu0 %1993 }
 0x1bc   : > { %17206 = vst [vmem:[#allocation120_spill] sm:$0xff] %v11791_v23 }
 0x1bd   : > { %1541 = vperm.xlu0 %10559, %v11592_v3   ;;  %v11794_v17 = vpop.permute.xlu1 %2061 }
 0x1be   : > { %17207 = vst [vmem:[#allocation121_spill] sm:$0xff] %v11794_v17 }
 0x1bf   : > { %10280 = vset.pattern.permute.xlu1 %v17184_v30  ;;  %v11797_v0 = vpop.permute.xlu0 %2001 }
 0x1c0   : > { %17208 = vst [vmem:[#allocation122_spill] sm:$0xff] %v11797_v0  ;;  %3025 = vperm.xlu1 %10280, %v11575_v21  }
 0x1c1   : > { %1549 = vperm.xlu0 %10559, %v11175_v22   ;;  %v11801_v37 = vpop.permute.xlu1 %2069 }
 0x1c2   : > { %17209 = vst [vmem:[#allocation123_spill] sm:$0xff] %v11801_v37 }
 0x1c3   : > { %v11803_v4 = vpop.permute.xlu0 %2009 }
 0x1c4   : > { %17210 = vst [vmem:[#allocation124_spill] sm:$0xff] %v11803_v4  ;;  %10281 = vset.pattern.permute.xlu1 %v17194_v63 }
 0x1c5   : > { %1557 = vperm.xlu0 %10559, %v11609_v58   ;;  %3279 = vperm.xlu1 %10281, %v11118_v13   ;;  %v11808_v23 = vpop.permute.xlu1 %2077 }
 0x1c6   : > { %17211 = vst [vmem:[#allocation125_spill] sm:$0xff] %v11808_v23 }
 0x1c7   : > { %v11810_v17 = vpop.permute.xlu0 %2017 }
 0x1c8   : > { %17212 = vst [vmem:[#allocation126_spill] sm:$0xff] %v11810_v17 }
 0x1c9   : > { %1565 = vperm.xlu0 %10559, %v11240_v33   ;;  %10282 = vset.pattern.permute.xlu1 %v17176_v28  ;;  %v11814_v0 = vpop.permute.xlu1 %2085 }
 0x1ca   : > { %17213 = vst [vmem:[#allocation127_spill] sm:$0xff] %v11814_v0  ;;  %2513 = vperm.xlu1 %10282, %v11099_v10  }
 0x1cb   : > { %v11817_v22 = vpop.permute.xlu0 %2025 }
 0x1cc   : > { %17214 = vst [vmem:[#allocation128_spill] sm:$0xff] %v11817_v22 }
 0x1cd   : > { %1573 = vperm.xlu0 %10559, %v11319_v51   ;;  %v11820_v37 = vpop.permute.xlu1 %2093 }
 0x1ce   : > { %17215 = vst [vmem:[#allocation129_spill] sm:$0xff] %v11820_v37  ;;  %10283 = vset.pattern.permute.xlu1 %v17190_v55 }
 0x1cf   : > { %2767 = vperm.xlu1 %10283, %v11564_v18   ;;  %v11824_v13 = vpop.permute.xlu0 %2033 }
 0x1d0   : > { %17216 = vst [vmem:[#allocation130_spill] sm:$0xff] %v11824_v13 }
 0x1d1   : > { %1581 = vperm.xlu0 %10559, %v11632_v29   ;;  %v11827_v33 = vpop.permute.xlu1 %2101 }
 0x1d2   : > { %17217 = vst [vmem:[#allocation131_spill] sm:$0xff] %v11827_v33 }
 0x1d3   : > { %10284 = vset.pattern.permute.xlu1 %v17194_v63  ;;  %v11830_v23 = vpop.permute.xlu0 %2041 }
 0x1d4   : > { %17218 = vst [vmem:[#allocation132_spill] sm:$0xff] %v11830_v23  ;;  %3275 = vperm.xlu1 %10284, %v11575_v21  }
 0x1d5   : > { %1589 = vperm.xlu0 %10559, %v11113_v12   ;;  %v11834_v51 = vpop.permute.xlu1 %2109 }
 0x1d6   : > { %17219 = vst [vmem:[#allocation133_spill] sm:$0xff] %v11834_v51 }
 0x1d7   : > { %v11836_v0 = vpop.permute.xlu0 %2049 }
 0x1d8   : > { %17220 = vst [vmem:[#allocation134_spill] sm:$0xff] %v11836_v0  ;;  %10285 = vset.pattern.permute.xlu1 %v17163_v20 }
 0x1d9   : > { %1597 = vperm.xlu0 %10559, %v11650_v11   ;;  %2255 = vperm.xlu1 %10285, %v11092_v9   ;;  %v11841_v13 = vpop.permute.xlu1 %2117 }
 0x1da   : > { %17221 = vst [vmem:[#allocation135_spill] sm:$0xff] %v11841_v13 }
 0x1db   : > { %v11843_v22 = vpop.permute.xlu0 %2057 }
 0x1dc   : > { %17222 = vst [vmem:[#allocation136_spill] sm:$0xff] %v11843_v22 }
 0x1dd   : > { %1605 = vperm.xlu0 %10559, %v11262_v35   ;;  %10286 = vset.pattern.permute.xlu1 %v17190_v55  ;;  %v11847_v23 = vpop.permute.xlu1 %2125 }
 0x1de   : > { %17223 = vst [vmem:[#allocation137_spill] sm:$0xff] %v11847_v23  ;;  %2763 = vperm.xlu1 %10286, %v11099_v10  }
 0x1df   : > { %v11850_v12 = vpop.permute.xlu0 %2065 }
 0x1e0   : > { %17224 = vst [vmem:[#allocation138_spill] sm:$0xff] %v11850_v12 }
 0x1e1   : > { %1613 = vperm.xlu0 %10559, %v11253_v34   ;;  %v11853_v51 = vpop.permute.xlu1 %2133 }
 0x1e2   : > { %17225 = vst [vmem:[#allocation139_spill] sm:$0xff] %v11853_v51  ;;  %10287 = vset.pattern.permute.xlu1 %v17184_v30  ;;  %v11879_v51 = vld [vmem:[%s17080_s6 + $0x1a8] sm:$0xff] }
 0x1e3   : > { %3017 = vperm.xlu1 %10287, %v11564_v18   ;;  %v11857_v13 = vpop.permute.xlu0 %2073 }
 0x1e4   : > { %17226 = vst [vmem:[#allocation140_spill] sm:$0xff] %v11857_v13 }
 0x1e5   : > { %1621 = vperm.xlu0 %10559, %v11508_v57  }
 0x1e6   : > { %v11860_v35 = vpop.permute.xlu1 %2227 }
 0x1e7   : > { %17227 = vst [vmem:[#allocation141_spill] sm:$0xff] %v11860_v35  ;;  %10288 = vset.pattern.permute.xlu1 %v17163_v20  ;;  %v11863_v23 = vpop.permute.xlu0 %2081 }
 0x1e8   : > { %17228 = vst [vmem:[#allocation142_spill] sm:$0xff] %v11863_v23  ;;  %2251 = vperm.xlu1 %10288, %v11087_v8  }
 0x1e9   : > { %1629 = vperm.xlu0 %10559, %v11156_v19  }
 0x1ea   : > { %v11867_v34 = vpop.permute.xlu1 %2235 }
 0x1eb   : > { %17229 = vst [vmem:[#allocation143_spill] sm:$0xff] %v11867_v34  ;;  %v11869_v0 = vpop.permute.xlu0 %2089 }
 0x1ec   : > { %17230 = vst [vmem:[#allocation144_spill] sm:$0xff] %v11869_v0  ;;  %10289 = vset.pattern.permute.xlu1 %v17176_v28 }
 0x1ed   : > { %1637 = vperm.xlu0 %10559, %v11132_v15   ;;  %2505 = vperm.xlu1 %10289, %v11092_v9   ;;  %v11891_v15 = vld [vmem:[%s17080_s6 + $0x190] sm:$0xff] }
 0x1ee   : > { %v11874_v22 = vpop.permute.xlu1 %2239 }
 0x1ef   : > { %17231 = vst [vmem:[#allocation145_spill] sm:$0xff] %v11874_v22  ;;  %v11881_v8 = vpop.permute.xlu0 %2097 }
 0x1f0   : > { %17232 = vst [vmem:[#allocation146_spill] sm:$0xff] %v11881_v8  ;;  %v1431_v8 = vlaneseq }
 0x1f1   : > { %5131 = vperm.xlu0 %10559, %v11879_v51   ;;  %10290 = vset.pattern.permute.xlu1 %v17184_v30 }
 0x1f2   : > { %3013 = vperm.xlu1 %10290, %v11099_v10   ;;  %v11886_v19 = vpop.permute.xlu1 %2247  ;;  %v11926_v35 = vshrl.u32 %v1431_v8, 7 }
 0x1f3   : > { %17233 = vst [vmem:[#allocation147_spill] sm:$0xff] %v11886_v19  ;;  %v11893_v12 = vpop.permute.xlu0 %2105  ;;  %v11953_v19 = vld [vmem:[%s17080_s6 + $0x28] sm:$0xff] }
 0x1f4   : > { %17234 = vst [vmem:[#allocation148_spill] sm:$0xff] %v11893_v12  ;;  %v9360_v12 = vld [vmem:[%s17080_s6 + $0x280] sm:$0xff]  ;;  %v1892_v8 = vsub.s32 2, %v11926_v35  ;;  %v2392_v37 = vsub.s32 4, %v11926_v35 }
 0x1f5   : > { %5119 = vperm.xlu0 %10559, %v11891_v15  }
 0x1f6   : > { %10291 = vset.pattern.permute.xlu1 %v17194_v63  ;;  %v11897_v13 = vpop.permute.xlu1 %2283 }
 0x1f7   : > { %17235 = vst [vmem:[#allocation149_spill] sm:$0xff] %v11897_v13  ;;  %3267 = vperm.xlu1 %10291, %v11564_v18   ;;  %v11902_v10 = vpop.permute.xlu0 %2113 }
 0x1f8   : > { %17236 = vst [vmem:[#allocation150_spill] sm:$0xff] %v11902_v10 }
 0x1f9   : > { %5171 = vperm.xlu0 %10559, %v11709_v1   ;;  %v9359_v1 = vld [vmem:[%s17080_s6 + $0x278] sm:$0xff] }
 0x1fa   : > { %v11905_v23 = vpop.permute.xlu1 %2279 }
 0x1fb   : > { %17237 = vst [vmem:[#allocation151_spill] sm:$0xff] %v11905_v23  ;;  %10292 = vset.pattern.permute.xlu1 %v17190_v55  ;;  %v11915_v13 = vpop.permute.xlu0 %2121 }
 0x1fc   : > { %17238 = vst [vmem:[#allocation152_spill] sm:$0xff] %v11915_v13  ;;  %2755 = vperm.xlu1 %10292, %v11092_v9   ;;  %v1642_v9 = vsub.s32 1, %v11926_v35  ;;  %v1433_v13 = vsub.s32 0, %v11926_v35 }
 0x1fd   : > { %5239 = vperm.xlu0 %10559, %v9360_v12  }
 0x1ff   : > { %v11922_v10 = vpop.permute.xlu1 %2533  ;;  %v11924_v0 = vpop.permute.xlu0 %2129 }
 0x200   : > { %17239 = vst [vmem:[#allocation153_spill] sm:$0xff] %v11922_v10  ;;  %17240 = vst [vmem:[#allocation154_spill] sm:$0xff] %v11924_v0  ;;  %10293 = vset.pattern.permute.xlu1 %v17184_v30  ;;  %v2142_v10 = vsub.s32 3, %v11926_v35 }
 0x201   : > { %5235 = vperm.xlu0 %10559, %v9359_v1   ;;  %3009 = vperm.xlu1 %10293, %v11075_v6   ;;  %v1053_v1 = vld [vmem:[%s11935_s4] sm:$0xff] }
 0x202   : > { %v11947_v6 = vrot.slane %v1053_v1, %v1642_v9  ;;  %v11965_v17 = vrot.slane %v1053_v1, %v1892_v8  ;;  %v11974_v22 = vrot.slane %v1053_v1, %v2142_v10  ;;  %v2642_v10 = vsub.s32 5, %v11926_v35 }
 0x203   : > { %v11938_v12 = vpop.permute.xlu0 %2137  ;;  %v11991_v8 = vrot.slane %v1053_v1, %v2392_v37  ;;  %v2892_v37 = vsub.s32 6, %v11926_v35 }
 0x204   : > { %17242 = vst [vmem:[#allocation155_spill] sm:$0xff] %v11938_v12  ;;  %v11942_v0 = vpop.permute.xlu1 %2275  ;;  %v9357_v12 = vld [vmem:[%s17080_s6 + $0x268] sm:$0xff]  ;;  %v1659_v9 = vmul.f32 %v11947_v6, %v11454_v56  ;;  %v1909_v60 = vmul.f32 %v11965_v17, %v11604_v26  ;;  %17246 = vst [vmem:[#allocation159_spill] sm:$0xff] %v11974_v22  ;;  %v9356_v56 = vld [vmem:[%s17080_s6 + $0x260] sm:$0xff]  ;;  %v2159_v26 = vmul.f32 %v11974_v22, %v11775_v16 }
 0x205   : > { %17243 = vst [vmem:[#allocation156_spill] sm:$0xff] %v11942_v0  ;;  %5159 = vperm.xlu0 %10559, %v11733_v5   ;;  %10294 = vset.pattern.permute.xlu1 %v17176_v28  ;;  %v11961_v5 = vrot.slane %v1053_v1, %v1433_v13  ;;  %v11983_v13 = vld [vmem:[%s17080_s6 + $0x30] sm:$0xff]  ;;  %v12004_v16 = vld [vmem:[%s17080_s6 + $0x40] sm:$0xff] }
 0x206   : > { %2497 = vperm.xlu1 %10294, %v11953_v19  }
 0x207   : > { %v11959_v0 = vpop.permute.xlu0 %5671  ;;  %v1450_v34 = vmul.f32 %v11961_v5, %v11325_v53 }
 0x208   : > { %17244 = vst [vmem:[#allocation157_spill] sm:$0xff] %v11959_v0 }
 0x209   : > { %5227 = vperm.xlu0 %10559, %v9357_v12   ;;  %v11967_v4 = vpop.permute.xlu1 %2529  ;;  %v1700_v12 = vadd.f32 %v1659_v9, %v1450_v34  ;;  %v2409_v34 = vmul.f32 %v11991_v8, %v11377_v32 }
 0x20a   : > { %17245 = vst [vmem:[#allocation158_spill] sm:$0xff] %v11967_v4  ;;  %10295 = vset.pattern.permute.xlu1 %v17190_v55  ;;  %v9337_v4 = vld [vmem:[%s17080_s6 + $0x1c8] sm:$0xff] }
 0x20b   : > { %2751 = vperm.xlu1 %10295, %v11983_v13   ;;  %v11986_v53 = vpop.permute.xlu0 %5667  ;;  %v1950_v0 = vadd.f32 %v1909_v60, %v1700_v12  ;;  %v12007_v60 = vrot.slane %v1053_v1, %v2642_v10  ;;  %v12025_v10 = vrot.slane %v1053_v1, %v2892_v37  ;;  %v12041_v37 = vld [vmem:[%s17080_s6 + $0x8] sm:$0xff] }
 0x20c   : > { %17247 = vst [vmem:[#allocation160_spill] sm:$0xff] %v11986_v53 }
 0x20d   : > { %5223 = vperm.xlu0 %10559, %v9356_v56   ;;  %v2200_v9 = vadd.f32 %v2159_v26, %v1950_v0  ;;  %v2659_v32 = vmul.f32 %v12007_v60, %v11280_v39  ;;  %v3142_v0 = vsub.s32 7, %v11926_v35  ;;  %v2909_v35 = vmul.f32 %v12025_v10, %v11456_v61 }
 0x20e   : > { %v3038_v7 = vpop.permute.xlu1 %3037 }
 0x20f   : > { %10296 = vset.pattern.permute.xlu1 %v17194_v63  ;;  %v11997_v23 = vpop.permute.xlu0 %5663  ;;  %v2450_v26 = vadd.f32 %v2409_v34, %v2200_v9  ;;  %v12032_v34 = vrot.slane %v1053_v1, %v3142_v0  ;;  %v12048_v1 = vld [vmem:[%s11935_s4 + $0x8] ss:$0 sm:$0xff] }
 0x210   : > { %17248 = vst [vmem:[#allocation161_spill] sm:$0xff] %v11997_v23  ;;  %3259 = vperm.xlu1 %10296, %v12004_v16   ;;  %v17251_v23 = vmov 0   ;;  %17255 = vst [vmem:[#allocation167_spill] sm:$0xff] %v12048_v1 }
 0x211   : > { %5147 = vperm.xlu0 %10559, %v9337_v4   ;;  %v12022_v4 = vld [vmem:[%s17080_s6 + $0x20] sm:$0xff]  ;;  %v2700_v9 = vadd.f32 %v2659_v32, %v2450_v26  ;;  %v3159_v53 = vmul.f32 %v12032_v34, %v3038_v7  ;;  %v10629_v7 = vld [vmem:[%s17080_s6 + $0x38] sm:$0xff] }
 0x213   : > { %v12010_v56 = vpop.permute.xlu1 %2525  ;;  %v12012_v12 = vpop.permute.xlu0 %5655 }
 0x214   : > { %17249 = vst [vmem:[#allocation162_spill] sm:$0xff] %v12010_v56  ;;  %17250 = vst [vmem:[#allocation163_spill] sm:$0xff] %v12012_v12  ;;  %10297 = vset.pattern.permute.xlu1 %v17176_v28 }
 0x215   : > { %10566 = vset.pattern.permute.xlu0 %v17251_v23  ;;  %2493 = vperm.xlu1 %10297, %v12022_v4  }
 0x216   : > { %1228 = vperm.xlu0 %10566, %v11232_v31   ;;  %v2950_v31 = vadd.f32 %v2909_v35, %v2700_v9 }
 0x217   : > { %v12028_v39 = vpop.permute.xlu0 %5651 }
 0x218   : > { %17252 = vst [vmem:[#allocation164_spill] sm:$0xff] %v12028_v39  ;;  %v12034_v12 = vpop.permute.xlu1 %2779  ;;  %v3200_v0 = vadd.f32 %v3159_v53, %v2950_v31  ;;  %v12065_v53 = vld [vmem:[%s12057_s8] ss:$0 sm:$0xff] }
 0x219   : > { %17253 = vst [vmem:[#allocation165_spill] sm:$0xff] %v12034_v12  ;;  %10298 = vset.pattern.permute.xlu1 %v17184_v30  ;;  %17258 = vst [vmem:[#allocation169_spill] sm:$0xff] %v12065_v53 }
 0x21a   : > { %1233 = vperm.xlu0 %10566, %v12041_v37   ;;  %3001 = vperm.xlu1 %10298, %v11983_v13  }
 0x21c   : > { %v12045_v61 = vpop.permute.xlu0 %1481 }
 0x21d   : > { %17254 = vst [vmem:[#allocation166_spill] sm:$0xff] %v12045_v61  ;;  %v3288_v32 = vpop.permute.xlu1 %3287  ;;  %v12147_v61 = vld [vmem:[%s17080_s6 + $0xc0] sm:$0xff] }
 0x21e   : > { %v3409_v26 = vmul.f32 %v12048_v1, %v3288_v32  ;;  %1248 = vperm.xlu0 %10566, %v12022_v4   ;;  %10299 = vset.pattern.permute.xlu1 %v17194_v63  ;;  %17277 = vst [vmem:[#allocation187_spill] sm:$0xff] %v12147_v61 }
 0x21f   : > { %3255 = vperm.xlu1 %10299, %v10629_v7  }
 0x220   : > { %v3450_v35 = vadd.f32 %v3409_v26, %v3200_v0  ;;  %v12062_v9 = vpop.permute.xlu0 %1493 }
 0x221   : > { %17257 = vst [vmem:[#allocation168_spill] sm:$0xff] %v12062_v9 }
 0x222   : > { %1258 = vperm.xlu0 %10566, %v11983_v13   ;;  %v12068_v31 = vpop.permute.xlu1 %2267  ;;  %v3497_v32 = vadd.f32 %v12065_v53, %v3450_v35  ;;  %v9334_v53 = vld [vmem:[%s17080_s6 + $0x1b0] sm:$0xff] }
 0x223   : > { %17259 = vst [vmem:[#allocation170_spill] sm:$0xff] %v12068_v31  ;;  %10300 = vset.pattern.permute.xlu1 %v17190_v55  ;;  %v17263_v31 = vmov 0.0  }
 0x224   : > { %2743 = vperm.xlu1 %10300, %v12022_v4   ;;  %v12073_v39 = vpop.permute.xlu0 %1501  ;;  %vm3538_vm0 = vcmp.gt.f32.partialorder %v3497_v32, 0.0  ;;  %v3579_v23 = vmul.f32 0.01, %v3497_v32 }
 0x225   : > { %17260 = vst [vmem:[#allocation171_spill] sm:$0xff] %v12073_v39 }
 0x226   : > { %1268 = vperm.xlu0 %10566, %v12004_v16   ;;  %v3620_v0 = vsel %vm3538_vm0, %v3497_v32, %v3579_v23  ;;  %v10630_v23 = vld [vmem:[%s17080_s6 + $0x10] sm:$0xff] }
 0x227   : > { %v12076_v26 = vpop.permute.xlu1 %2775  ;;  %3706 = vmatpush1.msra.mxu0 %v3620_v0 }
 0x228   : > { %17261 = vst [vmem:[#allocation172_spill] sm:$0xff] %v12076_v26  ;;  %10301 = vset.pattern.permute.xlu1 %v17184_v30  ;;  %v12079_v7 = vpop.permute.xlu0 %1509  ;;  %3707 = vmatprep.subr.mxu0 %v17263_v31  ;;  %v12100_v31 = vld [vmem:[%s17080_s6 + $0x70] sm:$0xff] }
 0x229   : > { %17262 = vst [vmem:[#allocation173_spill] sm:$0xff] %v12079_v7  ;;  %2997 = vperm.xlu1 %10301, %v11953_v19   ;;  %v10632_v7 = vld [vmem:[%s17080_s6 + $0x18] sm:$0xff] }
 0x22a   : > { %1278 = vperm.xlu0 %10566, %v11564_v18  }
 0x22c   : > { %v12084_v35 = vpop.permute.xlu1 %3029  ;;  %v12086_v39 = vpop.permute.xlu0 %1517 }
 0x22d   : > { %17264 = vst [vmem:[#allocation174_spill] sm:$0xff] %v12084_v35  ;;  %17265 = vst [vmem:[#allocation175_spill] sm:$0xff] %v12086_v39  ;;  %10302 = vset.pattern.permute.xlu1 %v17176_v28  ;;  %v12119_v39 = vld [vmem:[%s17080_s6 + $0x90] sm:$0xff]  ;;  %v12187_v35 = vld [vmem:[%s17080_s6 + $0x100] sm:$0xff] }
 0x22e   : > { %1288 = vperm.xlu0 %10566, %v11575_v21   ;;  %2485 = vperm.xlu1 %10302, %v10630_v23  }
 0x230   : > { %v12093_v32 = vpop.permute.xlu0 %1525 }
 0x231   : > { %17266 = vst [vmem:[#allocation176_spill] sm:$0xff] %v12093_v32  ;;  %v12095_v0 = vpop.permute.xlu1 %2263 }
 0x232   : > { %17267 = vst [vmem:[#allocation177_spill] sm:$0xff] %v12095_v0  ;;  %1298 = vperm.xlu0 %10566, %v12100_v31   ;;  %10303 = vset.pattern.permute.xlu1 %v17190_v55 }
 0x233   : > { %2739 = vperm.xlu1 %10303, %v10632_v7  }
 0x234   : > { %v12107_v26 = vpop.permute.xlu0 %1533 }
 0x235   : > { %17268 = vst [vmem:[#allocation178_spill] sm:$0xff] %v12107_v26 }
 0x236   : > { %1308 = vperm.xlu0 %10566, %v11592_v3   ;;  %v12110_v23 = vpop.permute.xlu1 %2517 }
 0x237   : > { %17269 = vst [vmem:[#allocation179_spill] sm:$0xff] %v12110_v23  ;;  %10304 = vset.pattern.permute.xlu1 %v17194_v63  ;;  %v12137_v23 = vld [vmem:[%s17080_s6 + $0xb0] sm:$0xff] }
 0x238   : > { %3247 = vperm.xlu1 %10304, %v11953_v19   ;;  %v12114_v32 = vpop.permute.xlu0 %1541 }
 0x239   : > { %17270 = vst [vmem:[#allocation180_spill] sm:$0xff] %v12114_v32 }
 0x23a   : > { %1318 = vperm.xlu0 %10566, %v12119_v39  }
 0x23b   : > { %v12122_v9 = vpop.permute.xlu1 %3025 }
 0x23c   : > { %17271 = vst [vmem:[#allocation181_spill] sm:$0xff] %v12122_v9  ;;  %10305 = vset.pattern.permute.xlu1 %v17176_v28  ;;  %v12125_v26 = vpop.permute.xlu0 %1549 }
 0x23d   : > { %17272 = vst [vmem:[#allocation182_spill] sm:$0xff] %v12125_v26  ;;  %2481 = vperm.xlu1 %10305, %v12041_v37  }
 0x23e   : > { %1328 = vperm.xlu0 %10566, %v11609_v58  }
 0x240   : > { %v12129_v19 = vpop.permute.xlu1 %3279  ;;  %v12131_v32 = vpop.permute.xlu0 %1557 }
 0x241   : > { %17273 = vst [vmem:[#allocation183_spill] sm:$0xff] %v12129_v19  ;;  %17274 = vst [vmem:[#allocation184_spill] sm:$0xff] %v12131_v32  ;;  %10306 = vset.pattern.permute.xlu1 %v17184_v30  ;;  %v12169_v19 = vld [vmem:[%s17080_s6 + $0xe0] sm:$0xff] }
 0x242   : > { %1338 = vperm.xlu0 %10566, %v12137_v23   ;;  %2989 = vperm.xlu1 %10306, %v10632_v7  }
 0x244   : > { %v12140_v9 = vpop.permute.xlu0 %1565 }
 0x245   : > { %17275 = vst [vmem:[#allocation185_spill] sm:$0xff] %v12140_v9  ;;  %v12142_v26 = vpop.permute.xlu1 %2513  ;;  %v12161_v9 = vld [vmem:[%s17080_s6] sm:$0xff] }
 0x246   : > { %17276 = vst [vmem:[#allocation186_spill] sm:$0xff] %v12142_v26  ;;  %1348 = vperm.xlu0 %10566, %v12147_v61   ;;  %10307 = vset.pattern.permute.xlu1 %v17194_v63 }
 0x247   : > { %3243 = vperm.xlu1 %10307, %v12022_v4  }
 0x248   : > { %v12152_v32 = vpop.permute.xlu0 %1573 }
 0x249   : > { %17278 = vst [vmem:[#allocation188_spill] sm:$0xff] %v12152_v32 }
 0x24a   : > { %1358 = vperm.xlu0 %10566, %v11632_v29   ;;  %v12155_v56 = vpop.permute.xlu1 %2767 }
 0x24b   : > { %17279 = vst [vmem:[#allocation189_spill] sm:$0xff] %v12155_v56  ;;  %10308 = vset.pattern.permute.xlu1 %v17176_v28 }
 0x24c   : > { %2477 = vperm.xlu1 %10308, %v12161_v9   ;;  %v12164_v26 = vpop.permute.xlu0 %1581 }
 0x24d   : > { %17280 = vst [vmem:[#allocation190_spill] sm:$0xff] %v12164_v26 }
 0x24e   : > { %1368 = vperm.xlu0 %10566, %v12169_v19  }
 0x24f   : > { %v12172_v32 = vpop.permute.xlu1 %3275 }
 0x250   : > { %17281 = vst [vmem:[#allocation191_spill] sm:$0xff] %v12172_v32  ;;  %10309 = vset.pattern.permute.xlu1 %v17190_v55  ;;  %v12175_v56 = vpop.permute.xlu0 %1589 }
 0x251   : > { %17282 = vst [vmem:[#allocation192_spill] sm:$0xff] %v12175_v56  ;;  %2731 = vperm.xlu1 %10309, %v12041_v37  }
 0x252   : > { %1378 = vperm.xlu0 %10566, %v11650_v11  }
 0x254   : > { %v12179_v0 = vpop.permute.xlu1 %2255  ;;  %v12181_v26 = vpop.permute.xlu0 %1597 }
 0x255   : > { %17283 = vst [vmem:[#allocation193_spill] sm:$0xff] %v12179_v0  ;;  %17284 = vst [vmem:[#allocation194_spill] sm:$0xff] %v12181_v26  ;;  %10310 = vset.pattern.permute.xlu1 %v17194_v63  ;;  %v12197_v0 = vld [vmem:[%s17080_s6 + $0x110] sm:$0xff] }
 0x256   : > { %1388 = vperm.xlu0 %10566, %v12187_v35   ;;  %3239 = vperm.xlu1 %10310, %v10632_v7  }
 0x258   : > { %v12190_v32 = vpop.permute.xlu0 %1605 }
 0x259   : > { %17285 = vst [vmem:[#allocation195_spill] sm:$0xff] %v12190_v32  ;;  %v12192_v56 = vpop.permute.xlu1 %2763 }
 0x25a   : > { %17286 = vst [vmem:[#allocation196_spill] sm:$0xff] %v12192_v56  ;;  %1398 = vperm.xlu0 %10566, %v12197_v0   ;;  %10311 = vset.pattern.permute.xlu1 %v17163_v20  ;;  %v12214_v56 = vld [vmem:[%s17080_s6 + $0x130] sm:$0xff] }
 0x25b   : > { %2347 = vperm.xlu1 %10311, %v11650_v11  }
 0x25c   : > { %v12202_v26 = vpop.permute.xlu0 %1613 }
 0x25d   : > { %17287 = vst [vmem:[#allocation197_spill] sm:$0xff] %v12202_v26  ;;  %v12226_v26 = vld [vmem:[%s17080_s6 + $0x140] sm:$0xf] }
 0x25e   : > { %1408 = vperm.xlu0 %10566, %v11508_v57   ;;  %v12205_v7 = vpop.permute.xlu1 %3017 }
 0x25f   : > { %17288 = vst [vmem:[#allocation198_spill] sm:$0xff] %v12205_v7  ;;  %10312 = vset.pattern.permute.xlu1 %v17190_v55 }
 0x260   : > { %2727 = vperm.xlu1 %10312, %v12161_v9   ;;  %v12209_v32 = vpop.permute.xlu0 %1621 }
 0x261   : > { %17289 = vst [vmem:[#allocation199_spill] sm:$0xff] %v12209_v32  ;;  %v12232_v32 = vld [vmem:[%s17080_s6 + $0x1b8] sm:$0xff] }
 0x262   : > { %1418 = vperm.xlu0 %10566, %v12214_v56  }
 0x263   : > { %v12217_v12 = vpop.permute.xlu1 %2251 }
 0x264   : > { %17290 = vst [vmem:[#allocation200_spill] sm:$0xff] %v12217_v12  ;;  %10313 = vset.pattern.permute.xlu1 %v17184_v30  ;;  %v12220_v57 = vpop.permute.xlu0 %1629 }
 0x265   : > { %17291 = vst [vmem:[#allocation201_spill] sm:$0xff] %v12220_v57  ;;  %2981 = vperm.xlu1 %10313, %v12041_v37   ;;  %v12243_v57 = vld [vmem:[%s17080_s6 + $0xe8] sm:$0xff] }
 0x266   : > { %1428 = vperm.xlu0 %10566, %v12226_v26  }
 0x268   : > { %v12234_v7 = vpop.permute.xlu1 %2505  ;;  %v12236_v12 = vpop.permute.xlu0 %1637 }
 0x269   : > { %17292 = vst [vmem:[#allocation202_spill] sm:$0xff] %v12234_v7  ;;  %17293 = vst [vmem:[#allocation203_spill] sm:$0xff] %v12236_v12  ;;  %10314 = vset.pattern.permute.xlu1 %v17163_v20  ;;  %v9342_v12 = vld [vmem:[%s17080_s6 + $0x1f0] sm:$0xff] }
 0x26a   : > { %4908 = vperm.xlu0 %10566, %v12232_v32   ;;  %2343 = vperm.xlu1 %10314, %v12243_v57  }
 0x26c   : > { %v12249_v27 = vpop.permute.xlu0 %5131 }
 0x26d   : > { %17294 = vst [vmem:[#allocation204_spill] sm:$0xff] %v12249_v27  ;;  %v12251_v7 = vpop.permute.xlu1 %3013 }
 0x26e   : > { %17295 = vst [vmem:[#allocation205_spill] sm:$0xff] %v12251_v7  ;;  %4903 = vperm.xlu0 %10566, %v9334_v53   ;;  %10315 = vset.pattern.permute.xlu1 %v17176_v28  ;;  %v9339_v7 = vld [vmem:[%s17080_s6 + $0x1d8] sm:$0xff] }
 0x26f   : > { %2597 = vperm.xlu1 %10315, %v11650_v11  }
 0x270   : > { %v12258_v1 = vpop.permute.xlu0 %5119 }
 0x271   : > { %17296 = vst [vmem:[#allocation206_spill] sm:$0xff] %v12258_v1 }
 0x272   : > { %4943 = vperm.xlu0 %10566, %v9342_v12   ;;  %v12260_v33 = vpop.permute.xlu1 %3267  ;;  %v9338_v12 = vld [vmem:[%s17080_s6 + $0x1d0] sm:$0xff] }
 0x273   : > { %17297 = vst [vmem:[#allocation207_spill] sm:$0xff] %v12260_v33  ;;  %10316 = vset.pattern.permute.xlu1 %v17184_v30 }
 0x274   : > { %2977 = vperm.xlu1 %10316, %v12161_v9   ;;  %v12264_v27 = vpop.permute.xlu0 %5171 }
 0x275   : > { %17298 = vst [vmem:[#allocation208_spill] sm:$0xff] %v12264_v27 }
 0x276   : > { %4938 = vperm.xlu0 %10566, %v11721_v54  }
 0x277   : > { %v12267_v53 = vpop.permute.xlu1 %2755 }
 0x278   : > { %10317 = vset.pattern.permute.xlu1 %v17194_v63  ;;  %v12273_v1 = vpop.permute.xlu0 %5239 }
 0x279   : > { %17299 = vst [vmem:[#allocation209_spill] sm:$0xff] %v12273_v1  ;;  %3231 = vperm.xlu1 %10317, %v12041_v37   ;;  %v9354_v1 = vld [vmem:[%s17080_s6 + $0x250] sm:$0xff] }
 0x27a   : > { %4928 = vperm.xlu0 %10566, %v9339_v7  }
 0x27c   : > { %v12279_v27 = vpop.permute.xlu1 %3009  ;;  %v12281_v54 = vpop.permute.xlu0 %5235 }
 0x27d   : > { %17300 = vst [vmem:[#allocation210_spill] sm:$0xff] %v12279_v27  ;;  %17301 = vst [vmem:[#allocation211_spill] sm:$0xff] %v12281_v54  ;;  %10318 = vset.pattern.permute.xlu1 %v17176_v28  ;;  %v17305_v54 = vmov 2  }
 0x27e   : > { %4923 = vperm.xlu0 %10566, %v9338_v12   ;;  %2593 = vperm.xlu1 %10318, %v12243_v57  }
 0x280   : > { %v12288_v33 = vpop.permute.xlu0 %5159 }
 0x281   : > { %17302 = vst [vmem:[#allocation212_spill] sm:$0xff] %v12288_v33  ;;  %v12290_v7 = vpop.permute.xlu1 %2497 }
 0x282   : > { %17303 = vst [vmem:[#allocation213_spill] sm:$0xff] %v12290_v7  ;;  %5003 = vperm.xlu0 %10566, %v9354_v1   ;;  %10319 = vset.pattern.permute.xlu1 %v17190_v55 }
 0x283   : > { %2847 = vperm.xlu1 %10319, %v11650_v11  }
 0x284   : > { %v12294_v27 = vpop.permute.xlu0 %5227 }
 0x285   : > { %17304 = vst [vmem:[#allocation214_spill] sm:$0xff] %v12294_v27  ;;  %v12313_v27 = vld [vmem:[%s17080_s6 + $0xd8] sm:$0xff] }
 0x286   : > { %10575 = vset.pattern.permute.xlu0 %v17305_v54  ;;  %v12297_v12 = vpop.permute.xlu1 %2751 }
 0x287   : > { %17306 = vst [vmem:[#allocation215_spill] sm:$0xff] %v12297_v12  ;;  %1731 = vperm.xlu0 %10575, %v12041_v37   ;;  %10320 = vset.pattern.permute.xlu1 %v17194_v63 }
 0x288   : > { %3227 = vperm.xlu1 %10320, %v12161_v9   ;;  %v12302_v33 = vpop.permute.xlu0 %5223 }
 0x289   : > { %17307 = vst [vmem:[#allocation216_spill] sm:$0xff] %v12302_v33 }
 0x28b   : > { %1743 = vperm.xlu0 %10575, %v12022_v4   ;;  %v12305_v1 = vpop.permute.xlu1 %3259 }
 0x28c   : > { %17308 = vst [vmem:[#allocation217_spill] sm:$0xff] %v12305_v1  ;;  %10321 = vset.pattern.permute.xlu1 %v17163_v20  ;;  %v12308_v7 = vpop.permute.xlu0 %5147 }
 0x28d   : > { %17309 = vst [vmem:[#allocation218_spill] sm:$0xff] %v12308_v7  ;;  %2335 = vperm.xlu1 %10321, %v12313_v27  }
 0x28f   : > { %1751 = vperm.xlu0 %10575, %v11983_v13  }
 0x290   : > { %v12317_v37 = vpop.permute.xlu1 %2493 }
 0x291   : > { %17310 = vst [vmem:[#allocation219_spill] sm:$0xff] %v12317_v37  ;;  %v12319_v9 = vpop.permute.xlu0 %1228  ;;  %10322 = vset.pattern.permute.xlu1 %v17190_v55 }
 0x292   : > { %2843 = vperm.xlu1 %10322, %v12243_v57  }
 0x293   : > { %1759 = vperm.xlu0 %10575, %v12004_v16  }
 0x295   : > { %v12324_v4 = vpop.permute.xlu1 %3001  ;;  %v12326_v33 = vpop.permute.xlu0 %1233 }
 0x296   : > { %17311 = vst [vmem:[#allocation220_spill] sm:$0xff] %v12324_v4  ;;  %17312 = vst [vmem:[#allocation221_spill] sm:$0xff] %v12326_v33  ;;  %10323 = vset.pattern.permute.xlu1 %v17184_v30 }
 0x297   : > { %1767 = vperm.xlu0 %10575, %v11564_v18   ;;  %3097 = vperm.xlu1 %10323, %v11650_v11  }
 0x299   : > { %v12331_v13 = vpop.permute.xlu0 %1248 }
 0x29a   : > { %v12333_v7 = vpop.permute.xlu1 %3255 }
 0x29b   : > { %1775 = vperm.xlu0 %10575, %v11575_v21   ;;  %10324 = vset.pattern.permute.xlu1 %v17163_v20 }
 0x29c   : > { %2331 = vperm.xlu1 %10324, %v11632_v29  }
 0x29d   : > { %v12338_v16 = vpop.permute.xlu0 %1258 }
 0x29f   : > { %1783 = vperm.xlu0 %10575, %v12100_v31   ;;  %v12341_v54 = vpop.permute.xlu1 %2743 }
 0x2a0   : > { %17313 = vst [vmem:[#allocation222_spill] sm:$0xff] %v12341_v54  ;;  %10325 = vset.pattern.permute.xlu1 %v17176_v28 }
 0x2a1   : > { %2585 = vperm.xlu1 %10325, %v12313_v27   ;;  %v12345_v18 = vpop.permute.xlu0 %1268 }
 0x2a3   : > { %1791 = vperm.xlu0 %10575, %v11592_v3  }
 0x2a4   : > { %v12348_v4 = vpop.permute.xlu1 %2997 }
 0x2a5   : > { %17314 = vst [vmem:[#allocation223_spill] sm:$0xff] %v12348_v4  ;;  %10326 = vset.pattern.permute.xlu1 %v17184_v30  ;;  %v12351_v21 = vpop.permute.xlu0 %1278 }
 0x2a6   : > { %3093 = vperm.xlu1 %10326, %v12243_v57  }
 0x2a7   : > { %1799 = vperm.xlu0 %10575, %v12119_v39  }
 0x2a9   : > { %v12355_v31 = vpop.permute.xlu1 %2485  ;;  %v12357_v54 = vpop.permute.xlu0 %1288 }
 0x2aa   : > { %10327 = vset.pattern.permute.xlu1 %v17194_v63 }
 0x2ab   : > { %1807 = vperm.xlu0 %10575, %v11609_v58   ;;  %3347 = vperm.xlu1 %10327, %v11650_v11  }
 0x2ad   : > { %v12362_v3 = vpop.permute.xlu0 %1298 }
 0x2ae   : > { %v12364_v37 = vpop.permute.xlu1 %2739 }
 0x2af   : > { %17315 = vst [vmem:[#allocation224_spill] sm:$0xff] %v12364_v37  ;;  %1815 = vperm.xlu0 %10575, %v12137_v23   ;;  %10328 = vset.pattern.permute.xlu1 %v17176_v28 }
 0x2b0   : > { %2581 = vperm.xlu1 %10328, %v11632_v29  }
 0x2b1   : > { %v12369_v39 = vpop.permute.xlu0 %1308 }
 0x2b2   : > { %17316 = vst [vmem:[#allocation225_spill] sm:$0xff] %v12369_v39 }
 0x2b3   : > { %1823 = vperm.xlu0 %10575, %v12147_v61   ;;  %v12372_v1 = vpop.permute.xlu1 %3247 }
 0x2b4   : > { %17317 = vst [vmem:[#allocation226_spill] sm:$0xff] %v12372_v1  ;;  %10329 = vset.pattern.permute.xlu1 %v17190_v55 }
 0x2b5   : > { %2835 = vperm.xlu1 %10329, %v12313_v27   ;;  %v12376_v58 = vpop.permute.xlu0 %1318 }
 0x2b6   : > { %17318 = vst [vmem:[#allocation227_spill] sm:$0xff] %v12376_v58 }
 0x2b7   : > { %1831 = vperm.xlu0 %10575, %v11632_v29  }
 0x2b8   : > { %v12379_v37 = vpop.permute.xlu1 %2481 }
 0x2b9   : > { %17319 = vst [vmem:[#allocation228_spill] sm:$0xff] %v12379_v37  ;;  %10330 = vset.pattern.permute.xlu1 %v17194_v63  ;;  %v12382_v12 = vpop.permute.xlu0 %1328 }
 0x2ba   : > { %17320 = vst [vmem:[#allocation229_spill] sm:$0xff] %v12382_v12  ;;  %3343 = vperm.xlu1 %10330, %v12243_v57   ;;  %v10644_v12 = vld [vmem:[%s17080_s6 + $0x120] sm:$0xff] }
 0x2bb   : > { %1839 = vperm.xlu0 %10575, %v12169_v19  }
 0x2bd   : > { %v12386_v39 = vpop.permute.xlu1 %2989  ;;  %v12388_v1 = vpop.permute.xlu0 %1338 }
 0x2be   : > { %17321 = vst [vmem:[#allocation230_spill] sm:$0xff] %v12386_v39  ;;  %17322 = vst [vmem:[#allocation231_spill] sm:$0xff] %v12388_v1  ;;  %10331 = vset.pattern.permute.xlu1 %v17163_v20 }
 0x2bf   : > { %1847 = vperm.xlu0 %10575, %v11650_v11   ;;  %2323 = vperm.xlu1 %10331, %v12147_v61  }
 0x2c1   : > { %v12393_v58 = vpop.permute.xlu0 %1348 }
 0x2c2   : > { %17323 = vst [vmem:[#allocation232_spill] sm:$0xff] %v12393_v58  ;;  %v12395_v37 = vpop.permute.xlu1 %3243 }
 0x2c3   : > { %17324 = vst [vmem:[#allocation233_spill] sm:$0xff] %v12395_v37  ;;  %10332 = vset.pattern.permute.xlu1 %v17190_v55  ;;  %1855 = vperm.xlu0 %10575, %v12187_v35  }
 0x2c4   : > { %2831 = vperm.xlu1 %10332, %v11632_v29  }
 0x2c5   : > { %v12400_v19 = vpop.permute.xlu0 %1358 }
 0x2c6   : > { %17325 = vst [vmem:[#allocation234_spill] sm:$0xff] %v12400_v19 }
 0x2c7   : > { %v12402_v57 = vpop.permute.xlu1 %2477  ;;  %1863 = vperm.xlu0 %10575, %v12197_v0   ;;  %v12420_v0 = vld [vmem:[%s17080_s6 + $0xb8] sm:$0xff] }
 0x2c8   : > { %17326 = vst [vmem:[#allocation235_spill] sm:$0xff] %v12402_v57  ;;  %10333 = vset.pattern.permute.xlu1 %v17184_v30  ;;  %17330 = vst [vmem:[#allocation239_spill] sm:$0xff] %v12420_v0  ;;  %v17360_v57 = vld [vmem:[#allocation20_spill] sm:$0xff] }
 0x2c9   : > { %3085 = vperm.xlu1 %10333, %v12313_v27   ;;  %v12407_v11 = vpop.permute.xlu0 %1368 }
 0x2ca   : > { %17327 = vst [vmem:[#allocation236_spill] sm:$0xff] %v12407_v11 }
 0x2cb   : > { %1871 = vperm.xlu0 %10575, %v10644_v12  }
 0x2cc   : > { %v12412_v35 = vpop.permute.xlu1 %2731 }
 0x2cd   : > { %17328 = vst [vmem:[#allocation237_spill] sm:$0xff] %v12412_v35  ;;  %10334 = vset.pattern.permute.xlu1 %v17163_v20  ;;  %v12415_v1 = vpop.permute.xlu0 %1378 }
 0x2ce   : > { %17329 = vst [vmem:[#allocation238_spill] sm:$0xff] %v12415_v1  ;;  %2319 = vperm.xlu1 %10334, %v12420_v0  }
 0x2cf   : > { %1879 = vperm.xlu0 %10575, %v12214_v56  }
 0x2d1   : > { %v12424_v58 = vpop.permute.xlu1 %3239  ;;  %v12426_v19 = vpop.permute.xlu0 %1388 }
 0x2d2   : > { %17331 = vst [vmem:[#allocation240_spill] sm:$0xff] %v12424_v58  ;;  %17332 = vst [vmem:[#allocation241_spill] sm:$0xff] %v12426_v19  ;;  %10335 = vset.pattern.permute.xlu1 %v17176_v28  ;;  %v1655_v19 = vmul.f32 %v11947_v6, %v11441_v62  ;;  %v17361_v58 = vld [vmem:[#allocation35_spill] sm:$0xff] }
 0x2d3   : > { %2573 = vperm.xlu1 %10335, %v12147_v61   ;;  %1887 = vperm.xlu0 %10575, %v12226_v26  }
 0x2d5   : > { %v12431_v12 = vpop.permute.xlu0 %1398 }
 0x2d6   : > { %17333 = vst [vmem:[#allocation242_spill] sm:$0xff] %v12431_v12  ;;  %v12433_v37 = vpop.permute.xlu1 %2347  ;;  %v9332_v12 = vld [vmem:[%s17080_s6 + $0x1a0] sm:$0xff] }
 0x2d7   : > { %17334 = vst [vmem:[#allocation243_spill] sm:$0xff] %v12433_v37  ;;  %10336 = vset.pattern.permute.xlu1 %v17184_v30  ;;  %5385 = vperm.xlu0 %10575, %v12232_v32  }
 0x2d8   : > { %3081 = vperm.xlu1 %10336, %v11632_v29   ;;  %v1446_v29 = vmul.f32 %v11961_v5, %v11308_v48  ;;  %v9329_v48 = vld [vmem:[%s17080_s6 + $0x188] sm:$0xff] }
 0x2d9   : > { %v12438_v35 = vpop.permute.xlu0 %1408 }
 0x2da   : > { %17335 = vst [vmem:[#allocation244_spill] sm:$0xff] %v12438_v35  ;;  %v1905_v35 = vmul.f32 %v11965_v17, %v11587_v14  ;;  %v1696_v37 = vadd.f32 %v1655_v19, %v1446_v29  ;;  %v2405_v14 = vmul.f32 %v11991_v8, %v11383_v2  ;;  %v2655_v2 = vmul.f32 %v12007_v60, %v11286_v41 }
 0x2db   : > { %v12440_v1 = vpop.permute.xlu1 %2727  ;;  %5377 = vperm.xlu0 %10575, %v11879_v51  }
 0x2dc   : > { %17336 = vst [vmem:[#allocation245_spill] sm:$0xff] %v12440_v1  ;;  %10337 = vset.pattern.permute.xlu1 %v17194_v63  ;;  %v2155_v1 = vmul.f32 %v11974_v22, %v11761_v24 }
 0x2dd   : > { %3335 = vperm.xlu1 %10337, %v12313_v27   ;;  %v12450_v32 = vpop.permute.xlu0 %1418  ;;  %v1946_v27 = vadd.f32 %v1905_v35, %v1696_v37  ;;  %v1440_v37 = vmul.f32 %v11961_v5, %v11290_v42  ;;  %v1442_v35 = vmul.f32 %v11961_v5, %v11296_v44  ;;  %v12497_v42 = vmul.f32 %v12007_v60, %v11298_v45 }
 0x2de   : > { %17337 = vst [vmem:[#allocation246_spill] sm:$0xff] %v12450_v32  ;;  %v12509_v44 = vmul.f32 %v12007_v60, %v11310_v49  ;;  %v17348_v49 = vld [vmem:[#allocation26_spill] sm:$0xff] }
 0x2df   : > { %5373 = vperm.xlu0 %10575, %v9332_v12   ;;  %v2196_v19 = vadd.f32 %v2155_v1, %v1946_v27  ;;  %v12486_v1 = vmul.f32 %v12007_v60, %v11292_v43  ;;  %17343 = vst [vmem:[#allocation252_spill] sm:$0xff] %v12497_v42  ;;  %v12503_v43 = vmul.f32 %v12007_v60, %v11304_v47 }
 0x2e0   : > { %v12456_v51 = vpop.permute.xlu1 %2981  ;;  %v1448_v27 = vmul.f32 %v11961_v5, %v11314_v50  ;;  %v12521_v47 = vmul.f32 %v11991_v8, %v11364_v36  ;;  %v1646_v50 = vmul.f32 %v11947_v6, %v11411_v59  ;;  %v10646_v36 = vld [vmem:[%s17080_s6 + $0xc8] sm:$0xff]  ;;  %v9327_v59 = vld [vmem:[%s17080_s6 + $0x178] sm:$0xff] }
 0x2e1   : > { %17338 = vst [vmem:[#allocation247_spill] sm:$0xff] %v12456_v51  ;;  %10338 = vset.pattern.permute.xlu1 %v17163_v20  ;;  %v12461_v62 = vpop.permute.xlu0 %1428  ;;  %17342 = vst [vmem:[#allocation251_spill] sm:$0xff] %v12486_v1  ;;  %v2446_v29 = vadd.f32 %v2405_v14, %v2196_v19  ;;  %v1647_v14 = vmul.f32 %v11947_v6, %v17348_v49  ;;  %v17358_v51 = vld [vmem:[#allocation18_spill] sm:$0xff] }
 0x2e2   : > { %17339 = vst [vmem:[#allocation248_spill] sm:$0xff] %v12461_v62  ;;  %2387 = vperm.xlu1 %10338, %v12226_v26   ;;  %v1437_v26 = vmul.f32 %v11961_v5, %v11278_v38  ;;  %v9328_v38 = vld [vmem:[%s17080_s6 + $0x180] sm:$0xff]  ;;  %17347 = vst [vmem:[#allocation256_spill] sm:$0xff] %v12521_v47  ;;  %v12554_v11 = vmul.f32 %v11991_v8, %v17358_v51  ;;  %v1657_v47 = vmul.f32 %v11947_v6, %v17361_v58  ;;  %v9326_v58 = vld [vmem:[%s17080_s6 + $0x170] sm:$0xff] }
 0x2e3   : > { %5365 = vperm.xlu0 %10575, %v11891_v15   ;;  %v1438_v15 = vmul.f32 %v11961_v5, %v11284_v40  ;;  %v1444_v40 = vmul.f32 %v11961_v5, %v11302_v46  ;;  %v12513_v46 = vmul.f32 %v12007_v60, %v11321_v52  ;;  %v17349_v52 = vld [vmem:[#allocation28_spill] sm:$0xff] }
 0x2e4   : > { %v1649_v19 = vmul.f32 %v11947_v6, %v17349_v52  ;;  %v17354_v52 = vld [vmem:[#allocation40_spill] sm:$0xff] }
 0x2e5   : > { %v12470_v12 = vpop.permute.xlu1 %2343  ;;  %v12472_v24 = vpop.permute.xlu0 %4908  ;;  %17345 = vst [vmem:[#allocation254_spill] sm:$0xff] %v12513_v46  ;;  %v2905_v62 = vmul.f32 %v12025_v10, %v17354_v52  ;;  %v17362_v52 = vld [vmem:[#allocation23_spill] sm:$0xff]  ;;  %v1688_v42 = vadd.f32 %v1647_v14, %v1438_v15  ;;  %v10647_v15 = vld [vmem:[%s17080_s6 + $0xd0] sm:$0xff] }
 0x2e6   : > { %17340 = vst [vmem:[#allocation249_spill] sm:$0xff] %v12470_v12  ;;  %17341 = vst [vmem:[#allocation250_spill] sm:$0xff] %v12472_v24  ;;  %10339 = vset.pattern.permute.xlu1 %v17176_v28  ;;  %v17357_v12 = vld [vmem:[#allocation15_spill] sm:$0xff]  ;;  %v12562_v39 = vmul.f32 %v11947_v6, %v17362_v52 }
 0x2e7   : > { %2569 = vperm.xlu1 %10339, %v12420_v0   ;;  %5361 = vperm.xlu0 %10575, %v9329_v48   ;;  %v1464_v48 = vmul.f32 %v11961_v5, %v11368_v25  ;;  %v17351_v25 = vld [vmem:[#allocation32_spill] sm:$0xff] }
 0x2e8   : > { %v1653_v32 = vmul.f32 %v11947_v6, %v17351_v25  ;;  %v2696_v25 = vadd.f32 %v2655_v2, %v2446_v29  ;;  %v17363_v2 = vld [vmem:[#allocation22_spill] sm:$0xff] }
 0x2e9   : > { %v12499_v41 = vpop.permute.xlu0 %4903  ;;  %v12566_v29 = vmul.f32 %v11991_v8, %v17363_v2  ;;  %v17367_v2 = vld [vmem:[#allocation94_spill] sm:$0xff] }
 0x2ea   : > { %17344 = vst [vmem:[#allocation253_spill] sm:$0xff] %v12499_v41  ;;  %v12515_v45 = vpop.permute.xlu1 %2597  ;;  %v17350_v41 = vld [vmem:[#allocation30_spill] sm:$0xff]  ;;  %v1694_v1 = vadd.f32 %v1653_v32, %v1444_v40 }
 0x2eb   : > { %17346 = vst [vmem:[#allocation255_spill] sm:$0xff] %v12515_v45  ;;  %10340 = vset.pattern.permute.xlu1 %v17184_v30  ;;  %5357 = vperm.xlu0 %10575, %v9328_v38   ;;  %v1651_v24 = vmul.f32 %v11947_v6, %v17350_v41  ;;  %v17352_v38 = vld [vmem:[#allocation14_spill] sm:$0xff]  ;;  %v17355_v41 = vld [vmem:[#allocation51_spill] sm:$0xff]  ;;  %17359 = vst [vmem:[#allocation30_spill] sm:$0xff] %v12554_v11 }
 0x2ec   : > { %3077 = vperm.xlu1 %10340, %v10646_v36   ;;  %v12542_v49 = vmul.f32 %v11991_v8, %v17352_v38  ;;  %v1675_v45 = vmul.f32 %v11947_v6, %v17355_v41  ;;  %v1466_v36 = vmul.f32 %v11961_v5, %v17357_v12  ;;  %v2425_v38 = vmul.f32 %v11991_v8, %v17360_v57  ;;  %v17365_v12 = vld [vmem:[#allocation91_spill] sm:$0xff]  ;;  %v17372_v40 = vld [vmem:[#allocation42_spill] sm:$0xff] }
 0x2ed   : > { %v12548_v46 = vpop.permute.xlu0 %4943  ;;  %17364 = vst [vmem:[#allocation32_spill] sm:$0xff] %v12566_v29  ;;  %v1687_v41 = vadd.f32 %v1646_v50, %v1437_v26  ;;  %v1690_v57 = vadd.f32 %v1649_v19, %v1440_v37  ;;  %v3155_v26 = vmul.f32 %v12032_v34, %v17367_v2  ;;  %v2946_v50 = vadd.f32 %v2905_v62, %v2696_v25  ;;  %v17368_v29 = vld [vmem:[#allocation131_spill] sm:$0xff]  ;;  %v17370_v37 = vld [vmem:[#allocation38_spill] sm:$0xff]  ;;  %v17374_v62 = vld [vmem:[#allocation49_spill] sm:$0xff] }
 0x2ee   : > { %17353 = vst [vmem:[#allocation26_spill] sm:$0xff] %v12542_v49  ;;  %17356 = vst [vmem:[#allocation28_spill] sm:$0xff] %v12548_v46  ;;  %v1925_v46 = vmul.f32 %v11965_v17, %v17365_v12  ;;  %v1692_v49 = vadd.f32 %v1651_v24, %v1442_v35  ;;  %v1716_v52 = vadd.f32 %v1675_v45, %v1466_v36  ;;  %v17375_v19 = vld [vmem:[#allocation44_spill] sm:$0xff]  ;;  %v17377_v25 = vld [vmem:[#allocation63_spill] sm:$0xff] }
 0x2ef   : > { %v12570_v51 = vpop.permute.xlu1 %2977  ;;  %5353 = vperm.xlu0 %10575, %v9327_v59   ;;  %v2175_v12 = vmul.f32 %v11974_v22, %v17368_v29  ;;  %v1698_v24 = vadd.f32 %v1657_v47, %v1448_v27  ;;  %v12587_v35 = vmul.f32 %v12025_v10, %v17370_v37  ;;  %v12591_v45 = vmul.f32 %v12025_v10, %v17372_v40  ;;  %v17378_v29 = vld [vmem:[#allocation65_spill] sm:$0xff]  ;;  %v17379_v2 = vld [vmem:[#allocation46_spill] sm:$0xff]  ;;  %v17381_v37 = vld [vmem:[#allocation48_spill] sm:$0xff] }
 0x2f0   : > { %17366 = vst [vmem:[#allocation14_spill] sm:$0xff] %v12570_v51  ;;  %10341 = vset.pattern.permute.xlu1 %v17194_v63  ;;  %v1673_v14 = vmul.f32 %v11947_v6, %v17374_v62  ;;  %v12597_v59 = vmul.f32 %v12025_v10, %v17375_v19  ;;  %v1896_v36 = vmul.f32 %v11965_v17, %v17377_v25  ;;  %v17382_v62 = vld [vmem:[#allocation67_spill] sm:$0xff]  ;;  %v17393_v11 = vld [vmem:[#allocation74_spill] sm:$0xff] }
 0x2f1   : > { %3331 = vperm.xlu1 %10341, %v10647_v15   ;;  %v12583_v32 = vpop.permute.xlu0 %4938  ;;  %17371 = vst [vmem:[#allocation51_spill] sm:$0xff] %v12587_v35  ;;  %17373 = vst [vmem:[#allocation15_spill] sm:$0xff] %v12591_v45  ;;  %v1897_v27 = vmul.f32 %v11965_v17, %v17378_v29  ;;  %v1966_v47 = vadd.f32 %v1925_v46, %v1716_v52  ;;  %v12605_v15 = vmul.f32 %v12025_v10, %v17379_v2  ;;  %v9325_v46 = vld [vmem:[%s17080_s6 + $0x168] sm:$0xff]  ;;  %v17386_v29 = vld [vmem:[#allocation70_spill] sm:$0xff] }
 0x2f2   : > { %17369 = vst [vmem:[#allocation40_spill] sm:$0xff] %v12583_v32  ;;  %17376 = vst [vmem:[#allocation18_spill] sm:$0xff] %v12597_v59  ;;  %v12609_v40 = vmul.f32 %v12025_v10, %v17381_v37  ;;  %v1899_v19 = vmul.f32 %v11965_v17, %v17382_v62  ;;  %v17383_v32 = vld [vmem:[#allocation69_spill] sm:$0xff]  ;;  %v17387_v2 = vld [vmem:[#allocation167_spill] sm:$0xff]  ;;  %v3196_v62 = vadd.f32 %v3155_v26, %v2946_v50 }
 0x2f3   : > { %5349 = vperm.xlu0 %10575, %v9326_v58   ;;  %17380 = vst [vmem:[#allocation20_spill] sm:$0xff] %v12605_v15  ;;  %v1901_v51 = vmul.f32 %v11965_v17, %v17383_v32  ;;  %v17385_v58 = vld [vmem:[#allocation71_spill] sm:$0xff]  ;;  %v3405_v45 = vmul.f32 %v17387_v2, %v17386_v29  ;;  %v2216_v37 = vadd.f32 %v2175_v12, %v1966_v47  ;;  %v17389_v32 = vld [vmem:[#allocation50_spill] sm:$0xff]  ;;  %v17391_v15 = vld [vmem:[#allocation61_spill] sm:$0xff] }
 0x2f4   : > { %v12615_v25 = vpop.permute.xlu1 %3231  ;;  %v1903_v52 = vmul.f32 %v11965_v17, %v17385_v58  ;;  %v1714_v63 = vadd.f32 %v1673_v14, %v1464_v48  ;;  %v12633_v59 = vmul.f32 %v11965_v17, %v17391_v15  ;;  %v1907_v58 = vmul.f32 %v11965_v17, %v17393_v11  ;;  %v12640_v12 = vld [vmem:[%s17080_s6 + $0x138] sm:$0xff]  ;;  %v17394_v50 = vld [vmem:[#allocation68_spill] sm:$0xff] }
 0x2f5   : > { %17384 = vst [vmem:[#allocation35_spill] sm:$0xff] %v12615_v25  ;;  %10342 = vset.pattern.permute.xlu1 %v17163_v20  ;;  %v12625_v35 = vpop.permute.xlu0 %4928  ;;  %v12629_v25 = vmul.f32 %v12025_v10, %v17389_v32  ;;  %v1937_v26 = vadd.f32 %v1896_v36, %v1687_v41  ;;  %v1938_v48 = vadd.f32 %v1897_v27, %v1688_v42  ;;  %v17396_v47 = vld [vmem:[#allocation89_spill] sm:$0xff]  ;;  %v17397_v11 = vld [vmem:[#allocation72_spill] sm:$0xff]  ;;  %v9324_v42 = vld [vmem:[%s17080_s6 + $0x160] sm:$0xff] }
 0x2f6   : > { %17388 = vst [vmem:[#allocation23_spill] sm:$0xff] %v12625_v35  ;;  %17392 = vst [vmem:[#allocation91_spill] sm:$0xff] %v12633_v59  ;;  %2383 = vperm.xlu1 %10342, %v12640_v12   ;;  %v12645_v14 = vmul.f32 %v17387_v2, %v17394_v50  ;;  %v1923_v15 = vmul.f32 %v11965_v17, %v17396_v47  ;;  %v1940_v29 = vadd.f32 %v1899_v19, %v1690_v57  ;;  %v17399_v36 = vld [vmem:[#allocation73_spill] sm:$0xff]  ;;  %v17403_v19 = vld [vmem:[#allocation75_spill] sm:$0xff] }
 0x2f7   : > { %17390 = vst [vmem:[#allocation22_spill] sm:$0xff] %v12629_v25  ;;  %5345 = vperm.xlu0 %10575, %v9325_v46   ;;  %v1942_v32 = vadd.f32 %v1901_v51, %v1692_v49  ;;  %v12651_v35 = vmul.f32 %v17387_v2, %v17397_v11  ;;  %v17398_v25 = vld [vmem:[#allocation114_spill] sm:$0xff]  ;;  %v1944_v41 = vadd.f32 %v1903_v52, %v1694_v1  ;;  %v17406_v1 = vld [vmem:[#allocation151_spill] sm:$0xff] }
 0x2f8   : > { %17395 = vst [vmem:[#allocation94_spill] sm:$0xff] %v12645_v14  ;;  %v2157_v59 = vmul.f32 %v11974_v22, %v17398_v25  ;;  %v12660_v27 = vmul.f32 %v17387_v2, %v17399_v36  ;;  %v2466_v50 = vadd.f32 %v2425_v38, %v2216_v37  ;;  %v3446_v51 = vadd.f32 %v3405_v45, %v3196_v62  ;;  %v17405_v25 = vld [vmem:[#allocation76_spill] sm:$0xff]  ;;  %v17410_v62 = vld [vmem:[#allocation98_spill] sm:$0xff] }
 0x2f9   : > { %v12662_v46 = vpop.permute.xlu1 %2593  ;;  %v12664_v49 = vpop.permute.xlu0 %4923  ;;  %v1948_v57 = vadd.f32 %v1907_v58, %v1698_v24  ;;  %v12668_v47 = vmul.f32 %v17387_v2, %v17403_v19  ;;  %v12672_v11 = vmul.f32 %v17387_v2, %v17405_v25  ;;  %v2407_v52 = vmul.f32 %v11991_v8, %v17406_v1  ;;  %v17407_v37 = vld [vmem:[#allocation92_spill] sm:$0xff]  ;;  %v17412_v19 = vld [vmem:[#allocation103_spill] sm:$0xff] }
 0x2fa   : > { %17400 = vst [vmem:[#allocation131_spill] sm:$0xff] %v12660_v27  ;;  %17401 = vst [vmem:[#allocation38_spill] sm:$0xff] %v12662_v46  ;;  %10343 = vset.pattern.permute.xlu1 %v17176_v28  ;;  %v12677_v38 = vadd.f32 %v1923_v15, %v1714_v63  ;;  %v12681_v36 = vmul.f32 %v12032_v34, %v17407_v37  ;;  %v17409_v24 = vld [vmem:[#allocation96_spill] sm:$0xff]  ;;  %v12690_v58 = vmul.f32 %v12032_v34, %v17410_v62  ;;  %v17413_v15 = vld [vmem:[#allocation158_spill] sm:$0xff] }
 0x2fb   : > { %17402 = vst [vmem:[#allocation42_spill] sm:$0xff] %v12664_v49  ;;  %17404 = vst [vmem:[#allocation49_spill] sm:$0xff] %v12668_v47  ;;  %v12685_v45 = vmul.f32 %v12032_v34, %v17409_v24  ;;  %2565 = vperm.xlu1 %10343, %v12137_v23   ;;  %5341 = vperm.xlu0 %10575, %v9324_v42   ;;  %v2146_v25 = vmul.f32 %v11974_v22, %v17412_v19  ;;  %v9323_v37 = vld [vmem:[%s17080_s6 + $0x158] sm:$0xff]  ;;  %v17414_v24 = vld [vmem:[#allocation100_spill] sm:$0xff] }
 0x2fc   : > { %17408 = vst [vmem:[#allocation44_spill] sm:$0xff] %v12681_v36  ;;  %17411 = vst [vmem:[#allocation63_spill] sm:$0xff] %v12690_v58  ;;  %v2198_v63 = vadd.f32 %v2157_v59, %v1948_v57  ;;  %v2657_v1 = vmul.f32 %v12007_v60, %v17413_v15  ;;  %v12701_v49 = vmul.f32 %v12032_v34, %v17414_v24  ;;  %v17416_v42 = vld [vmem:[#allocation105_spill] sm:$0xff]  ;;  %v17421_v58 = vld [vmem:[#allocation102_spill] sm:$0xff] }
 0x2fd   : > { %v2147_v46 = vmul.f32 %v11974_v22, %v17416_v42  ;;  %v2716_v62 = vadd.f32 %v12509_v44, %v2466_v50  ;;  %v12706_v27 = vpop.permute.xlu0 %5003  ;;  %v17418_v19 = vld [vmem:[#allocation169_spill] sm:$0xff]  ;;  %v3175_v14 = vmul.f32 %v12032_v34, %v17421_v58  ;;  %v17424_v42 = vld [vmem:[#allocation107_spill] sm:$0xff]  ;;  %v17427_v58 = vld [vmem:[#allocation104_spill] sm:$0xff] }
 0x2fe   : > { %17415 = vst [vmem:[#allocation65_spill] sm:$0xff] %v12701_v49  ;;  %17417 = vst [vmem:[#allocation46_spill] sm:$0xff] %v12706_v27  ;;  %v3493_v59 = vadd.f32 %v17418_v19, %v3446_v51  ;;  %v17419_v57 = vld [vmem:[#allocation101_spill] sm:$0xff]  ;;  %v2448_v47 = vadd.f32 %v2407_v52, %v2198_v63  ;;  %v12717_v49 = vpop.permute.xlu1 %2847  ;;  %v2149_v44 = vmul.f32 %v11974_v22, %v17424_v42  ;;  %v17426_v51 = vld [vmem:[#allocation111_spill] sm:$0xff] }
 0x2ff   : > { %v12711_v15 = vmul.f32 %v11974_v22, %v17419_v57  ;;  %v17422_v36 = vld [vmem:[#allocation165_spill] sm:$0xff]  ;;  %17423 = vst [vmem:[#allocation67_spill] sm:$0xff] %v12717_v49  ;;  %v2153_v4 = vmul.f32 %v11974_v22, %v17426_v51  ;;  %10344 = vset.pattern.permute.xlu1 %v17190_v55  ;;  %5337 = vperm.xlu0 %10575, %v9323_v37   ;;  %v17429_v63 = vld [vmem:[#allocation174_spill] sm:$0xff]  ;;  %v9322_v42 = vld [vmem:[%s17080_s6 + $0x150] sm:$0xff] }
 0x300   : > { %v2907_v24 = vmul.f32 %v12025_v10, %v17422_v36  ;;  %v17425_v50 = vld [vmem:[#allocation109_spill] sm:$0xff]  ;;  %v2187_v57 = vadd.f32 %v2146_v25, %v1937_v26  ;;  %v12728_v52 = vmul.f32 %v12032_v34, %v17427_v58  ;;  %v2698_v36 = vadd.f32 %v2657_v1, %v2448_v47  ;;  %2819 = vperm.xlu1 %10344, %v12420_v0   ;;  %v17432_v1 = vld [vmem:[#allocation183_spill] sm:$0xff] }
 0x301   : > { %17420 = vst [vmem:[#allocation48_spill] sm:$0xff] %v12711_v15  ;;  %v2151_v27 = vmul.f32 %v11974_v22, %v17425_v50  ;;  %v3157_v49 = vmul.f32 %v12032_v34, %v17429_v63  ;;  %v2188_v50 = vadd.f32 %v2147_v46, %v1938_v48  ;;  %v2966_v51 = vadd.f32 %v12609_v40, %v2716_v62  ;;  %v17430_v26 = vld [vmem:[#allocation145_spill] sm:$0xff]  ;;  %v17434_v46 = vld [vmem:[#allocation118_spill] sm:$0xff] }
 0x302   : > { %17428 = vst [vmem:[#allocation69_spill] sm:$0xff] %v12728_v52  ;;  %vm3534_vm1 = vcmp.gt.f32.partialorder %v3493_v59, 0.0  ;;  %v3575_v37 = vmul.f32 0.01, %v3493_v59  ;;  %v2397_v25 = vmul.f32 %v11991_v8, %v17430_v26  ;;  %v2948_v58 = vadd.f32 %v2907_v24, %v2698_v36  ;;  %v17431_v52 = vld [vmem:[#allocation177_spill] sm:$0xff]  ;;  %v12743_v15 = vpop.permute.xlu0 %1731  ;;  %v17437_v24 = vld [vmem:[#allocation120_spill] sm:$0xff] }
 0x303   : > { %v2403_v47 = vmul.f32 %v11991_v8, %v17431_v52  ;;  %v3407_v63 = vmul.f32 %v17387_v2, %v17432_v1  ;;  %17433 = vst [vmem:[#allocation71_spill] sm:$0xff] %v12743_v15  ;;  %v2190_v0 = vadd.f32 %v2149_v44, %v1940_v29  ;;  %v12745_v33 = vadd.f32 %v2151_v27, %v1942_v32  ;;  %v12751_v62 = vpop.permute.xlu1 %3227  ;;  %v17439_v52 = vld [vmem:[#allocation129_spill] sm:$0xff]  ;;  %v17440_v15 = vld [vmem:[#allocation186_spill] sm:$0xff]  ;;  %v17442_v27 = vld [vmem:[#allocation143_spill] sm:$0xff] }
 0x304   : > { %v2194_v48 = vadd.f32 %v2153_v4, %v1944_v41  ;;  %v12749_v40 = vmul.f32 %v11974_v22, %v17434_v46  ;;  %17436 = vst [vmem:[#allocation167_spill] sm:$0xff] %v12751_v62  ;;  %5333 = vperm.xlu0 %10575, %v9322_v42   ;;  %v12755_v36 = vmul.f32 %v11974_v22, %v17437_v24  ;;  %v9321_v4 = vld [vmem:[%s17080_s6 + $0x148] sm:$0xff]  ;;  %v17441_v32 = vld [vmem:[#allocation122_spill] sm:$0xff]  ;;  %v17444_v24 = vld [vmem:[#allocation196_spill] sm:$0xff] }
 0x305   : > { %v2173_v26 = vmul.f32 %v11974_v22, %v17439_v52  ;;  %v3198_v1 = vadd.f32 %v3157_v49, %v2948_v58  ;;  %v2653_v29 = vmul.f32 %v12007_v60, %v17440_v15  ;;  %10345 = vset.pattern.permute.xlu1 %v17184_v30  ;;  %v12767_v41 = vmul.f32 %v11974_v22, %v17441_v32 }
 0x306   : > { %17435 = vst [vmem:[#allocation70_spill] sm:$0xff] %v12749_v40  ;;  %17438 = vst [vmem:[#allocation50_spill] sm:$0xff] %v12755_v36  ;;  %v2396_v44 = vmul.f32 %v11991_v8, %v17442_v27  ;;  %3073 = vperm.xlu1 %10345, %v12147_v61   ;;  %v12773_v49 = vsel %vm3534_vm1, %v3493_v59, %v3575_v37  ;;  %v3216_v42 = vadd.f32 %v3175_v14, %v2966_v51  ;;  %v12777_v62 = vpop.permute.xlu0 %1743  ;;  %v17445_v40 = vld [vmem:[#allocation124_spill] sm:$0xff]  ;;  %v17446_v36 = vld [vmem:[#allocation126_spill] sm:$0xff] }
 0x307   : > { %17443 = vst [vmem:[#allocation61_spill] sm:$0xff] %v12773_v49  ;;  %v2438_v15 = vadd.f32 %v2397_v25, %v2188_v50  ;;  %v2444_v58 = vadd.f32 %v2403_v47, %v2194_v48  ;;  %v3448_v46 = vadd.f32 %v3407_v63, %v3198_v1  ;;  %v2903_v52 = vmul.f32 %v12025_v10, %v17444_v24  ;;  %v17447_v61 = vld [vmem:[#allocation128_spill] sm:$0xff]  ;;  %v17448_v14 = vld [vmem:[#allocation147_spill] sm:$0xff]  ;;  %v17450_v37 = vld [vmem:[#allocation130_spill] sm:$0xff] }
 0x308   : > { %v12781_v32 = vmul.f32 %v11974_v22, %v17445_v40  ;;  %v12785_v27 = vmul.f32 %v11974_v22, %v17446_v36  ;;  %v12789_v59 = vmul.f32 %v11974_v22, %v17447_v61  ;;  %v2399_v50 = vmul.f32 %v11991_v8, %v17448_v14  ;;  %5329 = vperm.xlu0 %10575, %v9321_v4   ;;  %v17451_v63 = vld [vmem:[#allocation205_spill] sm:$0xff]  ;;  %v12802_v40 = vpop.permute.xlu1 %2335  ;;  %v9352_v61 = vld [vmem:[%s17080_s6 + $0x240] sm:$0xff] }
 0x309   : > { %v12794_v51 = vadd.f32 %v2173_v26, %v12677_v38  ;;  %v12798_v25 = vmul.f32 %v11974_v22, %v17450_v37  ;;  %v2694_v47 = vadd.f32 %v2653_v29, %v2444_v58  ;;  %v3153_v48 = vmul.f32 %v12032_v34, %v17451_v63  ;;  %17452 = vst [vmem:[#allocation68_spill] sm:$0xff] %v12802_v40  ;;  %v17453_v36 = vld [vmem:[#allocation141_spill] sm:$0xff]  ;;  %v17455_v26 = vld [vmem:[#allocation144_spill] sm:$0xff]  ;;  %v17458_v58 = vld [vmem:[#allocation146_spill] sm:$0xff] }
 0x30a   : > { %v12809_v1 = vmul.f32 %v11991_v8, %v17453_v36  ;;  %v12811_v38 = vadd.f32 %v2396_v44, %v2187_v57  ;;  %v12815_v4 = vmul.f32 %v11974_v22, %v17455_v26  ;;  %10346 = vset.pattern.permute.xlu1 %v17163_v20  ;;  %v12819_v29 = vadd.f32 %v12672_v11, %v3216_v42  ;;  %v12829_v57 = vpop.permute.xlu0 %1751  ;;  %v12834_v44 = vld [vmem:[%s17080_s6 + $0xa0] sm:$0xff]  ;;  %v17462_v42 = vld [vmem:[#allocation149_spill] sm:$0xff]  ;;  %v17481_v20 = vld [vmem:[#allocation179_spill] sm:$0xff] }
 0x30b   : > { %17449 = vst [vmem:[#allocation74_spill] sm:$0xff] %v12794_v51  ;;  %v12823_v24 = vmul.f32 %v11974_v22, %v17458_v58  ;;  %v3495_v14 = vadd.f32 %v17418_v19, %v3448_v46  ;;  %v2944_v37 = vadd.f32 %v2903_v52, %v2694_v47  ;;  %v12827_v63 = vadd.f32 %v12503_v43, %v2438_v15  ;;  %v17464_v46 = vld [vmem:[#allocation153_spill] sm:$0xff]  ;;  %v17466_v43 = vld [vmem:[#allocation156_spill] sm:$0xff]  ;;  %v17467_v47 = vld [vmem:[#allocation162_spill] sm:$0xff] }
 0x30c   : > { %17454 = vst [vmem:[#allocation89_spill] sm:$0xff] %v12809_v1  ;;  %17456 = vst [vmem:[#allocation72_spill] sm:$0xff] %v12815_v4  ;;  %2307 = vperm.xlu1 %10346, %v12834_v44   ;;  %v12837_v11 = vadd.f32 %v2399_v50, %v2190_v0  ;;  %v12841_v36 = vmul.f32 %v11991_v8, %v17462_v42  ;;  %v12845_v52 = vmul.f32 %v12007_v60, %v17464_v46  ;;  %v17468_v58 = vld [vmem:[#allocation166_spill] sm:$0xff]  ;;  %v17469_v50 = vld [vmem:[#allocation168_spill] sm:$0xff] }
 0x30d   : > { %17457 = vst [vmem:[#allocation114_spill] sm:$0xff] %v12819_v29  ;;  %17459 = vst [vmem:[#allocation73_spill] sm:$0xff] %v12823_v24  ;;  %v12849_v15 = vmul.f32 %v11991_v8, %v17466_v43  ;;  %5453 = vperm.xlu0 %10575, %v9352_v61   ;;  %v12853_v26 = vmul.f32 %v12007_v60, %v17467_v47  ;;  %v12857_v0 = vmul.f32 %v11947_v6, %v17468_v58  ;;  %v9351_v46 = vld [vmem:[%s17080_s6 + $0x238] sm:$0xff]  ;;  %v17470_v43 = vld [vmem:[#allocation170_spill] sm:$0xff] }
 0x30e   : > { %17460 = vst [vmem:[#allocation75_spill] sm:$0xff] %v12827_v63  ;;  %17461 = vst [vmem:[#allocation76_spill] sm:$0xff] %v12834_v44  ;;  %v12861_v42 = vmul.f32 %v11947_v6, %v17469_v50  ;;  %v3194_v40 = vadd.f32 %v3153_v48, %v2944_v37  ;;  %v12868_v61 = vmul.f32 %v11991_v8, %v17470_v43  ;;  %v17471_v22 = vld [vmem:[#allocation175_spill] sm:$0xff]  ;;  %v17472_v29 = vld [vmem:[#allocation193_spill] sm:$0xff]  ;;  %v12876_v50 = vpop.permute.xlu1 %2843  ;;  %v1760_v44 = vpop.permute.xlu0 %1759  ;;  %vm3536_vm2 = vcmp.gt.f32.partialorder %v3495_v14, 0.0 }
 0x30f   : > { %17463 = vst [vmem:[#allocation151_spill] sm:$0xff] %v12841_v36  ;;  %17465 = vst [vmem:[#allocation92_spill] sm:$0xff] %v12845_v52  ;;  %v1654_v47 = vmul.f32 %v11947_v6, %v17471_v22  ;;  %v2401_v58 = vmul.f32 %v11991_v8, %v17472_v29  ;;  %v1445_v24 = vmul.f32 %v11961_v5, %v12351_v21  ;;  %v17474_v48 = vld [vmem:[#allocation171_spill] sm:$0xff]  ;;  %v17475_v51 = vld [vmem:[#allocation172_spill] sm:$0xff]  ;;  %v3577_v22 = vmul.f32 0.01, %v3495_v14 }
 0x310   : > { %17473 = vst [vmem:[#allocation96_spill] sm:$0xff] %v12876_v50  ;;  %v1650_v37 = vmul.f32 %v11947_v6, %v17474_v48  ;;  %v12882_v4 = vmul.f32 %v12025_v10, %v17475_v51  ;;  %v17477_v43 = vld [vmem:[#allocation173_spill] sm:$0xff]  ;;  %2379 = vperm.xlu1 %10346, %v12214_v56   ;;  %v17478_v29 = vld [vmem:[#allocation176_spill] sm:$0xff]  ;;  %v17479_v21 = vld [vmem:[#allocation202_spill] sm:$0xff]  ;;  %v1443_v48 = vmul.f32 %v11961_v5, %v12345_v18 }
 0x311   : > { %v1652_v49 = vmul.f32 %v11947_v6, %v17477_v43  ;;  %v1656_v63 = vmul.f32 %v11947_v6, %v17478_v29  ;;  %v2651_v50 = vmul.f32 %v12007_v60, %v17479_v21  ;;  %5449 = vperm.xlu0 %10575, %v9351_v46   ;;  %v17480_v51 = vld [vmem:[#allocation178_spill] sm:$0xff]  ;;  %v12897_v43 = vmul.f32 %v12007_v60, %v17481_v20  ;;  %v17482_v56 = vld [vmem:[#allocation181_spill] sm:$0xff]  ;;  %v9350_v20 = vld [vmem:[%s17080_s6 + $0x230] sm:$0xff] }
 0x312   : > { %17476 = vst [vmem:[#allocation98_spill] sm:$0xff] %v12882_v4  ;;  %v1658_v1 = vmul.f32 %v11947_v6, %v17480_v51  ;;  %v12901_v52 = vmul.f32 %v12032_v34, %v17482_v56  ;;  %v3444_v29 = vadd.f32 %v12651_v35, %v3194_v40  ;;  %v2442_v21 = vadd.f32 %v2401_v58, %v12745_v33  ;;  %v17483_v51 = vld [vmem:[#allocation189_spill] sm:$0xff]  ;;  %v17484_v56 = vld [vmem:[#allocation191_spill] sm:$0xff]  ;;  %v12923_v40 = vpop.permute.xlu1 %3097 }
 0x313   : > { %v2901_v18 = vmul.f32 %v12025_v10, %v12267_v53  ;;  %v1695_v36 = vadd.f32 %v1654_v47, %v1445_v24  ;;  %v1447_v46 = vmul.f32 %v11961_v5, %v12357_v54  ;;  %v12914_v4 = vmul.f32 %v12025_v10, %v17483_v51  ;;  %v1768_v53 = vpop.permute.xlu0 %1767  ;;  %17486 = vst [vmem:[#allocation158_spill] sm:$0xff] %v12923_v40  ;;  %v17489_v40 = vld [vmem:[#allocation198_spill] sm:$0xff] }
 0x314   : > { %v12918_v35 = vmul.f32 %v17387_v2, %v17484_v56  ;;  %v1441_v33 = vmul.f32 %v11961_v5, %v12338_v16  ;;  %10347 = vset.pattern.permute.xlu1 %v17176_v28  ;;  %v12926_v54 = vsel %vm3536_vm2, %v3495_v14, %v3577_v22  ;;  %v2692_v24 = vadd.f32 %v2651_v50, %v2442_v21  ;;  %v17487_v56 = vld [vmem:[#allocation192_spill] sm:$0xff]  ;;  %v17488_v16 = vld [vmem:[#allocation194_spill] sm:$0xff]  ;;  %v9349_v21 = vld [vmem:[%s17080_s6 + $0x228] sm:$0xff] }
 0x315   : > { %v1693_v47 = vadd.f32 %v1652_v49, %v1443_v48  ;;  %v1902_v58 = vmul.f32 %v11965_v17, %v1760_v44  ;;  %v1904_v51 = vmul.f32 %v11965_v17, %v1768_v53  ;;  %2633 = vperm.xlu1 %10347, %v12640_v12   ;;  %v12937_v28 = vmul.f32 %v11947_v6, %v17488_v16  ;;  %v17490_v53 = vld [vmem:[#allocation200_spill] sm:$0xff] }
 0x316   : > { %17485 = vst [vmem:[#allocation103_spill] sm:$0xff] %v12918_v35  ;;  %v12933_v35 = vmul.f32 %v11947_v6, %v17487_v56  ;;  %v12941_v14 = vmul.f32 %v12032_v34, %v17489_v40  ;;  %v3491_v49 = vadd.f32 %v17418_v19, %v3444_v29  ;;  %5445 = vperm.xlu0 %10575, %v9350_v20   ;;  %v17491_v29 = vld [vmem:[#allocation207_spill] sm:$0xff] }
 0x317   : > { %v2942_v44 = vadd.f32 %v2901_v18, %v2692_v24  ;;  %v1697_v50 = vadd.f32 %v1656_v63, %v1447_v46  ;;  %v1449_v22 = vmul.f32 %v11961_v5, %v12362_v3  ;;  %v1945_v48 = vadd.f32 %v1904_v51, %v1695_v36  ;;  %v1776_v63 = vpop.permute.xlu0 %1775  ;;  %v12964_v20 = vpop.permute.xlu1 %2331 }
 0x318   : > { %v12951_v56 = vmul.f32 %v11991_v8, %v17490_v53  ;;  %v1439_v40 = vmul.f32 %v11961_v5, %v12331_v13  ;;  %v1691_v16 = vadd.f32 %v1650_v37, %v1441_v33  ;;  %v1900_v19 = vmul.f32 %v11965_v17, %v12829_v57  ;;  %v17492_v13 = vld [vmem:[#allocation213_spill] sm:$0xff] }
 0x319   : > { %v12959_v3 = vmul.f32 %v17387_v2, %v17491_v29  ;;  %v1943_v36 = vadd.f32 %v1902_v58, %v1693_v47  ;;  %v2195_v18 = vadd.f32 %v12785_v27, %v1945_v48  ;;  %v1906_v46 = vmul.f32 %v11965_v17, %v1776_v63  ;;  %10348 = vset.pattern.permute.xlu1 %v17190_v55  ;;  %v12977_v58 = vld [vmem:[%s17080_s6 + $0x220] sm:$0xff] }
 0x31a   : > { %v2649_v37 = vmul.f32 %v12007_v60, %v17492_v13  ;;  %v1435_v57 = vmul.f32 %v11961_v5, %v12319_v9  ;;  %v2646_v2 = vmul.f32 %v12007_v60, %v12355_v31  ;;  %2815 = vperm.xlu1 %10348, %v12137_v23   ;;  %vm3532_vm3 = vcmp.gt.f32.partialorder %v3491_v49, 0.0  ;;  %5441 = vperm.xlu0 %10575, %v9349_v21   ;;  %v12981_v9 = vld [vmem:[%s11935_s4 + $0x8] ss:$0 sm:$0xff] }
 0x31b   : > { %v3192_v27 = vadd.f32 %v12685_v45, %v2942_v44  ;;  %v1699_v33 = vadd.f32 %v1658_v1, %v1449_v22  ;;  %v1947_v24 = vadd.f32 %v1906_v46, %v1697_v50  ;;  %v3573_v47 = vmul.f32 0.01, %v3491_v49  ;;  %v1784_v45 = vpop.permute.xlu0 %1783 }
 0x31c   : > { %v1689_v51 = vadd.f32 %v12861_v42, %v1439_v40  ;;  %v3401_v31 = vmul.f32 %v12981_v9, %v12333_v7  ;;  %v1898_v23 = vmul.f32 %v11965_v17, %v12777_v62  ;;  %v1941_v48 = vadd.f32 %v1900_v19, %v1691_v16  ;;  %v12995_v7 = vpop.permute.xlu1 %2585  ;;  %v17493_v62 = vld [vmem:[#allocation221_spill] sm:$0xff]  ;;  %v17494_v40 = vld [vmem:[#allocation239_spill] sm:$0xff] }
 0x31d   : > { %v2193_v1 = vadd.f32 %v12781_v32, %v1943_v36  ;;  %v2445_v44 = vadd.f32 %v12868_v61, %v2195_v18  ;;  %v2197_v50 = vadd.f32 %v12789_v59, %v1947_v24  ;;  %v1908_v22 = vmul.f32 %v11965_v17, %v1784_v45  ;;  %v17495_v16 = vld [vmem:[#allocation223_spill] sm:$0xff] }
 0x31e   : > { %v2690_v42 = vadd.f32 %v2649_v37, %v12837_v11  ;;  %v1685_v21 = vadd.f32 %v12562_v39, %v1435_v57  ;;  %v2687_v53 = vadd.f32 %v2646_v2, %v12811_v38  ;;  %10349 = vset.pattern.permute.xlu1 %v17184_v30  ;;  %5437 = vperm.xlu0 %10575, %v12977_v58   ;;  %v13008_v39 = vld [vmem:[%s17080_s6 + $0x218] sm:$0xff]  ;;  %v17498_v37 = vld [vmem:[#allocation91_spill] sm:$0xff]  ;;  %v17499_v2 = vld [vmem:[#allocation18_spill] sm:$0xff]  ;;  %v17505_v45 = vmov 8  }
 0x31f   : > { %v1436_v32 = vmul.f32 %v11961_v5, %v17493_v62  ;;  %v2447_v61 = vadd.f32 %v12849_v15, %v2197_v50  ;;  %v1949_v59 = vadd.f32 %v1908_v22, %v1699_v33  ;;  %3069 = vperm.xlu1 %10349, %v17494_v40   ;;  %v13003_v11 = vsel %vm3532_vm3, %v3491_v49, %v3573_v47  ;;  %v13013_v36 = vpop.permute.xlu0 %1791  ;;  %v17497_v15 = vld [vmem:[#allocation30_spill] sm:$0xff]  ;;  %v17500_v33 = vld [vmem:[#allocation20_spill] sm:$0xff] }
 0x320   : > { %v3442_v38 = vadd.f32 %v3401_v31, %v3192_v27  ;;  %v3149_v19 = vmul.f32 %v12032_v34, %v17495_v16  ;;  %v1939_v63 = vadd.f32 %v1898_v23, %v1689_v51  ;;  %v2191_v29 = vadd.f32 %v12767_v41, %v1941_v48  ;;  %17496 = vst [vmem:[#allocation100_spill] sm:$0xff] %v13013_v36  ;;  %v17501_v47 = vld [vmem:[#allocation226_spill] sm:$0xff]  ;;  %v17502_v31 = vld [vmem:[#allocation71_spill] sm:$0xff] }
 0x321   : > { %v2443_v18 = vadd.f32 %v17497_v15, %v2193_v1  ;;  %v2695_v49 = vadd.f32 %v12897_v43, %v2445_v44  ;;  %v2697_v46 = vadd.f32 %v12853_v26, %v2447_v61  ;;  %v2199_v13 = vadd.f32 %v12798_v25, %v1949_v59  ;;  %v17503_v23 = vld [vmem:[#allocation98_spill] sm:$0xff]  ;;  %v17504_v48 = vld [vmem:[#allocation151_spill] sm:$0xff]  ;;  %v13031_v1 = vpop.permute.xlu1 %3093  ;;  %v9346_v44 = vld [vmem:[%s17080_s6 + $0x210] sm:$0xff] }
 0x322   : > { %v1935_v57 = vadd.f32 %v17498_v37, %v1685_v21  ;;  %v2940_v27 = vadd.f32 %v17499_v2, %v2690_v42  ;;  %v2937_v24 = vadd.f32 %v17500_v33, %v2687_v53  ;;  %v3399_v41 = vmul.f32 %v12981_v9, %v17501_v47  ;;  %5433 = vperm.xlu0 %10575, %v13008_v39   ;;  %v13037_v50 = vld [vmem:[%s12057_s8] ss:$0 sm:$0xff]  ;;  %v17509_v61 = vld [vmem:[#allocation251_spill] sm:$0xff]  ;;  %v17510_v15 = vld [vmem:[#allocation92_spill] sm:$0xff] }
 0x323   : > { %v1686_v51 = vadd.f32 %v12857_v0, %v1436_v32  ;;  %v1895_v43 = vmul.f32 %v11965_v17, %v17502_v31  ;;  %v2947_v26 = vadd.f32 %v17503_v23, %v2697_v46  ;;  %v2449_v25 = vadd.f32 %v17504_v48, %v2199_v13  ;;  %10350 = vset.pattern.permute.xlu1 %v17505_v45  ;;  %v17506_v42 = vld [vmem:[#allocation50_spill] sm:$0xff]  ;;  %v13042_v62 = vpop.permute.xlu0 %1799  ;;  %v17508_v32 = vld [vmem:[#allocation187_spill] sm:$0xff]  ;;  %v17513_v2 = vld [vmem:[#allocation65_spill] sm:$0xff] }
 0x324   : > { %v3489_v22 = vadd.f32 %v13037_v50, %v3442_v38  ;;  %v3190_v0 = vadd.f32 %v3149_v19, %v2940_v27  ;;  %v2189_v21 = vadd.f32 %v17506_v42, %v1939_v63  ;;  %v2441_v53 = vadd.f32 %v12951_v56, %v2191_v29  ;;  %17507 = vst [vmem:[#allocation105_spill] sm:$0xff] %v13042_v62  ;;  %v17511_v37 = vld [vmem:[#allocation210_spill] sm:$0xff]  ;;  %v17512_v19 = vld [vmem:[#allocation215_spill] sm:$0xff]  ;;  %v17514_v27 = vld [vmem:[#allocation217_spill] sm:$0xff] }
 0x325   : > { %3323 = vperm.xlu1 %10350, %v17508_v32   ;;  %v2693_v59 = vadd.f32 %v17509_v61, %v2443_v18  ;;  %v2945_v16 = vadd.f32 %v12914_v4, %v2695_v49  ;;  %v2699_v46 = vadd.f32 %v17510_v15, %v2449_v25  ;;  %v3197_v13 = vadd.f32 %v12901_v52, %v2947_v26  ;;  %v17515_v18 = vld [vmem:[#allocation48_spill] sm:$0xff]  ;;  %v17516_v49 = vld [vmem:[#allocation51_spill] sm:$0xff]  ;;  %v17517_v23 = vld [vmem:[#allocation26_spill] sm:$0xff] }
 0x326   : > { %v3152_v38 = vmul.f32 %v12032_v34, %v17511_v37  ;;  %v2900_v63 = vmul.f32 %v12025_v10, %v17512_v19  ;;  %v3187_v56 = vadd.f32 %v17513_v2, %v2937_v24  ;;  %v3440_v29 = vadd.f32 %v3399_v41, %v3190_v0  ;;  %5429 = vperm.xlu0 %10575, %v9346_v44   ;;  %v17518_v26 = vld [vmem:[#allocation252_spill] sm:$0xff]  ;;  %v13063_v32 = vpop.permute.xlu1 %3347  ;;  %v17521_v41 = vld [vmem:[#allocation15_spill] sm:$0xff]  ;;  %v17526_v19 = vld [vmem:[#allocation49_spill] sm:$0xff] }
 0x327   : > { %v3402_v33 = vmul.f32 %v12981_v9, %v17514_v27  ;;  %v2185_v47 = vadd.f32 %v17515_v18, %v1935_v57  ;;  %v1936_v4 = vadd.f32 %v1895_v43, %v1686_v51  ;;  %v2949_v31 = vadd.f32 %v17516_v49, %v2699_v46  ;;  %v13060_v25 = vpop.permute.xlu0 %1807  ;;  %v13069_v57 = vld [vmem:[%s17080_s6 + $0x128] sm:$0xff]  ;;  %v17522_v51 = vld [vmem:[#allocation44_spill] sm:$0xff]  ;;  %v17529_v49 = vld [vmem:[#allocation70_spill] sm:$0xff] }
 0x328   : > { %v2439_v52 = vadd.f32 %v17517_v23, %v2189_v21  ;;  %v2691_v48 = vadd.f32 %v17518_v26, %v2441_v53  ;;  %17519 = vst [vmem:[#allocation169_spill] sm:$0xff] %v13060_v25  ;;  %v17520_v42 = vmov 4   ;;  %vm3530_vm4 = vcmp.gt.f32.partialorder %v3489_v22, 0.0  ;;  %v17523_v0 = vld [vmem:[#allocation103_spill] sm:$0xff]  ;;  %v17525_v46 = vld [vmem:[#allocation224_spill] sm:$0xff]  ;;  %v17530_v23 = vld [vmem:[#allocation94_spill] sm:$0xff] }
 0x329   : > { %10351 = vset.pattern.permute.xlu1 %v17520_v42  ;;  %v3571_v24 = vmul.f32 0.01, %v3489_v22  ;;  %v2943_v44 = vadd.f32 %v17521_v41, %v2693_v59  ;;  %v3199_v43 = vadd.f32 %v17522_v51, %v2949_v31  ;;  %v3447_v21 = vadd.f32 %v17523_v0, %v3197_v13  ;;  %v17524_v61 = vld [vmem:[#allocation219_spill] sm:$0xff]  ;;  %v17527_v13 = vld [vmem:[#allocation220_spill] sm:$0xff]  ;;  %v17531_v41 = vld [vmem:[#allocation222_spill] sm:$0xff] }
 0x32a   : > { %2375 = vperm.xlu1 %10351, %v13069_v57   ;;  %v3195_v53 = vadd.f32 %v12941_v14, %v2945_v16  ;;  %v2648_v15 = vmul.f32 %v12007_v60, %v17524_v61  ;;  %v2897_v37 = vmul.f32 %v12025_v10, %v17525_v46  ;;  %v3487_v59 = vadd.f32 %v13037_v50, %v3440_v29  ;;  %v13084_v27 = vld [vmem:[%s17080_s6 + $0x208] sm:$0xff]  ;;  %v17528_v16 = vld [vmem:[#allocation89_spill] sm:$0xff] }
 0x32b   : > { %v3437_v2 = vadd.f32 %v17526_v19, %v3187_v56  ;;  %5425 = vperm.xlu0 %10575, %v13084_v27   ;;  %v3150_v14 = vmul.f32 %v12032_v34, %v17527_v13  ;;  %v2435_v18 = vadd.f32 %v17528_v16, %v2185_v47  ;;  %v2186_v31 = vadd.f32 %v17529_v49, %v1936_v4  ;;  %v13094_v0 = vpop.permute.xlu0 %1815  ;;  %v13100_v19 = vpop.permute.xlu1 %2581  ;;  %v17534_v16 = vld [vmem:[#allocation75_spill] sm:$0xff] }
 0x32c   : > { %v3449_v26 = vadd.f32 %v17530_v23, %v3199_v43  ;;  %v2898_v29 = vmul.f32 %v12025_v10, %v17531_v41  ;;  %v2689_v56 = vadd.f32 %v2648_v15, %v2439_v52  ;;  %v2941_v51 = vadd.f32 %v2900_v63, %v2691_v48  ;;  %17532 = vst [vmem:[#allocation101_spill] sm:$0xff] %v13094_v0  ;;  %v17535_v52 = vld [vmem:[#allocation230_spill] sm:$0xff]  ;;  %v17536_v48 = vld [vmem:[#allocation76_spill] sm:$0xff]  ;;  %v13115_v15 = vld [vmem:[%s17080_s6 + $0x278] sm:$0xff] }
 0x32d   : > { %v13097_v61 = vsel %vm3530_vm4, %v3489_v22, %v3571_v24  ;;  %v17533_v46 = vmov 5   ;;  %v3494_v4 = vadd.f32 %v13037_v50, %v3447_v21  ;;  %v3445_v43 = vadd.f32 %v12959_v3, %v3195_v53  ;;  %v17537_v3 = vld [vmem:[#allocation256_spill] sm:$0xff] }
 0x32e   : > { %10352 = vset.pattern.permute.xlu1 %v17533_v46  ;;  %v3496_v47 = vadd.f32 %v13037_v50, %v3449_v26  ;;  %v3193_v13 = vadd.f32 %v3152_v38, %v2943_v44  ;;  %v2938_v49 = vadd.f32 %v2897_v37, %v17534_v16  ;;  %v3147_v63 = vmul.f32 %v12032_v34, %v17535_v52  ;;  %v17538_v21 = vld [vmem:[#allocation228_spill] sm:$0xff] }
 0x32f   : > { %2557 = vperm.xlu1 %10352, %v17536_v48   ;;  %v3569_v22 = vmul.f32 0.01, %v3487_v59  ;;  %v13110_v24 = vadd.f32 %v13037_v50, %v3437_v2  ;;  %5481 = vperm.xlu0 %10575, %v13115_v15   ;;  %v2436_v38 = vadd.f32 %v17537_v3, %v2186_v31  ;;  %vm3528_vm6 = vcmp.gt.f32.partialorder %v3487_v59, 0.0  ;;  %v17539_v37 = vld [vmem:[#allocation240_spill] sm:$0xff]  ;;  %v13123_v26 = vpop.permute.xlu0 %1823  ;;  %v17540_v31 = vld [vmem:[#allocation235_spill] sm:$0xff] }
 0x330   : > { %vm3537_vm5 = vcmp.gt.f32.partialorder %v3496_v47, 0.0  ;;  %v3578_v44 = vmul.f32 0.01, %v3496_v47  ;;  %v2645_v53 = vmul.f32 %v12007_v60, %v17538_v21  ;;  %v3397_v23 = vmul.f32 %v12981_v9, %v17539_v37  ;;  %v13129_v0 = vpop.permute.xlu1 %2835 }
 0x331   : > { %v2939_v2 = vadd.f32 %v2898_v29, %v2689_v56  ;;  %v3191_v41 = vadd.f32 %v3150_v14, %v2941_v51  ;;  %v3576_v52 = vmul.f32 0.01, %v3494_v4  ;;  %v3492_v36 = vadd.f32 %v13037_v50, %v3445_v43  ;;  %v17541_v56 = vld [vmem:[#allocation236_spill] sm:$0xff]  ;;  %v17542_v51 = vld [vmem:[#allocation238_spill] sm:$0xff]  ;;  %v10655_v43 = vld [vmem:[%s17080_s6 + $0xa8] sm:$0xff] }
 0x332   : > { %v3619_v16 = vsel %vm3537_vm5, %v3496_v47, %v3578_v44  ;;  %v3443_v62 = vadd.f32 %v3402_v33, %v3193_v13  ;;  %v3188_v25 = vadd.f32 %v3147_v63, %v2938_v49  ;;  %v2644_v3 = vmul.f32 %v12007_v60, %v17540_v31  ;;  %v17544_v49 = vld [vmem:[#allocation237_spill] sm:$0xff] }
 0x333   : > { %10353 = vset.pattern.permute.xlu1 %v17190_v55  ;;  %3708 = vmatpush1.msra.mxu0 %v3619_v16  ;;  %vm3535_vm7 = vcmp.gt.f32.partialorder %v3494_v4, 0.0  ;;  %v13132_v29 = vsel %vm3528_vm6, %v3487_v59, %v3569_v22  ;;  %v1463_v14 = vmul.f32 %v11961_v5, %v17541_v56  ;;  %v1465_v47 = vmul.f32 %v11961_v5, %v17542_v51  ;;  %v13144_v59 = vpop.permute.xlu0 %1831  ;;  %v17545_v22 = vld [vmem:[#allocation63_spill] sm:$0xff]  ;;  %v17548_v51 = vld [vmem:[#allocation245_spill] sm:$0xff] }
 0x334   : > { %v2686_v33 = vadd.f32 %v2645_v53, %v2436_v38  ;;  %2811 = vperm.xlu1 %10353, %v10655_v43   ;;  %v17543_v13 = vmov 0.0   ;;  %v2895_v63 = vmul.f32 %v12025_v10, %v17544_v49  ;;  %v3438_v44 = vadd.f32 %v3397_v23, %v3188_v25  ;;  %v13151_v38 = vld [vmem:[%s17080_s6 + $0x260] sm:$0xff]  ;;  %v17546_v23 = vld [vmem:[#allocation131_spill] sm:$0xff] }
 0x335   : > { %3709 = vmatprep.subr.mxu0 %v17543_v13  ;;  %v3189_v21 = vadd.f32 %v17545_v22, %v2939_v2  ;;  %5469 = vperm.xlu0 %10575, %v13151_v38   ;;  %v3617_v53 = vsel %vm3535_vm7, %v3494_v4, %v3576_v52  ;;  %v3574_v37 = vmul.f32 0.01, %v3492_v36  ;;  %v3490_v25 = vadd.f32 %v13037_v50, %v3443_v62  ;;  %v17547_v2 = vld [vmem:[#allocation233_spill] sm:$0xff]  ;;  %v17549_v22 = vld [vmem:[#allocation247_spill] sm:$0xff] }
 0x336   : > { %3710 = vmatpush1.msra.mxu0 %v12926_v54  ;;  %v3441_v16 = vadd.f32 %v17546_v23, %v3191_v41  ;;  %v9355_v54 = vld [vmem:[%s17080_s6 + $0x258] sm:$0xff]  ;;  %v3398_v31 = vmul.f32 %v12981_v9, %v17547_v2  ;;  %v2685_v56 = vadd.f32 %v2644_v3, %v2435_v18  ;;  %v2894_v43 = vmul.f32 %v12025_v10, %v17548_v51  ;;  %v3344_v41 = vpop.permute.xlu1 %3343  ;;  %v17552_v2 = vld [vmem:[#allocation14_spill] sm:$0xff] }
 0x337   : > { %3711 = vmatprep.subr.mxu0 %v17543_v13  ;;  %vm3533_vm8 = vcmp.gt.f32.partialorder %v3492_v36, 0.0  ;;  %v1713_v4 = vadd.f32 %v12933_v35, %v1463_v14  ;;  %v1715_v52 = vadd.f32 %v12937_v28, %v1465_v47  ;;  %v2936_v62 = vadd.f32 %v2895_v63, %v2686_v33  ;;  %v1840_v3 = vpop.permute.xlu0 %1839  ;;  %v17550_v23 = vld [vmem:[#allocation61_spill] sm:$0xff] }
 0x338   : > { %3712 = vmatpush1.msra.mxu0 %v3617_v53  ;;  %2883 = vperm.xlu1 %10353, %v12640_v12   ;;  %v13170_v49 = vadd.f32 %v13037_v50, %v3438_v44  ;;  %v3145_v18 = vmul.f32 %v12032_v34, %v17549_v22  ;;  %v3439_v53 = vadd.f32 %v3398_v31, %v3189_v21  ;;  %v3572_v14 = vmul.f32 0.01, %v3490_v25  ;;  %v17551_v63 = vld [vmem:[#allocation249_spill] sm:$0xff]  ;;  %v17553_v22 = vld [vmem:[#allocation35_spill] sm:$0xff] }
 0x339   : > { %3713 = vmatprep.subr.mxu0 %v17543_v13  ;;  %5465 = vperm.xlu0 %10575, %v9355_v54   ;;  %v1922_v35 = vmul.f32 %v11965_v17, %v1840_v3  ;;  %v3615_v28 = vsel %vm3533_vm8, %v3492_v36, %v3574_v37  ;;  %v3488_v47 = vadd.f32 %v13037_v50, %v3441_v16  ;;  %vm3531_vm9 = vcmp.gt.f32.partialorder %v3490_v25, 0.0  ;;  %v17554_v37 = vld [vmem:[#allocation38_spill] sm:$0xff]  ;;  %v17555_v31 = vld [vmem:[#allocation167_spill] sm:$0xff] }
 0x33a   : > { %3714 = vmatpush1.msra.mxu0 %v17550_v23  ;;  %v2935_v33 = vadd.f32 %v2894_v43, %v2685_v56  ;;  %v2423_v44 = vmul.f32 %v11991_v8, %v17551_v63  ;;  %v3144_v51 = vmul.f32 %v12032_v34, %v17552_v2  ;;  %v3395_v21 = vmul.f32 %v12981_v9, %v17553_v22  ;;  %v10657_v3 = vld [vmem:[%s17080_s6 + $0x140] sm:$0xf]  ;;  %v13193_v23 = vpop.permute.xlu1 %2323 }
 0x33b   : > { %3715 = vmatprep.subr.mxu0 %v17543_v13  ;;  %v1963_v54 = vadd.f32 %v1922_v35, %v1713_v4  ;;  %v3186_v36 = vadd.f32 %v3145_v18, %v2936_v62  ;;  %v2673_v16 = vmul.f32 %v12007_v60, %v17554_v37  ;;  %v3394_v56 = vmul.f32 %v12981_v9, %v17555_v31  ;;  %v1848_v43 = vpop.permute.xlu0 %1847  ;;  %v17556_v35 = vld [vmem:[#allocation72_spill] sm:$0xff]  ;;  %v17557_v2 = vld [vmem:[#allocation74_spill] sm:$0xff] }
 0x33c   : > { %3716 = vmatpush1.msra.mxu0 %v3615_v28  ;;  %10354 = vset.pattern.permute.xlu1 %v17184_v30  ;;  %v3486_v4 = vadd.f32 %v13037_v50, %v3439_v53  ;;  %v1924_v18 = vmul.f32 %v11965_v17, %v1848_v43  ;;  %v3613_v28 = vsel %vm3531_vm9, %v3490_v25, %v3572_v14  ;;  %v3570_v63 = vmul.f32 0.01, %v3488_v47  ;;  %v17558_v31 = vld [vmem:[#allocation96_spill] sm:$0xff]  ;;  %v17560_v53 = vld [vmem:[#allocation243_spill] sm:$0xff] }
 0x33d   : > { %3717 = vmatprep.subr.mxu0 %v17543_v13  ;;  %3137 = vperm.xlu1 %10354, %v10657_v3   ;;  %v2213_v62 = vadd.f32 %v17556_v35, %v1963_v54  ;;  %v2464_v22 = vadd.f32 %v2423_v44, %v17557_v2  ;;  %v3185_v37 = vadd.f32 %v3144_v51, %v2935_v33  ;;  %vm3529_vm10 = vcmp.gt.f32.partialorder %v3488_v47, 0.0  ;;  %v17561_v25 = vld [vmem:[#allocation32_spill] sm:$0xff] }
 0x33e   : > { %3718 = vmatpush1.msra.mxu0 %v13003_v11  ;;  %v2923_v3 = vmul.f32 %v12025_v10, %v17558_v31  ;;  %v13207_v11 = vld [vmem:[%s17080_s6 + $0x250] sm:$0xff]  ;;  %v2424_v54 = vmul.f32 %v11991_v8, %v17560_v53  ;;  %v1965_v43 = vadd.f32 %v1924_v18, %v1715_v52  ;;  %v3436_v33 = vadd.f32 %v3395_v21, %v3186_v36  ;;  %v17563_v31 = vld [vmem:[#allocation73_spill] sm:$0xff]  ;;  %v17564_v36 = vld [vmem:[#allocation255_spill] sm:$0xff] }
 0x33f   : > { %3719 = vmatprep.subr.mxu0 %v17543_v13  ;;  %17559 = vst [vmem:[#allocation102_spill] sm:$0xff] %v13207_v11  ;;  %5461 = vperm.xlu0 %10575, %v13207_v11   ;;  %v2463_v14 = vadd.f32 %v17561_v25, %v2213_v62  ;;  %v2714_v44 = vadd.f32 %v2673_v16, %v2464_v22  ;;  %v13221_v62 = vpop.permute.xlu1 %2831  ;;  %v3568_v21 = vmul.f32 0.01, %v3486_v4  ;;  %vm3527_vm11 = vcmp.gt.f32.partialorder %v3486_v4, 0.0 }
 0x340   : > { %3720 = vmatpush1.msra.mxu0 %v3613_v28  ;;  %v3435_v51 = vadd.f32 %v3394_v56, %v3185_v37  ;;  %v3173_v35 = vmul.f32 %v12032_v34, %v13031_v1  ;;  %v17562_v28 = vld [vmem:[#allocation254_spill] sm:$0xff]  ;;  %v2215_v11 = vadd.f32 %v17563_v31, %v1965_v43  ;;  %v3611_v52 = vsel %vm3529_vm10, %v3488_v47, %v3570_v63 }
 0x341   : > { %3721 = vmatprep.subr.mxu0 %v17543_v13  ;;  %10355 = vset.pattern.permute.xlu1 %v17505_v45  ;;  %v2713_v2 = vadd.f32 %v17562_v28, %v2463_v14  ;;  %v2674_v1 = vmul.f32 %v12007_v60, %v17564_v36  ;;  %v2964_v16 = vadd.f32 %v2923_v3, %v2714_v44  ;;  %v3567_v22 = vmul.f32 0.01, %v13170_v49  ;;  %v13236_v63 = vld [vmem:[%s17080_s6 + $0x1c0] sm:$0xff]  ;;  %v17567_v3 = vld [vmem:[#allocation67_spill] sm:$0xff]  ;;  %v17570_v28 = vld [vmem:[#allocation69_spill] sm:$0xff] }
 0x342   : > { %3722 = vmatpush1.msra.mxu0 %v13097_v61  ;;  %3319 = vperm.xlu1 %10355, %v17494_v40   ;;  %v3423_v56 = vmul.f32 %v12981_v9, %v3344_v41  ;;  %v17565_v61 = vld [vmem:[#allocation22_spill] sm:$0xff]  ;;  %v2465_v40 = vadd.f32 %v2424_v54, %v2215_v11  ;;  %v3483_v47 = vadd.f32 %v13037_v50, %v3436_v33  ;;  %vm3526_vm12 = vcmp.gt.f32.partialorder %v13170_v49, 0.0  ;;  %v13250_v33 = vpop.permute.xlu0 %1855 }
 0x343   : > { %3723 = vmatprep.subr.mxu0 %v17543_v13  ;;  %10586 = vset.pattern.permute.xlu0 %v17520_v42  ;;  %v2963_v18 = vadd.f32 %v17565_v61, %v2713_v2  ;;  %v17566_v41 = vld [vmem:[#allocation78_spill] sm:$0xff]  ;;  %v2924_v53 = vmul.f32 %v12025_v10, %v17567_v3  ;;  %v3214_v11 = vadd.f32 %v3173_v35, %v2964_v16  ;;  %v3566_v43 = vmul.f32 0.01, %v13110_v24  ;;  %v13273_v16 = vld [vmem:[%s17080_s6 + $0x1a8] sm:$0xff] }
 0x344   : > { %3724 = vmatpush1.msra.mxu0 %v3611_v52  ;;  %5881 = vperm.xlu0 %10586, %v13236_v63   ;;  %v3422_v37 = vmul.f32 %v12981_v9, %v17566_v41  ;;  %v3482_v54 = vadd.f32 %v13037_v50, %v3435_v51  ;;  %v2715_v25 = vadd.f32 %v2674_v1, %v2465_v40  ;;  %v13258_v51 = vpop.permute.xlu1 %3085  ;;  %vm3525_vm13 = vcmp.gt.f32.partialorder %v13110_v24, 0.0  ;;  %v17569_v35 = vld [vmem:[#allocation114_spill] sm:$0xff] }
 0x345   : > { %3725 = vmatprep.subr.mxu0 %v17543_v13  ;;  %v3609_v14 = vsel %vm3527_vm11, %v3486_v4, %v3568_v21  ;;  %17568 = vst [vmem:[#allocation165_spill] sm:$0xff] %v13250_v33  ;;  %v3464_v44 = vadd.f32 %v3423_v56, %v3214_v11  ;;  %v3513_v4 = vadd.f32 %v13037_v50, %v17569_v35  ;;  %v17571_v31 = vld [vmem:[#allocation158_spill] sm:$0xff]  ;;  %v3565_v1 = vmul.f32 0.01, %v3483_v47  ;;  %v13302_v35 = vld [vmem:[%s17080_s6 + $0x1f8] sm:$0xff] }
 0x346   : > { %3726 = vmatpush1.msra.mxu0 %v13132_v29  ;;  %10356 = vset.pattern.permute.xlu1 %v17520_v42  ;;  %v13255_v29 = vld [vmem:[%s17080_s6 + $0x120] sm:$0xff]  ;;  %v3213_v2 = vadd.f32 %v17570_v28, %v2963_v18  ;;  %v3174_v52 = vmul.f32 %v12032_v34, %v17571_v31  ;;  %v2965_v21 = vadd.f32 %v2924_v53, %v2715_v25  ;;  %vm3524_vm14 = vcmp.gt.f32.partialorder %v3483_v47, 0.0  ;;  %v13294_v53 = vpop.permute.xlu0 %1863  ;;  %v17575_v28 = vld [vmem:[#allocation87_spill] sm:$0xff] }
 0x347   : > { %3727 = vmatprep.subr.mxu0 %v17543_v13  ;;  %2371 = vperm.xlu1 %10356, %v13255_v29   ;;  %v3608_v36 = vsel %vm3526_vm12, %v13170_v49, %v3567_v22  ;;  %v3424_v61 = vmul.f32 %v12981_v9, %v13063_v32  ;;  %v3607_v18 = vsel %vm3525_vm13, %v13110_v24, %v3566_v43  ;;  %v3564_v40 = vmul.f32 0.01, %v3482_v54  ;;  %v17572_v22 = vld [vmem:[#allocation47_spill] sm:$0xff]  ;;  %v17574_v43 = vld [vmem:[#allocation13_spill] sm:$0xff] }
 0x348   : > { %3728 = vmatpush1.msra.mxu0 %v3609_v14  ;;  %5869 = vperm.xlu0 %10586, %v13273_v16   ;;  %v3463_v56 = vadd.f32 %v3422_v37, %v3213_v2  ;;  %v3215_v49 = vadd.f32 %v3174_v52, %v2965_v21  ;;  %v1671_v41 = vmul.f32 %v11947_v6, %v17572_v22  ;;  %vm3523_vm15 = vcmp.gt.f32.partialorder %v3482_v54, 0.0  ;;  %v13287_v37 = vld [vmem:[%s17080_s6 + $0x98] sm:$0xff]  ;;  %v17576_v21 = vld [vmem:[#allocation127_spill] sm:$0xff] }
 0x349   : > { %3729 = vmatprep.subr.mxu0 %v17543_v13  ;;  %v3511_v3 = vadd.f32 %v13037_v50, %v3464_v44  ;;  %v13290_v32 = vpop.permute.xlu1 %2319  ;;  %v3606_v24 = vsel %vm3524_vm14, %v3483_v47, %v3565_v1  ;;  %17573 = vst [vmem:[#allocation107_spill] sm:$0xff] %v13294_v53  ;;  %v3595_v11 = vmul.f32 0.01, %v3513_v4  ;;  %v1462_v44 = vmul.f32 %v11961_v5, %v17574_v43 }
 0x34a   : > { %3730 = vmatpush1.msra.mxu0 %v3608_v36  ;;  %v3465_v25 = vadd.f32 %v3424_v61, %v3215_v49  ;;  %v3510_v14 = vadd.f32 %v13037_v50, %v3463_v56  ;;  %vm3554_vm0 = vcmp.gt.f32.partialorder %v3513_v4, 0.0  ;;  %v1921_v47 = vmul.f32 %v11965_v17, %v17575_v28  ;;  %v17577_v36 = vld [vmem:[#allocation159_spill] sm:$0xff] }
 0x34b   : > { %3731 = vmatprep.subr.mxu0 %v17543_v13  ;;  %10357 = vset.pattern.permute.xlu1 %v17533_v46  ;;  %v3605_v2 = vsel %vm3523_vm15, %v3482_v54, %v3564_v40  ;;  %v1712_v52 = vadd.f32 %v1671_v41, %v1462_v44  ;;  %v2171_v1 = vmul.f32 %v17577_v36, %v17576_v21  ;;  %v3593_v56 = vmul.f32 0.01, %v3511_v3  ;;  %v17578_v40 = vld [vmem:[#allocation68_spill] sm:$0xff] }
 0x34c   : > { %3732 = vmatpush1.msra.mxu0 %v3607_v18  ;;  %2553 = vperm.xlu1 %10357, %v13287_v37   ;;  %v3512_v31 = vadd.f32 %v13037_v50, %v3465_v25  ;;  %v3636_v61 = vsel %vm3554_vm0, %v3513_v4, %v3595_v11  ;;  %v3592_v49 = vmul.f32 0.01, %v3510_v14  ;;  %vm3552_vm2 = vcmp.gt.f32.partialorder %v3511_v3, 0.0  ;;  %v13320_v25 = vpop.permute.xlu0 %1871  ;;  %v10664_v4 = vld [vmem:[%s17080_s6 + $0x280] sm:$0xff] }
 0x34d   : > { %3733 = vmatprep.subr.mxu0 %v17543_v13  ;;  %5909 = vperm.xlu0 %10586, %v13302_v35   ;;  %vm3551_vm3 = vcmp.gt.f32.partialorder %v3510_v14, 0.0  ;;  %v1962_v54 = vadd.f32 %v1921_v47, %v1712_v52  ;;  %v2421_v41 = vmul.f32 %v11991_v8, %v17578_v40  ;;  %17579 = vst [vmem:[#allocation109_spill] sm:$0xff] %v13320_v25  ;;  %v13331_v47 = vld [vmem:[%s17080_s6 + $0x130] sm:$0xff]  ;;  %v17584_v40 = vld [vmem:[#allocation85_spill] sm:$0xff]  ;;  %vm3701_vm9 = vcmask 1043456  }
 0x34e   : > { %3734 = vmatpush1.msra.mxu0 %v3606_v24  ;;  %vm3553_vm1 = vcmp.gt.f32.partialorder %v3512_v31, 0.0  ;;  %v3594_v18 = vmul.f32 0.01, %v3512_v31  ;;  %v13315_v22 = vpop.permute.xlu1 %2573  ;;  %v2671_v43 = vmul.f32 %v12007_v60, %v12995_v7  ;;  %v3634_v44 = vsel %vm3552_vm2, %v3511_v3, %v3593_v56  ;;  %v17580_v7 = vld [vmem:[#allocation45_spill] sm:$0xff] }
 0x34f   : > { %3735 = vmatprep.subr.mxu0 %v17543_v13  ;;  %v2212_v11 = vadd.f32 %v2171_v1, %v1962_v54  ;;  %v3633_v28 = vsel %vm3551_vm3, %v3510_v14, %v3592_v49  ;;  %v1669_v3 = vmul.f32 %v11947_v6, %v17580_v7  ;;  %v17581_v14 = vld [vmem:[#allocation190_spill] sm:$0xff]  ;;  %v17583_v49 = vld [vmem:[#allocation11_spill] sm:$0xff]  ;;  %vm3646_vm14 = vcmask 556032  }
 0x350   : > { %3736 = vmatpush1.msra.mxu0 %v3605_v2  ;;  %10358 = vset.pattern.permute.xlu1 %v17190_v55  ;;  %v3635_v24 = vsel %vm3553_vm1, %v3512_v31, %v3594_v18  ;;  %v2921_v31 = vmul.f32 %v12025_v10, %v13129_v0  ;;  %v1670_v21 = vmul.f32 %v11947_v6, %v17581_v14  ;;  %v17582_v1 = vld [vmem:[#allocation234_spill] sm:$0xff]  ;;  %v13348_v18 = vpop.permute.xlu0 %1879 }
 0x351   : > { %3737 = vmatprep.subr.mxu0 %v17543_v13  ;;  %2807 = vperm.xlu1 %10358, %v17536_v48   ;;  %v2462_v2 = vadd.f32 %v2421_v41, %v2212_v11  ;;  %v1461_v56 = vmul.f32 %v11961_v5, %v17582_v1  ;;  %v3171_v0 = vmul.f32 %v12032_v34, %v13258_v51  ;;  %v17585_v11 = vld [vmem:[#allocation125_spill] sm:$0xff] }
 0x352   : > { %3738 = vmatpush2.msra.mxu0 %v3636_v61  ;;  %5977 = vperm.xlu0 %10586, %v10664_v4   ;;  %v1460_v54 = vmul.f32 %v11961_v5, %v17583_v49  ;;  %v1919_v41 = vmul.f32 %v11965_v17, %v17584_v40 }
 0x353   : > { %3739 = vmatprep.subr.mxu0 %v17543_v13  ;;  %v13336_v52 = vpop.permute.xlu1 %3081  ;;  %v2712_v61 = vadd.f32 %v2671_v43, %v2462_v2  ;;  %v2169_v43 = vmul.f32 %v17577_v36, %v17585_v11  ;;  %v1920_v2 = vmul.f32 %v11965_v17, %v13144_v59  ;;  %v10668_v59 = vld [vmem:[%s17080_s6 + $0x1d8] sm:$0xff]  ;;  %v17589_v11 = vld [vmem:[#allocation2_spill] sm:$0xff] }
 0x354   : > { %3740 = vmatpush2.msra.mxu0 %v3635_v24  ;;  %v1710_v4 = vadd.f32 %v1669_v3, %v1460_v54  ;;  %v17586_v3 = vld [vmem:[#allocation24_spill] sm:$0xff] }
 0x355   : > { %3741 = vmatprep.subr.mxu0 %v17543_v13  ;;  %2879 = vperm.xlu1 %10358, %v13331_v47   ;;  %v2962_v24 = vadd.f32 %v2921_v31, %v2712_v61  ;;  %v2419_v61 = vmul.f32 %v11991_v8, %v17586_v3 }
 0x356   : > { %3742 = vmatpush2.msra.mxu0 %v3634_v44  ;;  %5973 = vperm.xlu0 %10586, %v13115_v15   ;;  %v10666_v44 = vld [vmem:[%s17080_s6 + $0x1e0] sm:$0xff]  ;;  %v1960_v31 = vadd.f32 %v1919_v41, %v1710_v4 }
 0x357   : > { %3743 = vmatprep.subr.mxu0 %v17543_v13  ;;  %v3212_v7 = vadd.f32 %v3171_v0, %v2962_v24 }
 0x358   : > { %3744 = vmatpush2.msra.mxu0 %v3633_v28  ;;  %v3336_v51 = vpop.permute.xlu1 %3335  ;;  %v1711_v28 = vadd.f32 %v1670_v21, %v1461_v56  ;;  %v2210_v49 = vadd.f32 %v2169_v43, %v1960_v31  ;;  %v10667_v21 = vld [vmem:[%s17080_s6 + $0xb0] sm:$0xff]  ;;  %v17587_v56 = vld [vmem:[#allocation142_spill] sm:$0xff]  ;;  %v2669_v43 = vmul.f32 %v12007_v60, %v17589_v11  ;;  %v2420_v31 = vmul.f32 %v11991_v8, %v12964_v20 }
 0x359   : > { %3745 = vmatprep.subr.mxu0 %v17543_v13  ;;  %10359 = vset.pattern.permute.xlu1 %v17184_v30  ;;  %v3421_v14 = vmul.f32 %v12981_v9, %v3336_v51  ;;  %v2170_v0 = vmul.f32 %v17577_v36, %v17587_v56  ;;  %v2670_v56 = vmul.f32 %v12007_v60, %v13100_v19 }
 0x35a   : > { %3133 = vperm.xlu1 %10359, %v12640_v12   ;;  %5897 = vperm.xlu0 %10586, %v10666_v44   ;;  %v13365_v12 = vpop.permute.xlu0 %1887  ;;  %v1961_v54 = vadd.f32 %v1920_v2, %v1711_v28  ;;  %v2460_v51 = vadd.f32 %v2419_v61, %v2210_v49  ;;  %v10669_v44 = vld [vmem:[%s17080_s6 + $0x1d0] sm:$0xff]  ;;  %v13392_v2 = vld [vmem:[%s17080_s6 + $0x88] sm:$0xff] }
 0x35b   : > { %v3462_v1 = vadd.f32 %v3421_v14, %v3212_v7  ;;  %v13405_v49 = vld [vmem:[%s17080_s6 + $0x1c8] sm:$0xff] }
 0x35c   : > { %v2211_v28 = vadd.f32 %v2170_v0, %v1961_v54  ;;  %v2710_v61 = vadd.f32 %v2669_v43, %v2460_v51  ;;  %v2920_v0 = vmul.f32 %v12025_v10, %v13221_v62 }
 0x35d   : > { %v3509_v40 = vadd.f32 %v13037_v50, %v3462_v1  ;;  %v13379_v41 = vpop.permute.xlu1 %2387  ;;  %v17590_v1 = vld [vmem:[#allocation52_spill] sm:$0xff] }
 0x35e   : > { %10360 = vset.pattern.permute.xlu1 %v17505_v45  ;;  %5893 = vperm.xlu0 %10586, %v10668_v59   ;;  %v13381_v4 = vpop.permute.xlu0 %5385  ;;  %v2919_v3 = vmul.f32 %v12025_v10, %v17590_v1  ;;  %v13411_v59 = vld [vmem:[%s17080_s6 + $0x118] sm:$0xff] }
 0x35f   : > { %3315 = vperm.xlu1 %10360, %v10667_v21   ;;  %vm3550_vm4 = vcmp.gt.f32.partialorder %v3509_v40, 0.0  ;;  %v3591_v24 = vmul.f32 0.01, %v3509_v40  ;;  %17588 = vst [vmem:[#allocation111_spill] sm:$0xff] %v13381_v4  ;;  %v2461_v21 = vadd.f32 %v2420_v31, %v2211_v28  ;;  %v17616_v4 = vld [vmem:[#allocation4_spill] sm:$0xff] }
 0x360   : > { %v2960_v11 = vadd.f32 %v2919_v3, %v2710_v61  ;;  %v2684_v53 = vmul.f32 %v12007_v60, %v17616_v4  ;;  %v2417_v4 = vmul.f32 %v11991_v8, %v13290_v32 }
 0x361   : > { %v3632_v7 = vsel %vm3550_vm4, %v3509_v40, %v3591_v24  ;;  %v17592_v40 = vld [vmem:[#allocation80_spill] sm:$0xff]  ;;  %v2711_v51 = vadd.f32 %v2670_v56, %v2461_v21 }
 0x362   : > { %5889 = vperm.xlu0 %10586, %v10669_v44   ;;  %v13395_v14 = vpop.permute.xlu1 %2569  ;;  %3746 = vmatpush2.msra.mxu0 %v3632_v7  ;;  %v13414_v20 = vpop.permute.xlu0 %5377  ;;  %v3419_v24 = vmul.f32 %v12981_v9, %v17592_v40  ;;  %v3170_v44 = vmul.f32 %v12032_v34, %v13336_v52  ;;  %v10673_v40 = vld [vmem:[%s17080_s6 + $0x200] sm:$0xff] }
 0x363   : > { %10361 = vset.pattern.permute.xlu1 %v17520_v42  ;;  %3747 = vmatprep.subr.mxu0 %v17543_v13  ;;  %17591 = vst [vmem:[#allocation104_spill] sm:$0xff] %v13414_v20  ;;  %v2961_v62 = vadd.f32 %v2920_v0, %v2711_v51  ;;  %v2667_v32 = vmul.f32 %v12007_v60, %v13395_v14  ;;  %v13656_v14 = vld [vmem:[%s17080_s6 + $0x150] sm:$0xff] }
 0x364   : > { %2295 = vperm.xlu1 %10361, %v13392_v2  }
 0x365   : > { %v3211_v1 = vadd.f32 %v3170_v44, %v2961_v62 }
 0x366   : > { %5885 = vperm.xlu0 %10586, %v13405_v49   ;;  %v13429_v28 = vpop.permute.xlu0 %5373 }
 0x367   : > { %v3078_v54 = vpop.permute.xlu1 %3077  ;;  %17593 = vst [vmem:[#allocation174_spill] sm:$0xff] %v13429_v28  ;;  %v13559_v28 = vld [vmem:[%s17080_s6 + $0x180] sm:$0xff] }
 0x368   : > { %2367 = vperm.xlu1 %10361, %v13411_v59   ;;  %v3169_v43 = vmul.f32 %v12032_v34, %v3078_v54 }
 0x36a   : > { %10595 = vset.pattern.permute.xlu0 %v17190_v55  ;;  %v3210_v19 = vadd.f32 %v3169_v43, %v2960_v11  ;;  %v13439_v56 = vpop.permute.xlu0 %5365  ;;  %v10674_v43 = vld [vmem:[%s17080_s6 + $0x138] sm:$0xff] }
 0x36b   : > { %6421 = vperm.xlu0 %10595, %v12977_v58   ;;  %17594 = vst [vmem:[#allocation145_spill] sm:$0xff] %v13439_v56 }
 0x36c   : > { %10363 = vset.pattern.permute.xlu1 %v17533_v46  ;;  %v3460_v7 = vadd.f32 %v3419_v24, %v3210_v19  ;;  %v3332_v31 = vpop.permute.xlu1 %3331 }
 0x36d   : > { %2621 = vperm.xlu1 %10363, %v13255_v29   ;;  %v3420_v3 = vmul.f32 %v12981_v9, %v3332_v31 }
 0x36e   : > { %v3507_v58 = vadd.f32 %v13037_v50, %v3460_v7  ;;  %v13450_v11 = vpop.permute.xlu0 %5361  ;;  %v17598_v7 = vld [vmem:[#allocation188_spill] sm:$0xff] }
 0x36f   : > { %6417 = vperm.xlu0 %10595, %v13008_v39   ;;  %v3461_v52 = vadd.f32 %v3420_v3, %v3211_v1  ;;  %17595 = vst [vmem:[#allocation177_spill] sm:$0xff] %v13450_v11  ;;  %v1668_v31 = vmul.f32 %v11947_v6, %v17598_v7  ;;  %v17599_v1 = vld [vmem:[#allocation232_spill] sm:$0xff]  ;;  %v13504_v7 = vld [vmem:[%s17080_s6 + $0x1a0] sm:$0xff] }
 0x370   : > { %v3589_v39 = vmul.f32 0.01, %v3507_v58  ;;  %vm3548_vm6 = vcmp.gt.f32.partialorder %v3507_v58, 0.0  ;;  %v1459_v3 = vmul.f32 %v11961_v5, %v17599_v1 }
 0x371   : > { %10364 = vset.pattern.permute.xlu1 %v17190_v55  ;;  %v3508_v61 = vadd.f32 %v13037_v50, %v3461_v52  ;;  %v13437_v21 = vpop.permute.xlu1 %2383  ;;  %v13485_v52 = vld [vmem:[%s17080_s6 + $0x1b8] sm:$0xff] }
 0x372   : > { %2803 = vperm.xlu1 %10364, %v13287_v37   ;;  %v13461_v51 = vpop.permute.xlu0 %5357 }
 0x373   : > { %6409 = vperm.xlu0 %10595, %v13084_v27   ;;  %vm3549_vm5 = vcmp.gt.f32.partialorder %v3508_v61, 0.0  ;;  %v3590_v0 = vmul.f32 0.01, %v3508_v61  ;;  %v3630_v27 = vsel %vm3548_vm6, %v3507_v58, %v3589_v39  ;;  %17596 = vst [vmem:[#allocation183_spill] sm:$0xff] %v13461_v51  ;;  %v1918_v39 = vmul.f32 %v11965_v17, %v13123_v26 }
 0x375   : > { %v3631_v54 = vsel %vm3549_vm5, %v3508_v61, %v3590_v0  ;;  %v1709_v0 = vadd.f32 %v1668_v31, %v1459_v3  ;;  %v13513_v31 = vld [vmem:[%s17080_s6 + $0x198] sm:$0xff]  ;;  %v2418_v3 = vmul.f32 %v11991_v8, %v13193_v23  ;;  %v17604_v23 = vld [vmem:[#allocation54_spill] sm:$0xff] }
 0x376   : > { %10365 = vset.pattern.permute.xlu1 %v17184_v30  ;;  %v13447_v24 = vpop.permute.xlu1 %2565  ;;  %3748 = vmatpush2.msra.mxu0 %v3631_v54  ;;  %v13473_v19 = vpop.permute.xlu0 %5353  ;;  %v17601_v54 = vld [vmem:[#allocation140_spill] sm:$0xff] }
 0x377   : > { %3057 = vperm.xlu1 %10365, %v17536_v48   ;;  %6405 = vperm.xlu0 %10595, %v10673_v40   ;;  %17597 = vst [vmem:[#allocation118_spill] sm:$0xff] %v13473_v19  ;;  %v2168_v40 = vmul.f32 %v17577_v36, %v17601_v54 }
 0x378   : > { %3749 = vmatprep.subr.mxu0 %v17543_v13 }
 0x379   : > { %3750 = vmatpush2.msra.mxu0 %v3630_v27  ;;  %v1959_v27 = vadd.f32 %v1918_v39, %v1709_v0  ;;  %v2668_v39 = vmul.f32 %v12007_v60, %v13315_v22 }
 0x37a   : > { %3751 = vmatprep.subr.mxu0 %v17543_v13  ;;  %v13491_v61 = vpop.permute.xlu0 %5349 }
 0x37b   : > { %3129 = vperm.xlu1 %10365, %v13331_v47   ;;  %6401 = vperm.xlu0 %10595, %v13302_v35   ;;  %v13455_v48 = vpop.permute.xlu1 %2819  ;;  %v13469_v35 = vld [vmem:[%s17080_s6 + $0x80] sm:$0xff]  ;;  %17600 = vst [vmem:[#allocation120_spill] sm:$0xff] %v13491_v61  ;;  %v2209_v1 = vadd.f32 %v2168_v40, %v1959_v27  ;;  %v13530_v40 = vld [vmem:[%s17080_s6 + $0x190] sm:$0xff]  ;;  %v2918_v27 = vmul.f32 %v12025_v10, %v17604_v23 }
 0x37e   : > { %v13508_v26 = vpop.permute.xlu0 %5345 }
 0x37f   : > { %10366 = vset.pattern.permute.xlu1 %v17505_v45  ;;  %6453 = vperm.xlu0 %10595, %v13151_v38   ;;  %17602 = vst [vmem:[#allocation129_spill] sm:$0xff] %v13508_v26  ;;  %v2459_v26 = vadd.f32 %v2418_v3, %v2209_v1  ;;  %v10679_v1 = vld [vmem:[%s17080_s6 + $0xa0] sm:$0xff]  ;;  %v13545_v3 = vld [vmem:[%s17080_s6 + $0x188] sm:$0xff] }
 0x380   : > { %3383 = vperm.xlu1 %10366, %v10674_v43  }
 0x381   : > { %v3074_v44 = vpop.permute.xlu1 %3073  ;;  %v2709_v61 = vadd.f32 %v2668_v39, %v2459_v26  ;;  %v17606_v39 = vld [vmem:[#allocation203_spill] sm:$0xff] }
 0x382   : > { %v13525_v54 = vpop.permute.xlu0 %5341  ;;  %v3168_v22 = vmul.f32 %v12032_v34, %v3074_v44  ;;  %v17607_v44 = vld [vmem:[#allocation248_spill] sm:$0xff] }
 0x383   : > { %10605 = vset.pattern.permute.xlu0 %v17533_v46  ;;  %17603 = vst [vmem:[#allocation186_spill] sm:$0xff] %v13525_v54  ;;  %v2959_v26 = vadd.f32 %v2918_v27, %v2709_v61  ;;  %v1684_v54 = vmul.f32 %v11947_v6, %v17606_v39  ;;  %v1475_v11 = vmul.f32 %v11961_v5, %v17607_v44  ;;  %v13582_v44 = vld [vmem:[%s17080_s6 + $0x170] sm:$0xff] }
 0x384   : > { %10367 = vset.pattern.permute.xlu1 %v17520_v42  ;;  %6127 = vperm.xlu0 %10605, %v13236_v63   ;;  %v17618_v42 = vld [vmem:[#allocation123_spill] sm:$0xff] }
 0x385   : > { %2291 = vperm.xlu1 %10367, %v13469_v35   ;;  %v3209_v56 = vadd.f32 %v3168_v22, %v2959_v26  ;;  %v1725_v39 = vadd.f32 %v1684_v54, %v1475_v11  ;;  %v17610_v11 = vld [vmem:[#allocation155_spill] sm:$0xff] }
 0x386   : > { %v13548_v23 = vpop.permute.xlu0 %5337 }
 0x387   : > { %v13475_v62 = vpop.permute.xlu1 %2307  ;;  %17605 = vst [vmem:[#allocation122_spill] sm:$0xff] %v13548_v23  ;;  %v1934_v23 = vmul.f32 %v11965_v17, %v13365_v12  ;;  %v2184_v12 = vmul.f32 %v17577_v36, %v17610_v11 }
 0x388   : > { %6123 = vperm.xlu0 %10605, %v13485_v52  }
 0x389   : > { %10368 = vset.pattern.permute.xlu1 %v17533_v46  ;;  %v1975_v54 = vadd.f32 %v1934_v23, %v1725_v39  ;;  %v2434_v39 = vmul.f32 %v11991_v8, %v13379_v41  ;;  %v17614_v41 = vld [vmem:[#allocation83_spill] sm:$0xff] }
 0x38a   : > { %2545 = vperm.xlu1 %10368, %v13392_v2   ;;  %v13562_v27 = vpop.permute.xlu0 %5333 }
 0x38b   : > { %v13489_v58 = vpop.permute.xlu1 %2379  ;;  %17608 = vst [vmem:[#allocation143_spill] sm:$0xff] %v13562_v27  ;;  %v2225_v23 = vadd.f32 %v2184_v12, %v1975_v54  ;;  %v17613_v12 = vld [vmem:[#allocation9_spill] sm:$0xff] }
 0x38c   : > { %6115 = vperm.xlu0 %10605, %v13273_v16   ;;  %v1458_v54 = vmul.f32 %v11961_v5, %v17613_v12  ;;  %v2167_v12 = vmul.f32 %v17577_v36, %v17618_v42  ;;  %v13639_v42 = vld [vmem:[%s17080_s6 + $0x158] sm:$0xff] }
 0x38d   : > { %v2475_v33 = vadd.f32 %v2434_v39, %v2225_v23  ;;  %v10687_v23 = vld [vmem:[%s17080_s6 + $0x90] sm:$0xff]  ;;  %17620 = vst [vmem:[#allocation147_spill] sm:$0xff] %v13639_v42 }
 0x38e   : > { %2617 = vperm.xlu1 %10368, %v13411_v59   ;;  %v13593_v11 = vpop.permute.xlu0 %5329  ;;  %v17619_v39 = vld [vmem:[#allocation56_spill] sm:$0xff] }
 0x38f   : > { %17611 = vst [vmem:[#allocation124_spill] sm:$0xff] %v13593_v11  ;;  %v1917_v11 = vmul.f32 %v11965_v17, %v17614_v41 }
 0x390   : > { %v13499_v43 = vpop.permute.xlu1 %2633  ;;  %6111 = vperm.xlu0 %10605, %v13504_v7  }
 0x392   : > { %10369 = vset.pattern.permute.xlu1 %v17190_v55  ;;  %v13614_v20 = vpop.permute.xlu0 %5453 }
 0x393   : > { %2871 = vperm.xlu1 %10369, %v13255_v29   ;;  %17615 = vst [vmem:[#allocation126_spill] sm:$0xff] %v13614_v20 }
 0x394   : > { %6107 = vperm.xlu0 %10605, %v13513_v31  }
 0x395   : > { %v13519_v0 = vpop.permute.xlu1 %2815 }
 0x397   : > { %10370 = vset.pattern.permute.xlu1 %v17184_v30 }
 0x398   : > { %3053 = vperm.xlu1 %10370, %v13287_v37   ;;  %6103 = vperm.xlu0 %10605, %v13530_v40  }
 0x39a   : > { %v13535_v19 = vpop.permute.xlu1 %3069 }
 0x39c   : > { %10371 = vset.pattern.permute.xlu1 %v17505_v45  ;;  %6099 = vperm.xlu0 %10605, %v13545_v3  }
 0x39d   : > { %3307 = vperm.xlu1 %10371, %v10679_v1  }
 0x3a0   : > { %v3324_v51 = vpop.permute.xlu1 %3323  ;;  %6095 = vperm.xlu0 %10605, %v13559_v28  }
 0x3a1   : > { %v3418_v1 = vmul.f32 %v12981_v9, %v3324_v51  ;;  %3379 = vperm.xlu1 %10371, %v13331_v47   ;;  %v13573_v47 = vld [vmem:[%s17080_s6 + $0x178] sm:$0xff] }
 0x3a3   : > { %v3459_v61 = vadd.f32 %v3418_v1, %v3209_v56  ;;  %v13588_v1 = vld [vmem:[%s17080_s6 + $0x110] sm:$0xff] }
 0x3a4   : > { %6091 = vperm.xlu0 %10605, %v13573_v47  }
 0x3a5   : > { %v3506_v22 = vadd.f32 %v13037_v50, %v3459_v61  ;;  %10372 = vset.pattern.permute.xlu1 %v17533_v46  ;;  %v13568_v51 = vpop.permute.xlu1 %2375 }
 0x3a6   : > { %17609 = vst [vmem:[#allocation196_spill] sm:$0xff] %v13568_v51  ;;  %2541 = vperm.xlu1 %10372, %v13469_v35   ;;  %v2934_v51 = vmul.f32 %v12025_v10, %v17619_v39 }
 0x3a7   : > { %vm3547_vm7 = vcmp.gt.f32.partialorder %v3506_v22, 0.0  ;;  %v3588_v56 = vmul.f32 0.01, %v3506_v22 }
 0x3a8   : > { %6087 = vperm.xlu0 %10605, %v13582_v44  }
 0x3a9   : > { %v3629_v26 = vsel %vm3547_vm7, %v3506_v22, %v3588_v56  ;;  %v13601_v22 = vld [vmem:[%s17080_s6 + $0x168] sm:$0xff] }
 0x3aa   : > { %2613 = vperm.xlu1 %10372, %v13588_v1   ;;  %v13591_v61 = vpop.permute.xlu1 %2557  ;;  %3752 = vmatpush2.msra.mxu0 %v3629_v26  ;;  %v17612_v56 = vld [vmem:[#allocation43_spill] sm:$0xff] }
 0x3ab   : > { %3753 = vmatprep.subr.mxu0 %v17543_v13  ;;  %v1667_v27 = vmul.f32 %v11947_v6, %v17612_v56  ;;  %v13621_v56 = vld [vmem:[%s17080_s6 + $0x160] sm:$0xff] }
 0x3ac   : > { %6083 = vperm.xlu0 %10605, %v13601_v22   ;;  %17617 = vst [vmem:[#allocation128_spill] sm:$0xff] %v13621_v56 }
 0x3ad   : > { %v1708_v25 = vadd.f32 %v1667_v27, %v1458_v54  ;;  %v2725_v27 = vadd.f32 %v2684_v53, %v2475_v33  ;;  %v17622_v53 = vld [vmem:[#allocation82_spill] sm:$0xff] }
 0x3ae   : > { %10373 = vset.pattern.permute.xlu1 %v17190_v55  ;;  %v3434_v39 = vmul.f32 %v12981_v9, %v17622_v53 }
 0x3af   : > { %2867 = vperm.xlu1 %10373, %v13411_v59   ;;  %v13608_v26 = vpop.permute.xlu1 %2811  ;;  %v1958_v20 = vadd.f32 %v1917_v11, %v1708_v25  ;;  %v13644_v11 = vpop.permute.xlu0 %5449 }
 0x3b0   : > { %6079 = vperm.xlu0 %10605, %v13621_v56   ;;  %17621 = vst [vmem:[#allocation130_spill] sm:$0xff] %v13644_v11  ;;  %v2975_v56 = vadd.f32 %v2934_v51, %v2725_v27 }
 0x3b1   : > { %v2208_v25 = vadd.f32 %v2167_v12, %v1958_v20 }
 0x3b3   : > { %10374 = vset.pattern.permute.xlu1 %v17184_v30  ;;  %v13627_v41 = vpop.permute.xlu1 %2883  ;;  %v2458_v54 = vadd.f32 %v2417_v4, %v2208_v25  ;;  %v13661_v9 = vpop.permute.xlu0 %5445 }
 0x3b4   : > { %3049 = vperm.xlu1 %10374, %v10687_v23   ;;  %6075 = vperm.xlu0 %10605, %v13639_v42   ;;  %v2917_v23 = vmul.f32 %v12025_v10, %v13455_v48  ;;  %v3167_v48 = vmul.f32 %v12032_v34, %v13535_v19  ;;  %17623 = vst [vmem:[#allocation205_spill] sm:$0xff] %v13661_v9 }
 0x3b5   : > { %v2708_v20 = vadd.f32 %v2667_v32, %v2458_v54  ;;  %v13671_v32 = vld [vmem:[%s11935_s4 + $0x8] ss:$0 sm:$0xff] }
 0x3b7   : > { %v2958_v4 = vadd.f32 %v2917_v23, %v2708_v20  ;;  %v17626_v23 = vld [vmem:[#allocation7_spill] sm:$0xff] }
 0x3b8   : > { %10375 = vset.pattern.permute.xlu1 %v17505_v45  ;;  %v3138_v33 = vpop.permute.xlu1 %3137  ;;  %6071 = vperm.xlu0 %10605, %v13656_v14  }
 0x3b9   : > { %v3184_v42 = vmul.f32 %v12032_v34, %v3138_v33  ;;  %3303 = vperm.xlu1 %10375, %v13287_v37   ;;  %v13667_v37 = vld [vmem:[%s17080_s6 + $0x148] sm:$0xff]  ;;  %v3208_v25 = vadd.f32 %v3167_v48, %v2958_v4  ;;  %v17627_v33 = vld [vmem:[#allocation81_spill] sm:$0xff] }
 0x3ba   : > { %17624 = vst [vmem:[#allocation141_spill] sm:$0xff] %v13667_v37  ;;  %v1915_v53 = vmul.f32 %v11965_v17, %v17627_v33  ;;  %v17629_v48 = vld [vmem:[#allocation231_spill] sm:$0xff] }
 0x3bb   : > { %v3225_v12 = vadd.f32 %v3184_v42, %v2975_v56  ;;  %v17625_v56 = vld [vmem:[#allocation41_spill] sm:$0xff]  ;;  %v1457_v4 = vmul.f32 %v11961_v5, %v17629_v48 }
 0x3bc   : > { %6067 = vperm.xlu0 %10605, %v13667_v37   ;;  %v1665_v42 = vmul.f32 %v11947_v6, %v17625_v56 }
 0x3bd   : > { %v3475_v51 = vadd.f32 %v3434_v39, %v3225_v12  ;;  %3375 = vperm.xlu1 %10375, %v13069_v57   ;;  %v3320_v27 = vpop.permute.xlu1 %3319  ;;  %v1456_v57 = vmul.f32 %v11961_v5, %v17626_v23  ;;  %v17628_v39 = vld [vmem:[#allocation185_spill] sm:$0xff]  ;;  %v13701_v23 = vpop.permute.xlu0 %5441 }
 0x3be   : > { %v3417_v19 = vmul.f32 %v13671_v32, %v3320_v27  ;;  %v1666_v20 = vmul.f32 %v11947_v6, %v17628_v39  ;;  %17631 = vst [vmem:[#allocation146_spill] sm:$0xff] %v13701_v23  ;;  %v17632_v39 = vld [vmem:[#allocation121_spill] sm:$0xff] }
 0x3bf   : > { %v3522_v54 = vadd.f32 %v13037_v50, %v3475_v51  ;;  %v13689_v51 = vld [vmem:[%s17080_s6 + $0x240] sm:$0xff]  ;;  %v1706_v33 = vadd.f32 %v1665_v42, %v1456_v57  ;;  %v2165_v48 = vmul.f32 %v17577_v36, %v17632_v39  ;;  %v13712_v23 = vld [vmem:[%s17080_s6 + $0x238] sm:$0xff] }
 0x3c0   : > { %v3458_v12 = vadd.f32 %v3417_v19, %v3208_v25  ;;  %17630 = vst [vmem:[#allocation144_spill] sm:$0xff] %v13689_v51  ;;  %6191 = vperm.xlu0 %10605, %v13689_v51   ;;  %v13696_v25 = vld [vmem:[%s17080_s6 + $0x108] sm:$0xff]  ;;  %v1707_v11 = vadd.f32 %v1666_v20, %v1457_v4  ;;  %v17633_v51 = vld [vmem:[#allocation101_spill] sm:$0xff]  ;;  %v17636_v4 = vld [vmem:[#allocation138_spill] sm:$0xff] }
 0x3c1   : > { %10377 = vset.pattern.permute.xlu1 %v17533_v46  ;;  %vm3563_vm8 = vcmp.gt.f32.partialorder %v3522_v54, 0.0  ;;  %v3604_v27 = vmul.f32 0.01, %v3522_v54  ;;  %v1916_v37 = vmul.f32 %v11965_v17, %v17633_v51 }
 0x3c2   : > { %v3505_v56 = vadd.f32 %v13037_v50, %v3458_v12  ;;  %2609 = vperm.xlu1 %10377, %v13696_v25   ;;  %v13699_v19 = vpop.permute.xlu1 %2371  ;;  %v1956_v12 = vadd.f32 %v1915_v53, %v1706_v33  ;;  %v17637_v33 = vld [vmem:[#allocation6_spill] sm:$0xff] }
 0x3c3   : > { %v3645_v9 = vsel %vm3563_vm8, %v3522_v54, %v3604_v27  ;;  %v17634_v54 = vld [vmem:[#allocation27_spill] sm:$0xff]  ;;  %v2166_v27 = vmul.f32 %v17577_v36, %v17636_v4  ;;  %v1957_v51 = vadd.f32 %v1916_v37, %v1707_v11  ;;  %v2665_v39 = vmul.f32 %v12007_v60, %v17637_v33 }
 0x3c4   : > { %9707 = vmatprep.subr.msk.mxu1 %vm3701_vm9, %v3645_v9  ;;  %vm3546_vm10 = vcmp.gt.f32.partialorder %v3505_v56, 0.0  ;;  %v3587_v50 = vmul.f32 0.01, %v3505_v56  ;;  %6187 = vperm.xlu0 %10605, %v13712_v23   ;;  %v2415_v57 = vmul.f32 %v11991_v8, %v17634_v54  ;;  %v2206_v53 = vadd.f32 %v2165_v48, %v1956_v12  ;;  %v17638_v12 = vld [vmem:[#allocation25_spill] sm:$0xff]  ;;  %v10696_v37 = vld [vmem:[%s17080_s6 + $0x228] sm:$0xff] }
 0x3c5   : > { %9708 = vmatpush3.msk.msra.mxu1 %vm3701_vm9, %v3645_v9  ;;  %v13722_v9 = vpop.permute.xlu0 %5437  ;;  %v2207_v54 = vadd.f32 %v2166_v27, %v1957_v51  ;;  %v2915_v11 = vmul.f32 %v12025_v10, %v13608_v26  ;;  %v2666_v27 = vmul.f32 %v12007_v60, %v13447_v24  ;;  %v13754_v51 = vld [vmem:[%s17080_s6 + $0x220] sm:$0xff] }
 0x3c6   : > { %10378 = vset.pattern.permute.xlu1 %v17190_v55  ;;  %v3628_v42 = vsel %vm3546_vm10, %v3505_v56, %v3587_v50  ;;  %17635 = vst [vmem:[#allocation149_spill] sm:$0xff] %v13722_v9  ;;  %v10695_v56 = vld [vmem:[%s17080_s6 + $0x230] sm:$0xff]  ;;  %v2456_v48 = vadd.f32 %v2415_v57, %v2206_v53 }
 0x3c7   : > { %2791 = vperm.xlu1 %10378, %v13469_v35   ;;  %v13719_v20 = vpop.permute.xlu1 %2553  ;;  %3754 = vmatpush2.msra.mxu0 %v3628_v42  ;;  %v2416_v42 = vmul.f32 %v11991_v8, %v17638_v12  ;;  %v17640_v53 = vld [vmem:[#allocation108_spill] sm:$0xff] }
 0x3c8   : > { %3755 = vmatprep.subr.mxu0 %v17543_v13  ;;  %6183 = vperm.xlu0 %10605, %v10695_v56   ;;  %v2706_v57 = vadd.f32 %v2665_v39, %v2456_v48  ;;  %v3165_v56 = vmul.f32 %v12032_v34, %v17640_v53  ;;  %v2916_v39 = vmul.f32 %v12025_v10, %v13519_v0  ;;  %v17642_v12 = vld [vmem:[#allocation84_spill] sm:$0xff]  ;;  %v17643_v0 = vld [vmem:[#allocation106_spill] sm:$0xff] }
 0x3c9   : > { %v13742_v4 = vpop.permute.xlu0 %5433  ;;  %v2457_v33 = vadd.f32 %v2416_v42, %v2207_v54  ;;  %v3415_v42 = vmul.f32 %v13671_v32, %v17642_v12 }
 0x3ca   : > { %17639 = vst [vmem:[#allocation153_spill] sm:$0xff] %v13742_v4  ;;  %v2956_v26 = vadd.f32 %v2915_v11, %v2706_v57  ;;  %v3166_v57 = vmul.f32 %v12032_v34, %v17643_v0 }
 0x3cb   : > { %10379 = vset.pattern.permute.xlu1 %v17184_v30  ;;  %v2707_v54 = vadd.f32 %v2666_v27, %v2457_v33  ;;  %v9358_v27 = vld [vmem:[%s17080_s6 + $0x270] sm:$0xff] }
 0x3cc   : > { %3045 = vperm.xlu1 %10379, %v13392_v2   ;;  %v13733_v50 = vpop.permute.xlu1 %2807  ;;  %6179 = vperm.xlu0 %10605, %v10696_v37   ;;  %v3206_v24 = vadd.f32 %v3165_v56, %v2956_v26  ;;  %v13770_v37 = vld [vmem:[%s17080_s6 + $0x208] sm:$0xff] }
 0x3cd   : > { %v13760_v48 = vpop.permute.xlu0 %5429  ;;  %v2957_v53 = vadd.f32 %v2916_v39, %v2707_v54 }
 0x3ce   : > { %17641 = vst [vmem:[#allocation156_spill] sm:$0xff] %v13760_v48  ;;  %v3456_v48 = vadd.f32 %v3415_v42, %v3206_v24  ;;  %v13787_v42 = vld [vmem:[%s12057_s8] ss:$0 sm:$0xff] }
 0x3cf   : > { %v3207_v26 = vadd.f32 %v3166_v57, %v2957_v53 }
 0x3d0   : > { %3117 = vperm.xlu1 %10379, %v13411_v59   ;;  %v13745_v2 = vpop.permute.xlu1 %2879  ;;  %6175 = vperm.xlu0 %10605, %v13754_v51  }
 0x3d1   : > { %v13780_v33 = vpop.permute.xlu0 %5425 }
 0x3d2   : > { %17644 = vst [vmem:[#allocation162_spill] sm:$0xff] %v13780_v33  ;;  %v17662_v33 = vld [vmem:[#allocation246_spill] sm:$0xff] }
 0x3d3   : > { %v1473_v4 = vmul.f32 %v11961_v5, %v17662_v33  ;;  %v17665_v33 = vld [vmem:[#allocation136_spill] sm:$0xff] }
 0x3d4   : > { %10380 = vset.pattern.permute.xlu1 %v17505_v45  ;;  %6163 = vperm.xlu0 %10605, %v13770_v37  }
 0x3d5   : > { %3371 = vperm.xlu1 %10380, %v13255_v29   ;;  %v13765_v11 = vpop.permute.xlu1 %3133  ;;  %v10699_v29 = vld [vmem:[%s17080_s6 + $0x100] sm:$0xff]  ;;  %v13795_v0 = vpop.permute.xlu0 %5481 }
 0x3d6   : > { %17645 = vst [vmem:[#allocation166_spill] sm:$0xff] %v13795_v0 }
 0x3d8   : > { %6219 = vperm.xlu0 %10605, %v13115_v15   ;;  %v3503_v15 = vadd.f32 %v13787_v42, %v3456_v48 }
 0x3d9   : > { %10381 = vset.pattern.permute.xlu1 %v17533_v46 }
 0x3da   : > { %2605 = vperm.xlu1 %10381, %v10699_v29   ;;  %v3316_v56 = vpop.permute.xlu1 %3315  ;;  %v3585_v53 = vmul.f32 0.01, %v3503_v15  ;;  %vm3544_vm12 = vcmp.gt.f32.partialorder %v3503_v15, 0.0 }
 0x3db   : > { %v3416_v39 = vmul.f32 %v13671_v32, %v3316_v56  ;;  %v10701_v56 = vld [vmem:[%s17080_s6 + $0x268] sm:$0xff] }
 0x3dc   : > { %6215 = vperm.xlu0 %10605, %v9358_v27  }
 0x3dd   : > { %v3457_v12 = vadd.f32 %v3416_v39, %v3207_v26  ;;  %v3626_v26 = vsel %vm3544_vm12, %v3503_v15, %v3585_v53  ;;  %v13805_v39 = vpop.permute.xlu0 %5469  ;;  %v17649_v53 = vld [vmem:[#allocation102_spill] sm:$0xff]  ;;  %vm4015_vm12 = vcmask 523264  }
 0x3de   : > { %10383 = vset.pattern.permute.xlu1 %v17184_v30  ;;  %17646 = vst [vmem:[#allocation168_spill] sm:$0xff] %v13805_v39 }
 0x3df   : > { %v3504_v54 = vadd.f32 %v13787_v42, %v3457_v12  ;;  %3041 = vperm.xlu1 %10383, %v13469_v35   ;;  %v13793_v24 = vpop.permute.xlu1 %2295 }
 0x3e0   : > { %6211 = vperm.xlu0 %10605, %v10701_v56   ;;  %v17650_v56 = vld [vmem:[#allocation21_spill] sm:$0xff] }
 0x3e1   : > { %vm3545_vm11 = vcmp.gt.f32.partialorder %v3504_v54, 0.0  ;;  %v3586_v57 = vmul.f32 0.01, %v3504_v54  ;;  %v13816_v15 = vpop.permute.xlu0 %5465 }
 0x3e2   : > { %17648 = vst [vmem:[#allocation170_spill] sm:$0xff] %v13816_v15 }
 0x3e3   : > { %3113 = vperm.xlu1 %10383, %v13588_v1   ;;  %v13801_v48 = vpop.permute.xlu1 %2367  ;;  %v3627_v27 = vsel %vm3545_vm11, %v3504_v54, %v3586_v57  ;;  %v17647_v54 = vld [vmem:[#allocation59_spill] sm:$0xff] }
 0x3e4   : > { %3756 = vmatpush2.msra.mxu0 %v3627_v27  ;;  %6207 = vperm.xlu0 %10605, %v13151_v38   ;;  %v1683_v57 = vmul.f32 %v11947_v6, %v17647_v54  ;;  %v1474_v27 = vmul.f32 %v11961_v5, %v17650_v56 }
 0x3e5   : > { %3757 = vmatprep.subr.mxu0 %v17543_v13  ;;  %v13834_v56 = vpop.permute.xlu0 %5461 }
 0x3e6   : > { %3758 = vmatpush2.msra.mxu0 %v3626_v26  ;;  %v1724_v0 = vadd.f32 %v1683_v57, %v1474_v27  ;;  %17653 = vst [vmem:[#allocation175_spill] sm:$0xff] %v13834_v56  ;;  %v2683_v27 = vmul.f32 %v12007_v60, %v13499_v43  ;;  %v13853_v43 = vld [vmem:[%s17080_s6 + $0x1b0] sm:$0xff]  ;;  %v17661_v56 = vld [vmem:[#allocation201_spill] sm:$0xff] }
 0x3e7   : > { %10384 = vset.pattern.permute.xlu1 %v17505_v45  ;;  %3759 = vmatprep.subr.mxu0 %v17543_v13  ;;  %v1682_v15 = vmul.f32 %v11947_v6, %v17661_v56 }
 0x3e8   : > { %3367 = vperm.xlu1 %10384, %v13411_v59   ;;  %v13810_v12 = vpop.permute.xlu1 %2621  ;;  %6131 = vperm.xlu0 %10605, %v13405_v49   ;;  %v17651_v59 = vld [vmem:[#allocation99_spill] sm:$0xff] }
 0x3e9   : > { %v1933_v26 = vmul.f32 %v11965_v17, %v17651_v59  ;;  %v17652_v49 = vld [vmem:[#allocation139_spill] sm:$0xff] }
 0x3ea   : > { %v2183_v39 = vmul.f32 %v17577_v36, %v17652_v49  ;;  %v2933_v49 = vmul.f32 %v12025_v10, %v13627_v41 }
 0x3eb   : > { %v1974_v54 = vadd.f32 %v1933_v26, %v1724_v0  ;;  %v13847_v26 = vpop.permute.xlu0 %5881 }
 0x3ec   : > { %10385 = vset.pattern.permute.xlu1 %v17190_v55  ;;  %6199 = vperm.xlu0 %10605, %v17649_v53  }
 0x3ed   : > { %2855 = vperm.xlu1 %10385, %v10699_v29   ;;  %v13818_v38 = vpop.permute.xlu1 %2803  ;;  %v2433_v29 = vmul.f32 %v11991_v8, %v13437_v21  ;;  %v2224_v57 = vadd.f32 %v2183_v39, %v1974_v54 }
 0x3ef   : > { %v2474_v59 = vadd.f32 %v2433_v29, %v2224_v57  ;;  %v17655_v57 = vmov 0  }
 0x3f0   : > { %10609 = vset.pattern.permute.xlu0 %v17505_v45 }
 0x3f1   : > { %10386 = vset.pattern.permute.xlu1 %v17505_v45  ;;  %6865 = vperm.xlu0 %10609, %v13236_v63   ;;  %v2724_v21 = vadd.f32 %v2683_v27, %v2474_v59 }
 0x3f2   : > { %3291 = vperm.xlu1 %10386, %v13469_v35   ;;  %v13832_v53 = vpop.permute.xlu1 %3057  ;;  %v3183_v35 = vmul.f32 %v12032_v34, %v13765_v11  ;;  %v1130_v11 = vld [vmem:[%s17654_s0 + $0x8] sm:$0xff] }
 0x3f3   : > { %v2974_v39 = vadd.f32 %v2933_v49, %v2724_v21  ;;  %3769 = vmatprep.mubr.f32.mxu0 %v1130_v11  ;;  %v1131_v21 = vld [vmem:[%s17654_s0 + $0x10] sm:$0xff] }
 0x3f4   : > { %9725 = vmatprep.mubr.msk.f32.mxu1 %vm3646_vm14, %v1131_v21 }
 0x3f5   : > { %6861 = vperm.xlu0 %10609, %v13485_v52   ;;  %v3224_v41 = vadd.f32 %v3183_v35, %v2974_v39  ;;  %v17657_v35 = vld [vmem:[#allocation184_spill] sm:$0xff] }
 0x3f6   : > { %3363 = vperm.xlu1 %10386, %v13588_v1   ;;  %v13842_v0 = vpop.permute.xlu1 %3129  ;;  %v1664_v39 = vmul.f32 %v11947_v6, %v17657_v35 }
 0x3f9   : > { %6857 = vperm.xlu0 %10609, %v13853_v43  }
 0x3fa   : > { %3359 = vperm.xlu1 %10386, %v13696_v25   ;;  %v13861_v25 = vpop.permute.xlu0 %5869 }
 0x3fb   : > { %v3384_v1 = vpop.permute.xlu1 %3383  ;;  %17656 = vst [vmem:[#allocation193_spill] sm:$0xff] %v13861_v25 }
 0x3fc   : > { %v3433_v54 = vmul.f32 %v13671_v32, %v3384_v1  ;;  %v17658_v1 = vld [vmem:[#allocation229_spill] sm:$0xff] }
 0x3fd   : > { %6853 = vperm.xlu0 %10609, %v13273_v16  }
 0x3fe   : > { %v3474_v29 = vadd.f32 %v3433_v54, %v3224_v41  ;;  %10388 = vset.pattern.permute.xlu1 %v17655_v57  ;;  %v1455_v41 = vmul.f32 %v11961_v5, %v17658_v1  ;;  %v17659_v54 = vmov 1   ;;  %v17663_v1 = vld [vmem:[#allocation169_spill] sm:$0xff] }
 0x3ff   : > { %4913 = vperm.xlu1 %10388, %v13236_v63   ;;  %v1914_v21 = vmul.f32 %v11965_v17, %v17663_v1 }
 0x400   : > { %v3521_v27 = vadd.f32 %v13787_v42, %v3474_v29  ;;  %v13866_v59 = vpop.permute.xlu1 %2291  ;;  %v13879_v29 = vpop.permute.xlu0 %5909  ;;  %v1705_v35 = vadd.f32 %v1664_v39, %v1455_v41  ;;  %v17666_v39 = vmov 2   ;;  %v17667_v41 = vld [vmem:[#allocation154_spill] sm:$0xff] }
 0x401   : > { %6849 = vperm.xlu0 %10609, %v13504_v7   ;;  %17660 = vst [vmem:[#allocation171_spill] sm:$0xff] %v13879_v29  ;;  %v2182_v1 = vmul.f32 %v17577_v36, %v17667_v41  ;;  %v17671_v41 = vld [vmem:[#allocation227_spill] sm:$0xff] }
 0x402   : > { %vm3562_vm13 = vcmp.gt.f32.partialorder %v3521_v27, 0.0  ;;  %v3603_v49 = vmul.f32 0.01, %v3521_v27  ;;  %v1955_v45 = vadd.f32 %v1914_v21, %v1705_v35  ;;  %v2432_v35 = vmul.f32 %v11991_v8, %v13489_v58 }
 0x403   : > { %10389 = vset.pattern.permute.xlu1 %v17659_v54  ;;  %v2664_v21 = vmul.f32 %v12007_v60, %v13591_v61  ;;  %v3164_v61 = vmul.f32 %v12032_v34, %v13832_v53  ;;  %v13939_v53 = vld [vmem:[%s17080_s6 + $0x1c0] sm:$0xff] }
 0x404   : > { %5143 = vperm.xlu1 %10389, %v13236_v63   ;;  %v3644_v11 = vsel %vm3562_vm13, %v3521_v27, %v3603_v49  ;;  %v1723_v27 = vadd.f32 %v1682_v15, %v1473_v4  ;;  %v1932_v49 = vmul.f32 %v11965_v17, %v13348_v18  ;;  %v13895_v29 = vpop.permute.xlu0 %5977  ;;  %v2414_v15 = vmul.f32 %v11991_v8, %v13475_v62 }
 0x405   : > { %v13885_v9 = vpop.permute.xlu1 %2545  ;;  %9709 = vmatprep.subr.mxu1 %v3644_v11  ;;  %6845 = vperm.xlu0 %10609, %v13513_v31   ;;  %17664 = vst [vmem:[#allocation172_spill] sm:$0xff] %v13895_v29 }
 0x406   : > { %9710 = vmatpush3.msra.mxu1 %v3644_v11  ;;  %v2164_v11 = vmul.f32 %v17577_v36, %v17665_v33  ;;  %v1973_v25 = vadd.f32 %v1932_v49, %v1723_v27  ;;  %v17670_v49 = vld [vmem:[#allocation182_spill] sm:$0xff] }
 0x408   : > { %5139 = vperm.xlu1 %10389, %v13485_v52   ;;  %v2205_v18 = vadd.f32 %v2164_v11, %v1955_v45  ;;  %v13909_v29 = vpop.permute.xlu0 %5973  ;;  %v2223_v33 = vadd.f32 %v2182_v1, %v1973_v25  ;;  %v2914_v45 = vmul.f32 %v12025_v10, %v13733_v50  ;;  %v1662_v11 = vmul.f32 %v11947_v6, %v17670_v49 }
 0x409   : > { %v13893_v56 = vpop.permute.xlu1 %2617  ;;  %6841 = vperm.xlu0 %10609, %v13530_v40   ;;  %17668 = vst [vmem:[#allocation173_spill] sm:$0xff] %v13909_v29  ;;  %v17672_v1 = vmov 3   ;;  %v17689_v29 = vld [vmem:[#allocation147_spill] sm:$0xff] }
 0x40a   : > { %v2473_v27 = vadd.f32 %v2432_v35, %v2223_v33 }
 0x40c   : > { %10390 = vset.pattern.permute.xlu1 %v17666_v39 }
 0x40d   : > { %5389 = vperm.xlu1 %10390, %v13236_v63   ;;  %6837 = vperm.xlu0 %10609, %v13545_v3   ;;  %v2455_v63 = vadd.f32 %v2414_v15, %v2205_v18  ;;  %v17669_v3 = vld [vmem:[#allocation8_spill] sm:$0xff]  ;;  %v13931_v18 = vpop.permute.xlu0 %5897  ;;  %v2932_v15 = vmul.f32 %v12025_v10, %v13745_v2 }
 0x40e   : > { %v13904_v4 = vpop.permute.xlu1 %2871  ;;  %v2682_v25 = vmul.f32 %v12007_v60, %v17669_v3  ;;  %17673 = vst [vmem:[#allocation176_spill] sm:$0xff] %v13931_v18 }
 0x40f   : > { %v2705_v58 = vadd.f32 %v2664_v21, %v2455_v63  ;;  %v3182_v63 = vmul.f32 %v12032_v34, %v13842_v0 }
 0x410   : > { %v2723_v35 = vadd.f32 %v2682_v25, %v2473_v27 }
 0x411   : > { %10391 = vset.pattern.permute.xlu1 %v17659_v54  ;;  %6833 = vperm.xlu0 %10609, %v13559_v28   ;;  %v1453_v28 = vmul.f32 %v11961_v5, %v17671_v41  ;;  %v2955_v50 = vadd.f32 %v2914_v45, %v2705_v58  ;;  %v17674_v45 = vld [vmem:[#allocation105_spill] sm:$0xff]  ;;  %v13950_v25 = vpop.permute.xlu0 %5893 }
 0x412   : > { %5135 = vperm.xlu1 %10391, %v13853_v43   ;;  %v1912_v58 = vmul.f32 %v11965_v17, %v17674_v45  ;;  %v2973_v2 = vadd.f32 %v2932_v15, %v2723_v35  ;;  %17675 = vst [vmem:[#allocation202_spill] sm:$0xff] %v13950_v25 }
 0x413   : > { %v13920_v62 = vpop.permute.xlu1 %3053  ;;  %v3205_v21 = vadd.f32 %v3164_v61, %v2955_v50 }
 0x414   : > { %v3223_v27 = vadd.f32 %v3182_v63, %v2973_v2  ;;  %v17681_v2 = vld [vmem:[#allocation57_spill] sm:$0xff] }
 0x415   : > { %6829 = vperm.xlu0 %10609, %v13573_v47   ;;  %v1703_v47 = vadd.f32 %v1662_v11, %v1453_v28  ;;  %v17676_v11 = vld [vmem:[#allocation134_spill] sm:$0xff] }
 0x416   : > { %10392 = vset.pattern.permute.xlu1 %v17672_v1  ;;  %v2162_v28 = vmul.f32 %v17577_v36, %v17676_v11 }
 0x417   : > { %5635 = vperm.xlu1 %10392, %v13939_v53   ;;  %v1953_v50 = vadd.f32 %v1912_v58, %v1703_v47  ;;  %v17680_v58 = vld [vmem:[#allocation128_spill] sm:$0xff] }
 0x418   : > { %v3308_v33 = vpop.permute.xlu1 %3307 }
 0x419   : > { %v3414_v3 = vmul.f32 %v13671_v32, %v3308_v33  ;;  %6825 = vperm.xlu0 %10609, %v13582_v44   ;;  %v2203_v45 = vadd.f32 %v2162_v28, %v1953_v50  ;;  %v17685_v50 = vld [vmem:[#allocation97_spill] sm:$0xff] }
 0x41b   : > { %v3455_v49 = vadd.f32 %v3414_v3, %v3205_v21  ;;  %10393 = vset.pattern.permute.xlu1 %v17655_v57  ;;  %v17677_v21 = vld [vmem:[#allocation31_spill] sm:$0xff] }
 0x41c   : > { %4898 = vperm.xlu1 %10393, %v13273_v16   ;;  %v3380_v41 = vpop.permute.xlu1 %3379  ;;  %v2412_v63 = vmul.f32 %v11991_v8, %v17677_v21  ;;  %v17678_v3 = vld [vmem:[#allocation39_spill] sm:$0xff] }
 0x41d   : > { %v3502_v0 = vadd.f32 %v13787_v42, %v3455_v49  ;;  %v3432_v61 = vmul.f32 %v13671_v32, %v3380_v41  ;;  %6821 = vperm.xlu0 %10609, %v13601_v22   ;;  %v1663_v47 = vmul.f32 %v11947_v6, %v17678_v3  ;;  %v13966_v22 = vpop.permute.xlu0 %5889  ;;  %v1681_v49 = vmul.f32 %v11947_v6, %v17681_v2  ;;  %v17686_v3 = vld [vmem:[#allocation12_spill] sm:$0xff] }
 0x41e   : > { %17679 = vst [vmem:[#allocation178_spill] sm:$0xff] %v13966_v22  ;;  %v2453_v25 = vadd.f32 %v2412_v63, %v2203_v45  ;;  %v17688_v22 = vld [vmem:[#allocation137_spill] sm:$0xff] }
 0x41f   : > { %v3473_v44 = vadd.f32 %v3432_v61, %v3223_v27  ;;  %vm3543_vm15 = vcmp.gt.f32.partialorder %v3502_v0, 0.0  ;;  %v3584_v15 = vmul.f32 0.01, %v3502_v0  ;;  %v17682_v27 = vld [vmem:[#allocation5_spill] sm:$0xff]  ;;  %v17683_v61 = vld [vmem:[#allocation19_spill] sm:$0xff] }
 0x420   : > { %10394 = vset.pattern.permute.xlu1 %v17666_v39  ;;  %v1472_v11 = vmul.f32 %v11961_v5, %v17683_v61  ;;  %v17687_v61 = vld [vmem:[#allocation119_spill] sm:$0xff] }
 0x421   : > { %v3520_v16 = vadd.f32 %v13787_v42, %v3473_v44  ;;  %5381 = vperm.xlu1 %10394, %v13853_v43   ;;  %v13960_v33 = vpop.permute.xlu1 %2541  ;;  %v3625_v35 = vsel %vm3543_vm15, %v3502_v0, %v3584_v15  ;;  %6817 = vperm.xlu0 %10609, %v17680_v58   ;;  %v1454_v0 = vmul.f32 %v11961_v5, %v17682_v27  ;;  %v17684_v44 = vld [vmem:[#allocation79_spill] sm:$0xff]  ;;  %v13991_v18 = vpop.permute.xlu0 %5885 }
 0x422   : > { %3760 = vmatpush2.msra.mxu0 %v3625_v35  ;;  %v1913_v28 = vmul.f32 %v11965_v17, %v17684_v44  ;;  %v1931_v15 = vmul.f32 %v11965_v17, %v17685_v50  ;;  %v2662_v58 = vmul.f32 %v12007_v60, %v17686_v3  ;;  %v1722_v27 = vadd.f32 %v1681_v49, %v1472_v11  ;;  %v17691_v3 = vld [vmem:[#allocation196_spill] sm:$0xff]  ;;  %v17693_v11 = vld [vmem:[#allocation29_spill] sm:$0xff] }
 0x423   : > { %vm3561_vm0 = vcmp.gt.f32.partialorder %v3520_v16, 0.0  ;;  %v3602_v41 = vmul.f32 0.01, %v3520_v16  ;;  %3761 = vmatprep.subr.mxu0 %v17543_v13  ;;  %v1704_v2 = vadd.f32 %v1663_v47, %v1454_v0  ;;  %v2163_v44 = vmul.f32 %v17577_v36, %v17687_v61  ;;  %17690 = vst [vmem:[#allocation179_spill] sm:$0xff] %v13991_v18  ;;  %v17692_v47 = vld [vmem:[#allocation60_spill] sm:$0xff] }
 0x424   : > { %v2181_v50 = vmul.f32 %v17577_v36, %v17688_v22  ;;  %v2431_v63 = vmul.f32 %v11991_v8, %v17691_v3  ;;  %v2912_v45 = vmul.f32 %v12025_v10, %v17692_v47  ;;  %v2703_v0 = vadd.f32 %v2662_v58, %v2453_v25 }
 0x425   : > { %10395 = vset.pattern.permute.xlu1 %v17672_v1  ;;  %v13981_v35 = vpop.permute.xlu1 %2613  ;;  %v3643_v21 = vsel %vm3561_vm0, %v3520_v16, %v3602_v41  ;;  %6813 = vperm.xlu0 %10609, %v17689_v29   ;;  %v1954_v16 = vadd.f32 %v1913_v28, %v1704_v2  ;;  %v1972_v41 = vadd.f32 %v1931_v15, %v1722_v27  ;;  %v17694_v28 = vld [vmem:[#allocation10_spill] sm:$0xff]  ;;  %v14008_v3 = vpop.permute.xlu0 %6421 }
 0x426   : > { %5631 = vperm.xlu1 %10395, %v13485_v52   ;;  %9711 = vmatprep.subr.mxu1 %v3643_v21  ;;  %v2413_v22 = vmul.f32 %v11991_v8, %v17693_v11  ;;  %v2681_v15 = vmul.f32 %v12007_v60, %v17694_v28  ;;  %v2663_v27 = vmul.f32 %v12007_v60, %v13719_v20  ;;  %v17698_v20 = vld [vmem:[#allocation58_spill] sm:$0xff] }
 0x427   : > { %9712 = vmatpush3.msra.mxu1 %v3643_v21  ;;  %v2204_v21 = vadd.f32 %v2163_v44, %v1954_v16  ;;  %v2222_v29 = vadd.f32 %v2181_v50, %v1972_v41  ;;  %v2953_v61 = vadd.f32 %v2912_v45, %v2703_v0  ;;  %17695 = vst [vmem:[#allocation181_spill] sm:$0xff] %v14008_v3  ;;  %v17696_v50 = vld [vmem:[#allocation141_spill] sm:$0xff] }
 0x428   : > { %v2913_v58 = vmul.f32 %v12025_v10, %v13818_v38  ;;  %v3163_v38 = vmul.f32 %v12032_v34, %v13920_v62 }
 0x429   : > { %6809 = vperm.xlu0 %10609, %v13656_v14   ;;  %v2472_v2 = vadd.f32 %v2431_v63, %v2222_v29  ;;  %v2454_v25 = vadd.f32 %v2413_v22, %v2204_v21  ;;  %v17697_v14 = vld [vmem:[#allocation86_spill] sm:$0xff]  ;;  %v2931_v63 = vmul.f32 %v12025_v10, %v17698_v20  ;;  %v17699_v22 = vld [vmem:[#allocation144_spill] sm:$0xff]  ;;  %v14024_v28 = vpop.permute.xlu0 %6417 }
 0x42a   : > { %10396 = vset.pattern.permute.xlu1 %v17655_v57  ;;  %v13998_v49 = vpop.permute.xlu1 %2867  ;;  %v3412_v16 = vmul.f32 %v13671_v32, %v17697_v14  ;;  %17700 = vst [vmem:[#allocation189_spill] sm:$0xff] %v14024_v28 }
 0x42b   : > { %4893 = vperm.xlu1 %10396, %v13504_v7   ;;  %v2722_v47 = vadd.f32 %v2681_v15, %v2472_v2  ;;  %v2704_v45 = vadd.f32 %v2663_v27, %v2454_v25 }
 0x42d   : > { %6805 = vperm.xlu0 %10609, %v17696_v50   ;;  %v2954_v11 = vadd.f32 %v2913_v58, %v2704_v45  ;;  %v2972_v2 = vadd.f32 %v2931_v63, %v2722_v47  ;;  %v17703_v58 = vld [vmem:[#allocation199_spill] sm:$0xff]  ;;  %v17705_v47 = vmov 4  }
 0x42e   : > { %v1680_v14 = vmul.f32 %v11947_v6, %v17703_v58 }
 0x42f   : > { %10397 = vset.pattern.permute.xlu1 %v17659_v54  ;;  %v3050_v44 = vpop.permute.xlu1 %3049  ;;  %v3204_v50 = vadd.f32 %v3163_v38, %v2954_v11  ;;  %v17707_v11 = vld [vmem:[#allocation77_spill] sm:$0xff] }
 0x430   : > { %v3162_v41 = vmul.f32 %v12032_v34, %v3050_v44  ;;  %5127 = vperm.xlu1 %10397, %v13504_v7   ;;  %v17701_v44 = vld [vmem:[#allocation110_spill] sm:$0xff] }
 0x431   : > { %6929 = vperm.xlu0 %10609, %v17699_v22   ;;  %v3181_v7 = vmul.f32 %v12032_v34, %v17701_v44  ;;  %v1911_v22 = vmul.f32 %v11965_v17, %v17707_v11 }
 0x432   : > { %v3203_v0 = vadd.f32 %v3162_v41, %v2953_v61  ;;  %v17702_v61 = vld [vmem:[#allocation37_spill] sm:$0xff]  ;;  %v17704_v41 = vld [vmem:[#allocation244_spill] sm:$0xff] }
 0x433   : > { %v1661_v25 = vmul.f32 %v11947_v6, %v17702_v61  ;;  %v1471_v20 = vmul.f32 %v11961_v5, %v17704_v41  ;;  %v3222_v38 = vadd.f32 %v3181_v7, %v2972_v2  ;;  %v17710_v61 = vld [vmem:[#allocation109_spill] sm:$0xff] }
 0x434   : > { %v3453_v21 = vadd.f32 %v3412_v16, %v3203_v0  ;;  %10398 = vset.pattern.permute.xlu1 %v17672_v1  ;;  %v3304_v29 = vpop.permute.xlu1 %3303  ;;  %v17706_v0 = vld [vmem:[#allocation3_spill] sm:$0xff]  ;;  %v1930_v58 = vmul.f32 %v11965_v17, %v17710_v61 }
 0x435   : > { %v3413_v15 = vmul.f32 %v13671_v32, %v3304_v29  ;;  %5627 = vperm.xlu1 %10398, %v13853_v43   ;;  %6925 = vperm.xlu0 %10609, %v13712_v23   ;;  %v1452_v23 = vmul.f32 %v11961_v5, %v17706_v0 }
 0x436   : > { %v3500_v27 = vadd.f32 %v13787_v42, %v3453_v21  ;;  %v14046_v21 = vpop.permute.xlu0 %6409 }
 0x437   : > { %v3454_v62 = vadd.f32 %v3413_v15, %v3204_v50  ;;  %17708 = vst [vmem:[#allocation191_spill] sm:$0xff] %v14046_v21  ;;  %v1702_v7 = vadd.f32 %v1661_v25, %v1452_v23  ;;  %v17709_v15 = vld [vmem:[#allocation117_spill] sm:$0xff] }
 0x438   : > { %v3376_v16 = vpop.permute.xlu1 %3375  ;;  %v3582_v50 = vmul.f32 0.01, %v3500_v27  ;;  %v2161_v2 = vmul.f32 %v17577_v36, %v17709_v15  ;;  %vm3541_vm2 = vcmp.gt.f32.partialorder %v3500_v27, 0.0 }
 0x439   : > { %v3501_v45 = vadd.f32 %v13787_v42, %v3454_v62  ;;  %v3431_v63 = vmul.f32 %v13671_v32, %v3376_v16  ;;  %10399 = vset.pattern.permute.xlu1 %v17705_v47  ;;  %6913 = vperm.xlu0 %10609, %v13754_v51   ;;  %v1721_v62 = vadd.f32 %v1680_v14, %v1471_v20 }
 0x43a   : > { %5877 = vperm.xlu1 %10399, %v13485_v52   ;;  %v3623_v51 = vsel %vm3541_vm2, %v3500_v27, %v3582_v50  ;;  %v2661_v20 = vmul.f32 %v12007_v60, %v13885_v9  ;;  %v17713_v9 = vld [vmem:[#allocation62_spill] sm:$0xff]  ;;  %v2430_v50 = vmul.f32 %v11991_v8, %v13699_v19  ;;  %v14088_v19 = vld [vmem:[%s17080_s6 + $0x1a8] sm:$0xff] }
 0x43b   : > { %v3472_v29 = vadd.f32 %v3431_v63, %v3222_v38  ;;  %vm3542_vm1 = vcmp.gt.f32.partialorder %v3501_v45, 0.0  ;;  %v3583_v44 = vmul.f32 0.01, %v3501_v45  ;;  %v1952_v38 = vadd.f32 %v1911_v22, %v1702_v7 }
 0x43c   : > { %v2411_v63 = vmul.f32 %v11991_v8, %v13793_v24  ;;  %v17712_v24 = vld [vmem:[#allocation152_spill] sm:$0xff]  ;;  %v1971_v23 = vadd.f32 %v1930_v58, %v1721_v62  ;;  %v2680_v7 = vmul.f32 %v12007_v60, %v13810_v12 }
 0x43d   : > { %v3519_v16 = vadd.f32 %v13787_v42, %v3472_v29  ;;  %v14054_v52 = vpop.permute.xlu1 %2609  ;;  %v3624_v41 = vsel %vm3542_vm1, %v3501_v45, %v3583_v44  ;;  %v2202_v14 = vadd.f32 %v2161_v2, %v1952_v38  ;;  %v14063_v45 = vpop.permute.xlu0 %6405  ;;  %6901 = vperm.xlu0 %10609, %v13770_v37   ;;  %v2180_v0 = vmul.f32 %v17577_v36, %v17712_v24  ;;  %v17714_v2 = vld [vmem:[#allocation88_spill] sm:$0xff] }
 0x43e   : > { %10400 = vset.pattern.permute.xlu1 %v17655_v57  ;;  %3762 = vmatpush2.msra.mxu0 %v3624_v41  ;;  %17711 = vst [vmem:[#allocation192_spill] sm:$0xff] %v14063_v45  ;;  %v2911_v29 = vmul.f32 %v12025_v10, %v17713_v9  ;;  %v3411_v62 = vmul.f32 %v13671_v32, %v17714_v2  ;;  %v17716_v9 = vld [vmem:[#allocation55_spill] sm:$0xff]  ;;  %v14563_v45 = vld [vmem:[%s17080_s6 + $0x160] sm:$0xff] }
 0x43f   : > { %4888 = vperm.xlu1 %10400, %v13513_v31   ;;  %3763 = vmatprep.subr.mxu0 %v17543_v13  ;;  %vm3560_vm3 = vcmp.gt.f32.partialorder %v3519_v16, 0.0  ;;  %v3601_v25 = vmul.f32 0.01, %v3519_v16  ;;  %v2452_v22 = vadd.f32 %v2411_v63, %v2202_v14  ;;  %v2221_v37 = vadd.f32 %v2180_v0, %v1971_v23  ;;  %17761 = vst [vmem:[#allocation50_spill] sm:$0xff] %v14563_v45 }
 0x440   : > { %3764 = vmatpush2.msra.mxu0 %v3623_v51  ;;  %v17715_v51 = vld [vmem:[#allocation112_spill] sm:$0xff] }
 0x441   : > { %v3642_v11 = vsel %vm3560_vm3, %v3519_v16, %v3601_v25  ;;  %3765 = vmatprep.subr.mxu0 %v17543_v13  ;;  %v2702_v44 = vadd.f32 %v2661_v20, %v2452_v22  ;;  %v2471_v16 = vadd.f32 %v2430_v50, %v2221_v37  ;;  %v3180_v25 = vmul.f32 %v12032_v34, %v17715_v51  ;;  %v17717_v50 = vld [vmem:[#allocation17_spill] sm:$0xff] }
 0x442   : > { %v14069_v27 = vpop.permute.xlu1 %2791  ;;  %9713 = vmatprep.subr.mxu1 %v3642_v11 }
 0x443   : > { %10401 = vset.pattern.permute.xlu1 %v17659_v54  ;;  %9714 = vmatpush3.msra.mxu1 %v3642_v11  ;;  %v2952_v61 = vadd.f32 %v2911_v29, %v2702_v44  ;;  %v2721_v41 = vadd.f32 %v2680_v7, %v2471_v16  ;;  %v1679_v29 = vmul.f32 %v11947_v6, %v17716_v9  ;;  %v17721_v16 = vld [vmem:[#allocation180_spill] sm:$0xff]  ;;  %v17726_v9 = vld [vmem:[#allocation165_spill] sm:$0xff] }
 0x444   : > { %5123 = vperm.xlu1 %10401, %v13513_v31   ;;  %v2930_v31 = vmul.f32 %v12025_v10, %v13904_v4  ;;  %v1470_v7 = vmul.f32 %v11961_v5, %v17717_v50  ;;  %v1926_v50 = vmul.f32 %v11965_v17, %v17726_v9  ;;  %v17733_v9 = vld [vmem:[#allocation16_spill] sm:$0xff] }
 0x446   : > { %v2971_v14 = vadd.f32 %v2930_v31, %v2721_v41  ;;  %v1660_v31 = vmul.f32 %v11947_v6, %v17721_v16  ;;  %v1720_v51 = vadd.f32 %v1679_v29, %v1470_v7  ;;  %v2429_v29 = vmul.f32 %v11991_v8, %v13801_v48  ;;  %v14141_v48 = vld [vmem:[%s17080_s6 + $0x198] sm:$0xff] }
 0x447   : > { %v3046_v15 = vpop.permute.xlu1 %3045 }
 0x448   : > { %v3161_v58 = vmul.f32 %v12032_v34, %v3046_v15  ;;  %10402 = vset.pattern.permute.xlu1 %v17672_v1  ;;  %v3221_v0 = vadd.f32 %v3180_v25, %v2971_v14  ;;  %v17718_v15 = vld [vmem:[#allocation95_spill] sm:$0xff] }
 0x449   : > { %5623 = vperm.xlu1 %10402, %v14088_v19   ;;  %v1929_v2 = vmul.f32 %v11965_v17, %v17718_v15  ;;  %v17723_v25 = vld [vmem:[#allocation135_spill] sm:$0xff] }
 0x44a   : > { %v3202_v12 = vadd.f32 %v3161_v58, %v2952_v61  ;;  %v2179_v14 = vmul.f32 %v17577_v36, %v17723_v25  ;;  %v17728_v25 = vld [vmem:[#allocation107_spill] sm:$0xff] }
 0x44b   : > { %v14091_v38 = vpop.permute.xlu1 %3117 }
 0x44c   : > { %v3452_v63 = vadd.f32 %v3411_v62, %v3202_v12  ;;  %v17719_v62 = vld [vmem:[#allocation195_spill] sm:$0xff]  ;;  %v17722_v12 = vld [vmem:[#allocation225_spill] sm:$0xff] }
 0x44d   : > { %10403 = vset.pattern.permute.xlu1 %v17705_v47  ;;  %v1676_v61 = vmul.f32 %v11947_v6, %v17719_v62  ;;  %v1451_v41 = vmul.f32 %v11961_v5, %v17722_v12  ;;  %v17727_v62 = vld [vmem:[#allocation100_spill] sm:$0xff] }
 0x44e   : > { %5873 = vperm.xlu1 %10403, %v13853_v43   ;;  %v3499_v4 = vadd.f32 %v13787_v42, %v3452_v63 }
 0x44f   : > { %v1701_v15 = vadd.f32 %v1660_v31, %v1451_v41  ;;  %v2929_v41 = vmul.f32 %v12025_v10, %v13998_v49  ;;  %v17734_v49 = vld [vmem:[#allocation93_spill] sm:$0xff] }
 0x450   : > { %v3372_v20 = vpop.permute.xlu1 %3371  ;;  %vm3540_vm4 = vcmp.gt.f32.partialorder %v3499_v4, 0.0  ;;  %v3581_v24 = vmul.f32 0.01, %v3499_v4 }
 0x451   : > { %v3430_v23 = vmul.f32 %v13671_v32, %v3372_v20 }
 0x452   : > { %10404 = vset.pattern.permute.xlu1 %v17190_v55  ;;  %v3622_v11 = vsel %vm3540_vm4, %v3499_v4, %v3581_v24  ;;  %v17724_v4 = vld [vmem:[#allocation197_spill] sm:$0xff]  ;;  %v17725_v24 = vld [vmem:[#allocation242_spill] sm:$0xff] }
 0x453   : > { %v3471_v22 = vadd.f32 %v3430_v23, %v3221_v0  ;;  %6373 = vperm.xlu1 %10404, %v13939_v53   ;;  %3766 = vmatpush2.msra.mxu0 %v3622_v11  ;;  %v17720_v53 = vld [vmem:[#allocation241_spill] sm:$0xff]  ;;  %v1678_v20 = vmul.f32 %v11947_v6, %v17724_v4  ;;  %v1469_v0 = vmul.f32 %v11961_v5, %v17725_v24  ;;  %v17732_v24 = vld [vmem:[#allocation150_spill] sm:$0xff] }
 0x454   : > { %3767 = vmatprep.subr.mxu0 %v17543_v13  ;;  %v1467_v58 = vmul.f32 %v11961_v5, %v17720_v53  ;;  %v1970_v11 = vadd.f32 %v1929_v2, %v1720_v51  ;;  %v1910_v53 = vmul.f32 %v11965_v17, %v17727_v62  ;;  %v17729_v2 = vld [vmem:[#allocation148_spill] sm:$0xff]  ;;  %v17730_v51 = vld [vmem:[#allocation53_spill] sm:$0xff] }
 0x455   : > { %v3518_v44 = vadd.f32 %v13787_v42, %v3471_v22  ;;  %v14105_v37 = vpop.permute.xlu1 %2605  ;;  %v1719_v12 = vadd.f32 %v1678_v20, %v1469_v0  ;;  %v2178_v0 = vmul.f32 %v17577_v36, %v17732_v24  ;;  %v17735_v62 = vld [vmem:[#allocation36_spill] sm:$0xff] }
 0x456   : > { %v1717_v22 = vadd.f32 %v1676_v61, %v1467_v58  ;;  %v2220_v16 = vadd.f32 %v2179_v14, %v1970_v11  ;;  %v2176_v61 = vmul.f32 %v17577_v36, %v17729_v2  ;;  %v17731_v14 = vld [vmem:[#allocation132_spill] sm:$0xff]  ;;  %v1951_v20 = vadd.f32 %v1910_v53, %v1701_v15 }
 0x457   : > { %10405 = vset.pattern.permute.xlu1 %v17655_v57  ;;  %vm3559_vm5 = vcmp.gt.f32.partialorder %v3518_v44, 0.0  ;;  %v3600_v63 = vmul.f32 0.01, %v3518_v44  ;;  %v2160_v4 = vmul.f32 %v17577_v36, %v17731_v14  ;;  %v2410_v2 = vmul.f32 %v11991_v8, %v13866_v59  ;;  %v17738_v59 = vld [vmem:[#allocation34_spill] sm:$0xff] }
 0x458   : > { %4883 = vperm.xlu1 %10405, %v13530_v40   ;;  %v1928_v40 = vmul.f32 %v11965_v17, %v17728_v25  ;;  %v1967_v58 = vadd.f32 %v1926_v50, %v1717_v22  ;;  %v2470_v31 = vadd.f32 %v2429_v29, %v2220_v16  ;;  %v3179_v22 = vmul.f32 %v12032_v34, %v14091_v38  ;;  %v17736_v25 = vld [vmem:[#allocation133_spill] sm:$0xff] }
 0x459   : > { %v3641_v23 = vsel %vm3559_vm5, %v3518_v44, %v3600_v63  ;;  %v2679_v44 = vmul.f32 %v12007_v60, %v13893_v56  ;;  %v1677_v56 = vmul.f32 %v11947_v6, %v17730_v51  ;;  %v1468_v50 = vmul.f32 %v11961_v5, %v17733_v9  ;;  %v17737_v51 = vld [vmem:[#allocation33_spill] sm:$0xff] }
 0x45a   : > { %v3042_v7 = vpop.permute.xlu1 %3041  ;;  %9715 = vmatprep.subr.mxu1 %v3641_v23  ;;  %v1927_v29 = vmul.f32 %v11965_v17, %v17734_v49  ;;  %v2426_v16 = vmul.f32 %v11991_v8, %v17735_v62  ;;  %v2217_v15 = vadd.f32 %v2176_v61, %v1967_v58  ;;  %v2428_v61 = vmul.f32 %v11991_v8, %v17737_v51 }
 0x45b   : > { %9716 = vmatpush3.msra.mxu1 %v3641_v23  ;;  %v1969_v23 = vadd.f32 %v1928_v40, %v1719_v12  ;;  %v2720_v11 = vadd.f32 %v2679_v44, %v2470_v31  ;;  %v14166_v12 = vld [vmem:[%s17080_s6 + $0x1a0] sm:$0xff]  ;;  %v1718_v38 = vadd.f32 %v1677_v56, %v1468_v50  ;;  %v2177_v40 = vmul.f32 %v17577_v36, %v17736_v25  ;;  %v17739_v25 = vld [vmem:[#allocation64_spill] sm:$0xff] }
 0x45c   : > { %10406 = vset.pattern.permute.xlu1 %v17666_v39  ;;  %v2201_v44 = vadd.f32 %v2160_v4, %v1951_v20  ;;  %v2467_v56 = vadd.f32 %v2426_v16, %v2217_v15  ;;  %v2676_v9 = vmul.f32 %v12007_v60, %v14105_v37  ;;  %v2427_v20 = vmul.f32 %v11991_v8, %v17738_v59 }
 0x45d   : > { %5369 = vperm.xlu1 %10406, %v14141_v48   ;;  %v2970_v53 = vadd.f32 %v2929_v41, %v2720_v11  ;;  %v2219_v58 = vadd.f32 %v2178_v0, %v1969_v23  ;;  %v1968_v24 = vadd.f32 %v1927_v29, %v1718_v38  ;;  %v2660_v11 = vmul.f32 %v12007_v60, %v13960_v33 }
 0x45e   : > { %v3114_v63 = vpop.permute.xlu1 %3113  ;;  %v2451_v49 = vadd.f32 %v2410_v2, %v2201_v44  ;;  %v2678_v23 = vmul.f32 %v12007_v60, %v13981_v35  ;;  %v2910_v33 = vmul.f32 %v12025_v10, %v14069_v27  ;;  %v2677_v62 = vmul.f32 %v12007_v60, %v14054_v52  ;;  %v14201_v52 = vld [vmem:[%s17080_s6 + $0x1b8] sm:$0xff] }
 0x45f   : > { %v3220_v41 = vadd.f32 %v3179_v22, %v2970_v53  ;;  %v2218_v50 = vadd.f32 %v2177_v40, %v1968_v24  ;;  %v2469_v0 = vadd.f32 %v2428_v61, %v2219_v58  ;;  %v2717_v15 = vadd.f32 %v2676_v9, %v2467_v56  ;;  %v17740_v40 = vld [vmem:[#allocation115_spill] sm:$0xff]  ;;  %v17741_v61 = vld [vmem:[#allocation66_spill] sm:$0xff] }
 0x460   : > { %v2701_v29 = vadd.f32 %v2660_v11, %v2451_v49  ;;  %v3160_v53 = vmul.f32 %v12032_v34, %v3042_v7  ;;  %v2928_v35 = vmul.f32 %v12025_v10, %v17739_v25  ;;  %v3176_v27 = vmul.f32 %v12032_v34, %v17740_v40  ;;  %v17742_v9 = vld [vmem:[#allocation90_spill] sm:$0xff]  ;;  %v17743_v49 = vld [vmem:[#allocation113_spill] sm:$0xff] }
 0x461   : > { %10407 = vset.pattern.permute.xlu1 %v17672_v1  ;;  %v2468_v44 = vadd.f32 %v2427_v20, %v2218_v50  ;;  %v2719_v2 = vadd.f32 %v2678_v23, %v2469_v0  ;;  %v2927_v58 = vmul.f32 %v12025_v10, %v17741_v61  ;;  %v3178_v11 = vmul.f32 %v12032_v34, %v3114_v63  ;;  %v14216_v23 = vld [vmem:[%s17080_s6 + $0x188] sm:$0xff] }
 0x462   : > { %5619 = vperm.xlu1 %10407, %v14166_v12   ;;  %v3177_v0 = vmul.f32 %v12032_v34, %v17743_v49 }
 0x463   : > { %v3368_v31 = vpop.permute.xlu1 %3367  ;;  %v2969_v59 = vadd.f32 %v2928_v35, %v2719_v2 }
 0x464   : > { %v3429_v14 = vmul.f32 %v13671_v32, %v3368_v31  ;;  %v2951_v31 = vadd.f32 %v2910_v33, %v2701_v29 }
 0x466   : > { %v3470_v4 = vadd.f32 %v3429_v14, %v3220_v41  ;;  %10408 = vset.pattern.permute.xlu1 %v17533_v46  ;;  %v2718_v14 = vadd.f32 %v2677_v62, %v2468_v44  ;;  %v3201_v24 = vadd.f32 %v3160_v53, %v2951_v31  ;;  %v1133_v44 = vld [vmem:[%s17654_s0 + $0x20] sm:$0xff] }
 0x467   : > { %6119 = vperm.xlu1 %10408, %v13853_v43  }
 0x468   : > { %v3517_v22 = vadd.f32 %v13787_v42, %v3470_v4  ;;  %v2856_v37 = vpop.permute.xlu1 %2855  ;;  %v3426_v4 = vmul.f32 %v13671_v32, %v17742_v9  ;;  %v2968_v33 = vadd.f32 %v2927_v58, %v2718_v14  ;;  %v1139_v9 = vld [vmem:[%s17654_s0 + $0x50] sm:$0xff] }
 0x469   : > { %v2926_v16 = vmul.f32 %v12025_v10, %v2856_v37 }
 0x46a   : > { %vm3558_vm6 = vcmp.gt.f32.partialorder %v3517_v22, 0.0  ;;  %v3599_v38 = vmul.f32 0.01, %v3517_v22  ;;  %v3218_v35 = vadd.f32 %v3177_v0, %v2968_v33  ;;  %v1142_v0 = vld [vmem:[%s17654_s0 + $0x68] sm:$0xff]  ;;  %v1143_v33 = vld [vmem:[%s17654_s0 + $0x70] sm:$0xff] }
 0x46b   : > { %10409 = vset.pattern.permute.xlu1 %v17190_v55  ;;  %v2967_v51 = vadd.f32 %v2926_v16, %v2717_v15 }
 0x46c   : > { %6369 = vperm.xlu1 %10409, %v14201_v52   ;;  %v3640_v7 = vsel %vm3558_vm6, %v3517_v22, %v3599_v38  ;;  %v3219_v22 = vadd.f32 %v3178_v11, %v2969_v59  ;;  %v1129_v38 = vld [vmem:[%s17654_s0] sm:$0xff]  ;;  %v1135_v11 = vld [vmem:[%s17654_s0 + $0x30] sm:$0xff]  ;;  %v1134_v59 = vld [vmem:[%s17654_s0 + $0x28] sm:$0xff] }
 0x46d   : > { %v3292_v41 = vpop.permute.xlu1 %3291  ;;  %9717 = vmatprep.subr.mxu1 %v3640_v7  ;;  %v3217_v20 = vadd.f32 %v3176_v27, %v2967_v51 }
 0x46e   : > { %v3410_v56 = vmul.f32 %v13671_v32, %v3292_v41  ;;  %9718 = vmatpush3.msra.mxu1 %v3640_v7  ;;  %v1132_v7 = vld [vmem:[%s17654_s0 + $0x18] sm:$0xff] }
 0x46f   : > { %v3467_v62 = vadd.f32 %v3426_v4, %v3217_v20  ;;  %v1136_v41 = vld [vmem:[%s17654_s0 + $0x38] sm:$0xff]  ;;  %v1137_v20 = vld [vmem:[%s17654_s0 + $0x40] sm:$0xff] }
 0x470   : > { %v3451_v50 = vadd.f32 %v3410_v56, %v3201_v24  ;;  %10411 = vset.pattern.permute.xlu1 %v17655_v57 }
 0x471   : > { %4878 = vperm.xlu1 %10411, %v14216_v23   ;;  %v3364_v63 = vpop.permute.xlu1 %3363  ;;  %v3514_v51 = vadd.f32 %v13787_v42, %v3467_v62  ;;  %v1146_v62 = vld [vmem:[%s17654_s0 + $0x88] sm:$0xff] }
 0x472   : > { %v3498_v37 = vadd.f32 %v13787_v42, %v3451_v50  ;;  %v3428_v29 = vmul.f32 %v13671_v32, %v3364_v63  ;;  %v1138_v50 = vld [vmem:[%s17654_s0 + $0x48] sm:$0xff]  ;;  %v1140_v63 = vld [vmem:[%s17654_s0 + $0x58] sm:$0xff] }
 0x473   : > { %v3596_v24 = vmul.f32 0.01, %v3514_v51  ;;  %vm3555_vm11 = vcmp.gt.f32.partialorder %v3514_v51, 0.0 }
 0x474   : > { %v3469_v16 = vadd.f32 %v3428_v29, %v3219_v22  ;;  %vm3539_vm7 = vcmp.gt.f32.partialorder %v3498_v37, 0.0  ;;  %v3580_v15 = vmul.f32 0.01, %v3498_v37  ;;  %v1141_v22 = vld [vmem:[%s17654_s0 + $0x60] sm:$0xff] }
 0x475   : > { %10412 = vset.pattern.permute.xlu1 %v17659_v54  ;;  %v3360_v53 = vpop.permute.xlu1 %3359  ;;  %v3637_v4 = vsel %vm3555_vm11, %v3514_v51, %v3596_v24  ;;  %v1150_v51 = vld [vmem:[%s17654_s0 + $0xa8] sm:$0xff]  ;;  %v1157_v24 = vld [vmem:[%s17654_s0 + $0xe0] sm:$0xff] }
 0x476   : > { %v3516_v25 = vadd.f32 %v13787_v42, %v3469_v16  ;;  %v3427_v40 = vmul.f32 %v13671_v32, %v3360_v53  ;;  %5115 = vperm.xlu1 %10412, %v14216_v23   ;;  %v3621_v27 = vsel %vm3539_vm7, %v3498_v37, %v3580_v15  ;;  %v1145_v37 = vld [vmem:[%s17654_s0 + $0x80] sm:$0xff]  ;;  %v1144_v15 = vld [vmem:[%s17654_s0 + $0x78] sm:$0xff] }
 0x477   : > { %3768 = vmatpush2.msra.mxu0 %v3621_v27  ;;  %v1149_v16 = vld [vmem:[%s17654_s0 + $0xa0] sm:$0xff]  ;;  %v1148_v53 = vld [vmem:[%s17654_s0 + $0x98] sm:$0xff]  ;;  %v1151_v27 = vld [vmem:[%s17654_s0 + $0xb0] sm:$0xff] }
 0x478   : > { %v3468_v2 = vadd.f32 %v3427_v40, %v3218_v35  ;;  %vm3557_vm8 = vcmp.gt.f32.partialorder %v3516_v25, 0.0  ;;  %v3598_v31 = vmul.f32 0.01, %v3516_v25  ;;  %3770 = vmatmul.mubr.f32.vlgmr.msra.gmra.mxu0 %v1129_v38  ;;  %v1152_v38 = vld [vmem:[%s17654_s0 + $0xb8] sm:$0xff]  ;;  %v1147_v35 = vld [vmem:[%s17654_s0 + $0x90] sm:$0xff]  ;;  %v14318_v40 = vld [vmem:[%s17080_s6 + $0x180] sm:$0xff] }
 0x479   : > { %3774 = vmatprep.mubr.f32.mxu0 %v1133_v44  ;;  %v1158_v44 = vld [vmem:[%s17654_s0 + $0xe8] sm:$0xff] }
 0x47a   : > { %v3515_v32 = vadd.f32 %v13787_v42, %v3468_v2  ;;  %10413 = vset.pattern.permute.xlu1 %v17672_v1  ;;  %v14237_v61 = vpop.permute.xlu1 %4913  ;;  %v3639_v58 = vsel %vm3557_vm8, %v3516_v25, %v3598_v31  ;;  %v1161_v2 = vld [vmem:[%s17654_s0 + $0x100] sm:$0xff] }
 0x47b   : > { %5615 = vperm.xlu1 %10413, %v14141_v48   ;;  %9719 = vmatprep.subr.mxu1 %v3639_v58 }
 0x47c   : > { %9720 = vmatpush3.msra.mxu1 %v3639_v58  ;;  %vm3556_vm10 = vcmp.gt.f32.partialorder %v3515_v32, 0.0  ;;  %v3597_v14 = vmul.f32 0.01, %v3515_v32  ;;  %3775 = vmatmul.mubr.f32.gmra.mxu0 %v1132_v7  ;;  %v1154_v7 = vld [vmem:[%s17654_s0 + $0xc8] sm:$0xff]  ;;  %v1167_v58 = vld [vmem:[%s17654_s0 + $0x130] sm:$0xff] }
 0x47d   : > { %3779 = vmatprep.mubr.f32.mxu0 %v1136_v41  ;;  %v1153_v41 = vld [vmem:[%s17654_s0 + $0xc0] sm:$0xff] }
 0x47e   : > { %v3638_v42 = vsel %vm3556_vm10, %v3515_v32, %v3597_v14  ;;  %v1164_v32 = vld [vmem:[%s17654_s0 + $0x118] sm:$0xff] }
 0x47f   : > { %10414 = vset.pattern.permute.xlu1 %v17705_v47  ;;  %v14247_v56 = vpop.permute.xlu1 %5143  ;;  %9721 = vmatprep.subr.mxu1 %v3638_v42 }
 0x480   : > { %5865 = vperm.xlu1 %10414, %v14166_v12   ;;  %9722 = vmatpush3.msra.mxu1 %v3638_v42  ;;  %v1170_v42 = vld [vmem:[%s17654_s0 + $0x148] sm:$0xff] }
 0x481   : > { %9723 = vmatprep.subr.mxu1 %v3637_v4  ;;  %3780 = vmatmul.mubr.f32.gmra.mxu0 %v1135_v11  ;;  %v14367_v11 = vld [vmem:[%s17080_s6 + $0x190] sm:$0xff] }
 0x482   : > { %9724 = vmatpush3.msra.mxu1 %v3637_v4  ;;  %3784 = vmatprep.mubr.f32.mxu0 %v1139_v9  ;;  %v1173_v9 = vld [vmem:[%s17654_s0 + $0x160] sm:$0xff]  ;;  %v1156_v4 = vld [vmem:[%s17654_s0 + $0xd8] sm:$0xff] }
 0x483   : > { %v14262_v49 = vpop.permute.xlu1 %5139  ;;  %9726 = vmatmul.mubr.msk.f32.vlgmr.msra.gmra.mxu1 %vm3646_vm14, %v1134_v59  ;;  %v1160_v59 = vld [vmem:[%s17654_s0 + $0xf8] sm:$0xff] }
 0x484   : > { %10415 = vset.pattern.permute.xlu1 %v17190_v55  ;;  %9728 = vmatprep.mubr.msk.f32.mxu1 %vm3646_vm14, %v1137_v20 }
 0x485   : > { %6365 = vperm.xlu1 %10415, %v13853_v43   ;;  %3785 = vmatmul.mubr.f32.gmra.mxu0 %v1138_v50  ;;  %v1176_v50 = vld [vmem:[%s17654_s0 + $0x178] sm:$0xff] }
 0x486   : > { %3789 = vmatprep.mubr.f32.mxu0 %v1142_v0  ;;  %v1159_v0 = vld [vmem:[%s17654_s0 + $0xf0] sm:$0xff] }
 0x487   : > { %9729 = vmatmul.mubr.msk.f32.gmra.mxu1 %vm3646_vm14, %v1140_v63  ;;  %v1163_v63 = vld [vmem:[%s17654_s0 + $0x110] sm:$0xff] }
 0x488   : > { %v14284_v29 = vpop.permute.xlu1 %5389  ;;  %9731 = vmatprep.mubr.msk.f32.mxu1 %vm3646_vm14, %v1143_v33 }
 0x489   : > { %10416 = vset.pattern.permute.xlu1 %v17184_v30  ;;  %3790 = vmatmul.mubr.f32.gmra.mxu0 %v1141_v22  ;;  %v1162_v22 = vld [vmem:[%s17654_s0 + $0x108] sm:$0xff] }
 0x48a   : > { %6615 = vperm.xlu1 %10416, %v14201_v52   ;;  %3794 = vmatprep.mubr.f32.mxu0 %v1145_v37  ;;  %v1155_v52 = vld [vmem:[%s17654_s0 + $0xd0] sm:$0xff]  ;;  %v1166_v37 = vld [vmem:[%s17654_s0 + $0x128] sm:$0xff] }
 0x48b   : > { %9732 = vmatmul.mubr.msk.f32.gmra.mxu1 %vm3646_vm14, %v1146_v62 }
 0x48c   : > { %9734 = vmatprep.mubr.msk.f32.mxu1 %vm3646_vm14, %v1149_v16  ;;  %v1165_v16 = vld [vmem:[%s17654_s0 + $0x120] sm:$0xff] }
 0x48d   : > { %v14306_v25 = vpop.permute.xlu1 %5135  ;;  %3795 = vmatmul.mubr.f32.gmra.mxu0 %v1144_v15  ;;  %v1169_v15 = vld [vmem:[%s17654_s0 + $0x140] sm:$0xff] }
 0x48e   : > { %10417 = vset.pattern.permute.xlu1 %v17655_v57  ;;  %3799 = vmatprep.mubr.f32.mxu0 %v1148_v53  ;;  %v1168_v53 = vld [vmem:[%s17654_s0 + $0x138] sm:$0xff] }
 0x48f   : > { %4873 = vperm.xlu1 %10417, %v14318_v40   ;;  %9735 = vmatmul.mubr.msk.f32.gmra.mxu1 %vm3646_vm14, %v1152_v38 }
 0x490   : > { %9737 = vmatprep.mubr.msk.f32.mxu1 %vm3646_vm14, %v1155_v52  ;;  %v1172_v52 = vld [vmem:[%s17654_s0 + $0x158] sm:$0xff] }
 0x491   : > { %3800 = vmatmul.mubr.f32.gmra.mxu0 %v1147_v35  ;;  %v14427_v35 = vld [vmem:[%s17080_s6 + $0x178] sm:$0xff] }
 0x492   : > { %v14332_v31 = vpop.permute.xlu1 %5635  ;;  %3804 = vmatprep.mubr.f32.mxu0 %v1151_v27  ;;  %v1175_v27 = vld [vmem:[%s17654_s0 + $0x170] sm:$0xff] }
 0x493   : > { %10418 = vset.pattern.permute.xlu1 %v17659_v54  ;;  %9738 = vmatmul.mubr.msk.f32.gmra.mxu1 %vm3646_vm14, %v1158_v44 }
 0x494   : > { %5111 = vperm.xlu1 %10418, %v14318_v40   ;;  %9740 = vmatprep.mubr.msk.f32.mxu1 %vm3646_vm14, %v1161_v2  ;;  %v1174_v2 = vld [vmem:[%s17654_s0 + $0x168] sm:$0xff] }
 0x495   : > { %3805 = vmatmul.mubr.f32.gmra.mxu0 %v1150_v51 }
 0x496   : > { %3809 = vmatprep.mubr.f32.mxu0 %v1154_v7 }
 0x497   : > { %v14353_v14 = vpop.permute.xlu1 %4898  ;;  %9741 = vmatmul.mubr.msk.f32.gmra.mxu1 %vm3646_vm14, %v1164_v32  ;;  %v1071_v32 = vld [vmem:[%s14454_s7 + $0x78] sm:$0xff] }
 0x498   : > { %10419 = vset.pattern.permute.xlu1 %v17672_v1  ;;  %9743 = vmatprep.mubr.msk.f32.mxu1 %vm3646_vm14, %v1167_v58  ;;  %v1070_v58 = vld [vmem:[%s14454_s7 + $0x70] sm:$0xff] }
 0x499   : > { %5611 = vperm.xlu1 %10419, %v14367_v11   ;;  %3810 = vmatmul.mubr.f32.gmra.mxu0 %v1153_v41 }
 0x49a   : > { %3814 = vmatprep.mubr.f32.mxu0 %v1157_v24  ;;  %9752 = vmatprep.subr.mxu1 %v1071_v32  ;;  %v1069_v24 = vld [vmem:[%s14454_s7 + $0x68] sm:$0xff] }
 0x49b   : > { %9744 = vmatmul.mubr.msk.f32.gmra.mxu1 %vm3646_vm14, %v1170_v42  ;;  %v1068_v42 = vld [vmem:[%s14454_s7 + $0x60] sm:$0xff] }
 0x49c   : > { %v14380_v20 = vpop.permute.xlu1 %5381  ;;  %9746 = vmatprep.mubr.msk.f32.mxu1 %vm3646_vm14, %v1173_v9  ;;  %9753 = vmatpush3.msra.mxu1 %v1071_v32 }
 0x49d   : > { %10420 = vset.pattern.permute.xlu1 %v17705_v47  ;;  %3815 = vmatmul.mubr.f32.gmra.mxu0 %v1156_v4  ;;  %v1067_v4 = vld [vmem:[%s14454_s7 + $0x58] sm:$0xff] }
 0x49e   : > { %5861 = vperm.xlu1 %10420, %v14141_v48   ;;  %3819 = vmatprep.mubr.f32.mxu0 %v1160_v59  ;;  %v1066_v59 = vld [vmem:[%s14454_s7 + $0x50] sm:$0xff] }
 0x49f   : > { %9747 = vmatmul.mubr.msk.f32.gmra.mxu1 %vm3646_vm14, %v1176_v50  ;;  %9754 = vmatprep.subr.mxu1 %v1070_v58  ;;  %v1179_v50 = vld [vmem:[%s17654_s0 + $0x190] sm:$0xff] }
 0x4a0   : > { %9755 = vmatpush3.msra.mxu1 %v1070_v58  ;;  %9749 = vmatprep.mubr.msk.f32.mxu1 %vm3646_vm14, %v1179_v50 }
 0x4a1   : > { %v14395_v33 = vpop.permute.xlu1 %5631  ;;  %3820 = vmatmul.mubr.f32.gmra.mxu0 %v1159_v0  ;;  %9756 = vmatprep.subr.mxu1 %v1069_v24  ;;  %v1065_v0 = vld [vmem:[%s14454_s7 + $0x48] sm:$0xff] }
 0x4a2   : > { %10421 = vset.pattern.permute.xlu1 %v17190_v55  ;;  %3824 = vmatprep.mubr.f32.mxu0 %v1163_v63 }
 0x4a3   : > { %6361 = vperm.xlu1 %10421, %v14088_v19   ;;  %9757 = vmatpush3.msra.mxu1 %v1069_v24  ;;  %v14524_v24 = vld [vmem:[%s17080_s6 + $0x168] sm:$0xff] }
 0x4a4   : > { %9758 = vmatprep.subr.mxu1 %v1068_v42  ;;  %17754 = vst [vmem:[#allocation91_spill] sm:$0xff] %v14524_v24 }
 0x4a5   : > { %3825 = vmatmul.mubr.f32.gmra.mxu0 %v1162_v22  ;;  %9759 = vmatpush3.msra.mxu1 %v1068_v42  ;;  %v1182_v22 = vld [vmem:[%s17654_s0 + $0x1a8] sm:$0xff] }
 0x4a6   : > { %v14405_v62 = vpop.permute.xlu1 %4893  ;;  %3829 = vmatprep.mubr.f32.mxu0 %v1166_v37  ;;  %9760 = vmatprep.subr.mxu1 %v1067_v4  ;;  %v14487_v37 = vld [vmem:[%s17080_s6 + $0x170] sm:$0xff] }
 0x4a7   : > { %10422 = vset.pattern.permute.xlu1 %v17184_v30  ;;  %9761 = vmatpush3.msra.mxu1 %v1067_v4 }
 0x4a8   : > { %6611 = vperm.xlu1 %10422, %v13853_v43   ;;  %v1171_v43 = vld [vmem:[%s17654_s0 + $0x150] sm:$0xff]  ;;  %9762 = vmatprep.subr.mxu1 %v1066_v59 }
 0x4a9   : > { %3830 = vmatmul.mubr.f32.gmra.mxu0 %v1165_v16  ;;  %9763 = vmatpush3.msra.mxu1 %v1066_v59  ;;  %v14491_v16 = vld [vmem:[%s14454_s7 + $0x38] sm:$0xff] }
 0x4aa   : > { %3834 = vmatprep.mubr.f32.mxu0 %v1169_v15  ;;  %9764 = vmatprep.subr.mxu1 %v1065_v0 }
 0x4ab   : > { %v14418_v38 = vpop.permute.xlu1 %5127  ;;  %9750 = vmatmul.mubr.msk.f32.gmra.mxu1 %vm3646_vm14, %v1182_v22 }
 0x4ac   : > { %10423 = vset.pattern.permute.xlu1 %v17655_v57  ;;  %9765 = vmatpush3.msra.mxu1 %v1065_v0 }
 0x4ad   : > { %4868 = vperm.xlu1 %10423, %v14427_v35   ;;  %3835 = vmatmul.mubr.f32.gmra.mxu0 %v1168_v53 }
 0x4ae   : > { %3839 = vmatprep.mubr.f32.mxu0 %v1172_v52 }
 0x4b0   : > { %v14436_v44 = vpop.permute.xlu1 %5627 }
 0x4b1   : > { %10424 = vset.pattern.permute.xlu1 %v17659_v54  ;;  %3840 = vmatmul.mubr.f32.gmra.mxu0 %v1171_v43 }
 0x4b2   : > { %5107 = vperm.xlu1 %10424, %v14427_v35   ;;  %3844 = vmatprep.mubr.f32.mxu0 %v1175_v27  ;;  %v14508_v27 = vpop.permute.xlu0 %6401 }
 0x4b3   : > { %17750 = vst [vmem:[#allocation221_spill] sm:$0xff] %v14508_v27 }
 0x4b5   : > { %v14443_v51 = vpop.permute.xlu1 %5877  ;;  %3845 = vmatmul.mubr.f32.gmra.mxu0 %v1174_v2 }
 0x4b6   : > { %10425 = vset.pattern.permute.xlu1 %v17672_v1  ;;  %v14515_v32 = vpop.permute.xlu0 %6453 }
 0x4b7   : > { %5607 = vperm.xlu1 %10425, %v14216_v23   ;;  %17752 = vst [vmem:[#allocation223_spill] sm:$0xff] %v14515_v32 }
 0x4ba   : > { %v14448_v7 = vpop.permute.xlu1 %4888  ;;  %v14527_v42 = vpop.permute.xlu0 %6127 }
 0x4bb   : > { %17744 = vst [vmem:[#allocation194_spill] sm:$0xff] %v14448_v7  ;;  %10426 = vset.pattern.permute.xlu1 %v17705_v47  ;;  %v1079_v7 = vld [vmem:[%s14454_s7 + $0xb8] sm:$0xff] }
 0x4bc   : > { %5857 = vperm.xlu1 %10426, %v14367_v11  }
 0x4bf   : > { %v14459_v41 = vpop.permute.xlu1 %5123 }
 0x4c0   : > { %17746 = vst [vmem:[#allocation198_spill] sm:$0xff] %v14459_v41  ;;  %10427 = vset.pattern.permute.xlu1 %v17190_v55 }
 0x4c1   : > { %6357 = vperm.xlu1 %10427, %v14166_v12  }
 0x4c4   : > { %v14465_v9 = vpop.permute.xlu1 %5623 }
 0x4c5   : > { %10428 = vset.pattern.permute.xlu1 %v17184_v30 }
 0x4c6   : > { %6607 = vperm.xlu1 %10428, %v14088_v19   ;;  %v1064_v19 = vld [vmem:[%s14454_s7 + $0x40] sm:$0xff] }
 0x4c7   : > { %9766 = vmatprep.subr.mxu1 %v1064_v19 }
 0x4c8   : > { %9767 = vmatpush3.msra.mxu1 %v1064_v19 }
 0x4c9   : > { %v14475_v63 = vpop.permute.xlu1 %5873  ;;  %9771 = vmatprep.subr.mxu1 %v14491_v16 }
 0x4ca   : > { %17747 = vst [vmem:[#allocation200_spill] sm:$0xff] %v14475_v63  ;;  %10429 = vset.pattern.permute.xlu1 %v17655_v57 }
 0x4cb   : > { %4863 = vperm.xlu1 %10429, %v14487_v37  }
 0x4ce   : > { %v14493_v15 = vpop.permute.xlu1 %6373 }
 0x4cf   : > { %10430 = vset.pattern.permute.xlu1 %v17659_v54 }
 0x4d0   : > { %5103 = vperm.xlu1 %10430, %v14487_v37  }
 0x4d3   : > { %v14498_v53 = vpop.permute.xlu1 %4883 }
 0x4d4   : > { %10431 = vset.pattern.permute.xlu1 %v17672_v1 }
 0x4d5   : > { %5603 = vperm.xlu1 %10431, %v14318_v40  }
 0x4d8   : > { %v14502_v52 = vpop.permute.xlu1 %5369 }
 0x4d9   : > { %17748 = vst [vmem:[#allocation207_spill] sm:$0xff] %v14502_v52  ;;  %10432 = vset.pattern.permute.xlu1 %v17705_v47 }
 0x4da   : > { %5853 = vperm.xlu1 %10432, %v14216_v23  }
 0x4dd   : > { %v14506_v43 = vpop.permute.xlu1 %5619 }
 0x4de   : > { %17749 = vst [vmem:[#allocation213_spill] sm:$0xff] %v14506_v43  ;;  %10433 = vset.pattern.permute.xlu1 %v17190_v55 }
 0x4df   : > { %6353 = vperm.xlu1 %10433, %v14141_v48  }
 0x4e2   : > { %v14512_v2 = vpop.permute.xlu1 %6119 }
 0x4e3   : > { %17751 = vst [vmem:[#allocation239_spill] sm:$0xff] %v14512_v2  ;;  %10434 = vset.pattern.permute.xlu1 %v17184_v30 }
 0x4e4   : > { %6603 = vperm.xlu1 %10434, %v14166_v12   ;;  %v14533_v12 = vpop.permute.xlu0 %6123 }
 0x4e7   : > { %v14518_v58 = vpop.permute.xlu1 %6369 }
 0x4e8   : > { %17753 = vst [vmem:[#allocation30_spill] sm:$0xff] %v14518_v58  ;;  %10435 = vset.pattern.permute.xlu1 %v17655_v57  ;;  %v14539_v50 = vpop.permute.xlu0 %6115 }
 0x4e9   : > { %4858 = vperm.xlu1 %10435, %v14524_v24  }
 0x4ec   : > { %v14529_v4 = vpop.permute.xlu1 %4878  ;;  %v14547_v19 = vpop.permute.xlu0 %6111 }
 0x4ed   : > { %17755 = vst [vmem:[#allocation18_spill] sm:$0xff] %v14529_v4  ;;  %10436 = vset.pattern.permute.xlu1 %v17659_v54 }
 0x4ee   : > { %5099 = vperm.xlu1 %10436, %v14524_v24  }
 0x4f0   : > { %v14554_v18 = vpop.permute.xlu0 %6107 }
 0x4f1   : > { %v14535_v59 = vpop.permute.xlu1 %5115 }
 0x4f2   : > { %17756 = vst [vmem:[#allocation20_spill] sm:$0xff] %v14535_v59  ;;  %10437 = vset.pattern.permute.xlu1 %v17672_v1 }
 0x4f3   : > { %5599 = vperm.xlu1 %10437, %v14427_v35  }
 0x4f4   : > { %v14566_v21 = vpop.permute.xlu0 %6103 }
 0x4f5   : > { %17762 = vst [vmem:[#allocation187_spill] sm:$0xff] %v14566_v21 }
 0x4f6   : > { %v14541_v0 = vpop.permute.xlu1 %5615 }
 0x4f7   : > { %17757 = vst [vmem:[#allocation226_spill] sm:$0xff] %v14541_v0  ;;  %10438 = vset.pattern.permute.xlu1 %v17705_v47 }
 0x4f8   : > { %5849 = vperm.xlu1 %10438, %v14318_v40  }
 0x4fb   : > { %v14545_v22 = vpop.permute.xlu1 %5865 }
 0x4fc   : > { %17758 = vst [vmem:[#allocation71_spill] sm:$0xff] %v14545_v22  ;;  %10439 = vset.pattern.permute.xlu1 %v17190_v55 }
 0x4fd   : > { %6349 = vperm.xlu1 %10439, %v14367_v11  }
 0x500   : > { %v14551_v32 = vpop.permute.xlu1 %6365 }
 0x501   : > { %17759 = vst [vmem:[#allocation98_spill] sm:$0xff] %v14551_v32  ;;  %10440 = vset.pattern.permute.xlu1 %v17184_v30 }
 0x502   : > { %6599 = vperm.xlu1 %10440, %v14141_v48   ;;  %v14572_v48 = vpop.permute.xlu0 %6099 }
 0x503   : > { %17764 = vst [vmem:[#allocation92_spill] sm:$0xff] %v14572_v48 }
 0x505   : > { %v14557_v27 = vpop.permute.xlu1 %6615 }
 0x506   : > { %17760 = vst [vmem:[#allocation151_spill] sm:$0xff] %v14557_v27  ;;  %10441 = vset.pattern.permute.xlu1 %v17655_v57  ;;  %v14578_v46 = vpop.permute.xlu0 %6095 }
 0x507   : > { %4853 = vperm.xlu1 %10441, %v14563_v45   ;;  %17766 = vst [vmem:[#allocation215_spill] sm:$0xff] %v14578_v46 }
 0x50a   : > { %v14568_v28 = vpop.permute.xlu1 %4873  ;;  %v14586_v13 = vpop.permute.xlu0 %6091 }
 0x50b   : > { %17763 = vst [vmem:[#allocation251_spill] sm:$0xff] %v14568_v28  ;;  %10442 = vset.pattern.permute.xlu1 %v17659_v54  ;;  %17769 = vst [vmem:[#allocation48_spill] sm:$0xff] %v14586_v13  ;;  %v14602_v13 = vld [vmem:[%s17080_s6 + $0x158] sm:$0xff] }
 0x50c   : > { %5095 = vperm.xlu1 %10442, %v14563_v45  }
 0x50e   : > { %v14593_v48 = vpop.permute.xlu0 %6087 }
 0x50f   : > { %v14574_v3 = vpop.permute.xlu1 %5111  ;;  %17771 = vst [vmem:[#allocation26_spill] sm:$0xff] %v14593_v48 }
 0x510   : > { %17765 = vst [vmem:[#allocation210_spill] sm:$0xff] %v14574_v3  ;;  %10443 = vset.pattern.permute.xlu1 %v17672_v1 }
 0x511   : > { %5595 = vperm.xlu1 %10443, %v14487_v37  }
 0x512   : > { %v14605_v4 = vpop.permute.xlu0 %6083 }
 0x513   : > { %17773 = vst [vmem:[#allocation15_spill] sm:$0xff] %v14605_v4 }
 0x514   : > { %v14580_v39 = vpop.permute.xlu1 %5611 }
 0x515   : > { %17767 = vst [vmem:[#allocation65_spill] sm:$0xff] %v14580_v39  ;;  %10444 = vset.pattern.permute.xlu1 %v17705_v47 }
 0x516   : > { %5845 = vperm.xlu1 %10444, %v14427_v35  }
 0x519   : > { %v14584_v28 = vpop.permute.xlu1 %5861 }
 0x51a   : > { %17768 = vst [vmem:[#allocation217_spill] sm:$0xff] %v14584_v28  ;;  %10445 = vset.pattern.permute.xlu1 %v17190_v55 }
 0x51b   : > { %6345 = vperm.xlu1 %10445, %v14216_v23  }
 0x51e   : > { %v14590_v3 = vpop.permute.xlu1 %6361 }
 0x51f   : > { %17770 = vst [vmem:[#allocation51_spill] sm:$0xff] %v14590_v3  ;;  %10446 = vset.pattern.permute.xlu1 %v17184_v30 }
 0x520   : > { %6595 = vperm.xlu1 %10446, %v14367_v11   ;;  %v14611_v11 = vpop.permute.xlu0 %6079 }
 0x521   : > { %17775 = vst [vmem:[#allocation103_spill] sm:$0xff] %v14611_v11 }
 0x523   : > { %v14596_v46 = vpop.permute.xlu1 %6611 }
 0x524   : > { %17772 = vst [vmem:[#allocation252_spill] sm:$0xff] %v14596_v46  ;;  %10447 = vset.pattern.permute.xlu1 %v17655_v57  ;;  %v14617_v3 = vpop.permute.xlu0 %6075 }
 0x525   : > { %4848 = vperm.xlu1 %10447, %v14602_v13   ;;  %17777 = vst [vmem:[#allocation224_spill] sm:$0xff] %v14617_v3 }
 0x528   : > { %v14607_v59 = vpop.permute.xlu1 %4868 }
 0x529   : > { %17774 = vst [vmem:[#allocation44_spill] sm:$0xff] %v14607_v59  ;;  %10448 = vset.pattern.permute.xlu1 %v17659_v54  ;;  %v14625_v59 = vpop.permute.xlu0 %6071 }
 0x52a   : > { %5091 = vperm.xlu1 %10448, %v14602_v13   ;;  %17780 = vst [vmem:[#allocation89_spill] sm:$0xff] %v14625_v59 }
 0x52d   : > { %v14613_v48 = vpop.permute.xlu1 %5107  ;;  %v14634_v3 = vpop.permute.xlu0 %6067 }
 0x52e   : > { %17776 = vst [vmem:[#allocation219_spill] sm:$0xff] %v14613_v48  ;;  %10449 = vset.pattern.permute.xlu1 %v17672_v1  ;;  %17782 = vst [vmem:[#allocation94_spill] sm:$0xff] %v14634_v3 }
 0x52f   : > { %5591 = vperm.xlu1 %10449, %v14524_v24  }
 0x531   : > { %v14646_v32 = vpop.permute.xlu0 %6191 }
 0x532   : > { %v14619_v46 = vpop.permute.xlu1 %5607  ;;  %17784 = vst [vmem:[#allocation75_spill] sm:$0xff] %v14646_v32 }
 0x533   : > { %17778 = vst [vmem:[#allocation49_spill] sm:$0xff] %v14619_v46  ;;  %10450 = vset.pattern.permute.xlu1 %v17705_v47 }
 0x534   : > { %5841 = vperm.xlu1 %10450, %v14487_v37  }
 0x535   : > { %v14652_v52 = vpop.permute.xlu0 %6187 }
 0x536   : > { %17786 = vst [vmem:[#allocation76_spill] sm:$0xff] %v14652_v52 }
 0x537   : > { %v14623_v4 = vpop.permute.xlu1 %5857 }
 0x538   : > { %17779 = vst [vmem:[#allocation220_spill] sm:$0xff] %v14623_v4  ;;  %10451 = vset.pattern.permute.xlu1 %v17190_v55  ;;  %v3771_v11 = vpop.f32.mrf.mxu0 }
 0x539   : > { %6341 = vperm.xlu1 %10451, %v14318_v40  }
 0x53a   : > { %v3773_v48 = vpop.f32.mrf.mxu0 }
 0x53b   : > { %v14643_v48 = vld [vmem:[%s17080_s6 + $0x150] sm:$0xff] }
 0x53c   : > { %v14629_v28 = vpop.permute.xlu1 %6357  ;;  %v14631_v39 = vpop.f32.mrf.mxu0 }
 0x53d   : > { %17781 = vst [vmem:[#allocation70_spill] sm:$0xff] %v14629_v28  ;;  %10452 = vset.pattern.permute.xlu1 %v17184_v30 }
 0x53e   : > { %6591 = vperm.xlu1 %10452, %v14216_v23   ;;  %v3778_v46 = vpop.f32.mrf.mxu0 }
 0x541   : > { %v14637_v4 = vpop.permute.xlu1 %6607  ;;  %v3781_v59 = vpop.f32.mrf.mxu0 }
 0x542   : > { %17783 = vst [vmem:[#allocation222_spill] sm:$0xff] %v14637_v4  ;;  %10453 = vset.pattern.permute.xlu1 %v17655_v57 }
 0x543   : > { %4843 = vperm.xlu1 %10453, %v14643_v48   ;;  %v9727_v28 = vpop.f32.mrf.mxu1  ;;  %v3783_v27 = vpop.f32.mrf.mxu0 }
 0x545   : > { %v3926_v3 = vpop.f32.mrf.mxu1  ;;  %v3786_v22 = vpop.f32.mrf.mxu0 }
 0x546   : > { %v14648_v46 = vpop.permute.xlu1 %4863  ;;  %v3927_v43 = vadd.f32 %v3926_v3, %v3771_v11  ;;  %v1061_v3 = vld [vmem:[%s14454_s7 + $0x28] sm:$0xff]  ;;  %v1060_v11 = vld [vmem:[%s14454_s7 + $0x20] sm:$0xff] }
 0x547   : > { %17785 = vst [vmem:[#allocation230_spill] sm:$0xff] %v14648_v46  ;;  %10454 = vset.pattern.permute.xlu1 %v17659_v54  ;;  %v9730_v23 = vpop.f32.mrf.mxu1  ;;  %v3788_v4 = vpop.f32.mrf.mxu0  ;;  %v1062_v46 = vld [vmem:[%s14454_s7 + $0x30] sm:$0xff] }
 0x548   : > { %5087 = vperm.xlu1 %10454, %v14643_v48   ;;  %v3942_v58 = vadd.f32 %v9730_v23, %v3786_v22 }
 0x549   : > { %v3936_v0 = vpop.f32.mrf.mxu1  ;;  %v3791_v2 = vpop.f32.mrf.mxu0 }
 0x54a   : > { %v3937_v27 = vadd.f32 %v3936_v0, %v3781_v59 }
 0x54b   : > { %v14654_v32 = vpop.permute.xlu1 %5103  ;;  %v3793_v4 = vpop.f32.mrf.mxu0 }
 0x54c   : > { %17787 = vst [vmem:[#allocation256_spill] sm:$0xff] %v14654_v32  ;;  %10455 = vset.pattern.permute.xlu1 %v17672_v1  ;;  %9768 = vmatprep.mubr.msk.f32.mxu1 %vm4015_vm12, %v3937_v27  ;;  %v14661_v22 = vpop.f32.mrf.mxu1  ;;  %v14671_v27 = vpop.permute.xlu0 %6183  ;;  %v1058_v4 = vld [vmem:[%s14454_s7 + $0x10] sm:$0xff] }
 0x54d   : > { %5587 = vperm.xlu1 %10455, %v14563_v45   ;;  %9769 = vmatmul.mubr.msk.f32.vlgmr.msra.gmra.mxu1 %vm4015_vm12, %v3942_v58  ;;  %v14666_v59 = vpop.f32.mrf.mxu0  ;;  %17789 = vst [vmem:[#allocation240_spill] sm:$0xff] %v14671_v27 }
 0x54e   : > { %9772 = vmatpush3.msra.mxu1 %v14491_v16  ;;  %9787 = vmatprep.mubr.msk.f32.mxu1 %vm4015_vm12, %v3927_v43  ;;  %v3946_v58 = vpop.f32.mrf.mxu1  ;;  %v1059_v16 = vld [vmem:[%s14454_s7 + $0x18] sm:$0xff] }
 0x54f   : > { %9773 = vmatprep.subr.mxu1 %v1062_v46  ;;  %v3798_v23 = vpop.f32.mrf.mxu0 }
 0x550   : > { %9774 = vmatpush3.msra.mxu1 %v1062_v46  ;;  %v14668_v0 = vpop.permute.xlu1 %5603  ;;  %v14678_v46 = vpop.f32.mrf.mxu1 }
 0x551   : > { %17788 = vst [vmem:[#allocation228_spill] sm:$0xff] %v14668_v0  ;;  %9775 = vmatprep.subr.mxu1 %v1061_v3  ;;  %10456 = vset.pattern.permute.xlu1 %v17705_v47  ;;  %v14676_v43 = vpop.f32.mrf.mxu0  ;;  %v14687_v32 = vpop.permute.xlu0 %6179 }
 0x552   : > { %9776 = vmatpush3.msra.mxu1 %v1061_v3  ;;  %5837 = vperm.xlu1 %10456, %v14524_v24   ;;  %v1057_v3 = vld [vmem:[%s14454_s7 + $0x8] sm:$0xff]  ;;  %17791 = vst [vmem:[#allocation236_spill] sm:$0xff] %v14687_v32  ;;  %v14690_v0 = vpop.f32.mrf.mxu1  ;;  %v3947_v32 = vadd.f32 %v3946_v58, %v3791_v2  ;;  %v1072_v24 = vld [vmem:[%s14454_s7 + $0x80] sm:$0xff] }
 0x553   : > { %9777 = vmatprep.subr.mxu1 %v1060_v11  ;;  %v3803_v23 = vpop.f32.mrf.mxu0  ;;  %v1077_v2 = vld [vmem:[%s14454_s7 + $0xa8] sm:$0xff] }
 0x554   : > { %9778 = vmatpush3.msra.mxu1 %v1060_v11  ;;  %v1056_v11 = vld [vmem:[%s14454_s7] sm:$0xff] }
 0x555   : > { %9779 = vmatprep.subr.mxu1 %v1059_v16  ;;  %v14681_v27 = vpop.permute.xlu1 %5853  ;;  %v14685_v52 = vpop.f32.mrf.mxu0 }
 0x556   : > { %17790 = vst [vmem:[#allocation235_spill] sm:$0xff] %v14681_v27  ;;  %9780 = vmatpush3.msra.mxu1 %v1059_v16  ;;  %10457 = vset.pattern.permute.xlu1 %v17190_v55  ;;  %v3932_v27 = vadd.f32 %v9727_v28, %v14631_v39  ;;  %v14694_v16 = vpop.f32.mrf.mxu1  ;;  %v14704_v28 = vpop.permute.xlu0 %6175 }
 0x557   : > { %9781 = vmatprep.subr.mxu1 %v1058_v4  ;;  %6337 = vperm.xlu1 %10457, %v14427_v35   ;;  %v3808_v23 = vpop.f32.mrf.mxu0  ;;  %17793 = vst [vmem:[#allocation237_spill] sm:$0xff] %v14704_v28 }
 0x558   : > { %9782 = vmatpush3.msra.mxu1 %v1058_v4  ;;  %v1078_v4 = vld [vmem:[%s14454_s7 + $0xb0] sm:$0xff]  ;;  %v1076_v23 = vld [vmem:[%s14454_s7 + $0xa0] sm:$0xff] }
 0x559   : > { %9783 = vmatprep.subr.mxu1 %v1057_v3  ;;  %v14699_v21 = vpop.f32.mrf.mxu0 }
 0x55a   : > { %9784 = vmatpush3.msra.mxu1 %v1057_v3  ;;  %v14696_v63 = vpop.permute.xlu1 %6353  ;;  %v14707_v3 = vpop.f32.mrf.mxu1 }
 0x55b   : > { %17792 = vst [vmem:[#allocation238_spill] sm:$0xff] %v14696_v63  ;;  %9785 = vmatprep.subr.mxu1 %v1056_v11  ;;  %10458 = vset.pattern.permute.xlu1 %v17184_v30  ;;  %v3813_v39 = vpop.f32.mrf.mxu0  ;;  %v14728_v28 = vpop.permute.xlu0 %6163 }
 0x55c   : > { %9786 = vmatpush3.msra.mxu1 %v1056_v11  ;;  %6587 = vperm.xlu1 %10458, %v14318_v40   ;;  %v14715_v40 = vpop.f32.mrf.mxu1  ;;  %17797 = vst [vmem:[#allocation245_spill] sm:$0xff] %v14728_v28 }
 0x55d   : > { %9790 = vmatprep.subr.mxu1 %v1079_v7  ;;  %9788 = vmatmul.mubr.msk.f32.vlgmr.msra.gmra.mxu1 %vm4015_vm12, %v3932_v27  ;;  %v14711_v58 = vpop.f32.mrf.mxu0  ;;  %17795 = vst [vmem:[#allocation131_spill] sm:$0xff] %v14715_v40 }
 0x55e   : > { %9791 = vmatpush3.msra.mxu1 %v1079_v7  ;;  %9806 = vmatprep.mubr.msk.f32.mxu1 %vm4015_vm12, %v3947_v32  ;;  %v14722_v7 = vld [vmem:[%s17080_s6 + $0x148] sm:$0xff]  ;;  %v1075_v32 = vld [vmem:[%s14454_s7 + $0x98] sm:$0xff] }
 0x55f   : > { %9792 = vmatprep.subr.mxu1 %v1078_v4  ;;  %v14713_v11 = vpop.permute.xlu1 %6603  ;;  %v3818_v27 = vpop.f32.mrf.mxu0  ;;  %17796 = vst [vmem:[#allocation233_spill] sm:$0xff] %v14722_v7 }
 0x560   : > { %17794 = vst [vmem:[#allocation63_spill] sm:$0xff] %v14713_v11  ;;  %9793 = vmatpush3.msra.mxu1 %v1078_v4  ;;  %10459 = vset.pattern.permute.xlu1 %v17655_v57  ;;  %v14730_v4 = vpop.f32.mrf.mxu1  ;;  %v1074_v11 = vld [vmem:[%s14454_s7 + $0x90] sm:$0xff]  ;;  %v14741_v41 = vpop.permute.xlu0 %6219 }
 0x561   : > { %9794 = vmatprep.subr.mxu1 %v1077_v2  ;;  %4838 = vperm.xlu1 %10459, %v14722_v7   ;;  %v14726_v39 = vpop.f32.mrf.mxu0  ;;  %17800 = vst [vmem:[#allocation249_spill] sm:$0xff] %v14741_v41  ;;  %v1086_v41 = vld [vmem:[%s14454_s7 + $0xf0] sm:$0xff] }
 0x562   : > { %9795 = vmatpush3.msra.mxu1 %v1077_v2  ;;  %v1073_v2 = vld [vmem:[%s14454_s7 + $0x88] sm:$0xff]  ;;  %v9745_v28 = vpop.f32.mrf.mxu1 }
 0x563   : > { %9796 = vmatprep.subr.mxu1 %v1076_v23  ;;  %v3823_v63 = vpop.f32.mrf.mxu0 }
 0x564   : > { %9797 = vmatpush3.msra.mxu1 %v1076_v23  ;;  %v14732_v27 = vpop.permute.xlu1 %4858 }
 0x565   : > { %17798 = vst [vmem:[#allocation247_spill] sm:$0xff] %v14732_v27  ;;  %9798 = vmatprep.subr.mxu1 %v1075_v32  ;;  %10460 = vset.pattern.permute.xlu1 %v17659_v54  ;;  %v14738_v40 = vpop.f32.mrf.mxu0  ;;  %v3952_v27 = vadd.f32 %v14661_v22, %v14666_v59  ;;  %v1085_v59 = vld [vmem:[%s14454_s7 + $0xe8] sm:$0xff] }
 0x566   : > { %9799 = vmatpush3.msra.mxu1 %v1075_v32  ;;  %5083 = vperm.xlu1 %10460, %v14722_v7   ;;  %17799 = vst [vmem:[#allocation61_spill] sm:$0xff] %v14738_v40  ;;  %v1087_v32 = vld [vmem:[%s14454_s7 + $0xf8] sm:$0xff]  ;;  %v3957_v7 = vadd.f32 %v14690_v0, %v14676_v43  ;;  %v3986_v40 = vpop.f32.mrf.mxu1  ;;  %v14760_v43 = vpop.permute.xlu0 %6215 }
 0x567   : > { %9800 = vmatprep.subr.mxu1 %v1074_v11  ;;  %v3828_v23 = vpop.f32.mrf.mxu0  ;;  %17804 = vst [vmem:[#allocation167_spill] sm:$0xff] %v14760_v43 }
 0x568   : > { %9801 = vmatpush3.msra.mxu1 %v1074_v11 }
 0x569   : > { %9802 = vmatprep.subr.mxu1 %v1073_v2  ;;  %v14743_v63 = vpop.permute.xlu1 %5099  ;;  %v3831_v11 = vpop.f32.mrf.mxu0 }
 0x56a   : > { %17801 = vst [vmem:[#allocation14_spill] sm:$0xff] %v14743_v63  ;;  %9803 = vmatpush3.msra.mxu1 %v1073_v2  ;;  %10461 = vset.pattern.permute.xlu1 %v17672_v1  ;;  %v14752_v23 = vadd.f32 %v3986_v40, %v3831_v11  ;;  %v1084_v40 = vld [vmem:[%s14454_s7 + $0xe0] sm:$0xff]  ;;  %v1083_v2 = vld [vmem:[%s14454_s7 + $0xd8] sm:$0xff]  ;;  %v1081_v11 = vld [vmem:[%s14454_s7 + $0xc8] sm:$0xff] }
 0x56b   : > { %9804 = vmatprep.subr.mxu1 %v1072_v24  ;;  %5583 = vperm.xlu1 %10461, %v14602_v13   ;;  %v3833_v63 = vpop.f32.mrf.mxu0 }
 0x56c   : > { %17802 = vst [vmem:[#allocation35_spill] sm:$0xff] %v14752_v23  ;;  %9805 = vmatpush3.msra.mxu1 %v1072_v24 }
 0x56d   : > { %9809 = vmatprep.subr.mxu1 %v1087_v32  ;;  %9807 = vmatmul.mubr.msk.f32.vlgmr.msra.gmra.mxu1 %vm4015_vm12, %v3952_v27  ;;  %v3836_v0 = vpop.f32.mrf.mxu0 }
 0x56e   : > { %9810 = vmatpush3.msra.mxu1 %v1087_v32  ;;  %v14756_v22 = vpop.permute.xlu1 %5599  ;;  %9825 = vmatprep.mubr.msk.f32.mxu1 %vm4015_vm12, %v3957_v7  ;;  %v14763_v24 = vadd.f32 %v9745_v28, %v3836_v0  ;;  %v1082_v28 = vld [vmem:[%s14454_s7 + $0xd0] sm:$0xff] }
 0x56f   : > { %17803 = vst [vmem:[#allocation38_spill] sm:$0xff] %v14756_v22  ;;  %9811 = vmatprep.subr.mxu1 %v1086_v41  ;;  %10462 = vset.pattern.permute.xlu1 %v17705_v47  ;;  %v3838_v27 = vpop.f32.mrf.mxu0 }
 0x570   : > { %17805 = vst [vmem:[#allocation72_spill] sm:$0xff] %v14763_v24  ;;  %9812 = vmatpush3.msra.mxu1 %v1086_v41  ;;  %5833 = vperm.xlu1 %10462, %v14563_v45   ;;  %v14774_v41 = vpop.permute.xlu0 %6211  ;;  %v3962_v27 = vadd.f32 %v14678_v46, %v14685_v52  ;;  %v14801_v52 = vld [vmem:[%s17080_s6 + $0x240] sm:$0xff] }
 0x571   : > { %9813 = vmatprep.subr.mxu1 %v1085_v59  ;;  %v14768_v63 = vpop.f32.mrf.mxu0  ;;  %17807 = vst [vmem:[#allocation96_spill] sm:$0xff] %v14774_v41  ;;  %v3967_v41 = vadd.f32 %v14707_v3, %v14699_v21  ;;  %17809 = vst [vmem:[#allocation32_spill] sm:$0xff] %v14801_v52  ;;  %v1092_v21 = vld [vmem:[%s14454_s7 + $0x120] sm:$0xff]  ;;  %v5261_v3 = vmul.f32 %v14247_v56, %v11947_v6 }
 0x572   : > { %9814 = vmatpush3.msra.mxu1 %v1085_v59 }
 0x573   : > { %9815 = vmatprep.subr.mxu1 %v1084_v40  ;;  %v14770_v7 = vpop.permute.xlu1 %5849  ;;  %v3843_v32 = vpop.f32.mrf.mxu0 }
 0x574   : > { %17806 = vst [vmem:[#allocation74_spill] sm:$0xff] %v14770_v7  ;;  %9816 = vmatpush3.msra.mxu1 %v1084_v40  ;;  %10463 = vset.pattern.permute.xlu1 %v17190_v55  ;;  %v1080_v40 = vld [vmem:[%s14454_s7 + $0xc0] sm:$0xff]  ;;  %v14788_v43 = vpop.permute.xlu0 %6207 }
 0x575   : > { %9817 = vmatprep.subr.mxu1 %v1083_v2  ;;  %6333 = vperm.xlu1 %10463, %v14487_v37   ;;  %v14778_v59 = vpop.f32.mrf.mxu0  ;;  %17808 = vst [vmem:[#allocation243_spill] sm:$0xff] %v14788_v43 }
 0x576   : > { %9818 = vmatpush3.msra.mxu1 %v1083_v2  ;;  %v1095_v2 = vld [vmem:[%s14454_s7 + $0x138] sm:$0xff] }
 0x577   : > { %9819 = vmatprep.subr.mxu1 %v1082_v28  ;;  %v3848_v32 = vpop.f32.mrf.mxu0 }
 0x578   : > { %9820 = vmatpush3.msra.mxu1 %v1082_v28  ;;  %v14780_v0 = vpop.permute.xlu1 %6349  ;;  %v1094_v28 = vld [vmem:[%s14454_s7 + $0x130] sm:$0xff]  ;;  %v14806_v46 = vpop.permute.xlu0 %6131 }
 0x579   : > { %9821 = vmatprep.subr.mxu1 %v1081_v11  ;;  %10464 = vset.pattern.permute.xlu1 %v17184_v30  ;;  %17810 = vst [vmem:[#allocation254_spill] sm:$0xff] %v14806_v46  ;;  %v1090_v32 = vld [vmem:[%s14454_s7 + $0x110] sm:$0xff] }
 0x57a   : > { %9822 = vmatpush3.msra.mxu1 %v1081_v11  ;;  %6583 = vperm.xlu1 %10464, %v14427_v35   ;;  %v1093_v35 = vld [vmem:[%s14454_s7 + $0x128] sm:$0xff] }
 0x57b   : > { %9823 = vmatprep.subr.mxu1 %v1080_v40 }
 0x57c   : > { %9824 = vmatpush3.msra.mxu1 %v1080_v40  ;;  %v1091_v40 = vld [vmem:[%s14454_s7 + $0x118] sm:$0xff] }
 0x57d   : > { %9828 = vmatprep.subr.mxu1 %v1095_v2  ;;  %v14793_v24 = vpop.permute.xlu1 %6599  ;;  %9826 = vmatmul.mubr.msk.f32.vlgmr.msra.gmra.mxu1 %vm4015_vm12, %v3962_v27  ;;  %v5056_v27 = vmul.f32 %v14237_v61, %v11961_v5  ;;  %v17813_v61 = vld [vmem:[#allocation250_spill] sm:$0xff] }
 0x57e   : > { %9829 = vmatpush3.msra.mxu1 %v1095_v2  ;;  %10465 = vset.pattern.permute.xlu1 %v17655_v57  ;;  %v5753_v2 = vmul.f32 %v14332_v31, %v17577_v36  ;;  %v5055_v46 = vmul.f32 %v17813_v61, %v11961_v5  ;;  %v1088_v61 = vld [vmem:[%s14454_s7 + $0x100] sm:$0xff] }
 0x57f   : > { %9830 = vmatprep.subr.mxu1 %v1094_v28  ;;  %4993 = vperm.xlu1 %10465, %v14801_v52   ;;  %v5302_v56 = vadd.f32 %v5261_v3, %v5056_v27  ;;  %v17816_v3 = vld [vmem:[#allocation204_spill] sm:$0xff] }
 0x580   : > { %9831 = vmatpush3.msra.mxu1 %v1094_v28  ;;  %9844 = vmatprep.mubr.msk.f32.mxu1 %vm4015_vm12, %v3967_v41  ;;  %v5507_v41 = vmul.f32 %v14284_v29, %v11965_v17  ;;  %v1089_v28 = vld [vmem:[%s14454_s7 + $0x108] sm:$0xff]  ;;  %v5260_v29 = vmul.f32 %v14262_v49, %v11947_v6  ;;  %v5258_v31 = vmul.f32 %v17816_v3, %v11947_v6  ;;  %v17818_v49 = vld [vmem:[#allocation253_spill] sm:$0xff]  ;;  %v17820_v3 = vld [vmem:[#allocation104_spill] sm:$0xff] }
 0x581   : > { %9832 = vmatprep.subr.mxu1 %v1093_v35 }
 0x582   : > { %9833 = vmatpush3.msra.mxu1 %v1093_v35  ;;  %v14810_v11 = vpop.permute.xlu1 %4853  ;;  %v17812_v35 = vld [vmem:[#allocation116_spill] sm:$0xff]  ;;  %v5301_v45 = vadd.f32 %v5260_v29, %v5055_v46  ;;  %v5752_v29 = vmul.f32 %v14395_v33, %v17577_v36  ;;  %v5998_v33 = vmul.f32 %v14443_v51, %v11991_v8 }
 0x583   : > { %17811 = vst [vmem:[#allocation73_spill] sm:$0xff] %v14810_v11  ;;  %9834 = vmatprep.subr.mxu1 %v1092_v21  ;;  %10466 = vset.pattern.permute.xlu1 %v17659_v54  ;;  %v14825_v43 = vmul.f32 %v17812_v35, %v12032_v34  ;;  %v5548_v35 = vadd.f32 %v5507_v41, %v5302_v56 }
 0x584   : > { %9835 = vmatpush3.msra.mxu1 %v1092_v21  ;;  %5207 = vperm.xlu1 %10466, %v14801_v52   ;;  %v14831_v21 = vpop.permute.xlu0 %6199  ;;  %v5054_v11 = vmul.f32 %v17818_v49, %v11961_v5  ;;  %v5999_v41 = vmul.f32 %v13847_v26, %v11991_v8  ;;  %v3972_v56 = vadd.f32 %v14694_v16, %v14711_v58  ;;  %v1103_v49 = vld [vmem:[%s14454_s7 + $0x178] sm:$0xff] }
 0x585   : > { %9836 = vmatprep.subr.mxu1 %v1091_v40  ;;  %17814 = vst [vmem:[#allocation255_spill] sm:$0xff] %v14831_v21  ;;  %v17819_v21 = vld [vmem:[#allocation111_spill] sm:$0xff]  ;;  %v3977_v26 = vadd.f32 %v14730_v4, %v14726_v39  ;;  %v6245_v16 = vmul.f32 %v14527_v42, %v12007_v60  ;;  %v14875_v58 = vmul.f32 %v14533_v12, %v12007_v60  ;;  %v1102_v12 = vld [vmem:[%s14454_s7 + $0x170] sm:$0xff] }
 0x586   : > { %9837 = vmatpush3.msra.mxu1 %v1091_v40  ;;  %v17817_v40 = vld [vmem:[#allocation206_spill] sm:$0xff]  ;;  %v5506_v22 = vmul.f32 %v17819_v21, %v11965_v17  ;;  %v14883_v39 = vmul.f32 %v14539_v50, %v12007_v60 }
 0x587   : > { %9838 = vmatprep.subr.mxu1 %v1090_v32  ;;  %v14833_v23 = vpop.permute.xlu1 %5095  ;;  %v14839_v27 = vmul.f32 %v17817_v40, %v11947_v6  ;;  %v5504_v40 = vmul.f32 %v17820_v3, %v11965_v17  ;;  %v17821_v21 = vld [vmem:[#allocation174_spill] sm:$0xff]  ;;  %v5257_v3 = vmul.f32 %v14418_v38, %v11947_v6 }
 0x588   : > { %17815 = vst [vmem:[#allocation22_spill] sm:$0xff] %v14833_v23  ;;  %9839 = vmatpush3.msra.mxu1 %v1090_v32  ;;  %10467 = vset.pattern.permute.xlu1 %v17672_v1  ;;  %v5053_v23 = vmul.f32 %v14353_v14, %v11961_v5  ;;  %v5794_v32 = vadd.f32 %v5753_v2, %v5548_v35  ;;  %v17822_v14 = vld [vmem:[#allocation145_spill] sm:$0xff]  ;;  %v6866_v42 = vpop.permute.xlu0 %6865 }
 0x589   : > { %9840 = vmatprep.subr.mxu1 %v1089_v28  ;;  %5579 = vperm.xlu1 %10467, %v14643_v48   ;;  %v14859_v7 = vmul.f32 %v17821_v21, %v11965_v17  ;;  %v14863_v52 = vmul.f32 %v17822_v14, %v11965_v17  ;;  %v17823_v2 = vld [vmem:[#allocation193_spill] sm:$0xff]  ;;  %v5259_v35 = vmul.f32 %v14306_v25, %v11947_v6 }
 0x58a   : > { %9841 = vmatpush3.msra.mxu1 %v1089_v28  ;;  %v14869_v28 = vmul.f32 %v17823_v2, %v11991_v8  ;;  %v5299_v4 = vadd.f32 %v5258_v31, %v5053_v23  ;;  %v14891_v25 = vmul.f32 %v14547_v19, %v12007_v60  ;;  %v5547_v50 = vadd.f32 %v5506_v22, %v5301_v45  ;;  %v1101_v31 = vld [vmem:[%s14454_s7 + $0x168] sm:$0xff]  ;;  %v1099_v14 = vld [vmem:[%s14454_s7 + $0x158] sm:$0xff] }
 0x58b   : > { %9842 = vmatprep.subr.mxu1 %v1088_v61  ;;  %v5750_v23 = vmul.f32 %v14465_v9, %v17577_v36  ;;  %v14905_v19 = vmul.f32 %v14554_v18, %v12007_v60  ;;  %v5300_v38 = vadd.f32 %v5259_v35, %v5054_v11  ;;  %v5052_v45 = vmul.f32 %v14405_v62, %v11961_v5  ;;  %v1100_v11 = vld [vmem:[%s14454_s7 + $0x160] sm:$0xff] }
 0x58c   : > { %9843 = vmatpush3.msra.mxu1 %v1088_v61  ;;  %v14879_v46 = vpop.permute.xlu1 %5595  ;;  %v6040_v61 = vadd.f32 %v5999_v41, %v5794_v32  ;;  %v5793_v51 = vadd.f32 %v5752_v29, %v5547_v50  ;;  %v5545_v22 = vadd.f32 %v5504_v40, %v5299_v4  ;;  %v6491_v9 = vmul.f32 %v14493_v15, %v12025_v10  ;;  %v6862_v32 = vpop.permute.xlu0 %6861  ;;  %v17824_v15 = vld [vmem:[#allocation198_spill] sm:$0xff] }
 0x58d   : > { %9847 = vmatprep.subr.mxu1 %v1103_v49  ;;  %10468 = vset.pattern.permute.xlu1 %v17705_v47  ;;  %v5050_v41 = vmul.f32 %v14498_v53, %v11961_v5  ;;  %v5751_v62 = vmul.f32 %v14436_v44, %v17577_v36  ;;  %v17825_v53 = vld [vmem:[#allocation91_spill] sm:$0xff]  ;;  %v14938_v29 = vpop.f32.mrf.mxu1 }
 0x58e   : > { %9845 = vmatmul.mubr.msk.f32.vlgmr.msra.gmra.mxu1 %vm4015_vm12, %v3972_v56  ;;  %5829 = vperm.xlu1 %10468, %v14602_v13   ;;  %v5505_v13 = vmul.f32 %v14380_v20, %v11965_v17  ;;  %v5298_v20 = vadd.f32 %v5257_v3, %v5052_v45  ;;  %v6286_v56 = vadd.f32 %v6245_v16, %v6040_v61  ;;  %v14930_v44 = vld [vmem:[%s11935_s4 + $0x8] ss:$0 sm:$0xff]  ;;  %v17828_v3 = vld [vmem:[#allocation200_spill] sm:$0xff] }
 0x58f   : > { %9848 = vmatpush3.msra.mxu1 %v1103_v49  ;;  %9863 = vmatprep.mubr.msk.f32.mxu1 %vm4015_vm12, %v3977_v26  ;;  %v6039_v40 = vadd.f32 %v5998_v33, %v5793_v51  ;;  %v5256_v49 = vmul.f32 %v17824_v15, %v11947_v6  ;;  %v5791_v21 = vadd.f32 %v5750_v23, %v5545_v22  ;;  %v17826_v26 = vld [vmem:[#allocation187_spill] sm:$0xff]  ;;  %v17830_v51 = vld [vmem:[#allocation213_spill] sm:$0xff] }
 0x590   : > { %9849 = vmatprep.subr.mxu1 %v1102_v12  ;;  %v14927_v2 = vmul.f32 %v17826_v26, %v12007_v60  ;;  %v5546_v35 = vadd.f32 %v5505_v13, %v5300_v38  ;;  %v14933_v16 = vmul.f32 %v14930_v44, %v6866_v42  ;;  %v14936_v4 = vmul.f32 %v14930_v44, %v6862_v32  ;;  %v17829_v38 = vld [vmem:[#allocation207_spill] sm:$0xff]  ;;  %v6858_v32 = vpop.permute.xlu0 %6857 }
 0x591   : > { %9850 = vmatpush3.msra.mxu1 %v1102_v12  ;;  %v14915_v18 = vpop.permute.xlu1 %5845  ;;  %v17827_v12 = vld [vmem:[#allocation194_spill] sm:$0xff]  ;;  %v5997_v50 = vmul.f32 %v17828_v3, %v11991_v8  ;;  %v6532_v33 = vadd.f32 %v6491_v9, %v6286_v56  ;;  %v5296_v23 = vadd.f32 %v14839_v27, %v5050_v41  ;;  %v5502_v13 = vmul.f32 %v17829_v38, %v11965_v17  ;;  %v1097_v41 = vld [vmem:[%s14454_s7 + $0x148] sm:$0xff] }
 0x592   : > { %9851 = vmatprep.subr.mxu1 %v1101_v31  ;;  %10469 = vset.pattern.permute.xlu1 %v17190_v55  ;;  %v5051_v61 = vmul.f32 %v17827_v12, %v11961_v5  ;;  %v5792_v42 = vadd.f32 %v5751_v62, %v5546_v35  ;;  %v5544_v45 = vadd.f32 %v14859_v7, %v5298_v20  ;;  %v17832_v20 = vld [vmem:[#allocation30_spill] sm:$0xff] }
 0x593   : > { %9852 = vmatpush3.msra.mxu1 %v1101_v31  ;;  %6329 = vperm.xlu1 %10469, %v17825_v53   ;;  %v1098_v31 = vld [vmem:[%s14454_s7 + $0x150] sm:$0xff]  ;;  %v5749_v22 = vmul.f32 %v17830_v51, %v17577_v36  ;;  %v6037_v9 = vadd.f32 %v14869_v28, %v5791_v21  ;;  %v6285_v27 = vadd.f32 %v14875_v58, %v6039_v40  ;;  %v17833_v56 = vld [vmem:[#allocation226_spill] sm:$0xff]  ;;  %v3996_v28 = vpop.f32.mrf.mxu1  ;;  %v17834_v40 = vld [vmem:[#allocation71_spill] sm:$0xff] }
 0x594   : > { %9853 = vmatprep.subr.mxu1 %v1100_v11  ;;  %v5297_v53 = vadd.f32 %v5256_v49, %v5051_v61  ;;  %v6490_v62 = vmul.f32 %v17832_v20, %v12025_v10  ;;  %v5748_v26 = vmul.f32 %v17833_v56, %v17577_v36  ;;  %v6038_v49 = vadd.f32 %v5997_v50, %v5792_v42  ;;  %v1096_v35 = vld [vmem:[%s14454_s7 + $0x140] sm:$0xff]  ;;  %v6854_v51 = vpop.permute.xlu0 %6853  ;;  %v17839_v42 = vld [vmem:[#allocation65_spill] sm:$0xff] }
 0x595   : > { %9854 = vmatpush3.msra.mxu1 %v1100_v11  ;;  %v17831_v11 = vld [vmem:[#allocation239_spill] sm:$0xff]  ;;  %v6778_v58 = vadd.f32 %v14825_v43, %v6532_v33  ;;  %v5995_v21 = vmul.f32 %v17834_v40, %v11991_v8  ;;  %v5790_v61 = vadd.f32 %v5749_v22, %v5544_v45  ;;  %v17835_v3 = vld [vmem:[#allocation98_spill] sm:$0xff]  ;;  %v5747_v20 = vmul.f32 %v17839_v42, %v17577_v36 }
 0x596   : > { %9855 = vmatprep.subr.mxu1 %v1099_v14  ;;  %v14951_v15 = vpop.permute.xlu1 %6345  ;;  %v6243_v7 = vmul.f32 %v17831_v11, %v12007_v60  ;;  %v5543_v12 = vadd.f32 %v5502_v13, %v5297_v53  ;;  %v6489_v38 = vmul.f32 %v17835_v3, %v12025_v10  ;;  %v17837_v11 = vld [vmem:[#allocation131_spill] sm:$0xff]  ;;  %v1119_v13 = vld [vmem:[%s14454_s7 + $0x1f8] sm:$0xff]  ;;  %v3997_v45 = vadd.f32 %v3996_v28, %v14768_v63  ;;  %v17841_v3 = vld [vmem:[#allocation252_spill] sm:$0xff] }
 0x597   : > { %9856 = vmatpush3.msra.mxu1 %v1099_v14  ;;  %10470 = vset.pattern.permute.xlu1 %v17184_v30  ;;  %v5542_v14 = vadd.f32 %v14863_v52, %v5296_v23  ;;  %v17838_v43 = vld [vmem:[#allocation151_spill] sm:$0xff]  ;;  %v17840_v52 = vld [vmem:[#allocation217_spill] sm:$0xff]  ;;  %v6531_v53 = vadd.f32 %v6490_v62, %v6285_v27  ;;  %v6036_v40 = vadd.f32 %v5995_v21, %v5790_v61  ;;  %v1118_v63 = vld [vmem:[%s14454_s7 + $0x1f0] sm:$0xff] }
 0x598   : > { %9857 = vmatprep.subr.mxu1 %v1098_v31  ;;  %6579 = vperm.xlu1 %10470, %v14487_v37   ;;  %v17836_v37 = vld [vmem:[#allocation61_spill] sm:$0xff]  ;;  %v6736_v33 = vmul.f32 %v17838_v43, %v12032_v34  ;;  %v5994_v23 = vmul.f32 %v17840_v52, %v11991_v8  ;;  %v6284_v22 = vadd.f32 %v6243_v7, %v6038_v49  ;;  %v17843_v7 = vld [vmem:[#allocation51_spill] sm:$0xff]  ;;  %v6850_v28 = vpop.permute.xlu0 %6849  ;;  %v17844_v42 = vld [vmem:[#allocation70_spill] sm:$0xff] }
 0x599   : > { %9858 = vmatpush3.msra.mxu1 %v1098_v31  ;;  %v3982_v50 = vadd.f32 %v17837_v11, %v17836_v37  ;;  %v5789_v56 = vadd.f32 %v5748_v26, %v5543_v12  ;;  %v6735_v37 = vmul.f32 %v17841_v3, %v12032_v34  ;;  %v17842_v11 = vld [vmem:[#allocation220_spill] sm:$0xff]  ;;  %v6488_v62 = vmul.f32 %v17843_v7, %v12025_v10  ;;  %v1117_v12 = vld [vmem:[%s14454_s7 + $0x1e8] sm:$0xff] }
 0x59a   : > { %9859 = vmatprep.subr.mxu1 %v1097_v41  ;;  %v5993_v43 = vmul.f32 %v17842_v11, %v11991_v8  ;;  %v6530_v27 = vadd.f32 %v6489_v38, %v6284_v22  ;;  %v6981_v26 = vmul.f32 %v14930_v44, %v6858_v32  ;;  %v6777_v49 = vadd.f32 %v6736_v33, %v6531_v53  ;;  %v17845_v32 = vld [vmem:[#allocation222_spill] sm:$0xff] }
 0x59b   : > { %9860 = vmatpush3.msra.mxu1 %v1097_v41  ;;  %v14979_v31 = vpop.permute.xlu1 %6595  ;;  %v14991_v41 = vld [vmem:[%s17080_s6 + $0x238] sm:$0xff]  ;;  %v5788_v21 = vadd.f32 %v5747_v20, %v5542_v14  ;;  %v7024_v61 = vadd.f32 %v14933_v16, %v6778_v58  ;;  %v6283_v38 = vadd.f32 %v14883_v39, %v6037_v9  ;;  %v6487_v52 = vmul.f32 %v17844_v42, %v12025_v10  ;;  %v1116_v16 = vld [vmem:[%s14454_s7 + $0x1e0] sm:$0xff] }
 0x59c   : > { %9861 = vmatprep.subr.mxu1 %v1096_v35  ;;  %10471 = vset.pattern.permute.xlu1 %v17655_v57  ;;  %v6734_v22 = vmul.f32 %v17845_v32, %v12032_v34  ;;  %v6776_v14 = vadd.f32 %v6735_v37, %v6530_v27  ;;  %v6282_v20 = vadd.f32 %v14891_v25, %v6036_v40  ;;  %v17846_v39 = vld [vmem:[#allocation238_spill] sm:$0xff]  ;;  %v1115_v40 = vld [vmem:[%s14454_s7 + $0x1d8] sm:$0xff] }
 0x59d   : > { %9862 = vmatpush3.msra.mxu1 %v1096_v35  ;;  %4988 = vperm.xlu1 %10471, %v14991_v41   ;;  %v6035_v35 = vadd.f32 %v5994_v23, %v5789_v56  ;;  %v6034_v33 = vadd.f32 %v5993_v43, %v5788_v21  ;;  %v6529_v58 = vadd.f32 %v6488_v62, %v6283_v38  ;;  %v17847_v23 = vld [vmem:[#allocation63_spill] sm:$0xff]  ;;  %v1114_v62 = vld [vmem:[%s14454_s7 + $0x1d0] sm:$0xff] }
 0x59e   : > { %9885 = vmatprep.subr.mxu1 %v1119_v13  ;;  %9864 = vmatmul.mubr.msk.f32.vlgmr.msra.gmra.mxu1 %vm4015_vm12, %v3982_v50  ;;  %v6486_v9 = vmul.f32 %v17846_v39, %v12025_v10  ;;  %v7023_v53 = vadd.f32 %v14936_v4, %v6777_v49  ;;  %v6980_v25 = vmul.f32 %v14930_v44, %v6854_v51 }
 0x59f   : > { %9886 = vmatpush3.msra.mxu1 %v1119_v13  ;;  %9901 = vmatprep.mubr.msk.f32.mxu1 %vm4015_vm12, %v3997_v45  ;;  %v6733_v13 = vmul.f32 %v17847_v23, %v12032_v34  ;;  %v6846_v45 = vpop.permute.xlu0 %6845  ;;  %v6281_v56 = vadd.f32 %v14905_v19, %v6035_v35  ;;  %v6528_v3 = vadd.f32 %v6487_v52, %v6282_v20  ;;  %v17851_v23 = vld [vmem:[#allocation177_spill] sm:$0xff] }
 0x5a0   : > { %9887 = vmatprep.subr.mxu1 %v1118_v63  ;;  %v15007_v50 = vpop.permute.xlu1 %4848  ;;  %v6775_v37 = vadd.f32 %v6734_v22, %v6529_v58  ;;  %v6485_v11 = vmul.f32 %v14780_v0, %v12025_v10  ;;  %v6732_v43 = vmul.f32 %v14793_v24, %v12032_v34  ;;  %v7022_v27 = vadd.f32 %v6981_v26, %v6776_v14  ;;  %v17848_v26 = vld [vmem:[#allocation20_spill] sm:$0xff]  ;;  %v1112_v14 = vld [vmem:[%s14454_s7 + $0x1c0] sm:$0xff] }
 0x5a1   : > { %9888 = vmatpush3.msra.mxu1 %v1118_v63  ;;  %10472 = vset.pattern.permute.xlu1 %v17659_v54  ;;  %v15026_v63 = vld [vmem:[%s12057_s8] ss:$0 sm:$0xff]  ;;  %v6979_v51 = vmul.f32 %v14930_v44, %v6850_v28  ;;  %v6280_v19 = vadd.f32 %v14927_v2, %v6034_v33  ;;  %v6527_v49 = vadd.f32 %v6486_v9, %v6281_v56  ;;  %v17849_v2 = vld [vmem:[#allocation233_spill] sm:$0xff] }
 0x5a2   : > { %9889 = vmatprep.subr.mxu1 %v1117_v12  ;;  %5203 = vperm.xlu1 %10472, %v14991_v41   ;;  %v7065_v4 = vadd.f32 %v15026_v63, %v7024_v61  ;;  %v6774_v0 = vadd.f32 %v6733_v13, %v6528_v3  ;;  %v6731_v24 = vmul.f32 %v14979_v31, %v12032_v34  ;;  %v17850_v31 = vld [vmem:[#allocation18_spill] sm:$0xff] }
 0x5a3   : > { %9890 = vmatpush3.msra.mxu1 %v1117_v12  ;;  %v6842_v21 = vpop.permute.xlu0 %6841  ;;  %v5254_v35 = vmul.f32 %v17848_v26, %v11947_v6  ;;  %v6978_v28 = vmul.f32 %v14930_v44, %v6846_v45  ;;  %v1113_v12 = vld [vmem:[%s14454_s7 + $0x1c8] sm:$0xff]  ;;  %v7064_v61 = vadd.f32 %v15026_v63, %v7023_v53  ;;  %v7021_v38 = vadd.f32 %v6980_v25, %v6775_v37 }
 0x5a4   : > { %9891 = vmatprep.subr.mxu1 %v1116_v16  ;;  %v6526_v42 = vadd.f32 %v6485_v11, %v6280_v19  ;;  %v6773_v52 = vadd.f32 %v6732_v43, %v6527_v49  ;;  %v5049_v32 = vmul.f32 %v17850_v31, %v11961_v5  ;;  %v6977_v22 = vmul.f32 %v14930_v44, %v6842_v21 }
 0x5a5   : > { %9892 = vmatpush3.msra.mxu1 %v1116_v16  ;;  %v15031_v7 = vpop.permute.xlu1 %5091  ;;  %vm7106_vm13 = vcmp.gt.f32.partialorder %v7065_v4, 0.0  ;;  %v7147_v33 = vmul.f32 0.01, %v7065_v4  ;;  %v7063_v20 = vadd.f32 %v15026_v63, %v7022_v27  ;;  %v7020_v16 = vadd.f32 %v6979_v51, %v6774_v0 }
 0x5a6   : > { %9893 = vmatprep.subr.mxu1 %v1115_v40  ;;  %10473 = vset.pattern.permute.xlu1 %v17672_v1  ;;  %v6772_v58 = vadd.f32 %v6731_v24, %v6526_v42  ;;  %v4002_v9 = vadd.f32 %v14938_v29, %v14778_v59  ;;  %v5500_v13 = vmul.f32 %v17851_v23, %v11965_v17  ;;  %v7146_v56 = vmul.f32 0.01, %v7064_v61  ;;  %v17852_v59 = vld [vmem:[#allocation49_spill] sm:$0xff]  ;;  %v17855_v24 = vld [vmem:[#allocation50_spill] sm:$0xff] }
 0x5a7   : > { %9894 = vmatpush3.msra.mxu1 %v1115_v40  ;;  %5575 = vperm.xlu1 %10473, %v17849_v2   ;;  %v5295_v45 = vadd.f32 %v5254_v35, %v5049_v32  ;;  %v7062_v53 = vadd.f32 %v15026_v63, %v7021_v38  ;;  %v7019_v25 = vadd.f32 %v6978_v28, %v6773_v52  ;;  %vm7105_vm15 = vcmp.gt.f32.partialorder %v7064_v61, 0.0 }
 0x5a8   : > { %9895 = vmatprep.subr.mxu1 %v1114_v62  ;;  %v7188_v40 = vsel %vm7106_vm13, %v7065_v4, %v7147_v33  ;;  %v5746_v29 = vmul.f32 %v17852_v59, %v17577_v36  ;;  %v7061_v3 = vadd.f32 %v15026_v63, %v7020_v16  ;;  %v7018_v37 = vadd.f32 %v6977_v22, %v6772_v58  ;;  %v17854_v4 = vld [vmem:[#allocation235_spill] sm:$0xff] }
 0x5a9   : > { %9896 = vmatpush3.msra.mxu1 %v1114_v62  ;;  %v17853_v11 = vmov 0.0   ;;  %v7145_v43 = vmul.f32 0.01, %v7063_v20  ;;  %v5541_v27 = vadd.f32 %v5500_v13, %v5295_v45  ;;  %vm7104_vm0 = vcmp.gt.f32.partialorder %v7063_v20, 0.0 }
 0x5aa   : > { %9897 = vmatprep.subr.mxu1 %v1113_v12  ;;  %v15048_v39 = vpop.permute.xlu1 %5591  ;;  %v5992_v19 = vmul.f32 %v17854_v4, %v11991_v8  ;;  %v7060_v62 = vadd.f32 %v15026_v63, %v7019_v25  ;;  %v7187_v49 = vsel %vm7105_vm15, %v7064_v61, %v7146_v56  ;;  %v7144_v0 = vmul.f32 0.01, %v7062_v53  ;;  %v17859_v4 = vld [vmem:[#allocation251_spill] sm:$0xff] }
 0x5ab   : > { %9898 = vmatpush3.msra.mxu1 %v1113_v12  ;;  %10474 = vset.pattern.permute.xlu1 %v17705_v47  ;;  %vm7103_vm1 = vcmp.gt.f32.partialorder %v7062_v53, 0.0  ;;  %v5787_v21 = vadd.f32 %v5746_v29, %v5541_v27  ;;  %v7059_v26 = vadd.f32 %v15026_v63, %v7018_v37  ;;  %v7186_v35 = vsel %vm7104_vm0, %v7063_v20, %v7145_v43  ;;  %v17856_v12 = vld [vmem:[#allocation92_spill] sm:$0xff]  ;;  %v6838_v20 = vpop.permute.xlu0 %6837  ;;  %v17858_v27 = vld [vmem:[#allocation210_spill] sm:$0xff] }
 0x5ac   : > { %9899 = vmatprep.subr.mxu1 %v1112_v14  ;;  %5825 = vperm.xlu1 %10474, %v14643_v48   ;;  %v10722_v48 = vld [vmem:[%s17654_s0 + $0x8] sm:$0xff]  ;;  %v7143_v28 = vmul.f32 0.01, %v7061_v3  ;;  %vm7102_vm2 = vcmp.gt.f32.partialorder %v7061_v3, 0.0  ;;  %v6238_v38 = vmul.f32 %v17856_v12, %v12007_v60  ;;  %v7185_v42 = vsel %vm7103_vm1, %v7062_v53, %v7144_v0  ;;  %v15095_v53 = vld [vmem:[%s17080_s6 + $0x230] sm:$0xff]  ;;  %v17862_v12 = vld [vmem:[#allocation74_spill] sm:$0xff] }
 0x5ad   : > { %9900 = vmatpush3.msra.mxu1 %v1112_v14  ;;  %v6033_v61 = vadd.f32 %v5992_v19, %v5787_v21  ;;  %v7142_v31 = vmul.f32 0.01, %v7060_v62  ;;  %vm7101_vm3 = vcmp.gt.f32.partialorder %v7060_v62, 0.0  ;;  %v6484_v32 = vmul.f32 %v14951_v15, %v12025_v10  ;;  %v10723_v14 = vld [vmem:[%s17080_s6 + $0x168] sm:$0xff]  ;;  %v17857_v43 = vld [vmem:[#allocation32_spill] sm:$0xff] }
 0x5ae   : > { %7217 = vmatprep.subr.mxu1 %v17853_v11  ;;  %9902 = vmatmul.mubr.msk.f32.vlgmr.msra.gmra.mxu1 %vm4015_vm12, %v4002_v9  ;;  %v7184_v22 = vsel %vm7102_vm2, %v7061_v3, %v7143_v28  ;;  %v7141_v33 = vmul.f32 0.01, %v7059_v26  ;;  %vm7100_vm4 = vcmp.gt.f32.partialorder %v7059_v26, 0.0  ;;  %v6976_v15 = vmul.f32 %v14930_v44, %v6838_v20  ;;  %v17861_v21 = vld [vmem:[#allocation228_spill] sm:$0xff]  ;;  %v10726_v20 = vld [vmem:[%s17080_s6 + $0x160] sm:$0xff] }
 0x5af   : > { %7218 = vmatpush1.msra.mxu1 %v7188_v40  ;;  %v15063_v51 = vpop.permute.xlu1 %5841  ;;  %7281 = vmatprep.mubr.f32.mxu1 %v10722_v48  ;;  %v6279_v16 = vadd.f32 %v6238_v38, %v6033_v61  ;;  %v7183_v58 = vsel %vm7101_vm3, %v7060_v62, %v7142_v31  ;;  %v5253_v48 = vmul.f32 %v17858_v27, %v11947_v6  ;;  %v10725_v61 = vld [vmem:[%s17080_s6 + $0x158] sm:$0xff]  ;;  %v17863_v31 = vld [vmem:[#allocation215_spill] sm:$0xff] }
 0x5b0   : > { %7219 = vmatprep.subr.mxu1 %v17853_v11  ;;  %10475 = vset.pattern.permute.xlu1 %v17190_v55  ;;  %v7182_v45 = vsel %vm7100_vm4, %v7059_v26, %v7141_v33  ;;  %v5048_v19 = vmul.f32 %v17859_v4, %v11961_v5  ;;  %v5745_v26 = vmul.f32 %v17861_v21, %v17577_v36 }
 0x5b1   : > { %7220 = vmatpush1.msra.mxu1 %v7187_v49  ;;  %6325 = vperm.xlu1 %10475, %v17855_v24   ;;  %v6525_v23 = vadd.f32 %v6484_v32, %v6279_v16  ;;  %v17860_v49 = vld [vmem:[#allocation183_spill] sm:$0xff]  ;;  %v5991_v38 = vmul.f32 %v17862_v12, %v11991_v8  ;;  %v6237_v32 = vmul.f32 %v17863_v31, %v12007_v60  ;;  %v6834_v16 = vpop.permute.xlu0 %6833 }
 0x5b2   : > { %7221 = vmatprep.subr.mxu1 %v17853_v11  ;;  %v5499_v0 = vmul.f32 %v17860_v49, %v11965_v17  ;;  %v5294_v24 = vadd.f32 %v5253_v48, %v5048_v19  ;;  %v17864_v48 = vld [vmem:[#allocation219_spill] sm:$0xff]  ;;  %v17865_v19 = vld [vmem:[#allocation44_spill] sm:$0xff]  ;;  %v5990_v31 = vmul.f32 %v14915_v18, %v11991_v8 }
 0x5b3   : > { %7222 = vmatpush1.msra.mxu1 %v7186_v35  ;;  %v5252_v4 = vmul.f32 %v17864_v48, %v11947_v6  ;;  %v5047_v49 = vmul.f32 %v17865_v19, %v11961_v5 }
 0x5b4   : > { %7223 = vmatprep.subr.mxu1 %v17853_v11  ;;  %v6342_v52 = vpop.permute.xlu1 %6341  ;;  %v5540_v28 = vadd.f32 %v5499_v0, %v5294_v24  ;;  %v17866_v24 = vld [vmem:[#allocation118_spill] sm:$0xff] }
 0x5b5   : > { %7224 = vmatpush1.msra.mxu1 %v7185_v42  ;;  %10476 = vset.pattern.permute.xlu1 %v17184_v30  ;;  %v6483_v33 = vmul.f32 %v6342_v52, %v12025_v10  ;;  %v5498_v21 = vmul.f32 %v17866_v24, %v11965_v17 }
 0x5b6   : > { %7225 = vmatprep.subr.mxu1 %v17853_v11  ;;  %6575 = vperm.xlu1 %10476, %v10723_v14   ;;  %v5786_v42 = vadd.f32 %v5745_v26, %v5540_v28  ;;  %v5293_v26 = vadd.f32 %v5252_v4, %v5047_v49  ;;  %v17867_v28 = vld [vmem:[#allocation38_spill] sm:$0xff]  ;;  %v17869_v49 = vld [vmem:[#allocation256_spill] sm:$0xff] }
 0x5b7   : > { %7226 = vmatpush1.msra.mxu1 %v7184_v22  ;;  %v5744_v12 = vmul.f32 %v17867_v28, %v17577_v36  ;;  %v5251_v24 = vmul.f32 %v17869_v49, %v11947_v6 }
 0x5b8   : > { %7227 = vmatprep.subr.mxu1 %v17853_v11  ;;  %v6032_v22 = vadd.f32 %v5991_v38, %v5786_v42  ;;  %v5539_v42 = vadd.f32 %v5498_v21, %v5293_v26  ;;  %v17870_v21 = vld [vmem:[#allocation230_spill] sm:$0xff] }
 0x5b9   : > { %7228 = vmatpush1.msra.mxu1 %v7183_v58  ;;  %v6592_v9 = vpop.permute.xlu1 %6591  ;;  %v5046_v26 = vmul.f32 %v17870_v21, %v11961_v5  ;;  %v15249_v21 = vld [vmem:[%s17080_s6 + $0x278] sm:$0xff] }
 0x5ba   : > { %7229 = vmatprep.subr.mxu1 %v17853_v11  ;;  %v6730_v13 = vmul.f32 %v6592_v9, %v12032_v34  ;;  %10477 = vset.pattern.permute.xlu1 %v17655_v57  ;;  %v6278_v58 = vadd.f32 %v6237_v32, %v6032_v22  ;;  %v10728_v32 = vld [vmem:[%s17080_s6 + $0x150] sm:$0xff]  ;;  %v5785_v22 = vadd.f32 %v5744_v12, %v5539_v42 }
 0x5bb   : > { %7230 = vmatpush1.msra.mxu1 %v7182_v45  ;;  %4983 = vperm.xlu1 %10477, %v15095_v53   ;;  %v15142_v45 = vld [vmem:[%s17080_s6 + $0x228] sm:$0xff]  ;;  %v17871_v12 = vld [vmem:[#allocation120_spill] sm:$0xff] }
 0x5bc   : > { %v6771_v25 = vadd.f32 %v6730_v13, %v6525_v23  ;;  %7231 = vmatprep.subr.mxu1 %v17853_v11  ;;  %v6975_v13 = vmul.f32 %v14930_v44, %v6834_v16  ;;  %v6031_v16 = vadd.f32 %v5990_v31, %v5785_v22  ;;  %v5497_v42 = vmul.f32 %v17871_v12, %v11965_v17 }
 0x5bd   : > { %v5292_v31 = vadd.f32 %v5251_v24, %v5046_v26  ;;  %v5743_v22 = vmul.f32 %v14879_v46, %v17577_v36 }
 0x5be   : > { %v7017_v56 = vadd.f32 %v6976_v15, %v6771_v25  ;;  %v15099_v40 = vpop.permute.xlu1 %4843  ;;  %v6524_v15 = vadd.f32 %v6483_v33, %v6278_v58  ;;  %v17868_v33 = vld [vmem:[#allocation48_spill] sm:$0xff] }
 0x5bf   : > { %10478 = vset.pattern.permute.xlu1 %v17659_v54 }
 0x5c0   : > { %v7058_v59 = vadd.f32 %v15026_v63, %v7017_v56  ;;  %5199 = vperm.xlu1 %10478, %v15095_v53  }
 0x5c2   : > { %vm7099_vm5 = vcmp.gt.f32.partialorder %v7058_v59, 0.0  ;;  %v7140_v29 = vmul.f32 0.01, %v7058_v59 }
 0x5c3   : > { %v15104_v3 = vpop.permute.xlu1 %5087 }
 0x5c4   : > { %10479 = vset.pattern.permute.xlu1 %v17672_v1  ;;  %v7181_v37 = vsel %vm7099_vm5, %v7058_v59, %v7140_v29 }
 0x5c5   : > { %5699 = vperm.xlu1 %10479, %v17857_v43   ;;  %7232 = vmatpush1.msra.mxu1 %v7181_v37 }
 0x5c6   : > { %7233 = vmatprep.subr.mxu1 %v17853_v11 }
 0x5c8   : > { %v15113_v62 = vpop.permute.xlu1 %5587 }
 0x5c9   : > { %10480 = vset.pattern.permute.xlu1 %v17705_v47 }
 0x5ca   : > { %5821 = vperm.xlu1 %10480, %v17849_v2  }
 0x5cd   : > { %v15121_v35 = vpop.permute.xlu1 %5837 }
 0x5ce   : > { %10481 = vset.pattern.permute.xlu1 %v17190_v55 }
 0x5cf   : > { %6321 = vperm.xlu1 %10481, %v10725_v61  }
 0x5d2   : > { %v6338_v14 = vpop.permute.xlu1 %6337 }
 0x5d3   : > { %10482 = vset.pattern.permute.xlu1 %v17184_v30 }
 0x5d4   : > { %6571 = vperm.xlu1 %10482, %v10726_v20   ;;  %v6236_v20 = vmul.f32 %v17868_v33, %v12007_v60 }
 0x5d6   : > { %v6277_v18 = vadd.f32 %v6236_v20, %v6031_v16  ;;  %v5538_v20 = vadd.f32 %v5497_v42, %v5292_v31  ;;  %v5989_v16 = vmul.f32 %v15063_v51, %v11991_v8  ;;  %v15223_v51 = vld [vmem:[%s17080_s6 + $0x288] sm:$0xf]  ;;  %v17873_v31 = vld [vmem:[#allocation14_spill] sm:$0xff] }
 0x5d7   : > { %v6588_v9 = vpop.permute.xlu1 %6587  ;;  %6965 = vperm.xlu0 %10609, %v15223_v51  }
 0x5d8   : > { %v6729_v23 = vmul.f32 %v6588_v9, %v12032_v34  ;;  %10483 = vset.pattern.permute.xlu1 %v17655_v57  ;;  %v6482_v9 = vmul.f32 %v6338_v14, %v12025_v10 }
 0x5d9   : > { %4978 = vperm.xlu1 %10483, %v15142_v45  }
 0x5da   : > { %v6770_v52 = vadd.f32 %v6729_v23, %v6524_v15  ;;  %v6830_v15 = vpop.permute.xlu0 %6829 }
 0x5dc   : > { %v7016_v25 = vadd.f32 %v6975_v13, %v6770_v52  ;;  %v15145_v56 = vpop.permute.xlu1 %4838  ;;  %v6523_v13 = vadd.f32 %v6482_v9, %v6277_v18  ;;  %v5784_v9 = vadd.f32 %v5743_v22, %v5538_v20  ;;  %v5250_v22 = vmul.f32 %v17873_v31, %v11947_v6  ;;  %v15262_v20 = vld [vmem:[%s17080_s6 + $0x1e0] sm:$0xff] }
 0x5dd   : > { %10484 = vset.pattern.permute.xlu1 %v17659_v54 }
 0x5de   : > { %v7057_v59 = vadd.f32 %v15026_v63, %v7016_v25  ;;  %5195 = vperm.xlu1 %10484, %v15142_v45   ;;  %v6974_v25 = vmul.f32 %v14930_v44, %v6830_v15  ;;  %v17872_v15 = vld [vmem:[#allocation26_spill] sm:$0xff] }
 0x5df   : > { %v6235_v18 = vmul.f32 %v17872_v15, %v12007_v60 }
 0x5e0   : > { %vm7098_vm6 = vcmp.gt.f32.partialorder %v7057_v59, 0.0  ;;  %v7139_v29 = vmul.f32 0.01, %v7057_v59 }
 0x5e1   : > { %v15150_v37 = vpop.permute.xlu1 %5083 }
 0x5e2   : > { %10485 = vset.pattern.permute.xlu1 %v17672_v1  ;;  %v7180_v27 = vsel %vm7098_vm6, %v7057_v59, %v7139_v29  ;;  %v15185_v59 = vld [vmem:[%s17080_s6 + $0x220] sm:$0xff] }
 0x5e3   : > { %5695 = vperm.xlu1 %10485, %v14991_v41   ;;  %7234 = vmatpush1.msra.mxu1 %v7180_v27 }
 0x5e4   : > { %7235 = vmatprep.subr.mxu1 %v17853_v11 }
 0x5e6   : > { %v15159_v0 = vpop.permute.xlu1 %5583 }
 0x5e7   : > { %10486 = vset.pattern.permute.xlu1 %v17705_v47 }
 0x5e8   : > { %5945 = vperm.xlu1 %10486, %v17857_v43  }
 0x5eb   : > { %v15167_v38 = vpop.permute.xlu1 %5833 }
 0x5ec   : > { %10487 = vset.pattern.permute.xlu1 %v17190_v55 }
 0x5ed   : > { %6317 = vperm.xlu1 %10487, %v10728_v32  }
 0x5f0   : > { %v6334_v58 = vpop.permute.xlu1 %6333 }
 0x5f1   : > { %10488 = vset.pattern.permute.xlu1 %v17184_v30  ;;  %v6481_v46 = vmul.f32 %v6334_v58, %v12025_v10 }
 0x5f2   : > { %6567 = vperm.xlu1 %10488, %v10725_v61  }
 0x5f5   : > { %v6584_v23 = vpop.permute.xlu1 %6583 }
 0x5f6   : > { %v6728_v52 = vmul.f32 %v6584_v23, %v12032_v34  ;;  %10489 = vset.pattern.permute.xlu1 %v17655_v57  ;;  %v6030_v23 = vadd.f32 %v5989_v16, %v5784_v9  ;;  %v17874_v16 = vld [vmem:[#allocation247_spill] sm:$0xff] }
 0x5f7   : > { %4973 = vperm.xlu1 %10489, %v15185_v59   ;;  %v5045_v9 = vmul.f32 %v17874_v16, %v11961_v5 }
 0x5f8   : > { %v6769_v29 = vadd.f32 %v6728_v52, %v6523_v13  ;;  %v6826_v52 = vpop.permute.xlu0 %6825 }
 0x5fa   : > { %v7015_v14 = vadd.f32 %v6974_v25, %v6769_v29  ;;  %v15188_v61 = vpop.permute.xlu1 %4993  ;;  %v6276_v25 = vadd.f32 %v6235_v18, %v6030_v23  ;;  %v17875_v18 = vld [vmem:[#allocation129_spill] sm:$0xff] }
 0x5fb   : > { %10490 = vset.pattern.permute.xlu1 %v17659_v54  ;;  %v5496_v23 = vmul.f32 %v17875_v18, %v11965_v17 }
 0x5fc   : > { %v7056_v27 = vadd.f32 %v15026_v63, %v7015_v14  ;;  %5191 = vperm.xlu1 %10490, %v15185_v59   ;;  %v6822_v31 = vpop.permute.xlu0 %6821 }
 0x5fe   : > { %vm7097_vm7 = vcmp.gt.f32.partialorder %v7056_v27, 0.0  ;;  %v7138_v48 = vmul.f32 0.01, %v7056_v27 }
 0x5ff   : > { %v15193_v4 = vpop.permute.xlu1 %5207 }
 0x600   : > { %10491 = vset.pattern.permute.xlu1 %v17672_v1  ;;  %v7179_v19 = vsel %vm7097_vm7, %v7056_v27, %v7138_v48  ;;  %v6973_v27 = vmul.f32 %v14930_v44, %v6826_v52  ;;  %v15238_v48 = vld [vmem:[%s17080_s6 + $0x280] sm:$0xff]  ;;  %v15276_v52 = vld [vmem:[%s17080_s6 + $0x268] sm:$0xff] }
 0x601   : > { %5691 = vperm.xlu1 %10491, %v15095_v53   ;;  %7236 = vmatpush1.msra.mxu1 %v7179_v19  ;;  %17876 = vst [vmem:[#allocation78_spill] sm:$0xff] %v15276_v52 }
 0x602   : > { %7237 = vmatprep.subr.mxu1 %v17853_v11  ;;  %6961 = vperm.xlu0 %10609, %v15238_v48  }
 0x604   : > { %v15202_v28 = vpop.permute.xlu1 %5579 }
 0x605   : > { %10492 = vset.pattern.permute.xlu1 %v17705_v47 }
 0x606   : > { %5941 = vperm.xlu1 %10492, %v14991_v41   ;;  %6957 = vperm.xlu0 %10609, %v15249_v21  }
 0x609   : > { %v15210_v33 = vpop.permute.xlu1 %5829 }
 0x60a   : > { %10493 = vset.pattern.permute.xlu1 %v17190_v55  ;;  %6881 = vperm.xlu0 %10609, %v15262_v20  }
 0x60b   : > { %6313 = vperm.xlu1 %10493, %v17849_v2   ;;  %v6522_v2 = vadd.f32 %v6481_v46, %v6276_v25  ;;  %v5291_v46 = vadd.f32 %v5250_v22, %v5045_v9  ;;  %v5742_v25 = vmul.f32 %v15048_v39, %v17577_v36  ;;  %v17878_v39 = vld [vmem:[#allocation15_spill] sm:$0xff]  ;;  %v15310_v9 = vld [vmem:[%s17080_s6 + $0x1f8] sm:$0xff] }
 0x60e   : > { %v6330_v13 = vpop.permute.xlu1 %6329  ;;  %6949 = vperm.xlu0 %10609, %v15276_v52  }
 0x60f   : > { %10494 = vset.pattern.permute.xlu1 %v17184_v30 }
 0x610   : > { %6563 = vperm.xlu1 %10494, %v10728_v32   ;;  %v15232_v32 = vld [vmem:[%s17080_s6 + $0x218] sm:$0xff] }
 0x613   : > { %v6580_v29 = vpop.permute.xlu1 %6579 }
 0x614   : > { %v6727_v14 = vmul.f32 %v6580_v29, %v12032_v34  ;;  %10495 = vset.pattern.permute.xlu1 %v17655_v57 }
 0x615   : > { %4968 = vperm.xlu1 %10495, %v15232_v32  }
 0x616   : > { %v6768_v58 = vadd.f32 %v6727_v14, %v6522_v2  ;;  %v5537_v2 = vadd.f32 %v5496_v23, %v5291_v46  ;;  %v5988_v14 = vmul.f32 %v15121_v35, %v11991_v8  ;;  %v15298_v35 = vld [vmem:[%s17080_s6 + $0x1c8] sm:$0xff]  ;;  %v6972_v23 = vmul.f32 %v14930_v44, %v6822_v31  ;;  %v15319_v46 = vld [vmem:[%s17080_s6 + $0x210] sm:$0xff]  ;;  %v17880_v31 = vld [vmem:[#allocation22_spill] sm:$0xff] }
 0x617   : > { %17879 = vst [vmem:[#allocation114_spill] sm:$0xff] %v15298_v35 }
 0x618   : > { %v7014_v19 = vadd.f32 %v6973_v27, %v6768_v58  ;;  %v15241_v49 = vpop.permute.xlu1 %4988  ;;  %v15289_v27 = vld [vmem:[%s17080_s6 + $0x260] sm:$0xff]  ;;  %v5783_v58 = vadd.f32 %v5742_v25, %v5537_v2  ;;  %v15325_v2 = vld [vmem:[%s17080_s6 + $0x1f0] sm:$0xff] }
 0x619   : > { %10496 = vset.pattern.permute.xlu1 %v17659_v54  ;;  %17877 = vst [vmem:[#allocation67_spill] sm:$0xff] %v15289_v27  ;;  %6945 = vperm.xlu0 %10609, %v15289_v27  }
 0x61a   : > { %v7055_v24 = vadd.f32 %v15026_v63, %v7014_v19  ;;  %5187 = vperm.xlu1 %10496, %v15232_v32   ;;  %v6234_v19 = vmul.f32 %v17878_v39, %v12007_v60 }
 0x61c   : > { %vm7096_vm8 = vcmp.gt.f32.partialorder %v7055_v24, 0.0  ;;  %v7137_v26 = vmul.f32 0.01, %v7055_v24 }
 0x61d   : > { %v15252_v12 = vpop.permute.xlu1 %5203  ;;  %6869 = vperm.xlu0 %10609, %v15298_v35  }
 0x61e   : > { %10497 = vset.pattern.permute.xlu1 %v17672_v1  ;;  %v7178_v42 = vsel %vm7096_vm8, %v7055_v24, %v7137_v26  ;;  %v6029_v24 = vadd.f32 %v5988_v14, %v5783_v58 }
 0x61f   : > { %5687 = vperm.xlu1 %10497, %v15142_v45   ;;  %7238 = vmatpush1.msra.mxu1 %v7178_v42  ;;  %v6480_v42 = vmul.f32 %v6330_v13, %v12025_v10 }
 0x620   : > { %7239 = vmatprep.subr.mxu1 %v17853_v11  ;;  %v6275_v22 = vadd.f32 %v6234_v19, %v6029_v24  ;;  %v15336_v19 = vld [vmem:[%s17080_s6 + $0x1e8] sm:$0xff] }
 0x621   : > { %10619 = vset.pattern.permute.xlu0 %v17184_v30 }
 0x622   : > { %v15267_v15 = vpop.permute.xlu1 %5575  ;;  %6647 = vperm.xlu0 %10619, %v15310_v9   ;;  %v6521_v18 = vadd.f32 %v6480_v42, %v6275_v22  ;;  %v5249_v22 = vmul.f32 %v17880_v31, %v11947_v6 }
 0x623   : > { %10498 = vset.pattern.permute.xlu1 %v17705_v47 }
 0x624   : > { %5937 = vperm.xlu1 %10498, %v15095_v53  }
 0x626   : > { %6643 = vperm.xlu0 %10619, %v15325_v2  }
 0x627   : > { %v15281_v29 = vpop.permute.xlu1 %5825 }
 0x628   : > { %10499 = vset.pattern.permute.xlu1 %v17190_v55 }
 0x629   : > { %6437 = vperm.xlu1 %10499, %v17857_v43   ;;  %v10737_v43 = vld [vmem:[%s17080_s6 + $0x148] sm:$0xff] }
 0x62a   : > { %6639 = vperm.xlu0 %10619, %v15336_v19  }
 0x62c   : > { %v6326_v26 = vpop.permute.xlu1 %6325 }
 0x62d   : > { %10500 = vset.pattern.permute.xlu1 %v17184_v30 }
 0x62e   : > { %6559 = vperm.xlu1 %10500, %v10737_v43   ;;  %6635 = vperm.xlu0 %10619, %v15262_v20  }
 0x631   : > { %v6576_v16 = vpop.permute.xlu1 %6575 }
 0x632   : > { %v6726_v13 = vmul.f32 %v6576_v16, %v12032_v34  ;;  %10501 = vset.pattern.permute.xlu1 %v17655_v57  ;;  %v17881_v16 = vld [vmem:[#allocation73_spill] sm:$0xff] }
 0x633   : > { %4963 = vperm.xlu1 %10501, %v15319_v46  }
 0x634   : > { %v6767_v25 = vadd.f32 %v6726_v13, %v6521_v18  ;;  %v5044_v18 = vmul.f32 %v17881_v16, %v11961_v5  ;;  %v5987_v16 = vmul.f32 %v15167_v38, %v11991_v8  ;;  %v10743_v38 = vld [vmem:[%s17080_s6 + $0x240] sm:$0xff] }
 0x636   : > { %v7013_v14 = vadd.f32 %v6972_v23, %v6767_v25  ;;  %v15328_v58 = vpop.permute.xlu1 %4983  ;;  %v17882_v23 = vld [vmem:[#allocation186_spill] sm:$0xff] }
 0x637   : > { %10502 = vset.pattern.permute.xlu1 %v17659_v54  ;;  %v5495_v25 = vmul.f32 %v17882_v23, %v11965_v17 }
 0x638   : > { %v7054_v39 = vadd.f32 %v15026_v63, %v7013_v14  ;;  %5183 = vperm.xlu1 %10502, %v15319_v46   ;;  %v5290_v14 = vadd.f32 %v5249_v22, %v5044_v18  ;;  %v17884_v18 = vld [vmem:[#allocation103_spill] sm:$0xff] }
 0x639   : > { %v6233_v23 = vmul.f32 %v17884_v18, %v12007_v60 }
 0x63a   : > { %vm7095_vm10 = vcmp.gt.f32.partialorder %v7054_v39, 0.0  ;;  %v7136_v24 = vmul.f32 0.01, %v7054_v39  ;;  %v5536_v31 = vadd.f32 %v5495_v25, %v5290_v14  ;;  %v6818_v25 = vpop.permute.xlu0 %6817 }
 0x63b   : > { %v15339_v42 = vpop.permute.xlu1 %5199 }
 0x63c   : > { %10503 = vset.pattern.permute.xlu1 %v17672_v1  ;;  %v7177_v43 = vsel %vm7095_vm10, %v7054_v39, %v7136_v24  ;;  %v15358_v39 = vld [vmem:[%s17080_s6 + $0x1d0] sm:$0xff]  ;;  %v5741_v24 = vmul.f32 %v15113_v62, %v17577_v36  ;;  %v6479_v62 = vmul.f32 %v6326_v26, %v12025_v10 }
 0x63d   : > { %5683 = vperm.xlu1 %10503, %v15185_v59   ;;  %7240 = vmatpush1.msra.mxu1 %v7177_v43  ;;  %17883 = vst [vmem:[#allocation69_spill] sm:$0xff] %v15358_v39 }
 0x63e   : > { %7241 = vmatprep.subr.mxu1 %v17853_v11  ;;  %6627 = vperm.xlu0 %10619, %v15358_v39   ;;  %v5782_v22 = vadd.f32 %v5741_v24, %v5536_v31  ;;  %v6971_v31 = vmul.f32 %v14930_v44, %v6818_v25 }
 0x640   : > { %v15349_v13 = vpop.permute.xlu1 %5699  ;;  %v6028_v39 = vadd.f32 %v5987_v16, %v5782_v22  ;;  %v15383_v16 = vld [vmem:[%s17080_s6 + $0x208] sm:$0xff] }
 0x641   : > { %10504 = vset.pattern.permute.xlu1 %v17705_v47 }
 0x642   : > { %5933 = vperm.xlu1 %10504, %v15142_v45   ;;  %6623 = vperm.xlu0 %10619, %v15298_v35   ;;  %v6274_v14 = vadd.f32 %v6233_v23, %v6028_v39 }
 0x644   : > { %v6520_v52 = vadd.f32 %v6479_v62, %v6274_v14  ;;  %v17886_v14 = vld [vmem:[#allocation122_spill] sm:$0xff] }
 0x645   : > { %v15363_v43 = vpop.permute.xlu1 %5821 }
 0x646   : > { %10505 = vset.pattern.permute.xlu1 %v17190_v55 }
 0x647   : > { %6433 = vperm.xlu1 %10505, %v14991_v41  }
 0x64a   : > { %v6322_v27 = vpop.permute.xlu1 %6321 }
 0x64b   : > { %10506 = vset.pattern.permute.xlu1 %v17184_v30 }
 0x64c   : > { %6683 = vperm.xlu1 %10506, %v10743_v38   ;;  %v5043_v38 = vmul.f32 %v15007_v50, %v11961_v5 }
 0x64f   : > { %v6572_v35 = vpop.permute.xlu1 %6571 }
 0x650   : > { %v6725_v24 = vmul.f32 %v6572_v35, %v12032_v34  ;;  %10507 = vset.pattern.permute.xlu1 %v17655_v57 }
 0x651   : > { %4958 = vperm.xlu1 %10507, %v15383_v16  }
 0x652   : > { %v6766_v26 = vadd.f32 %v6725_v24, %v6520_v52  ;;  %v5248_v52 = vmul.f32 %v15031_v7, %v11947_v6  ;;  %v5494_v24 = vmul.f32 %v17886_v14, %v11965_v17  ;;  %v6814_v14 = vpop.permute.xlu0 %6813 }
 0x654   : > { %v7012_v22 = vadd.f32 %v6971_v31, %v6766_v26  ;;  %v15386_v18 = vpop.permute.xlu1 %4978  ;;  %v5289_v31 = vadd.f32 %v5248_v52, %v5043_v38  ;;  %v5740_v26 = vmul.f32 %v15159_v0, %v17577_v36  ;;  %v6478_v0 = vmul.f32 %v6322_v27, %v12025_v10 }
 0x655   : > { %17885 = vst [vmem:[#allocation158_spill] sm:$0xff] %v15386_v18  ;;  %10508 = vset.pattern.permute.xlu1 %v17659_v54 }
 0x656   : > { %v7053_v39 = vadd.f32 %v15026_v63, %v7012_v22  ;;  %5179 = vperm.xlu1 %10508, %v15383_v16   ;;  %v5535_v7 = vadd.f32 %v5494_v24, %v5289_v31 }
 0x658   : > { %vm7094_vm11 = vcmp.gt.f32.partialorder %v7053_v39, 0.0  ;;  %v7135_v35 = vmul.f32 0.01, %v7053_v39  ;;  %v5781_v50 = vadd.f32 %v5740_v26, %v5535_v7  ;;  %v6970_v26 = vmul.f32 %v14930_v44, %v6814_v14  ;;  %v15425_v7 = vld [vmem:[%s17080_s6 + $0x200] sm:$0xff] }
 0x659   : > { %v15391_v23 = vpop.permute.xlu1 %5195 }
 0x65a   : > { %10509 = vset.pattern.permute.xlu1 %v17672_v1  ;;  %v7176_v62 = vsel %vm7094_vm11, %v7053_v39, %v7135_v35  ;;  %v5986_v39 = vmul.f32 %v15210_v33, %v11991_v8  ;;  %v17887_v35 = vld [vmem:[#allocation224_spill] sm:$0xff] }
 0x65b   : > { %5679 = vperm.xlu1 %10509, %v15232_v32   ;;  %7242 = vmatpush1.msra.mxu1 %v7176_v62  ;;  %v6232_v62 = vmul.f32 %v17887_v35, %v12007_v60 }
 0x65c   : > { %7243 = vmatprep.subr.mxu1 %v17853_v11  ;;  %v6027_v52 = vadd.f32 %v5986_v39, %v5781_v50 }
 0x65e   : > { %v15400_v25 = vpop.permute.xlu1 %5695  ;;  %v6273_v24 = vadd.f32 %v6232_v62, %v6027_v52 }
 0x65f   : > { %10510 = vset.pattern.permute.xlu1 %v17705_v47 }
 0x660   : > { %5929 = vperm.xlu1 %10510, %v15185_v59   ;;  %v6519_v33 = vadd.f32 %v6478_v0, %v6273_v24  ;;  %v5042_v0 = vmul.f32 %v15099_v40, %v11961_v5  ;;  %v17888_v24 = vld [vmem:[#allocation143_spill] sm:$0xff] }
 0x663   : > { %v15408_v22 = vpop.permute.xlu1 %5945 }
 0x664   : > { %10511 = vset.pattern.permute.xlu1 %v17190_v55 }
 0x665   : > { %6429 = vperm.xlu1 %10511, %v15095_v53  }
 0x668   : > { %v6318_v38 = vpop.permute.xlu1 %6317 }
 0x669   : > { %10512 = vset.pattern.permute.xlu1 %v17184_v30 }
 0x66a   : > { %6679 = vperm.xlu1 %10512, %v14991_v41  }
 0x66d   : > { %v6568_v31 = vpop.permute.xlu1 %6567 }
 0x66e   : > { %v6724_v18 = vmul.f32 %v6568_v31, %v12032_v34  ;;  %10513 = vset.pattern.permute.xlu1 %v17655_v57  ;;  %v5493_v31 = vmul.f32 %v17888_v24, %v11965_v17 }
 0x66f   : > { %4953 = vperm.xlu1 %10513, %v15425_v7  }
 0x670   : > { %v6765_v27 = vadd.f32 %v6724_v18, %v6519_v33  ;;  %v5247_v18 = vmul.f32 %v15104_v3, %v11947_v6 }
 0x672   : > { %v7011_v39 = vadd.f32 %v6970_v26, %v6765_v27  ;;  %v15428_v41 = vpop.permute.xlu1 %4973  ;;  %v5288_v33 = vadd.f32 %v5247_v18, %v5042_v0  ;;  %v5739_v26 = vmul.f32 %v15202_v28, %v17577_v36  ;;  %v6477_v28 = vmul.f32 %v6318_v38, %v12025_v10  ;;  %v6810_v0 = vpop.permute.xlu0 %6809 }
 0x673   : > { %10514 = vset.pattern.permute.xlu1 %v17659_v54 }
 0x674   : > { %v7052_v50 = vadd.f32 %v15026_v63, %v7011_v39  ;;  %5175 = vperm.xlu1 %10514, %v15425_v7   ;;  %v5534_v3 = vadd.f32 %v5493_v31, %v5288_v33  ;;  %v5985_v39 = vmul.f32 %v15281_v29, %v11991_v8 }
 0x676   : > { %vm7093_vm13 = vcmp.gt.f32.partialorder %v7052_v50, 0.0  ;;  %v7134_v35 = vmul.f32 0.01, %v7052_v50  ;;  %v5780_v40 = vadd.f32 %v5739_v26, %v5534_v3  ;;  %v6969_v26 = vmul.f32 %v14930_v44, %v6810_v0 }
 0x677   : > { %v15433_v62 = vpop.permute.xlu1 %5191  ;;  %v5246_v44 = vmul.f32 %v15150_v37, %v11947_v6  ;;  %v17892_v0 = vmov 2  }
 0x678   : > { %10515 = vset.pattern.permute.xlu1 %v17672_v1  ;;  %v7175_v52 = vsel %vm7093_vm13, %v7052_v50, %v7134_v35  ;;  %v17889_v50 = vld [vmem:[#allocation89_spill] sm:$0xff] }
 0x679   : > { %5675 = vperm.xlu1 %10515, %v15319_v46   ;;  %7244 = vmatpush1.msra.mxu1 %v7175_v52  ;;  %v6231_v35 = vmul.f32 %v17889_v50, %v12007_v60  ;;  %v6026_v52 = vadd.f32 %v5985_v39, %v5780_v40 }
 0x67a   : > { %7245 = vmatprep.subr.mxu1 %v17853_v11 }
 0x67b   : > { %v6272_v24 = vadd.f32 %v6231_v35, %v6026_v52 }
 0x67c   : > { %v15442_v14 = vpop.permute.xlu1 %5691 }
 0x67d   : > { %10516 = vset.pattern.permute.xlu1 %v17705_v47  ;;  %v6518_v29 = vadd.f32 %v6477_v28, %v6272_v24  ;;  %v5041_v28 = vmul.f32 %v15145_v56, %v11961_v5  ;;  %v5984_v56 = vmul.f32 %v15363_v43, %v11991_v8 }
 0x67e   : > { %5925 = vperm.xlu1 %10516, %v15232_v32  }
 0x681   : > { %v15450_v27 = vpop.permute.xlu1 %5941 }
 0x682   : > { %10517 = vset.pattern.permute.xlu1 %v17190_v55 }
 0x683   : > { %6425 = vperm.xlu1 %10517, %v15142_v45  }
 0x686   : > { %v6314_v18 = vpop.permute.xlu1 %6313 }
 0x687   : > { %10518 = vset.pattern.permute.xlu1 %v17184_v30 }
 0x688   : > { %6675 = vperm.xlu1 %10518, %v15095_v53  }
 0x68b   : > { %v6564_v31 = vpop.permute.xlu1 %6563 }
 0x68c   : > { %v6723_v33 = vmul.f32 %v6564_v31, %v12032_v34  ;;  %10519 = vset.pattern.permute.xlu1 %v17655_v57  ;;  %v17893_v31 = vld [vmem:[#allocation124_spill] sm:$0xff] }
 0x68d   : > { %4948 = vperm.xlu1 %10519, %v15310_v9  }
 0x68e   : > { %v6764_v3 = vadd.f32 %v6723_v33, %v6518_v29  ;;  %v5492_v29 = vmul.f32 %v17893_v31, %v11965_v17  ;;  %v5287_v33 = vadd.f32 %v5246_v44, %v5041_v28  ;;  %v17895_v44 = vmov 5   ;;  %v6806_v31 = vpop.permute.xlu0 %6805 }
 0x690   : > { %v7010_v39 = vadd.f32 %v6969_v26, %v6764_v3  ;;  %v15465_v40 = vpop.permute.xlu1 %4968  ;;  %v5738_v26 = vmul.f32 %v15267_v15, %v17577_v36  ;;  %v5533_v3 = vadd.f32 %v5492_v29, %v5287_v33  ;;  %v6476_v15 = vmul.f32 %v6314_v18, %v12025_v10 }
 0x691   : > { %17890 = vst [vmem:[#allocation47_spill] sm:$0xff] %v15465_v40  ;;  %5038 = vperm.xlu1 %10519, %v15223_v51  }
 0x692   : > { %v7051_v38 = vadd.f32 %v15026_v63, %v7010_v39  ;;  %v5779_v39 = vadd.f32 %v5738_v26, %v5533_v3  ;;  %v15501_v26 = vld [vmem:[%s11935_s4 + $0x8] ss:$0 sm:$0xff] }
 0x693   : > { %v6968_v3 = vmul.f32 %v15501_v26, %v6806_v31 }
 0x694   : > { %vm7092_vm15 = vcmp.gt.f32.partialorder %v7051_v38, 0.0  ;;  %v7133_v50 = vmul.f32 0.01, %v7051_v38 }
 0x695   : > { %10520 = vset.pattern.permute.xlu1 %v17659_v54  ;;  %v15470_v35 = vpop.permute.xlu1 %5187 }
 0x696   : > { %17891 = vst [vmem:[#allocation13_spill] sm:$0xff] %v15470_v35  ;;  %5243 = vperm.xlu1 %10520, %v15223_v51   ;;  %v7174_v52 = vsel %vm7092_vm15, %v7051_v38, %v7133_v50  ;;  %v17894_v38 = vld [vmem:[#allocation94_spill] sm:$0xff] }
 0x697   : > { %7246 = vmatpush1.msra.mxu1 %v7174_v52  ;;  %v6230_v50 = vmul.f32 %v17894_v38, %v12007_v60  ;;  %v6025_v52 = vadd.f32 %v5984_v56, %v5779_v39  ;;  %v17896_v38 = vmov 8  }
 0x698   : > { %7247 = vmatprep.subr.mxu1 %v17853_v11 }
 0x699   : > { %v6271_v29 = vadd.f32 %v6230_v50, %v6025_v52 }
 0x69a   : > { %10521 = vset.pattern.permute.xlu1 %v17892_v0  ;;  %v15479_v24 = vpop.permute.xlu1 %5687 }
 0x69b   : > { %5421 = vperm.xlu1 %10521, %v15425_v7   ;;  %v6517_v33 = vadd.f32 %v6476_v15, %v6271_v29  ;;  %v17897_v29 = vld [vmem:[#allocation126_spill] sm:$0xff] }
 0x69f   : > { %10522 = vset.pattern.permute.xlu1 %v17705_v47  ;;  %v15487_v37 = vpop.permute.xlu1 %5937 }
 0x6a0   : > { %5921 = vperm.xlu1 %10522, %v15319_v46  }
 0x6a4   : > { %10523 = vset.pattern.permute.xlu1 %v17895_v44  ;;  %v6438_v28 = vpop.permute.xlu1 %6437 }
 0x6a5   : > { %6171 = vperm.xlu1 %10523, %v15232_v32  }
 0x6a9   : > { %10524 = vset.pattern.permute.xlu1 %v17184_v30  ;;  %v6560_v43 = vpop.permute.xlu1 %6559 }
 0x6aa   : > { %v6722_v40 = vmul.f32 %v6560_v43, %v12032_v34  ;;  %6671 = vperm.xlu1 %10524, %v15142_v45   ;;  %v5523_v43 = vmul.f32 %v17897_v29, %v11965_v17 }
 0x6ac   : > { %v6763_v56 = vadd.f32 %v6722_v40, %v6517_v33  ;;  %v5277_v40 = vmul.f32 %v15193_v4, %v11947_v6 }
 0x6ae   : > { %v7009_v39 = vadd.f32 %v6968_v3, %v6763_v56  ;;  %10525 = vset.pattern.permute.xlu1 %v17896_v38  ;;  %v15505_v35 = vpop.permute.xlu1 %4963  ;;  %v5769_v3 = vmul.f32 %v15349_v13, %v17577_v36  ;;  %v6507_v13 = vmul.f32 %v6438_v28, %v12025_v10 }
 0x6af   : > { %6921 = vperm.xlu1 %10525, %v15095_v53   ;;  %v5072_v53 = vmul.f32 %v15188_v61, %v11961_v5  ;;  %v6015_v61 = vmul.f32 %v15408_v22, %v11991_v8 }
 0x6b0   : > { %v7050_v18 = vadd.f32 %v15026_v63, %v7009_v39 }
 0x6b1   : > { %v5318_v33 = vadd.f32 %v5277_v40, %v5072_v53  ;;  %v6930_v53 = vpop.permute.xlu0 %6929 }
 0x6b2   : > { %vm7091_vm0 = vcmp.gt.f32.partialorder %v7050_v18, 0.0  ;;  %v7132_v50 = vmul.f32 0.01, %v7050_v18 }
 0x6b3   : > { %10526 = vset.pattern.permute.xlu1 %v17655_v57  ;;  %v15510_v52 = vpop.permute.xlu1 %5183  ;;  %v5564_v56 = vadd.f32 %v5523_v43, %v5318_v33 }
 0x6b4   : > { %5033 = vperm.xlu1 %10526, %v15238_v48   ;;  %v7173_v15 = vsel %vm7091_vm0, %v7050_v18, %v7132_v50  ;;  %v17898_v18 = vld [vmem:[#allocation75_spill] sm:$0xff] }
 0x6b5   : > { %7248 = vmatpush1.msra.mxu1 %v7173_v15  ;;  %v5810_v39 = vadd.f32 %v5769_v3, %v5564_v56  ;;  %v6261_v50 = vmul.f32 %v17898_v18, %v12007_v60  ;;  %v6999_v3 = vmul.f32 %v15501_v26, %v6930_v53 }
 0x6b6   : > { %7249 = vmatprep.subr.mxu1 %v17853_v11 }
 0x6b7   : > { %v6056_v15 = vadd.f32 %v6015_v61, %v5810_v39 }
 0x6b8   : > { %10527 = vset.pattern.permute.xlu1 %v17659_v54  ;;  %v15519_v31 = vpop.permute.xlu1 %5683 }
 0x6b9   : > { %5167 = vperm.xlu1 %10527, %v15325_v2   ;;  %v6302_v29 = vadd.f32 %v6261_v50, %v6056_v15 }
 0x6bb   : > { %v6548_v22 = vadd.f32 %v6507_v13, %v6302_v29  ;;  %v5276_v13 = vmul.f32 %v15252_v12, %v11947_v6 }
 0x6bd   : > { %10528 = vset.pattern.permute.xlu1 %v17892_v0  ;;  %v15527_v4 = vpop.permute.xlu1 %5933 }
 0x6be   : > { %5417 = vperm.xlu1 %10528, %v15310_v9  }
 0x6c2   : > { %5489 = vperm.xlu1 %10528, %v15223_v51   ;;  %v6434_v40 = vpop.permute.xlu1 %6433 }
 0x6c6   : > { %10529 = vset.pattern.permute.xlu1 %v17705_v47 }
 0x6c7   : > { %5917 = vperm.xlu1 %10529, %v15383_v16   ;;  %v6684_v43 = vpop.permute.xlu1 %6683 }
 0x6c8   : > { %v6753_v33 = vmul.f32 %v6684_v43, %v12032_v34 }
 0x6ca   : > { %v6794_v56 = vadd.f32 %v6753_v33, %v6548_v22  ;;  %v5768_v22 = vmul.f32 %v15400_v25, %v17577_v36 }
 0x6cb   : > { %10530 = vset.pattern.permute.xlu1 %v17895_v44 }
 0x6cc   : > { %v7040_v61 = vadd.f32 %v6999_v3, %v6794_v56  ;;  %6167 = vperm.xlu1 %10530, %v15319_v46   ;;  %v15542_v39 = vpop.permute.xlu1 %4958  ;;  %v17900_v3 = vld [vmem:[#allocation76_spill] sm:$0xff] }
 0x6cd   : > { %v6260_v56 = vmul.f32 %v17900_v3, %v12007_v60 }
 0x6ce   : > { %v7081_v28 = vadd.f32 %v15026_v63, %v7040_v61  ;;  %v5071_v63 = vmul.f32 %v15241_v49, %v11961_v5  ;;  %v6014_v49 = vmul.f32 %v15450_v27, %v11991_v8 }
 0x6d0   : > { %10531 = vset.pattern.permute.xlu1 %v17184_v30  ;;  %vm7122_vm1 = vcmp.gt.f32.partialorder %v7081_v28, 0.0  ;;  %v7163_v18 = vmul.f32 0.01, %v7081_v28  ;;  %v5317_v43 = vadd.f32 %v5276_v13, %v5071_v63 }
 0x6d1   : > { %6667 = vperm.xlu1 %10531, %v15185_v59   ;;  %v15547_v50 = vpop.permute.xlu1 %5179  ;;  %v17899_v59 = vld [vmem:[#allocation130_spill] sm:$0xff] }
 0x6d2   : > { %v7204_v15 = vsel %vm7122_vm1, %v7081_v28, %v7163_v18  ;;  %v5522_v29 = vmul.f32 %v17899_v59, %v11965_v17  ;;  %v6506_v28 = vmul.f32 %v6434_v40, %v12025_v10  ;;  %v6926_v18 = vpop.permute.xlu0 %6925 }
 0x6d3   : > { %7250 = vmatpush2.msra.mxu1 %v7204_v15  ;;  %v6998_v59 = vmul.f32 %v15501_v26, %v6926_v18  ;;  %v1178_v18 = vld [vmem:[%s17654_s0 + $0x188] sm:$0xff] }
 0x6d4   : > { %7251 = vmatprep.subr.mxu1 %v17853_v11  ;;  %v5563_v33 = vadd.f32 %v5522_v29, %v5317_v43  ;;  %3849 = vmatprep.mubr.f32.mxu0 %v1178_v18  ;;  %v5275_v18 = vmul.f32 %v15339_v42, %v11947_v6  ;;  %v6013_v42 = vmul.f32 %v15487_v37, %v11991_v8 }
 0x6d5   : > { %10532 = vset.pattern.permute.xlu1 %v17896_v38 }
 0x6d6   : > { %6917 = vperm.xlu1 %10532, %v15142_v45   ;;  %v15556_v53 = vpop.permute.xlu1 %5679  ;;  %v5809_v45 = vadd.f32 %v5768_v22, %v5563_v33  ;;  %v15583_v33 = vld [vmem:[%s12057_s8] ss:$0 sm:$0xff] }
 0x6d8   : > { %v6055_v61 = vadd.f32 %v6014_v49, %v5809_v45 }
 0x6da   : > { %10533 = vset.pattern.permute.xlu1 %v17655_v57  ;;  %v6301_v15 = vadd.f32 %v6260_v56, %v6055_v61 }
 0x6db   : > { %5028 = vperm.xlu1 %10533, %v15249_v21   ;;  %v15564_v12 = vpop.permute.xlu1 %5929 }
 0x6dc   : > { %v6547_v13 = vadd.f32 %v6506_v28, %v6301_v15  ;;  %v1177_v15 = vld [vmem:[%s17654_s0 + $0x180] sm:$0xff] }
 0x6dd   : > { %3850 = vmatmul.mubr.f32.gmra.mxu0 %v1177_v15  ;;  %v5070_v15 = vmul.f32 %v15328_v58, %v11961_v5 }
 0x6df   : > { %10534 = vset.pattern.permute.xlu1 %v17659_v54 }
 0x6e0   : > { %5163 = vperm.xlu1 %10534, %v15336_v19   ;;  %v15572_v25 = vpop.permute.xlu1 %6429 }
 0x6e4   : > { %10535 = vset.pattern.permute.xlu1 %v17892_v0 }
 0x6e5   : > { %5413 = vperm.xlu1 %10535, %v15325_v2   ;;  %v6680_v27 = vpop.permute.xlu1 %6679 }
 0x6e6   : > { %v6752_v63 = vmul.f32 %v6680_v27, %v12032_v34 }
 0x6e8   : > { %v6793_v29 = vadd.f32 %v6752_v63, %v6547_v13  ;;  %v1181_v13 = vld [vmem:[%s17654_s0 + $0x1a0] sm:$0xff]  ;;  %v15617_v63 = vld [vmem:[%s17080_s6 + $0x270] sm:$0xff] }
 0x6e9   : > { %5485 = vperm.xlu1 %10535, %v15238_v48   ;;  %3854 = vmatprep.mubr.f32.mxu0 %v1181_v13  ;;  %v17907_v13 = vld [vmem:[#allocation205_spill] sm:$0xff] }
 0x6ea   : > { %v7039_v43 = vadd.f32 %v6998_v59, %v6793_v29  ;;  %v15580_v22 = vpop.permute.xlu1 %4953  ;;  %v1180_v59 = vld [vmem:[%s17654_s0 + $0x198] sm:$0xff] }
 0x6eb   : > { %17901 = vst [vmem:[#allocation87_spill] sm:$0xff] %v15580_v22  ;;  %3855 = vmatmul.mubr.f32.gmra.mxu0 %v1180_v59  ;;  %v5521_v59 = vmul.f32 %v17907_v13, %v11965_v17 }
 0x6ec   : > { %v7080_v40 = vadd.f32 %v15583_v33, %v7039_v43  ;;  %v17903_v43 = vld [vmem:[#allocation35_spill] sm:$0xff] }
 0x6ed   : > { %10536 = vset.pattern.permute.xlu1 %v17672_v1  ;;  %9882 = vmatprep.mubr.msk.f32.mxu0 %vm4015_vm12, %v17903_v43  ;;  %v5316_v43 = vadd.f32 %v5275_v18, %v5070_v15  ;;  %v17908_v18 = vld [vmem:[#allocation240_spill] sm:$0xff] }
 0x6ee   : > { %5735 = vperm.xlu1 %10536, %v15223_v51   ;;  %vm7121_vm2 = vcmp.gt.f32.partialorder %v7080_v40, 0.0  ;;  %v7162_v49 = vmul.f32 0.01, %v7080_v40  ;;  %v6259_v15 = vmul.f32 %v17908_v18, %v12007_v60 }
 0x6ef   : > { %v15588_v45 = vpop.permute.xlu1 %5175 }
 0x6f0   : > { %v7203_v3 = vsel %vm7121_vm2, %v7080_v40, %v7162_v49 }
 0x6f1   : > { %7252 = vmatpush2.msra.mxu1 %v7203_v3 }
 0x6f2   : > { %10537 = vset.pattern.permute.xlu1 %v17705_v47  ;;  %7253 = vmatprep.subr.mxu1 %v17853_v11 }
 0x6f3   : > { %5913 = vperm.xlu1 %10537, %v15425_v7  }
 0x6f4   : > { %v15593_v56 = vpop.permute.xlu1 %5675 }
 0x6f7   : > { %10538 = vset.pattern.permute.xlu1 %v17190_v55 }
 0x6f8   : > { %6413 = vperm.xlu1 %10538, %v15319_v46  }
 0x6f9   : > { %v15597_v61 = vpop.permute.xlu1 %5925 }
 0x6fc   : > { %10539 = vset.pattern.permute.xlu1 %v17184_v30 }
 0x6fd   : > { %6663 = vperm.xlu1 %10539, %v15232_v32  }
 0x6fe   : > { %v15601_v28 = vpop.permute.xlu1 %6425 }
 0x701   : > { %10540 = vset.pattern.permute.xlu1 %v17655_v57 }
 0x702   : > { %4933 = vperm.xlu1 %10540, %v15262_v20  }
 0x703   : > { %v6676_v27 = vpop.permute.xlu1 %6675 }
 0x706   : > { %5023 = vperm.xlu1 %10540, %v15617_v63  }
 0x708   : > { %v15623_v29 = vpop.permute.xlu1 %4948 }
 0x709   : > { %17902 = vst [vmem:[#allocation127_spill] sm:$0xff] %v15623_v29 }
 0x70a   : > { %10541 = vset.pattern.permute.xlu1 %v17659_v54 }
 0x70b   : > { %5231 = vperm.xlu1 %10541, %v15617_v63  }
 0x70c   : > { %v15629_v40 = vpop.permute.xlu1 %5038 }
 0x70d   : > { %17904 = vst [vmem:[#allocation159_spill] sm:$0xff] %v15629_v40  ;;  %v5767_v40 = vmul.f32 %v15442_v14, %v17577_v36  ;;  %v6505_v14 = vmul.f32 %v15572_v25, %v12025_v10 }
 0x70f   : > { %10542 = vset.pattern.permute.xlu1 %v17892_v0 }
 0x710   : > { %5409 = vperm.xlu1 %10542, %v15336_v19  }
 0x711   : > { %v15633_v49 = vpop.permute.xlu1 %5243 }
 0x712   : > { %17905 = vst [vmem:[#allocation68_spill] sm:$0xff] %v15633_v49 }
 0x714   : > { %10543 = vset.pattern.permute.xlu1 %v17672_v1 }
 0x715   : > { %5659 = vperm.xlu1 %10543, %v15325_v2  }
 0x716   : > { %v15637_v3 = vpop.permute.xlu1 %5421 }
 0x717   : > { %17906 = vst [vmem:[#allocation45_spill] sm:$0xff] %v15637_v3  ;;  %v5562_v3 = vadd.f32 %v5521_v59, %v5316_v43  ;;  %v6751_v43 = vmul.f32 %v6676_v27, %v12032_v34 }
 0x719   : > { %5731 = vperm.xlu1 %10543, %v15238_v48   ;;  %v5808_v22 = vadd.f32 %v5767_v40, %v5562_v3 }
 0x71b   : > { %v15646_v29 = vpop.permute.xlu1 %5921  ;;  %v6054_v13 = vadd.f32 %v6013_v42, %v5808_v22 }
 0x71d   : > { %10544 = vset.pattern.permute.xlu1 %v17705_v47  ;;  %v6300_v59 = vadd.f32 %v6259_v15, %v6054_v13  ;;  %v17910_v15 = vld [vmem:[#allocation78_spill] sm:$0xff] }
 0x71e   : > { %5981 = vperm.xlu1 %10544, %v15223_v51  }
 0x71f   : > { %v6546_v37 = vadd.f32 %v6505_v14, %v6300_v59  ;;  %v5273_v59 = vmul.f32 %v15433_v62, %v11947_v6  ;;  %v5765_v62 = vmul.f32 %v15519_v31, %v17577_v36  ;;  %v17916_v31 = vld [vmem:[#allocation237_spill] sm:$0xff] }
 0x720   : > { %v15654_v58 = vpop.permute.xlu1 %6171 }
 0x721   : > { %v6792_v3 = vadd.f32 %v6751_v43, %v6546_v37  ;;  %v5068_v37 = vmul.f32 %v15428_v41, %v11961_v5 }
 0x722   : > { %10545 = vset.pattern.permute.xlu1 %v17895_v44 }
 0x723   : > { %6159 = vperm.xlu1 %10545, %v15425_v7  }
 0x725   : > { %v15662_v49 = vpop.permute.xlu1 %6671 }
 0x727   : > { %10546 = vset.pattern.permute.xlu1 %v17184_v30 }
 0x728   : > { %6659 = vperm.xlu1 %10546, %v15319_v46  }
 0x72a   : > { %v6922_v40 = vpop.permute.xlu1 %6921 }
 0x72b   : > { %v6997_v18 = vmul.f32 %v15501_v26, %v6922_v40  ;;  %v17913_v40 = vld [vmem:[#allocation149_spill] sm:$0xff] }
 0x72c   : > { %10547 = vset.pattern.permute.xlu1 %v17896_v38 }
 0x72d   : > { %v7038_v22 = vadd.f32 %v6997_v18, %v6792_v3  ;;  %6909 = vperm.xlu1 %10547, %v15232_v32   ;;  %v15682_v32 = vld [vmem:[%s17080_s6 + $0x1d8] sm:$0xff]  ;;  %v5519_v3 = vmul.f32 %v17913_v40, %v11965_v17  ;;  %v5314_v18 = vadd.f32 %v5273_v59, %v5068_v37  ;;  %v17915_v40 = vld [vmem:[#allocation146_spill] sm:$0xff] }
 0x72e   : > { %v5520_v59 = vmul.f32 %v17915_v40, %v11965_v17 }
 0x72f   : > { %v7079_v25 = vadd.f32 %v15583_v33, %v7038_v22  ;;  %v15671_v42 = vpop.permute.xlu1 %5033  ;;  %v5560_v41 = vadd.f32 %v5519_v3, %v5314_v18 }
 0x730   : > { %17909 = vst [vmem:[#allocation190_spill] sm:$0xff] %v15671_v42 }
 0x731   : > { %10548 = vset.pattern.permute.xlu1 %v17655_v57  ;;  %vm7120_vm3 = vcmp.gt.f32.partialorder %v7079_v25, 0.0  ;;  %v7161_v27 = vmul.f32 0.01, %v7079_v25  ;;  %v5806_v42 = vadd.f32 %v5765_v62, %v5560_v41  ;;  %v17917_v62 = vld [vmem:[#allocation181_spill] sm:$0xff] }
 0x732   : > { %5018 = vperm.xlu1 %10548, %v17910_v15  }
 0x733   : > { %v7202_v13 = vsel %vm7120_vm3, %v7079_v25, %v7161_v27  ;;  %v5274_v25 = vmul.f32 %v15391_v23, %v11947_v6  ;;  %v17914_v27 = vld [vmem:[#allocation158_spill] sm:$0xff]  ;;  %v5766_v23 = vmul.f32 %v15479_v24, %v17577_v36  ;;  %v17918_v24 = vld [vmem:[#allocation236_spill] sm:$0xff] }
 0x734   : > { %v15675_v14 = vpop.permute.xlu1 %5167  ;;  %7254 = vmatpush2.msra.mxu1 %v7202_v13  ;;  %v5069_v13 = vmul.f32 %v17914_v27, %v11961_v5  ;;  %v6257_v27 = vmul.f32 %v17916_v31, %v12007_v60  ;;  %v6258_v40 = vmul.f32 %v17918_v24, %v12007_v60 }
 0x735   : > { %17911 = vst [vmem:[#allocation234_spill] sm:$0xff] %v15675_v14  ;;  %7255 = vmatprep.subr.mxu1 %v17853_v11 }
 0x736   : > { %10549 = vset.pattern.permute.xlu1 %v17659_v54  ;;  %v5315_v37 = vadd.f32 %v5274_v25, %v5069_v13  ;;  %v6503_v13 = vmul.f32 %v17917_v62, %v12025_v10 }
 0x737   : > { %5155 = vperm.xlu1 %10549, %v15682_v32  }
 0x738   : > { %v5561_v3 = vadd.f32 %v5520_v59, %v5315_v37 }
 0x739   : > { %v15687_v43 = vpop.permute.xlu1 %5417 }
 0x73a   : > { %17912 = vst [vmem:[#allocation11_spill] sm:$0xff] %v15687_v43  ;;  %v5807_v25 = vadd.f32 %v5766_v23, %v5561_v3 }
 0x73b   : > { %10550 = vset.pattern.permute.xlu1 %v17892_v0 }
 0x73c   : > { %5405 = vperm.xlu1 %10550, %v15262_v20   ;;  %v6011_v20 = vmul.f32 %v15564_v12, %v11991_v8  ;;  %v6012_v12 = vmul.f32 %v15527_v4, %v11991_v8 }
 0x73d   : > { %v15695_v22 = vpop.permute.xlu1 %5489 }
 0x73e   : > { %v6052_v43 = vadd.f32 %v6011_v20, %v5806_v42  ;;  %v6053_v31 = vadd.f32 %v6012_v12, %v5807_v25  ;;  %v6504_v42 = vmul.f32 %v15601_v28, %v12025_v10 }
 0x740   : > { %5477 = vperm.xlu1 %10550, %v15617_v63   ;;  %v6298_v41 = vadd.f32 %v6257_v27, %v6052_v43  ;;  %v6299_v23 = vadd.f32 %v6258_v40, %v6053_v31  ;;  %v6750_v43 = vmul.f32 %v15662_v49, %v12032_v34 }
 0x742   : > { %v15708_v14 = vpop.permute.xlu1 %5917  ;;  %v6544_v20 = vadd.f32 %v6503_v13, %v6298_v41  ;;  %v6545_v3 = vadd.f32 %v6504_v42, %v6299_v23 }
 0x744   : > { %10551 = vset.pattern.permute.xlu1 %v17672_v1  ;;  %v6791_v62 = vadd.f32 %v6750_v43, %v6545_v3 }
 0x745   : > { %5727 = vperm.xlu1 %10551, %v15249_v21   ;;  %v6914_v21 = vpop.permute.xlu0 %6913 }
 0x746   : > { %v6995_v37 = vmul.f32 %v15501_v26, %v6914_v21 }
 0x747   : > { %v15718_v18 = vpop.permute.xlu1 %6167 }
 0x749   : > { %10552 = vset.pattern.permute.xlu1 %v17705_v47 }
 0x74a   : > { %5905 = vperm.xlu1 %10552, %v15325_v2  }
 0x74c   : > { %v6668_v4 = vpop.permute.xlu1 %6667 }
 0x74d   : > { %v6749_v59 = vmul.f32 %v6668_v4, %v12032_v34 }
 0x74e   : > { %10553 = vset.pattern.permute.xlu1 %v17895_v44 }
 0x74f   : > { %v6790_v27 = vadd.f32 %v6749_v59, %v6544_v20  ;;  %6155 = vperm.xlu1 %10553, %v15310_v9   ;;  %v17922_v59 = vld [vmem:[#allocation69_spill] sm:$0xff] }
 0x751   : > { %v7036_v12 = vadd.f32 %v6995_v37, %v6790_v27  ;;  %v6918_v25 = vpop.permute.xlu1 %6917  ;;  %v15772_v27 = vld [vmem:[%s17080_s6 + $0x248] sm:$0xff] }
 0x752   : > { %v6996_v28 = vmul.f32 %v15501_v26, %v6918_v25  ;;  %6687 = vperm.xlu0 %10619, %v15772_v27  }
 0x753   : > { %6227 = vperm.xlu1 %10553, %v15223_v51   ;;  %v7077_v13 = vadd.f32 %v15583_v33, %v7036_v12 }
 0x754   : > { %v7037_v41 = vadd.f32 %v6996_v28, %v6791_v62 }
 0x755   : > { %v7159_v49 = vmul.f32 0.01, %v7077_v13  ;;  %vm7118_vm5 = vcmp.gt.f32.partialorder %v7077_v13, 0.0 }
 0x756   : > { %v7078_v24 = vadd.f32 %v15583_v33, %v7037_v41  ;;  %v15738_v40 = vpop.permute.xlu1 %5028  ;;  %10621 = vset.pattern.permute.xlu0 %v17655_v57 }
 0x757   : > { %10554 = vset.pattern.permute.xlu1 %v17184_v30  ;;  %v7200_v42 = vsel %vm7118_vm5, %v7077_v13, %v7159_v49  ;;  %v17926_v13 = vld [vmem:[#allocation114_spill] sm:$0xff] }
 0x758   : > { %6655 = vperm.xlu1 %10554, %v15383_v16   ;;  %vm7119_vm4 = vcmp.gt.f32.partialorder %v7078_v24, 0.0  ;;  %v7160_v9 = vmul.f32 0.01, %v7078_v24  ;;  %v17921_v16 = vld [vmem:[#allocation67_spill] sm:$0xff] }
 0x75a   : > { %v7201_v31 = vsel %vm7119_vm4, %v7078_v24, %v7160_v9  ;;  %v17928_v9 = vld [vmem:[#allocation47_spill] sm:$0xff] }
 0x75b   : > { %v15742_v21 = vpop.permute.xlu1 %5163  ;;  %7256 = vmatpush2.msra.mxu1 %v7201_v31  ;;  %v5067_v49 = vmul.f32 %v17928_v9, %v11961_v5  ;;  %v17929_v31 = vld [vmem:[#allocation153_spill] sm:$0xff] }
 0x75c   : > { %17919 = vst [vmem:[#allocation85_spill] sm:$0xff] %v15742_v21  ;;  %10555 = vset.pattern.permute.xlu1 %v17896_v38  ;;  %7257 = vmatprep.subr.mxu1 %v17853_v11  ;;  %v6010_v21 = vmul.f32 %v15597_v61, %v11991_v8 }
 0x75d   : > { %6905 = vperm.xlu1 %10555, %v15319_v46   ;;  %7258 = vmatpush2.msra.mxu1 %v7200_v42  ;;  %v5518_v42 = vmul.f32 %v17929_v31, %v11965_v17 }
 0x75e   : > { %7259 = vmatprep.subr.mxu1 %v17853_v11 }
 0x760   : > { %v15748_v4 = vpop.permute.xlu1 %5413 }
 0x761   : > { %17920 = vst [vmem:[#allocation125_spill] sm:$0xff] %v15748_v4  ;;  %10556 = vset.pattern.permute.xlu1 %v17655_v57 }
 0x762   : > { %5013 = vperm.xlu1 %10556, %v17921_v16  }
 0x764   : > { %v15752_v20 = vpop.permute.xlu1 %5485 }
 0x766   : > { %10557 = vset.pattern.permute.xlu1 %v17659_v54 }
 0x767   : > { %5151 = vperm.xlu1 %10557, %v17922_v59  }
 0x769   : > { %v15756_v37 = vpop.permute.xlu1 %5735 }
 0x76b   : > { %10558 = vset.pattern.permute.xlu1 %v17892_v0 }
 0x76c   : > { %5401 = vperm.xlu1 %10558, %v15682_v32  }
 0x76e   : > { %v15760_v46 = vpop.permute.xlu1 %5913 }
 0x770   : > { %5473 = vperm.xlu1 %10558, %v17910_v15  }
 0x773   : > { %v15763_v23 = vpop.permute.xlu1 %6413 }
 0x774   : > { %10560 = vset.pattern.permute.xlu1 %v17672_v1 }
 0x775   : > { %5723 = vperm.xlu1 %10560, %v15617_v63  }
 0x778   : > { %v6664_v43 = vpop.permute.xlu1 %6663 }
 0x779   : > { %10561 = vset.pattern.permute.xlu1 %v17705_v47  ;;  %v6748_v61 = vmul.f32 %v6664_v43, %v12032_v34 }
 0x77a   : > { %5901 = vperm.xlu1 %10561, %v15336_v19  }
 0x77d   : > { %v15774_v3 = vpop.permute.xlu1 %4933 }
 0x77e   : > { %10562 = vset.pattern.permute.xlu1 %v17895_v44 }
 0x77f   : > { %6151 = vperm.xlu1 %10562, %v15325_v2  }
 0x781   : > { %v15779_v12 = vpop.permute.xlu1 %5023 }
 0x782   : > { %17923 = vst [vmem:[#allocation24_spill] sm:$0xff] %v15779_v12 }
 0x783   : > { %6223 = vperm.xlu1 %10562, %v15238_v48   ;;  %v17927_v48 = vld [vmem:[#allocation13_spill] sm:$0xff] }
 0x784   : > { %v5272_v24 = vmul.f32 %v17927_v48, %v11947_v6  ;;  %v5764_v48 = vmul.f32 %v15556_v53, %v17577_v36  ;;  %v17930_v53 = vld [vmem:[#allocation189_spill] sm:$0xff] }
 0x785   : > { %v6502_v31 = vmul.f32 %v17930_v53, %v12025_v10 }
 0x786   : > { %v15783_v25 = vpop.permute.xlu1 %5231  ;;  %v5313_v16 = vadd.f32 %v5272_v24, %v5067_v49  ;;  %v6256_v24 = vmul.f32 %v15654_v58, %v12007_v60 }
 0x787   : > { %10563 = vset.pattern.permute.xlu1 %v17190_v55 }
 0x788   : > { %6473 = vperm.xlu1 %10563, %v15223_v51   ;;  %v15802_v51 = vld [vmem:[%s17080_s6 + $0x258] sm:$0xff] }
 0x78b   : > { %v15787_v62 = vpop.permute.xlu1 %5409 }
 0x78c   : > { %17924 = vst [vmem:[#allocation142_spill] sm:$0xff] %v15787_v62  ;;  %10564 = vset.pattern.permute.xlu1 %v17184_v30  ;;  %v5559_v62 = vadd.f32 %v5518_v42, %v5313_v16 }
 0x78d   : > { %6651 = vperm.xlu1 %10564, %v15425_v7  }
 0x78e   : > { %v5805_v9 = vadd.f32 %v5764_v48, %v5559_v62  ;;  %v1111_v62 = vld [vmem:[%s14454_s7 + $0x1b8] sm:$0xff] }
 0x78f   : > { %9866 = vmatprep.subr.mxu0 %v1111_v62 }
 0x790   : > { %v15791_v28 = vpop.permute.xlu1 %5659  ;;  %v6051_v49 = vadd.f32 %v6010_v21, %v5805_v9  ;;  %9867 = vmatpush3.msra.mxu0 %v1111_v62  ;;  %v1110_v9 = vld [vmem:[%s14454_s7 + $0x1b0] sm:$0xff]  ;;  %v1105_v62 = vld [vmem:[%s14454_s7 + $0x188] sm:$0xff] }
 0x791   : > { %17925 = vst [vmem:[#allocation2_spill] sm:$0xff] %v15791_v28  ;;  %10565 = vset.pattern.permute.xlu1 %v17655_v57  ;;  %9868 = vmatprep.subr.mxu0 %v1110_v9 }
 0x792   : > { %4918 = vperm.xlu1 %10565, %v17926_v13   ;;  %v6297_v4 = vadd.f32 %v6256_v24, %v6051_v49  ;;  %v1109_v24 = vld [vmem:[%s14454_s7 + $0x1a8] sm:$0xff]  ;;  %9869 = vmatpush3.msra.mxu0 %v1110_v9  ;;  %v1108_v49 = vld [vmem:[%s14454_s7 + $0x1a0] sm:$0xff]  ;;  %v1126_v9 = vld [vmem:[%s14454_s7 + $0x230] sm:$0xff] }
 0x793   : > { %9870 = vmatprep.subr.mxu0 %v1109_v24 }
 0x794   : > { %v15795_v41 = vpop.permute.xlu1 %5731  ;;  %v6543_v58 = vadd.f32 %v6502_v31, %v6297_v4  ;;  %9871 = vmatpush3.msra.mxu0 %v1109_v24  ;;  %v1107_v31 = vld [vmem:[%s14454_s7 + $0x198] sm:$0xff]  ;;  %v17933_v24 = vld [vmem:[#allocation72_spill] sm:$0xff] }
 0x795   : > { %9872 = vmatprep.subr.mxu0 %v1108_v49 }
 0x796   : > { %5008 = vperm.xlu1 %10565, %v15802_v51   ;;  %9873 = vmatpush3.msra.mxu0 %v1108_v49 }
 0x797   : > { %9874 = vmatprep.subr.mxu0 %v1107_v31 }
 0x798   : > { %9875 = vmatpush3.msra.mxu0 %v1107_v31  ;;  %v10752_v31 = vld [vmem:[%s17080_s6 + $0x288] sm:$0xf] }
 0x799   : > { %v15809_v13 = vpop.permute.xlu1 %5981 }
 0x79a   : > { %10567 = vset.pattern.permute.xlu1 %v17659_v54 }
 0x79b   : > { %5219 = vperm.xlu1 %10567, %v15802_v51  }
 0x79e   : > { %v15817_v28 = vpop.permute.xlu1 %6159 }
 0x79f   : > { %10568 = vset.pattern.permute.xlu1 %v17892_v0 }
 0x7a0   : > { %5397 = vperm.xlu1 %10568, %v17922_v59   ;;  %v6789_v59 = vadd.f32 %v6748_v61, %v6543_v58  ;;  %v1106_v58 = vld [vmem:[%s14454_s7 + $0x190] sm:$0xff] }
 0x7a1   : > { %9876 = vmatprep.subr.mxu0 %v1106_v58 }
 0x7a2   : > { %9877 = vmatpush3.msra.mxu0 %v1106_v58 }
 0x7a3   : > { %v15825_v42 = vpop.permute.xlu1 %6659  ;;  %9878 = vmatprep.subr.mxu0 %v1105_v62 }
 0x7a4   : > { %10569 = vset.pattern.permute.xlu1 %v17672_v1  ;;  %9879 = vmatpush3.msra.mxu0 %v1105_v62 }
 0x7a5   : > { %5647 = vperm.xlu1 %10569, %v15682_v32  }
 0x7a8   : > { %v6910_v16 = vpop.permute.xlu1 %6909 }
 0x7a9   : > { %v6994_v21 = vmul.f32 %v15501_v26, %v6910_v16  ;;  %5719 = vperm.xlu1 %10569, %v17910_v15  }
 0x7ab   : > { %v7035_v48 = vadd.f32 %v6994_v21, %v6789_v59  ;;  %v1104_v59 = vld [vmem:[%s14454_s7 + $0x180] sm:$0xff] }
 0x7ac   : > { %9880 = vmatprep.subr.mxu0 %v1104_v59 }
 0x7ad   : > { %v7076_v43 = vadd.f32 %v15583_v33, %v7035_v48  ;;  %10570 = vset.pattern.permute.xlu1 %v17705_v47  ;;  %v15837_v4 = vpop.permute.xlu1 %5018  ;;  %9881 = vmatpush3.msra.mxu0 %v1104_v59  ;;  %v15860_v48 = vld [vmem:[%s17080_s6 + $0x280] sm:$0xff]  ;;  %v1123_v59 = vld [vmem:[%s14454_s7 + $0x218] sm:$0xff] }
 0x7ae   : > { %5969 = vperm.xlu1 %10570, %v15617_v63   ;;  %9883 = vmatmul.mubr.msk.f32.vlgmr.msra.gmra.mxu0 %vm4015_vm12, %v17933_v24  ;;  %v9751_v24 = vpop.f32.mrf.mxu1 }
 0x7af   : > { %vm7117_vm6 = vcmp.gt.f32.partialorder %v7076_v43, 0.0  ;;  %v7158_v15 = vmul.f32 0.01, %v7076_v43 }
 0x7b1   : > { %v7199_v53 = vsel %vm7117_vm6, %v7076_v43, %v7158_v15  ;;  %v1125_v43 = vld [vmem:[%s14454_s7 + $0x228] sm:$0xff]  ;;  %v5065_v15 = vmul.f32 %v15542_v39, %v11961_v5  ;;  %v3851_v39 = vpop.f32.mrf.mxu0 }
 0x7b2   : > { %10571 = vset.pattern.permute.xlu1 %v17895_v44  ;;  %v15843_v61 = vpop.permute.xlu1 %5155  ;;  %7260 = vmatpush2.msra.mxu1 %v7199_v53  ;;  %v1124_v53 = vld [vmem:[%s14454_s7 + $0x220] sm:$0xff] }
 0x7b3   : > { %17931 = vst [vmem:[#allocation52_spill] sm:$0xff] %v15843_v61  ;;  %6147 = vperm.xlu1 %10571, %v15336_v19   ;;  %7261 = vmatprep.subr.mxu1 %v17853_v11  ;;  %v1127_v19 = vld [vmem:[%s14454_s7 + $0x238] sm:$0xff]  ;;  %v1121_v61 = vld [vmem:[%s14454_s7 + $0x208] sm:$0xff] }
 0x7b4   : > { %9904 = vmatprep.subr.mxu0 %v1127_v19 }
 0x7b5   : > { %9905 = vmatpush3.msra.mxu0 %v1127_v19  ;;  %v1122_v19 = vld [vmem:[%s14454_s7 + $0x210] sm:$0xff] }
 0x7b6   : > { %9906 = vmatprep.subr.mxu0 %v1126_v9 }
 0x7b7   : > { %10572 = vset.pattern.permute.xlu1 %v17190_v55  ;;  %v15850_v16 = vpop.permute.xlu1 %5405  ;;  %9907 = vmatpush3.msra.mxu0 %v1126_v9 }
 0x7b8   : > { %6397 = vperm.xlu1 %10572, %v15325_v2   ;;  %v5270_v2 = vmul.f32 %v15547_v50, %v11947_v6  ;;  %9908 = vmatprep.subr.mxu0 %v1125_v43  ;;  %v17935_v50 = vld [vmem:[#allocation162_spill] sm:$0xff] }
 0x7b9   : > { %v5516_v58 = vmul.f32 %v17935_v50, %v11965_v17  ;;  %9909 = vmatpush3.msra.mxu0 %v1125_v43  ;;  %v3853_v50 = vpop.f32.mrf.mxu0  ;;  %v4006_v43 = vpop.f32.mrf.mxu1 }
 0x7ba   : > { %v5311_v62 = vadd.f32 %v5270_v2, %v5065_v15  ;;  %9910 = vmatprep.subr.mxu0 %v1124_v53  ;;  %v5271_v2 = vmul.f32 %v15510_v52, %v11947_v6  ;;  %v17937_v15 = vld [vmem:[#allocation157_spill] sm:$0xff] }
 0x7bb   : > { %v15855_v21 = vpop.permute.xlu1 %5477  ;;  %9911 = vmatpush3.msra.mxu0 %v1124_v53  ;;  %v5762_v53 = vmul.f32 %v17937_v15, %v17577_v36  ;;  %v17938_v15 = vld [vmem:[#allocation156_spill] sm:$0xff] }
 0x7bc   : > { %17932 = vst [vmem:[#allocation80_spill] sm:$0xff] %v15855_v21  ;;  %6469 = vperm.xlu1 %10572, %v15860_v48   ;;  %9912 = vmatprep.subr.mxu0 %v1123_v59  ;;  %v3856_v21 = vpop.f32.mrf.mxu0  ;;  %v5517_v12 = vmul.f32 %v17938_v15, %v11965_v17 }
 0x7bd   : > { %9913 = vmatpush3.msra.mxu0 %v1123_v59 }
 0x7be   : > { %9914 = vmatprep.subr.mxu0 %v1122_v19  ;;  %v3858_v50 = vpop.f32.mrf.mxu0 }
 0x7bf   : > { %9915 = vmatpush3.msra.mxu0 %v1122_v19 }
 0x7c0   : > { %10573 = vset.pattern.permute.xlu1 %v17184_v30  ;;  %v15872_v49 = vpop.permute.xlu1 %5727  ;;  %9916 = vmatprep.subr.mxu0 %v1121_v61 }
 0x7c1   : > { %17934 = vst [vmem:[#allocation188_spill] sm:$0xff] %v15872_v49  ;;  %6719 = vperm.xlu1 %10573, %v10752_v31   ;;  %v5557_v31 = vadd.f32 %v5516_v58, %v5311_v62  ;;  %v4007_v49 = vadd.f32 %v4006_v43, %v3851_v39  ;;  %v1120_v58 = vld [vmem:[%s14454_s7 + $0x200] sm:$0xff]  ;;  %v4012_v62 = vadd.f32 %v9751_v24, %v3856_v21  ;;  %v15904_v39 = vld [vmem:[%s17080_s6 + $0x250] sm:$0xff] }
 0x7c2   : > { %9917 = vmatpush3.msra.mxu0 %v1121_v61  ;;  %v5763_v61 = vmul.f32 %v15593_v56, %v17577_v36 }
 0x7c3   : > { %v5803_v59 = vadd.f32 %v5762_v53, %v5557_v31  ;;  %9918 = vmatprep.subr.mxu0 %v1120_v58  ;;  %9920 = vmatprep.mubr.msk.f32.mxu0 %vm4015_vm12, %v4007_v49  ;;  %v10754_v31 = vld [vmem:[%s17654_s0 + $0x10] sm:$0xff]  ;;  %v17940_v49 = vld [vmem:[#allocation191_spill] sm:$0xff] }
 0x7c4   : > { %9919 = vmatpush3.msra.mxu0 %v1120_v58  ;;  %v6500_v43 = vmul.f32 %v17940_v49, %v12025_v10  ;;  %v15927_v53 = vld [vmem:[%s17080_s6 + $0x1c8] sm:$0xff]  ;;  %v15949_v49 = vld [vmem:[%s17080_s6 + $0x260] sm:$0xff] }
 0x7c5   : > { %10574 = vset.pattern.permute.xlu1 %v17896_v38  ;;  %v15883_v9 = vpop.permute.xlu1 %5905  ;;  %9921 = vmatmul.mubr.msk.f32.vlgmr.msra.gmra.mxu0 %vm4015_vm12, %v4012_v62  ;;  %v6902_v62 = vpop.permute.xlu0 %6901 }
 0x7c6   : > { %17936 = vst [vmem:[#allocation232_spill] sm:$0xff] %v15883_v9  ;;  %6897 = vperm.xlu1 %10574, %v15425_v7   ;;  %v6008_v9 = vmul.f32 %v15708_v14, %v11991_v8  ;;  %v5066_v7 = vmul.f32 %v15505_v35, %v11961_v5  ;;  %v17939_v35 = vld [vmem:[#allocation245_spill] sm:$0xff]  ;;  %9941 = vmatprep.mubr.msk.f32.mxu0 %vm3646_vm14, %v10754_v31 }
 0x7c7   : > { %v6254_v21 = vmul.f32 %v17939_v35, %v12007_v60  ;;  %v6992_v50 = vmul.f32 %v15501_v26, %v6902_v62 }
 0x7c8   : > { %v5312_v14 = vadd.f32 %v5271_v2, %v5066_v7  ;;  %v6049_v19 = vadd.f32 %v6008_v9, %v5803_v59  ;;  %v6009_v9 = vmul.f32 %v15646_v29, %v11991_v8  ;;  %v6501_v29 = vmul.f32 %v15763_v23, %v12025_v10 }
 0x7ca   : > { %10576 = vset.pattern.permute.xlu1 %v17659_v54  ;;  %v15897_v52 = vpop.permute.xlu1 %6155  ;;  %v5558_v2 = vadd.f32 %v5517_v12, %v5312_v14  ;;  %v6295_v56 = vadd.f32 %v6254_v21, %v6049_v19  ;;  %v6255_v12 = vmul.f32 %v15718_v18, %v12007_v60  ;;  %v6747_v21 = vmul.f32 %v15825_v42, %v12032_v34  ;;  %v15942_v18 = vld [vmem:[%s17080_s6 + $0x1d0] sm:$0xff] }
 0x7cb   : > { %5215 = vperm.xlu1 %10576, %v15904_v39  }
 0x7cc   : > { %v5804_v58 = vadd.f32 %v5763_v61, %v5558_v2  ;;  %v6541_v15 = vadd.f32 %v6500_v43, %v6295_v56 }
 0x7ce   : > { %v15913_v24 = vpop.permute.xlu1 %6227  ;;  %v6050_v7 = vadd.f32 %v6009_v9, %v5804_v58 }
 0x7cf   : > { %10577 = vset.pattern.permute.xlu1 %v17892_v0 }
 0x7d0   : > { %5393 = vperm.xlu1 %10577, %v15927_v53   ;;  %v6296_v35 = vadd.f32 %v6255_v12, %v6050_v7 }
 0x7d2   : > { %v6542_v19 = vadd.f32 %v6501_v29, %v6296_v35 }
 0x7d3   : > { %v6656_v59 = vpop.permute.xlu1 %6655 }
 0x7d4   : > { %v6746_v14 = vmul.f32 %v6656_v59, %v12032_v34  ;;  %10578 = vset.pattern.permute.xlu1 %v17672_v1  ;;  %v6788_v2 = vadd.f32 %v6747_v21, %v6542_v19  ;;  %v10759_v59 = vld [vmem:[%s17080_s6 + $0x1e0] sm:$0xff]  ;;  %v10761_v21 = vld [vmem:[%s17080_s6 + $0x278] sm:$0xff] }
 0x7d5   : > { %5643 = vperm.xlu1 %10578, %v15942_v18  }
 0x7d6   : > { %v6787_v23 = vadd.f32 %v6746_v14, %v6541_v15  ;;  %v15977_v14 = vld [vmem:[%s17080_s6 + $0x1e8] sm:$0xff] }
 0x7d8   : > { %v7033_v61 = vadd.f32 %v6992_v50, %v6787_v23  ;;  %v6906_v31 = vpop.permute.xlu1 %6905 }
 0x7d9   : > { %v6993_v9 = vmul.f32 %v15501_v26, %v6906_v31  ;;  %5715 = vperm.xlu1 %10578, %v15949_v49   ;;  %v15960_v26 = vld [vmem:[%s17080_s6 + $0x268] sm:$0xff] }
 0x7da   : > { %v7074_v42 = vadd.f32 %v15583_v33, %v7033_v61  ;;  %v10762_v61 = vld [vmem:[%s17080_s6 + $0x1f8] sm:$0xff] }
 0x7db   : > { %v7034_v43 = vadd.f32 %v6993_v9, %v6788_v2 }
 0x7dc   : > { %v7156_v7 = vmul.f32 0.01, %v7074_v42  ;;  %vm7115_vm8 = vcmp.gt.f32.partialorder %v7074_v42, 0.0 }
 0x7dd   : > { %v7075_v56 = vadd.f32 %v15583_v33, %v7034_v43  ;;  %10579 = vset.pattern.permute.xlu1 %v17705_v47  ;;  %v15955_v58 = vpop.permute.xlu1 %5013 }
 0x7de   : > { %5965 = vperm.xlu1 %10579, %v15960_v26   ;;  %v7197_v50 = vsel %vm7115_vm8, %v7074_v42, %v7156_v7 }
 0x7df   : > { %vm7116_vm7 = vcmp.gt.f32.partialorder %v7075_v56, 0.0  ;;  %v7157_v12 = vmul.f32 0.01, %v7075_v56 }
 0x7e1   : > { %v7198_v29 = vsel %vm7116_vm7, %v7075_v56, %v7157_v12 }
 0x7e2   : > { %10580 = vset.pattern.permute.xlu1 %v17895_v44  ;;  %v15964_v62 = vpop.permute.xlu1 %5151  ;;  %7262 = vmatpush2.msra.mxu1 %v7198_v29  ;;  %v10763_v29 = vld [vmem:[%s17080_s6 + $0x1f0] sm:$0xff] }
 0x7e3   : > { %17941 = vst [vmem:[#allocation140_spill] sm:$0xff] %v15964_v62  ;;  %6143 = vperm.xlu1 %10580, %v10759_v59   ;;  %7263 = vmatprep.subr.mxu1 %v17853_v11 }
 0x7e4   : > { %7264 = vmatpush2.msra.mxu1 %v7197_v50 }
 0x7e5   : > { %7265 = vmatprep.subr.mxu1 %v17853_v11 }
 0x7e7   : > { %10581 = vset.pattern.permute.xlu1 %v17190_v55  ;;  %v15972_v15 = vpop.permute.xlu1 %5401 }
 0x7e8   : > { %17942 = vst [vmem:[#allocation54_spill] sm:$0xff] %v15972_v15  ;;  %6393 = vperm.xlu1 %10581, %v15977_v14  }
 0x7eb   : > { %v15980_v35 = vpop.permute.xlu1 %5473 }
 0x7ec   : > { %6465 = vperm.xlu1 %10581, %v10761_v21  }
 0x7f0   : > { %10582 = vset.pattern.permute.xlu1 %v17184_v30  ;;  %v15986_v23 = vpop.permute.xlu1 %5723 }
 0x7f1   : > { %6715 = vperm.xlu1 %10582, %v15860_v48  }
 0x7f5   : > { %10583 = vset.pattern.permute.xlu1 %v17896_v38  ;;  %v15990_v19 = vpop.permute.xlu1 %5901 }
 0x7f6   : > { %17943 = vst [vmem:[#allocation203_spill] sm:$0xff] %v15990_v19  ;;  %6893 = vperm.xlu1 %10583, %v10762_v61  }
 0x7fa   : > { %10584 = vset.pattern.permute.xlu1 %v17655_v57  ;;  %v15996_v31 = vpop.permute.xlu1 %6151  ;;  %v17951_v57 = vld [vmem:[#allocation87_spill] sm:$0xff] }
 0x7fb   : > { %17944 = vst [vmem:[#allocation248_spill] sm:$0xff] %v15996_v31  ;;  %4998 = vperm.xlu1 %10584, %v15772_v27  }
 0x7fe   : > { %v15999_v2 = vpop.permute.xlu1 %6223 }
 0x7ff   : > { %10585 = vset.pattern.permute.xlu1 %v17659_v54 }
 0x800   : > { %5211 = vperm.xlu1 %10585, %v15772_v27  }
 0x803   : > { %v6474_v48 = vpop.permute.xlu1 %6473 }
 0x804   : > { %10587 = vset.pattern.permute.xlu1 %v17672_v1 }
 0x805   : > { %5639 = vperm.xlu1 %10587, %v15927_v53  }
 0x808   : > { %v6652_v9 = vpop.permute.xlu1 %6651 }
 0x809   : > { %5711 = vperm.xlu1 %10587, %v15802_v51  }
 0x80d   : > { %10588 = vset.pattern.permute.xlu1 %v17705_v47  ;;  %v16007_v42 = vpop.permute.xlu1 %4918 }
 0x80e   : > { %5961 = vperm.xlu1 %10588, %v15949_v49  }
 0x811   : > { %v16010_v43 = vpop.permute.xlu1 %5008 }
 0x812   : > { %17945 = vst [vmem:[#allocation155_spill] sm:$0xff] %v16010_v43  ;;  %10589 = vset.pattern.permute.xlu1 %v17895_v44 }
 0x813   : > { %6139 = vperm.xlu1 %10589, %v15682_v32  }
 0x816   : > { %v16014_v54 = vpop.permute.xlu1 %5219 }
 0x817   : > { %17946 = vst [vmem:[#allocation43_spill] sm:$0xff] %v16014_v54  ;;  %10590 = vset.pattern.permute.xlu1 %v17190_v55 }
 0x818   : > { %6389 = vperm.xlu1 %10590, %v10759_v59   ;;  %v5269_v59 = vmul.f32 %v15588_v45, %v11947_v6  ;;  %v5532_v45 = vmul.f32 %v15695_v22, %v11965_v17  ;;  %v6007_v22 = vmul.f32 %v15760_v46, %v11991_v8 }
 0x81b   : > { %v16017_v56 = vpop.permute.xlu1 %5397 }
 0x81c   : > { %17947 = vst [vmem:[#allocation9_spill] sm:$0xff] %v16017_v56  ;;  %6461 = vperm.xlu1 %10590, %v15617_v63  }
 0x820   : > { %10591 = vset.pattern.permute.xlu1 %v17184_v30  ;;  %v16021_v12 = vpop.permute.xlu1 %5647 }
 0x821   : > { %17948 = vst [vmem:[#allocation83_spill] sm:$0xff] %v16021_v12  ;;  %6711 = vperm.xlu1 %10591, %v10761_v21   ;;  %v17950_v21 = vld [vmem:[#allocation68_spill] sm:$0xff]  ;;  %v5064_v12 = vmul.f32 %v17951_v57, %v11961_v5 }
 0x822   : > { %v5286_v19 = vmul.f32 %v17950_v21, %v11947_v6  ;;  %v5778_v21 = vmul.f32 %v15756_v37, %v17577_v36  ;;  %v6270_v37 = vmul.f32 %v15913_v24, %v12007_v60  ;;  %v6966_v24 = vpop.permute.xlu0 %6965 }
 0x824   : > { %v16023_v7 = vpop.permute.xlu1 %5719 }
 0x825   : > { %10592 = vset.pattern.permute.xlu1 %v17896_v38 }
 0x826   : > { %6889 = vperm.xlu1 %10592, %v10763_v29   ;;  %v17952_v29 = vld [vmem:[#allocation45_spill] sm:$0xff] }
 0x827   : > { %v5515_v15 = vmul.f32 %v17952_v29, %v11965_v17  ;;  %v6024_v29 = vmul.f32 %v15809_v13, %v11991_v8 }
 0x829   : > { %v16029_v50 = vpop.permute.xlu1 %5969 }
 0x82a   : > { %10593 = vset.pattern.permute.xlu1 %v17892_v0  ;;  %v17953_v0 = vld [vmem:[#allocation159_spill] sm:$0xff] }
 0x82b   : > { %5457 = vperm.xlu1 %10593, %v15772_v27   ;;  %v5081_v56 = vmul.f32 %v17953_v0, %v11961_v5  ;;  %v17954_v0 = vld [vmem:[#allocation160_spill] sm:$0xff] }
 0x82c   : > { %v5761_v31 = vmul.f32 %v17954_v0, %v17577_v36  ;;  %v16073_v0 = vld [vmem:[%s11935_s4 + $0x8] ss:$0 sm:$0xff] }
 0x82d   : > { %v5327_v62 = vadd.f32 %v5286_v19, %v5081_v56 }
 0x82e   : > { %v16035_v61 = vpop.permute.xlu1 %6147 }
 0x82f   : > { %17949 = vst [vmem:[#allocation4_spill] sm:$0xff] %v16035_v61  ;;  %10594 = vset.pattern.permute.xlu1 %v17672_v1  ;;  %v5310_v61 = vadd.f32 %v5269_v59, %v5064_v12  ;;  %v5573_v57 = vadd.f32 %v5532_v45, %v5327_v62  ;;  %v6253_v62 = vmul.f32 %v15817_v28, %v12007_v60 }
 0x830   : > { %5707 = vperm.xlu1 %10594, %v15904_v39   ;;  %v6516_v12 = vmul.f32 %v6474_v48, %v12025_v10  ;;  %v6745_v48 = vmul.f32 %v6652_v9, %v12032_v34 }
 0x831   : > { %v5556_v54 = vadd.f32 %v5515_v15, %v5310_v61  ;;  %v5819_v19 = vadd.f32 %v5778_v21, %v5573_v57  ;;  %v17955_v61 = vld [vmem:[#allocation192_spill] sm:$0xff] }
 0x832   : > { %v6499_v45 = vmul.f32 %v17955_v61, %v12025_v10  ;;  %v16086_v61 = vpop.permute.xlu0 %6961 }
 0x833   : > { %v16051_v43 = vpop.permute.xlu1 %6397  ;;  %v5802_v56 = vadd.f32 %v5761_v31, %v5556_v54  ;;  %v6065_v13 = vadd.f32 %v6024_v29, %v5819_v19  ;;  %v7008_v31 = vmul.f32 %v16073_v0, %v6966_v24 }
 0x834   : > { %10596 = vset.pattern.permute.xlu1 %v17705_v47 }
 0x835   : > { %5957 = vperm.xlu1 %10596, %v15802_v51   ;;  %v6048_v59 = vadd.f32 %v6007_v22, %v5802_v56  ;;  %v6311_v46 = vadd.f32 %v6270_v37, %v6065_v13 }
 0x837   : > { %v16063_v15 = vpop.permute.xlu1 %6469  ;;  %v6294_v21 = vadd.f32 %v6253_v62, %v6048_v59  ;;  %v6557_v28 = vadd.f32 %v6516_v12, %v6311_v46 }
 0x839   : > { %10597 = vset.pattern.permute.xlu1 %v17895_v44  ;;  %v6540_v22 = vadd.f32 %v6499_v45, %v6294_v21 }
 0x83a   : > { %6135 = vperm.xlu1 %10597, %v15942_v18  }
 0x83b   : > { %v6786_v56 = vadd.f32 %v6745_v48, %v6540_v22 }
 0x83c   : > { %v6720_v57 = vpop.permute.xlu1 %6719 }
 0x83d   : > { %v6762_v54 = vmul.f32 %v6720_v57, %v12032_v34 }
 0x83e   : > { %10598 = vset.pattern.permute.xlu1 %v17190_v55 }
 0x83f   : > { %v6803_v29 = vadd.f32 %v6762_v54, %v6557_v28  ;;  %6385 = vperm.xlu1 %10598, %v15682_v32   ;;  %v17956_v54 = vld [vmem:[#allocation214_spill] sm:$0xff] }
 0x840   : > { %v5282_v48 = vmul.f32 %v17956_v54, %v11947_v6 }
 0x841   : > { %v7049_v19 = vadd.f32 %v7008_v31, %v6803_v29  ;;  %v6898_v37 = vpop.permute.xlu1 %6897  ;;  %v5528_v29 = vmul.f32 %v15980_v35, %v11965_v17 }
 0x842   : > { %v6991_v62 = vmul.f32 %v16073_v0, %v6898_v37 }
 0x843   : > { %v7090_v13 = vadd.f32 %v15583_v33, %v7049_v19  ;;  %6457 = vperm.xlu1 %10598, %v15960_v26   ;;  %v5774_v19 = vmul.f32 %v16023_v7, %v17577_v36  ;;  %v17959_v7 = vld [vmem:[#allocation96_spill] sm:$0xff] }
 0x844   : > { %v7032_v12 = vadd.f32 %v6991_v62, %v6786_v56  ;;  %v17957_v56 = vld [vmem:[#allocation127_spill] sm:$0xff] }
 0x845   : > { %vm7131_vm10 = vcmp.gt.f32.partialorder %v7090_v13, 0.0  ;;  %v7172_v59 = vmul.f32 0.01, %v7090_v13  ;;  %v5063_v62 = vmul.f32 %v17957_v56, %v11961_v5 }
 0x846   : > { %v7073_v9 = vadd.f32 %v15583_v33, %v7032_v12  ;;  %v16084_v46 = vpop.permute.xlu1 %5215  ;;  %v16096_v33 = vpop.permute.xlu0 %6957  ;;  %v17958_v12 = vld [vmem:[#allocation208_spill] sm:$0xff] }
 0x847   : > { %10599 = vset.pattern.permute.xlu1 %v17184_v30  ;;  %v7213_v45 = vsel %vm7131_vm10, %v7090_v13, %v7172_v59  ;;  %v5268_v59 = vmul.f32 %v17958_v12, %v11947_v6 }
 0x848   : > { %6707 = vperm.xlu1 %10599, %v15617_v63   ;;  %9923 = vmatprep.subr.msk.mxu0 %vm3701_vm9, %v7213_v45  ;;  %vm7114_vm11 = vcmp.gt.f32.partialorder %v7073_v9, 0.0  ;;  %v7155_v21 = vmul.f32 0.01, %v7073_v9  ;;  %v5077_v63 = vmul.f32 %v15837_v4, %v11961_v5 }
 0x849   : > { %9924 = vmatpush3.msk.msra.mxu0 %vm3701_vm9, %v7213_v45  ;;  %v17960_v45 = vld [vmem:[#allocation11_spill] sm:$0xff] }
 0x84a   : > { %v7196_v24 = vsel %vm7114_vm11, %v7073_v9, %v7155_v21  ;;  %v16105_v28 = vpop.permute.xlu0 %6881  ;;  %v6266_v9 = vmul.f32 %v17959_v7, %v12007_v60  ;;  %v5514_v21 = vmul.f32 %v17960_v45, %v11965_v17  ;;  %v17965_v45 = vld [vmem:[#allocation171_spill] sm:$0xff] }
 0x84b   : > { %v16092_v57 = vpop.permute.xlu1 %5393  ;;  %7266 = vmatpush2.msra.mxu1 %v7196_v24 }
 0x84c   : > { %10600 = vset.pattern.permute.xlu1 %v17896_v38  ;;  %7267 = vmatprep.subr.mxu1 %v17853_v11 }
 0x84d   : > { %6885 = vperm.xlu1 %10600, %v15977_v14   ;;  %v5323_v14 = vadd.f32 %v5282_v48, %v5077_v63  ;;  %v17961_v63 = vld [vmem:[#allocation190_spill] sm:$0xff]  ;;  %v5309_v48 = vadd.f32 %v5268_v59, %v5063_v62  ;;  %v17964_v59 = vld [vmem:[#allocation161_spill] sm:$0xff] }
 0x84e   : > { %v16117_v4 = vpop.permute.xlu0 %6949  ;;  %v5080_v54 = vmul.f32 %v17961_v63, %v11961_v5  ;;  %v5760_v7 = vmul.f32 %v17964_v59, %v17577_v36  ;;  %v17966_v63 = vld [vmem:[#allocation172_spill] sm:$0xff] }
 0x84f   : > { %v5555_v12 = vadd.f32 %v5514_v21, %v5309_v48  ;;  %v6006_v21 = vmul.f32 %v17965_v45, %v11991_v8  ;;  %v6023_v48 = vmul.f32 %v17966_v63, %v11991_v8 }
 0x850   : > { %v16099_v31 = vpop.permute.xlu1 %5643 }
 0x851   : > { %10601 = vset.pattern.permute.xlu1 %v17672_v1  ;;  %v5569_v1 = vadd.f32 %v5528_v29, %v5323_v14 }
 0x852   : > { %5703 = vperm.xlu1 %10601, %v15772_v27   ;;  %v16140_v56 = vpop.permute.xlu0 %6945 }
 0x853   : > { %v5815_v13 = vadd.f32 %v5774_v19, %v5569_v1  ;;  %v17962_v19 = vld [vmem:[#allocation209_spill] sm:$0xff] }
 0x854   : > { %v16111_v22 = vpop.permute.xlu1 %5715  ;;  %v5285_v1 = vmul.f32 %v17962_v19, %v11947_v6 }
 0x856   : > { %10602 = vset.pattern.permute.xlu1 %v17705_v47  ;;  %v5326_v62 = vadd.f32 %v5285_v1, %v5080_v54  ;;  %v16157_v19 = vpop.permute.xlu0 %6869  ;;  %v6269_v1 = vmul.f32 %v15999_v2, %v12007_v60  ;;  %v7007_v2 = vmul.f32 %v16073_v0, %v16086_v61  ;;  %v16184_v61 = vld [vmem:[%s12057_s8] ss:$0 sm:$0xff]  ;;  %s1037_s8 = scalar_lea.vmem %s17004_s20, %s16892_s29 }
 0x857   : > { %5953 = vperm.xlu1 %10602, %v15904_v39  }
 0x859   : > { %v5966_v37 = vpop.permute.xlu1 %5965 }
 0x85a   : > { %v6020_v35 = vmul.f32 %v5966_v37, %v11991_v8  ;;  %v5531_v37 = vmul.f32 %v15752_v20, %v11965_v17 }
 0x85b   : > { %10603 = vset.pattern.permute.xlu1 %v17895_v44 }
 0x85c   : > { %v6061_v24 = vadd.f32 %v6020_v35, %v5815_v13  ;;  %6203 = vperm.xlu1 %10603, %v15802_v51   ;;  %v1183_v13 = vld [vmem:[%s17963_s25] sm:$0xff]  ;;  %v5777_v35 = vmul.f32 %v15795_v41, %v17577_v36  ;;  %v5572_v20 = vadd.f32 %v5531_v37, %v5326_v62  ;;  %v6252_v41 = vmul.f32 %v15897_v52, %v12007_v60 }
 0x85d   : > { %4775 = vperm.xlu0 %10621, %v1183_v13   ;;  %v6515_v62 = vmul.f32 %v16063_v15, %v12025_v10 }
 0x85e   : > { %v16132_v29 = vpop.permute.xlu1 %6143  ;;  %v16134_v14 = vadd.f32 %v6266_v9, %v6061_v24  ;;  %v5801_v24 = vadd.f32 %v5760_v7, %v5555_v12  ;;  %v5818_v54 = vadd.f32 %v5777_v35, %v5572_v20  ;;  %v17967_v35 = vld [vmem:[#allocation221_spill] sm:$0xff]  ;;  %v6648_v20 = vpop.permute.xlu0 %6647 }
 0x85f   : > { %v6498_v59 = vmul.f32 %v17967_v35, %v12025_v10 }
 0x860   : > { %10604 = vset.pattern.permute.xlu1 %v17190_v55  ;;  %v6047_v12 = vadd.f32 %v6006_v21, %v5801_v24  ;;  %v6064_v13 = vadd.f32 %v6023_v48, %v5818_v54  ;;  %v6744_v48 = vmul.f32 %v6648_v20, %v12032_v34 }
 0x861   : > { %6381 = vperm.xlu1 %10604, %v15942_v18   ;;  %10623 = vset.pattern.permute.xlu0 %v17896_v38 }
 0x862   : > { %v6293_v7 = vadd.f32 %v6252_v41, %v6047_v12  ;;  %v6310_v52 = vadd.f32 %v6269_v1, %v6064_v13 }
 0x863   : > { %v16151_v9 = vpop.permute.xlu1 %6393 }
 0x864   : > { %v6556_v63 = vadd.f32 %v6515_v62, %v6310_v52  ;;  %v6539_v24 = vadd.f32 %v6498_v59, %v6293_v7 }
 0x865   : > { %10606 = vset.pattern.permute.xlu1 %v17184_v30 }
 0x866   : > { %6631 = vperm.xlu1 %10606, %v15682_v32   ;;  %v6785_v1 = vadd.f32 %v6744_v48, %v6539_v24  ;;  %v17968_v24 = vld [vmem:[#allocation218_spill] sm:$0xff] }
 0x867   : > { %v16166_v37 = vpop.permute.xlu1 %6465  ;;  %v5262_v48 = vmul.f32 %v17968_v24, %v11947_v6  ;;  %v5773_v24 = vmul.f32 %v16111_v22, %v17577_v36 }
 0x86a   : > { %6703 = vperm.xlu1 %10606, %v15960_v26   ;;  %v10765_v26 = vld [vmem:[%s17080_s6 + $0x270] sm:$0xff] }
 0x86c   : > { %v6716_v45 = vpop.permute.xlu1 %6715 }
 0x86d   : > { %v6761_v21 = vmul.f32 %v6716_v45, %v12032_v34  ;;  %v5057_v45 = vmul.f32 %v16007_v42, %v11961_v5  ;;  %v5076_v42 = vmul.f32 %v15955_v58, %v11961_v5 }
 0x86e   : > { %10607 = vset.pattern.permute.xlu1 %v17896_v38 }
 0x86f   : > { %v6802_v15 = vadd.f32 %v6761_v21, %v6556_v63  ;;  %6953 = vperm.xlu1 %10607, %v10765_v26   ;;  %v5303_v26 = vadd.f32 %v5262_v48, %v5057_v45  ;;  %v17972_v45 = vld [vmem:[#allocation212_spill] sm:$0xff] }
 0x871   : > { %v7048_v54 = vadd.f32 %v7007_v2, %v6802_v15  ;;  %v6894_v41 = vpop.permute.xlu1 %6893  ;;  %v5508_v15 = vmul.f32 %v16092_v57, %v11965_v17  ;;  %v17970_v57 = vld [vmem:[#allocation179_spill] sm:$0xff] }
 0x872   : > { %v6990_v12 = vmul.f32 %v16073_v0, %v6894_v41 }
 0x873   : > { %10608 = vset.pattern.permute.xlu1 %v17705_v47  ;;  %v7089_v13 = vadd.f32 %v16184_v61, %v7048_v54  ;;  %v5549_v41 = vadd.f32 %v5508_v15, %v5303_v26  ;;  %v5079_v26 = vmul.f32 %v15738_v40, %v11961_v5  ;;  %v17976_v40 = vld [vmem:[#allocation243_spill] sm:$0xff] }
 0x874   : > { %v7031_v62 = vadd.f32 %v6990_v12, %v6785_v1  ;;  %5949 = vperm.xlu1 %10608, %v15772_v27   ;;  %v17969_v12 = vld [vmem:[#allocation216_spill] sm:$0xff] }
 0x875   : > { %vm7130_vm9 = vcmp.gt.f32.partialorder %v7089_v13, 0.0  ;;  %v7171_v35 = vmul.f32 0.01, %v7089_v13 }
 0x876   : > { %v7072_v59 = vadd.f32 %v16184_v61, %v7031_v62  ;;  %v4999_v7 = vpop.permute.xlu1 %4998  ;;  %v6000_v62 = vmul.f32 %v17970_v57, %v11991_v8 }
 0x877   : > { %v7212_v20 = vsel %vm7130_vm9, %v7089_v13, %v7171_v35  ;;  %v5073_v63 = vmul.f32 %v4999_v7, %v11961_v5  ;;  %v5281_v13 = vmul.f32 %v17969_v12, %v11947_v6  ;;  %v17974_v12 = vld [vmem:[#allocation164_spill] sm:$0xff] }
 0x878   : > { %10610 = vset.pattern.permute.xlu1 %v17190_v55  ;;  %9925 = vmatprep.subr.mxu0 %v7212_v20  ;;  %vm7113_vm13 = vcmp.gt.f32.partialorder %v7072_v59, 0.0  ;;  %v7154_v52 = vmul.f32 0.01, %v7072_v59 }
 0x879   : > { %6377 = vperm.xlu1 %10610, %v15927_v53   ;;  %9926 = vmatpush3.msra.mxu0 %v7212_v20  ;;  %v5322_v7 = vadd.f32 %v5281_v13, %v5076_v42  ;;  %v17971_v20 = vld [vmem:[#allocation254_spill] sm:$0xff]  ;;  %v16232_v42 = vpop.permute.xlu0 %6643  ;;  %v17975_v13 = vld [vmem:[#allocation211_spill] sm:$0xff] }
 0x87a   : > { %v7195_v47 = vsel %vm7113_vm13, %v7072_v59, %v7154_v52  ;;  %v5060_v59 = vmul.f32 %v15774_v3, %v11961_v5  ;;  %v6246_v52 = vmul.f32 %v17971_v20, %v12007_v60  ;;  %v5284_v57 = vmul.f32 %v17975_v13, %v11947_v6  ;;  %v17984_v13 = vld [vmem:[#allocation125_spill] sm:$0xff] }
 0x87b   : > { %v5212_v2 = vpop.permute.xlu1 %5211  ;;  %7268 = vmatpush2.msra.mxu1 %v7195_v47 }
 0x87c   : > { %v5278_v21 = vmul.f32 %v5212_v2, %v11947_v6  ;;  %7269 = vmatprep.subr.mxu1 %v17853_v11  ;;  %v5265_v2 = vmul.f32 %v17972_v45, %v11947_v6  ;;  %v5325_v45 = vadd.f32 %v5284_v57, %v5079_v26  ;;  %v5513_v57 = vmul.f32 %v17984_v13, %v11965_v17 }
 0x87d   : > { %6449 = vperm.xlu1 %10610, %v15802_v51  }
 0x87e   : > { %v16201_v53 = vadd.f32 %v5278_v21, %v5073_v63  ;;  %v17973_v63 = vld [vmem:[#allocation168_spill] sm:$0xff]  ;;  %v5511_v21 = vmul.f32 %v15850_v16, %v11965_v17  ;;  %v5306_v48 = vadd.f32 %v5265_v2, %v5060_v59  ;;  %v5283_v16 = vmul.f32 %v15783_v25, %v11947_v6  ;;  %v16251_v2 = vpop.permute.xlu0 %6639 }
 0x87f   : > { %v17978_v25 = vld [vmem:[#allocation80_spill] sm:$0xff] }
 0x880   : > { %v5640_v54 = vpop.permute.xlu1 %5639 }
 0x881   : > { %v5754_v1 = vmul.f32 %v5640_v54, %v17577_v36  ;;  %10611 = vset.pattern.permute.xlu1 %v17184_v30 }
 0x882   : > { %6699 = vperm.xlu1 %10611, %v15949_v49   ;;  %v5527_v49 = vmul.f32 %v17973_v63, %v11965_v17 }
 0x883   : > { %v5795_v35 = vadd.f32 %v5754_v1, %v5549_v41  ;;  %v5552_v41 = vadd.f32 %v5511_v21, %v5306_v48  ;;  %v17980_v48 = vld [vmem:[#allocation166_spill] sm:$0xff] }
 0x884   : > { %v16214_v58 = vpop.permute.xlu1 %5711  ;;  %v5568_v15 = vadd.f32 %v5527_v49, %v5322_v7  ;;  %v5529_v7 = vmul.f32 %v17978_v25, %v11965_v17  ;;  %v5775_v49 = vmul.f32 %v15986_v23, %v17577_v36  ;;  %v6249_v23 = vmul.f32 %v16132_v29, %v12007_v60 }
 0x885   : > { %v6041_v47 = vadd.f32 %v6000_v62, %v5795_v35  ;;  %v6265_v62 = vmul.f32 %v17976_v40, %v12007_v60  ;;  %v17977_v35 = vld [vmem:[#allocation24_spill] sm:$0xff] }
 0x886   : > { %10612 = vset.pattern.permute.xlu1 %v17896_v38  ;;  %v5814_v1 = vadd.f32 %v5773_v24, %v5568_v15  ;;  %v5078_v59 = vmul.f32 %v17977_v35, %v11961_v5  ;;  %v5530_v15 = vmul.f32 %v17980_v48, %v11965_v17  ;;  %v17985_v35 = vld [vmem:[#allocation173_spill] sm:$0xff] }
 0x887   : > { %6877 = vperm.xlu1 %10612, %v15682_v32   ;;  %v16228_v3 = vadd.f32 %v6246_v52, %v6041_v47  ;;  %v5757_v32 = vmul.f32 %v17974_v12, %v17577_v36  ;;  %v17979_v52 = vld [vmem:[#allocation176_spill] sm:$0xff] }
 0x888   : > { %v6003_v47 = vmul.f32 %v17979_v52, %v11991_v8  ;;  %v5324_v63 = vadd.f32 %v5283_v16, %v5078_v59  ;;  %v6021_v16 = vmul.f32 %v16029_v50, %v11991_v8  ;;  %v5571_v40 = vadd.f32 %v5530_v15, %v5325_v45  ;;  %v17987_v52 = vld [vmem:[#allocation2_spill] sm:$0xff] }
 0x889   : > { %v5962_v54 = vpop.permute.xlu1 %5961  ;;  %v6022_v59 = vmul.f32 %v17985_v35, %v11991_v8 }
 0x88a   : > { %v6019_v22 = vmul.f32 %v5962_v54, %v11991_v8  ;;  %v17981_v54 = vld [vmem:[#allocation234_spill] sm:$0xff]  ;;  %v5570_v12 = vadd.f32 %v5529_v7, %v5324_v63  ;;  %v17986_v7 = vld [vmem:[#allocation167_spill] sm:$0xff]  ;;  %v5759_v63 = vmul.f32 %v17987_v52, %v17577_v36 }
 0x88b   : > { %10613 = vset.pattern.permute.xlu1 %v17895_v44  ;;  %v5798_v44 = vadd.f32 %v5757_v32, %v5552_v41  ;;  %v17983_v41 = vld [vmem:[#allocation28_spill] sm:$0xff]  ;;  %v6267_v29 = vmul.f32 %v17986_v7, %v12007_v60  ;;  %v6497_v7 = vmul.f32 %v16051_v43, %v12025_v10  ;;  %v6743_v43 = vmul.f32 %v16232_v42, %v12032_v34 }
 0x88c   : > { %v6060_v20 = vadd.f32 %v6019_v22, %v5814_v1  ;;  %6195 = vperm.xlu1 %10613, %v15772_v27   ;;  %v5267_v1 = vmul.f32 %v17981_v54, %v11947_v6  ;;  %v17982_v22 = vld [vmem:[#allocation188_spill] sm:$0xff]  ;;  %v5062_v32 = vmul.f32 %v17983_v41, %v11961_v5  ;;  %v5816_v25 = vadd.f32 %v5775_v49, %v5570_v12 }
 0x88d   : > { %v5776_v26 = vmul.f32 %v17982_v22, %v17577_v36  ;;  %v6044_v50 = vadd.f32 %v6003_v47, %v5798_v44  ;;  %v6987_v47 = vmul.f32 %v16073_v0, %v16105_v28  ;;  %v17988_v44 = vld [vmem:[#allocation232_spill] sm:$0xff]  ;;  %v6514_v28 = vmul.f32 %v16166_v37, %v12025_v10 }
 0x88e   : > { %v16255_v21 = vadd.f32 %v6265_v62, %v6060_v20  ;;  %v16257_v24 = vpop.permute.xlu1 %6139  ;;  %v6636_v62 = vpop.permute.xlu0 %6635  ;;  %v5308_v20 = vadd.f32 %v5267_v1, %v5062_v32  ;;  %v6062_v22 = vadd.f32 %v6021_v16, %v5816_v25  ;;  %v6005_v49 = vmul.f32 %v17988_v44, %v11991_v8 }
 0x88f   : > { %v5817_v48 = vadd.f32 %v5776_v26, %v5571_v40  ;;  %v6290_v41 = vadd.f32 %v6249_v23, %v6044_v50  ;;  %v6741_v15 = vmul.f32 %v6636_v62, %v12032_v34  ;;  %v17989_v26 = vld [vmem:[#allocation249_spill] sm:$0xff]  ;;  %v17990_v40 = vld [vmem:[#allocation248_spill] sm:$0xff] }
 0x890   : > { %10614 = vset.pattern.permute.xlu1 %v17190_v55  ;;  %v5554_v13 = vadd.f32 %v5513_v57, %v5308_v20  ;;  %v6268_v12 = vmul.f32 %v17989_v26, %v12007_v60  ;;  %v6251_v57 = vmul.f32 %v17990_v40, %v12007_v60  ;;  %v6308_v35 = vadd.f32 %v6267_v29, %v6062_v22 }
 0x891   : > { %6445 = vperm.xlu1 %10614, %v15904_v39   ;;  %v6063_v23 = vadd.f32 %v6022_v59, %v5817_v48  ;;  %v7006_v48 = vmul.f32 %v16073_v0, %v16096_v33 }
 0x892   : > { %v5800_v16 = vadd.f32 %v5759_v63, %v5554_v13 }
 0x893   : > { %v6390_v54 = vpop.permute.xlu1 %6389  ;;  %v6309_v59 = vadd.f32 %v6268_v12, %v6063_v23 }
 0x894   : > { %v6495_v45 = vmul.f32 %v6390_v54, %v12025_v10  ;;  %v6046_v50 = vadd.f32 %v6005_v49, %v5800_v16  ;;  %v17992_v16 = vld [vmem:[#allocation155_spill] sm:$0xff] }
 0x895   : > { %10615 = vset.pattern.permute.xlu1 %v17184_v30  ;;  %v6555_v54 = vadd.f32 %v6514_v28, %v6309_v59  ;;  %v5075_v23 = vmul.f32 %v17992_v16, %v11961_v5  ;;  %v17997_v59 = vld [vmem:[#allocation52_spill] sm:$0xff] }
 0x896   : > { %v6536_v1 = vadd.f32 %v6495_v45, %v6290_v41  ;;  %6695 = vperm.xlu1 %10615, %v15802_v51   ;;  %v6292_v63 = vadd.f32 %v6251_v57, %v6046_v50  ;;  %v17995_v50 = vld [vmem:[#allocation9_spill] sm:$0xff] }
 0x897   : > { %v6462_v32 = vpop.permute.xlu1 %6461 }
 0x898   : > { %v6782_v62 = vadd.f32 %v6741_v15, %v6536_v1  ;;  %v6513_v25 = vmul.f32 %v6462_v32, %v12025_v10  ;;  %v6538_v22 = vadd.f32 %v6497_v7, %v6292_v63  ;;  %v17993_v32 = vld [vmem:[#allocation140_spill] sm:$0xff]  ;;  %v5264_v63 = vmul.f32 %v17997_v59, %v11947_v6 }
 0x899   : > { %v5263_v40 = vmul.f32 %v17993_v32, %v11947_v6 }
 0x89a   : > { %v16298_v20 = vadd.f32 %v6987_v47, %v6782_v62  ;;  %v16300_v52 = vadd.f32 %v6513_v25, %v6308_v35  ;;  %10616 = vset.pattern.permute.xlu1 %v17896_v38  ;;  %v17994_v25 = vld [vmem:[#allocation42_spill] sm:$0xff] }
 0x89b   : > { %6873 = vperm.xlu1 %10616, %v15942_v18   ;;  %v6784_v18 = vadd.f32 %v6743_v43, %v6538_v22  ;;  %v5058_v28 = vmul.f32 %v17994_v25, %v11961_v5  ;;  %v17999_v22 = vld [vmem:[#allocation54_spill] sm:$0xff] }
 0x89c   : > { %v6712_v29 = vpop.permute.xlu1 %6711  ;;  %v5510_v43 = vmul.f32 %v17999_v22, %v11965_v17 }
 0x89d   : > { %v6760_v37 = vmul.f32 %v6712_v29, %v12032_v34  ;;  %v5304_v29 = vadd.f32 %v5263_v40, %v5058_v28  ;;  %v18005_v28 = vld [vmem:[#allocation202_spill] sm:$0xff] }
 0x89f   : > { %v6801_v41 = vadd.f32 %v6760_v37, %v6555_v54  ;;  %10617 = vset.pattern.permute.xlu1 %v17190_v55  ;;  %v17991_v55 = vld [vmem:[#allocation43_spill] sm:$0xff] }
 0x8a0   : > { %6441 = vperm.xlu1 %10617, %v15772_v27   ;;  %v5280_v27 = vmul.f32 %v17991_v55, %v11947_v6  ;;  %v17998_v54 = vld [vmem:[#allocation23_spill] sm:$0xff] }
 0x8a1   : > { %v7047_v45 = vadd.f32 %v7006_v48, %v6801_v41  ;;  %v6890_v15 = vpop.permute.xlu1 %6889  ;;  %v5755_v48 = vmul.f32 %v16099_v31, %v17577_v36  ;;  %v5059_v37 = vmul.f32 %v17998_v54, %v11961_v5 }
 0x8a2   : > { %v6989_v13 = vmul.f32 %v16073_v0, %v6890_v15  ;;  %v5321_v62 = vadd.f32 %v5280_v27, %v5075_v23  ;;  %v1184_v27 = vld [vmem:[%s17963_s25 + $0x8] sm:$0xff] }
 0x8a3   : > { %v7088_v47 = vadd.f32 %v16184_v61, %v7047_v45 }
 0x8a4   : > { %v7030_v33 = vadd.f32 %v6989_v13, %v6784_v18  ;;  %10618 = vset.pattern.permute.xlu1 %v17184_v30  ;;  %v5305_v18 = vadd.f32 %v5264_v63, %v5059_v37  ;;  %v18000_v13 = vld [vmem:[#allocation83_spill] sm:$0xff] }
 0x8a5   : > { %6691 = vperm.xlu1 %10618, %v15904_v39   ;;  %vm7129_vm15 = vcmp.gt.f32.partialorder %v7088_v47, 0.0  ;;  %v7170_v44 = vmul.f32 0.01, %v7088_v47 }
 0x8a6   : > { %v7071_v42 = vadd.f32 %v16184_v61, %v7030_v33  ;;  %v5458_v49 = vpop.permute.xlu1 %5457  ;;  %v5551_v31 = vadd.f32 %v5510_v43, %v5305_v18 }
 0x8a7   : > { %v5524_v1 = vmul.f32 %v5458_v49, %v11965_v17  ;;  %v7211_v26 = vsel %vm7129_vm15, %v7088_v47, %v7170_v44  ;;  %v5756_v47 = vmul.f32 %v18000_v13, %v17577_v36  ;;  %v18001_v49 = vld [vmem:[#allocation178_spill] sm:$0xff]  ;;  %v18008_v13 = vld [vmem:[#allocation203_spill] sm:$0xff] }
 0x8a8   : > { %9927 = vmatprep.subr.mxu0 %v7211_v26  ;;  %vm7112_vm0 = vcmp.gt.f32.partialorder %v7071_v42, 0.0  ;;  %v7153_v12 = vmul.f32 0.01, %v7071_v42  ;;  %v6001_v55 = vmul.f32 %v18001_v49, %v11991_v8 }
 0x8a9   : > { %v16322_v30 = vadd.f32 %v5524_v1, %v16201_v53  ;;  %10620 = vset.pattern.permute.xlu1 %v17896_v38  ;;  %9928 = vmatpush3.msra.mxu0 %v7211_v26  ;;  %v5509_v53 = vmul.f32 %v17995_v50, %v11965_v17  ;;  %v17996_v38 = vld [vmem:[#allocation170_spill] sm:$0xff]  ;;  %v9770_v1 = vpop.f32.mrf.mxu1  ;;  %v18002_v26 = vld [vmem:[#allocation85_spill] sm:$0xff]  ;;  %v5797_v16 = vadd.f32 %v5756_v47, %v5551_v31  ;;  %v18009_v31 = vld [vmem:[#allocation4_spill] sm:$0xff] }
 0x8aa   : > { %6941 = vperm.xlu1 %10620, %v15802_v51   ;;  %v7194_v57 = vsel %vm7112_vm0, %v7071_v42, %v7153_v12  ;;  %v5526_v7 = vmul.f32 %v17996_v38, %v11965_v17  ;;  %v5772_v51 = vmul.f32 %v16214_v58, %v17577_v36  ;;  %v5266_v12 = vmul.f32 %v18002_v26, %v11947_v6 }
 0x8ab   : > { %v16328_v35 = vpop.permute.xlu1 %5707  ;;  %7270 = vmatpush2.msra.mxu1 %v7194_v57  ;;  %v5550_v45 = vadd.f32 %v5509_v53, %v5304_v29  ;;  %v18003_v57 = vmov 0   ;;  %v6002_v50 = vmul.f32 %v18005_v28, %v11991_v8  ;;  %v18006_v53 = vld [vmem:[#allocation142_spill] sm:$0xff]  ;;  %v4088_v63 = vpop.f32.mrf.mxu1  ;;  %v6250_v49 = vmul.f32 %v18009_v31, %v12007_v60 }
 0x8ac   : > { %7271 = vmatprep.subr.mxu1 %v17853_v11  ;;  %v5567_v41 = vadd.f32 %v5526_v7, %v5321_v62  ;;  %v18004_v62 = vld [vmem:[#allocation40_spill] sm:$0xff]  ;;  %v5512_v38 = vmul.f32 %v18006_v53, %v11965_v17  ;;  %v6248_v7 = vmul.f32 %v16257_v24, %v12007_v60  ;;  %v6004_v24 = vmul.f32 %v18008_v13, %v11991_v8 }
 0x8ad   : > { %v5796_v44 = vadd.f32 %v5755_v48, %v5550_v45  ;;  %v5061_v25 = vmul.f32 %v18004_v62, %v11961_v5  ;;  %v6043_v29 = vadd.f32 %v6002_v50, %v5797_v16  ;;  %v9789_v54 = vpop.f32.mrf.mxu1  ;;  %v6496_v26 = vmul.f32 %v16151_v9, %v12025_v10 }
 0x8ae   : > { %6937 = vperm.xlu1 %10620, %v15904_v39   ;;  %v5813_v58 = vadd.f32 %v5772_v51, %v5567_v41  ;;  %v10767_v39 = vld [vmem:[%s17080_s6 + $0x248] sm:$0xff]  ;;  %v4175_v41 = vadd.f32 %v9789_v54, %v9770_v1  ;;  %v7069_v54 = vadd.f32 %v16184_v61, %v16298_v20  ;;  %v5771_v20 = vmul.f32 %v16328_v35, %v17577_v36  ;;  %s16826_s6 = sshll.u32 %s18019_s26, 6 }
 0x8af   : > { %v6042_v32 = vadd.f32 %v6001_v55, %v5796_v44  ;;  %v5307_v51 = vadd.f32 %v5266_v12, %v5061_v25  ;;  %v6289_v22 = vadd.f32 %v6248_v7, %v6043_v29  ;;  %v4169_v45 = vpop.f32.mrf.mxu1  ;;  %v6742_v25 = vmul.f32 %v16251_v2, %v12032_v34  ;;  %s16848_s28 = scalar_lea.vmem %s16994_s10, %s16826_s6 }
 0x8b0   : > { %v5958_v15 = vpop.permute.xlu1 %5957  ;;  %v7151_v31 = vmul.f32 0.01, %v7069_v54  ;;  %vm7110_vm2 = vcmp.gt.f32.partialorder %v7069_v54, 0.0 }
 0x8b1   : > { %v6018_v33 = vmul.f32 %v5958_v15, %v11991_v8  ;;  %v5553_v37 = vadd.f32 %v5512_v38, %v5307_v51  ;;  %v18007_v15 = vld [vmem:[#allocation163_spill] sm:$0xff]  ;;  %v9808_v44 = vpop.f32.mrf.mxu1  ;;  %v9884_v38 = vpop.f32.mrf.mxu0  ;;  %v5279_v51 = vmul.f32 %v16084_v46, %v11947_v6 }
 0x8b2   : > { %6933 = vperm.xlu1 %10620, %v10767_v39   ;;  %v5758_v18 = vmul.f32 %v18007_v15, %v17577_v36  ;;  %v4260_v55 = vadd.f32 %v9808_v44, %v4175_v41 }
 0x8b3   : > { %v16354_v42 = vadd.f32 %v6018_v33, %v5813_v58  ;;  %v4170_v58 = vadd.f32 %v4169_v45, %v4088_v63  ;;  %v4582_v15 = vpop.f32.mrf.mxu0 }
 0x8b4   : > { %v5799_v39 = vadd.f32 %v5758_v18, %v5553_v37 }
 0x8b5   : > { %v6136_v23 = vpop.permute.xlu1 %6135 }
 0x8b6   : > { %v6247_v40 = vmul.f32 %v6136_v23, %v12007_v60  ;;  %10622 = vset.pattern.permute.xlu1 %v18003_v57  ;;  %v6045_v1 = vadd.f32 %v6004_v24, %v5799_v39 }
 0x8b7   : > { %4780 = vperm.xlu1 %10622, %v1184_v27   ;;  %v4250_v27 = vpop.f32.mrf.mxu1 }
 0x8b8   : > { %v16373_v59 = vadd.f32 %v6247_v40, %v6042_v32  ;;  %v4259_v12 = vadd.f32 %v4250_v27, %v4170_v58  ;;  %v6291_v23 = vadd.f32 %v6250_v49, %v6045_v1  ;;  %v18011_v58 = vld [vmem:[#allocation175_spill] sm:$0xff] }
 0x8b9   : > { %v9827_v16 = vpop.f32.mrf.mxu1  ;;  %v5525_v44 = vmul.f32 %v18011_v58, %v11965_v17 }
 0x8ba   : > { %v6386_v48 = vpop.permute.xlu1 %6385  ;;  %v4343_v40 = vadd.f32 %v9827_v16, %v4260_v55  ;;  %v6537_v62 = vadd.f32 %v6496_v26, %v6291_v23  ;;  %v9922_v26 = vpop.f32.mrf.mxu0 }
 0x8bb   : > { %v6494_v43 = vmul.f32 %v6386_v48, %v12025_v10  ;;  %v4333_v57 = vpop.f32.mrf.mxu1 }
 0x8bc   : > { %v4342_v28 = vadd.f32 %v4333_v57, %v4259_v12  ;;  %v6783_v9 = vadd.f32 %v6742_v25, %v6537_v62  ;;  %v18012_v57 = vld [vmem:[#allocation255_spill] sm:$0xff] }
 0x8bd   : > { %v16380_v47 = vadd.f32 %v6494_v43, %v6289_v22  ;;  %v9846_v50 = vpop.f32.mrf.mxu1  ;;  %v18010_v22 = vld [vmem:[#allocation46_spill] sm:$0xff]  ;;  %v6263_v62 = vmul.f32 %v18012_v57, %v12007_v60 }
 0x8be   : > { %v16382_v33 = vpop.permute.xlu1 %6457  ;;  %v4426_v53 = vadd.f32 %v9846_v50, %v4343_v40  ;;  %v5074_v2 = vmul.f32 %v18010_v22, %v11961_v5  ;;  %v7192_v40 = vsel %vm7110_vm2, %v7069_v54, %v7151_v31  ;;  %v7004_v54 = vmul.f32 %v16073_v0, %v16117_v4 }
 0x8bf   : > { %v4416_v63 = vpop.f32.mrf.mxu1  ;;  %vm8289_vm2 = vcmask 1040384  }
 0x8c0   : > { %v4425_v48 = vadd.f32 %v4416_v63, %v4342_v28  ;;  %v5320_v18 = vadd.f32 %v5279_v51, %v5074_v2  ;;  %v6512_v63 = vmul.f32 %v16382_v33, %v12025_v10 }
 0x8c1   : > { %v9865_v37 = vpop.f32.mrf.mxu1 }
 0x8c2   : > { %v4509_v41 = vadd.f32 %v9865_v37, %v4426_v53  ;;  %v5566_v12 = vadd.f32 %v5525_v44, %v5320_v18 }
 0x8c3   : > { %v6708_v32 = vpop.permute.xlu1 %6707  ;;  %v4499_v45 = vpop.f32.mrf.mxu1 }
 0x8c4   : > { %v4508_v6 = vadd.f32 %v4499_v45, %v4425_v48  ;;  %v4592_v46 = vadd.f32 %v9884_v38, %v4509_v41  ;;  %v5812_v35 = vadd.f32 %v5771_v20, %v5566_v12  ;;  %v6759_v48 = vmul.f32 %v6708_v32, %v12032_v34  ;;  %v6628_v45 = vpop.permute.xlu0 %6627 }
 0x8c5   : > { %v9903_v5 = vpop.f32.mrf.mxu1  ;;  %v6984_v20 = vmul.f32 %v16073_v0, %v16157_v19 }
 0x8c6   : > { %v16403_v55 = vadd.f32 %v4582_v15, %v4508_v6  ;;  %v4675_v27 = vadd.f32 %v9903_v5, %v4592_v46  ;;  %v6800_v2 = vadd.f32 %v6759_v48, %v16300_v52  ;;  %v18013_v5 = vld [vmem:[#allocation223_spill] sm:$0xff] }
 0x8c8   : > { %v6886_v7 = vpop.permute.xlu1 %6885  ;;  %v16408_v17 = vadd.f32 %v9922_v26, %v4675_v27 }
 0x8c9   : > { %v6988_v29 = vmul.f32 %v16073_v0, %v6886_v7 }
 0x8cb   : > { %v7029_v43 = vadd.f32 %v6988_v29, %v6783_v9  ;;  %v6553_v9 = vadd.f32 %v6512_v63, %v16134_v14 }
 0x8cd   : > { %v7070_v13 = vadd.f32 %v16184_v61, %v7029_v43  ;;  %v5704_v24 = vpop.permute.xlu1 %5703 }
 0x8ce   : > { %v5770_v39 = vmul.f32 %v5704_v24, %v17577_v36 }
 0x8cf   : > { %vm7111_vm1 = vcmp.gt.f32.partialorder %v7070_v13, 0.0  ;;  %v7152_v49 = vmul.f32 0.01, %v7070_v13 }
 0x8d0   : > { %v16406_v1 = vadd.f32 %v5770_v39, %v16322_v30 }
 0x8d1   : > { %v7193_v16 = vsel %vm7111_vm1, %v7070_v13, %v7152_v49  ;;  %v6624_v13 = vpop.permute.xlu0 %6623  ;;  %v6511_v49 = vmul.f32 %v18013_v5, %v12025_v10  ;;  %v10771_v5 = vld [vmem:[%s14454_s7 + $0x1b0] sm:$0xff] }
 0x8d2   : > { %v5954_v23 = vpop.permute.xlu1 %5953  ;;  %7272 = vmatpush2.msra.mxu1 %v7193_v16  ;;  %v6738_v6 = vmul.f32 %v6624_v13, %v12032_v34 }
 0x8d3   : > { %v6017_v36 = vmul.f32 %v5954_v23, %v11991_v8  ;;  %7273 = vmatprep.subr.mxu1 %v17853_v11  ;;  %v6552_v26 = vadd.f32 %v6511_v49, %v16255_v21 }
 0x8d4   : > { %7274 = vmatpush2.msra.mxu1 %v7192_v40 }
 0x8d5   : > { %v6058_v30 = vadd.f32 %v6017_v36, %v5812_v35  ;;  %7275 = vmatprep.subr.mxu1 %v17853_v11 }
 0x8d7   : > { %v6204_v25 = vpop.permute.xlu1 %6203  ;;  %v16415_v28 = vadd.f32 %v6263_v62, %v6058_v30 }
 0x8d8   : > { %v6264_v50 = vmul.f32 %v6204_v25, %v12007_v60 }
 0x8da   : > { %v16419_v53 = vadd.f32 %v6264_v50, %v16354_v42 }
 0x8dc   : > { %v16421_v38 = vpop.permute.xlu1 %6381 }
 0x8e1   : > { %v6632_v7 = vpop.permute.xlu1 %6631 }
 0x8e2   : > { %v6740_v16 = vmul.f32 %v6632_v7, %v12032_v34 }
 0x8e4   : > { %v6781_v19 = vadd.f32 %v6740_v16, %v16380_v47  ;;  %v6493_v47 = vmul.f32 %v16421_v38, %v12025_v10  ;;  %v4748_v38 = vpop.f32.mrf.mxu0 }
 0x8e5   : > { %v6704_v51 = vpop.permute.xlu1 %6703 }
 0x8e6   : > { %v6758_v29 = vmul.f32 %v6704_v51, %v12032_v34 }
 0x8e8   : > { %v6799_v37 = vadd.f32 %v6758_v29, %v6553_v9  ;;  %v6534_v9 = vadd.f32 %v6493_v47, %v16373_v59  ;;  %v6739_v29 = vmul.f32 %v6628_v45, %v12032_v34 }
 0x8ea   : > { %v7045_v22 = vadd.f32 %v7004_v54, %v6799_v37  ;;  %v6954_v42 = vpop.permute.xlu1 %6953  ;;  %v6780_v54 = vadd.f32 %v6739_v29, %v6534_v9 }
 0x8eb   : > { %v7005_v43 = vmul.f32 %v16073_v0, %v6954_v42 }
 0x8ec   : > { %v7086_v33 = vadd.f32 %v16184_v61, %v7045_v22  ;;  %v4665_v22 = vpop.f32.mrf.mxu1 }
 0x8ed   : > { %v7046_v41 = vadd.f32 %v7005_v43, %v6800_v2 }
 0x8ee   : > { %v7168_v18 = vmul.f32 0.01, %v7086_v33  ;;  %vm7127_vm4 = vcmp.gt.f32.partialorder %v7086_v33, 0.0 }
 0x8ef   : > { %v7087_v14 = vadd.f32 %v16184_v61, %v7046_v41  ;;  %v16434_v15 = vpop.permute.xlu1 %5949 }
 0x8f0   : > { %v7209_v46 = vsel %vm7127_vm4, %v7086_v33, %v7168_v18  ;;  %v4674_v33 = vadd.f32 %v4665_v22, %v16403_v55  ;;  %v6016_v55 = vmul.f32 %v16434_v15, %v11991_v8  ;;  %v10781_v22 = vld [vmem:[%s17654_s0 + $0x48] sm:$0xff]  ;;  %vm8482_vm4 = vcmask 48128  }
 0x8f1   : > { %vm7128_vm3 = vcmp.gt.f32.partialorder %v7087_v14, 0.0  ;;  %v7169_v32 = vmul.f32 0.01, %v7087_v14 }
 0x8f2   : > { %v4757_v45 = vadd.f32 %v4748_v38, %v4674_v33  ;;  %v10783_v38 = vld [vmem:[%s14454_s7 + $0x188] sm:$0xff] }
 0x8f3   : > { %v7210_v4 = vsel %vm7128_vm3, %v7087_v14, %v7169_v32  ;;  %vm8486_vm3 = vcmask 1045504  }
 0x8f4   : > { %v6378_v24 = vpop.permute.xlu1 %6377  ;;  %9929 = vmatprep.subr.mxu0 %v7210_v4 }
 0x8f5   : > { %v6492_v52 = vmul.f32 %v6378_v24, %v12025_v10  ;;  %9930 = vmatpush3.msra.mxu0 %v7210_v4  ;;  %v16466_v4 = vld [vmem:[%s985_s27] ss:$0 sm:$0xff]  ;;  %s18015_s27 = sld [smem:[#allocation265_spill]] }
 0x8f6   : > { %9931 = vmatprep.subr.mxu0 %v7209_v46 }
 0x8f7   : > { %v6533_v58 = vadd.f32 %v6492_v52, %v16228_v3  ;;  %9932 = vmatpush3.msra.mxu0 %v7209_v46  ;;  %v7003_v3 = vmul.f32 %v16073_v0, %v16140_v56  ;;  %v4765_v46 = vadd.f32 %v16466_v4, %v4757_v45  ;;  %v10784_v45 = vld [vmem:[%s17654_s0 + $0x60] sm:$0xff] }
 0x8f8   : > { %v6450_v44 = vpop.permute.xlu1 %6449 }
 0x8f9   : > { %v6779_v39 = vadd.f32 %v6738_v6, %v6533_v58  ;;  %v6510_v18 = vmul.f32 %v6450_v44, %v12025_v10  ;;  %v10768_v6 = vld [vmem:[%s17654_s0] sm:$0xff]  ;;  %v10769_v58 = vld [vmem:[%s14454_s7 + $0x1b8] sm:$0xff]  ;;  %vm4767_vm10 = vcmp.gt.f32.partialorder %v4765_v46, 0.0 }
 0x8fb   : > { %v7025_v31 = vadd.f32 %v6984_v20, %v6779_v39  ;;  %v6551_v44 = vadd.f32 %v6510_v18, %v16419_v53  ;;  %v10770_v20 = vld [vmem:[%s17654_s0 + $0x20] sm:$0xff]  ;;  %v6057_v39 = vadd.f32 %v6016_v55, %v16406_v1  ;;  %v4766_v1 = vadd.f32 %v16466_v4, %v16408_v17 }
 0x8fd   : > { %v6700_v27 = vpop.permute.xlu1 %6699  ;;  %v7066_v42 = vadd.f32 %v16184_v61, %v7025_v31  ;;  %vm4768_vm9 = vcmp.gt.f32.partialorder %v4766_v1, 0.0 }
 0x8fe   : > { %v6757_v12 = vmul.f32 %v6700_v27, %v12032_v34 }
 0x8ff   : > { %v7148_v32 = vmul.f32 0.01, %v7066_v42  ;;  %vm7107_vm8 = vcmp.gt.f32.partialorder %v7066_v42, 0.0 }
 0x900   : > { %v6798_v23 = vadd.f32 %v6757_v12, %v6552_v26  ;;  %v10772_v26 = vld [vmem:[%s17654_s0 + $0x18] sm:$0xff]  ;;  %v10773_v12 = vld [vmem:[%s14454_s7 + $0x1a8] sm:$0xff] }
 0x901   : > { %v7189_v24 = vsel %vm7107_vm8, %v7066_v42, %v7148_v32 }
 0x902   : > { %v7044_v35 = vadd.f32 %v7003_v3, %v6798_v23  ;;  %v6878_v36 = vpop.permute.xlu1 %6877 }
 0x903   : > { %v6986_v40 = vmul.f32 %v16073_v0, %v6878_v36  ;;  %v4769_v36 = vmul.f32 0.01, %v4765_v46 }
 0x904   : > { %v7085_v57 = vadd.f32 %v16184_v61, %v7044_v35  ;;  %v10774_v35 = vld [vmem:[%s17654_s0 + $0x38] sm:$0xff] }
 0x905   : > { %v7027_v62 = vadd.f32 %v6986_v40, %v6781_v19  ;;  %v10775_v40 = vld [vmem:[%s14454_s7 + $0x1a0] sm:$0xff] }
 0x906   : > { %vm7126_vm5 = vcmp.gt.f32.partialorder %v7085_v57, 0.0  ;;  %v7167_v30 = vmul.f32 0.01, %v7085_v57 }
 0x907   : > { %v7068_v21 = vadd.f32 %v16184_v61, %v7027_v62  ;;  %v6196_v25 = vpop.permute.xlu1 %6195 }
 0x908   : > { %v7208_v50 = vsel %vm7126_vm5, %v7085_v57, %v7167_v30  ;;  %v6262_v8 = vmul.f32 %v6196_v25, %v12007_v60  ;;  %v4770_v25 = vmul.f32 0.01, %v4766_v1 }
 0x909   : > { %9933 = vmatprep.subr.mxu0 %v7208_v50  ;;  %vm7109_vm6 = vcmp.gt.f32.partialorder %v7068_v21, 0.0  ;;  %v7150_v7 = vmul.f32 0.01, %v7068_v21 }
 0x90a   : > { %9934 = vmatpush3.msra.mxu0 %v7208_v50  ;;  %v6303_v16 = vadd.f32 %v6262_v8, %v6057_v39  ;;  %v10777_v50 = vld [vmem:[%s14454_s7 + $0x198] sm:$0xff]  ;;  %v4772_v33 = vsel %vm4768_vm9, %v4766_v1, %v4770_v25  ;;  %v10789_v8 = vld [vmem:[%s17654_s0 + $0x28] sm:$0xff]  ;;  %v10792_v39 = vld [vmem:[%s17654_s0 + $0x90] sm:$0xff] }
 0x90b   : > { %v7191_v56 = vsel %vm7109_vm6, %v7068_v21, %v7150_v7  ;;  %v10776_v21 = vld [vmem:[%s17654_s0 + $0x30] sm:$0xff]  ;;  %v10800_v1 = vld [vmem:[%s17654_s0 + $0xc8] sm:$0xff]  ;;  %v16622_v25 = vld [vmem:[%s14454_s7 + $0x238] sm:$0xff] }
 0x90c   : > { %v6446_v63 = vpop.permute.xlu1 %6445  ;;  %7276 = vmatpush2.msra.mxu1 %v7191_v56 }
 0x90d   : > { %7277 = vmatprep.subr.mxu1 %v17853_v11  ;;  %v6509_v15 = vmul.f32 %v6446_v63, %v12025_v10 }
 0x90f   : > { %v6550_v3 = vadd.f32 %v6509_v15, %v16415_v28  ;;  %v10790_v15 = vld [vmem:[%s14454_s7 + $0x78] sm:$0xff] }
 0x911   : > { %v6696_v51 = vpop.permute.xlu1 %6695 }
 0x912   : > { %v6756_v52 = vmul.f32 %v6696_v51, %v12032_v34  ;;  %v10779_v51 = vld [vmem:[%s14454_s7 + $0x190] sm:$0xff] }
 0x914   : > { %v6797_v49 = vadd.f32 %v6756_v52, %v6551_v44  ;;  %v10786_v52 = vld [vmem:[%s14454_s7 + $0x180] sm:$0xff]  ;;  %v10788_v44 = vld [vmem:[%s17654_s0 + $0x98] sm:$0xff] }
 0x916   : > { %v6874_v48 = vpop.permute.xlu1 %6873 }
 0x917   : > { %v6985_v37 = vmul.f32 %v16073_v0, %v6874_v48  ;;  %v10780_v48 = vld [vmem:[%s11935_s4 + $0x8] ss:$0 sm:$0xff]  ;;  %s990_s4 = scalar_lea.vmem %s18015_s27, %s16826_s6 }
 0x919   : > { %v7026_v2 = vadd.f32 %v6985_v37, %v6780_v54 }
 0x91b   : > { %v7067_v43 = vadd.f32 %v16184_v61, %v7026_v2  ;;  %v6442_v41 = vpop.permute.xlu1 %6441 }
 0x91c   : > { %v6508_v27 = vmul.f32 %v6442_v41, %v12025_v10  ;;  %v6688_v10 = vpop.permute.xlu0 %6687  ;;  %v10782_v41 = vld [vmem:[%s17654_s0 + $0x68] sm:$0xff] }
 0x91d   : > { %vm7108_vm7 = vcmp.gt.f32.partialorder %v7067_v43, 0.0  ;;  %v7149_v14 = vmul.f32 0.01, %v7067_v43  ;;  %v6754_v30 = vmul.f32 %v6688_v10, %v12032_v34  ;;  %v10804_v10 = vld [vmem:[%s17654_s0 + $0xc0] sm:$0xff] }
 0x91e   : > { %v6549_v17 = vadd.f32 %v6508_v27, %v6303_v16  ;;  %v10796_v27 = vld [vmem:[%s14454_s7 + $0x68] sm:$0xff]  ;;  %v10802_v16 = vld [vmem:[%s14454_s7 + $0x58] sm:$0xff] }
 0x91f   : > { %v7190_v59 = vsel %vm7108_vm7, %v7067_v43, %v7149_v14  ;;  %vm8574_vm7 = vcmask 261120  }
 0x920   : > { %v6692_v13 = vpop.permute.xlu1 %6691  ;;  %7278 = vmatpush2.msra.mxu1 %v7190_v59  ;;  %v16509_v63 = vpop.permute.xlu0 %4775  ;;  %v6795_v29 = vadd.f32 %v6754_v30, %v6549_v17  ;;  %v10810_v17 = vld [vmem:[%s17654_s0 + $0xd8] sm:$0xff] }
 0x921   : > { %7279 = vmatprep.subr.mxu1 %v17853_v11  ;;  %v6755_v53 = vmul.f32 %v6692_v13, %v12032_v34  ;;  %v4771_v34 = vsel %vm4767_vm10, %v4765_v46, %v4769_v36  ;;  %v10807_v36 = vld [vmem:[%s17654_s0 + $0xb8] sm:$0xff] }
 0x922   : > { %7280 = vmatpush2.msra.mxu1 %v7189_v24  ;;  %v4783_v42 = vmul.f32 %v16509_v63, %v4771_v34  ;;  %v16614_v30 = vld [vmem:[%s14454_s7 + $0x38] sm:$0xff]  ;;  %v10821_v34 = vld [vmem:[%s17654_s0 + $0x108] sm:$0xff] }
 0x923   : > { %7282 = vmatmul.mubr.f32.vlgmr.msra.gmra.mxu1 %v10768_v6  ;;  %10082 = vmatprep.subr.mxu1 %v10769_v58  ;;  %v6796_v57 = vadd.f32 %v6755_v53, %v6550_v3  ;;  %v10797_v53 = vld [vmem:[%s17654_s0 + $0x70] sm:$0xff]  ;;  %v10803_v3 = vld [vmem:[%s17654_s0 + $0xa0] sm:$0xff] }
 0x924   : > { %7286 = vmatprep.mubr.f32.mxu1 %v10770_v20  ;;  %10083 = vmatpush3.msra.mxu1 %v10769_v58  ;;  %v4785_v13 = vsel %vm4015_vm12, %v4783_v42, 0.0  ;;  %v10787_v58 = vld [vmem:[%s17654_s0 + $0x78] sm:$0xff]  ;;  %v10791_v20 = vld [vmem:[%s17654_s0 + $0x40] sm:$0xff] }
 0x925   : > { %v6942_v31 = vpop.permute.xlu1 %6941  ;;  %10084 = vmatprep.subr.mxu1 %v10771_v5  ;;  %v10830_v42 = vld [vmem:[%s17654_s0 + $0x158] sm:$0xff] }
 0x926   : > { %v7002_v60 = vmul.f32 %v16073_v0, %v6942_v31  ;;  %10085 = vmatpush3.msra.mxu1 %v10771_v5  ;;  %v10793_v31 = vld [vmem:[%s14454_s7 + $0x70] sm:$0xff] }
 0x927   : > { %7287 = vmatmul.mubr.f32.gmra.mxu1 %v10772_v26  ;;  %10086 = vmatprep.subr.mxu1 %v10773_v12  ;;  %v10794_v5 = vld [vmem:[%s17654_s0 + $0xb0] sm:$0xff]  ;;  %v10799_v26 = vld [vmem:[%s14454_s7 + $0x60] sm:$0xff] }
 0x928   : > { %v7043_v23 = vadd.f32 %v7002_v60, %v6797_v49  ;;  %7291 = vmatprep.mubr.f32.mxu1 %v10774_v35  ;;  %10087 = vmatpush3.msra.mxu1 %v10773_v12  ;;  %v10795_v49 = vld [vmem:[%s17654_s0 + $0x58] sm:$0xff]  ;;  %v10798_v60 = vld [vmem:[%s17654_s0 + $0xa8] sm:$0xff]  ;;  %v10806_v35 = vld [vmem:[%s17654_s0 + $0xe0] sm:$0xff] }
 0x929   : > { %v6938_v19 = vpop.permute.xlu1 %6937  ;;  %10088 = vmatprep.subr.mxu1 %v10775_v40  ;;  %v10801_v12 = vld [vmem:[%s17654_s0 + $0x88] sm:$0xff] }
 0x92a   : > { %v7084_v62 = vadd.f32 %v16184_v61, %v7043_v23  ;;  %v7001_v28 = vmul.f32 %v16073_v0, %v6938_v19  ;;  %10089 = vmatpush3.msra.mxu1 %v10775_v40  ;;  %v10778_v0 = vld [vmem:[%s17654_s0 + $0x50] sm:$0xff]  ;;  %v10808_v19 = vld [vmem:[%s14454_s7 + $0x48] sm:$0xff] }
 0x92b   : > { %7292 = vmatmul.mubr.f32.gmra.mxu1 %v10776_v21  ;;  %10090 = vmatprep.subr.mxu1 %v10777_v50  ;;  %v10805_v23 = vld [vmem:[%s14454_s7 + $0x50] sm:$0xff]  ;;  %v10815_v21 = vld [vmem:[%s17654_s0 + $0x100] sm:$0xff] }
 0x92c   : > { %v7042_v7 = vadd.f32 %v7001_v28, %v6796_v57  ;;  %vm7125_vm11 = vcmp.gt.f32.partialorder %v7084_v62, 0.0  ;;  %v7166_v56 = vmul.f32 0.01, %v7084_v62  ;;  %7296 = vmatprep.mubr.f32.mxu1 %v10778_v0  ;;  %10091 = vmatpush3.msra.mxu1 %v10777_v50  ;;  %v10809_v40 = vld [vmem:[%s17654_s0 + $0xd0] sm:$0xff]  ;;  %v10811_v57 = vld [vmem:[%s14454_s7 + $0x40] sm:$0xff]  ;;  %v10813_v28 = vld [vmem:[%s17654_s0 + $0xe8] sm:$0xff] }
 0x92d   : > { %v6934_v47 = vpop.permute.xlu1 %6933  ;;  %10092 = vmatprep.subr.mxu1 %v10779_v51  ;;  %v10817_v50 = vld [vmem:[%s17654_s0 + $0xf0] sm:$0xff] }
 0x92e   : > { %v7083_v9 = vadd.f32 %v16184_v61, %v7042_v7  ;;  %v7000_v54 = vmul.f32 %v10780_v48, %v6934_v47  ;;  %v7207_v37 = vsel %vm7125_vm11, %v7084_v62, %v7166_v56  ;;  %10093 = vmatpush3.msra.mxu1 %v10779_v51  ;;  %v10812_v62 = vld [vmem:[%s17654_s0 + $0xf8] sm:$0xff]  ;;  %v10818_v7 = vld [vmem:[%s17654_s0 + $0x110] sm:$0xff]  ;;  %v10822_v47 = vld [vmem:[%s17654_s0 + $0x128] sm:$0xff] }
 0x92f   : > { %9935 = vmatprep.subr.mxu0 %v7207_v37  ;;  %7297 = vmatmul.mubr.f32.gmra.mxu1 %v10781_v22  ;;  %v10819_v56 = vld [vmem:[%s17654_s0 + $0x118] sm:$0xff]  ;;  %v10820_v0 = vld [vmem:[%s17654_s0 + $0x130] sm:$0xff]  ;;  %v10823_v51 = vld [vmem:[%s17654_s0 + $0x148] sm:$0xff] }
 0x930   : > { %v7041_v2 = vadd.f32 %v7000_v54, %v6795_v29  ;;  %9936 = vmatpush3.msra.mxu0 %v7207_v37  ;;  %vm7124_vm13 = vcmp.gt.f32.partialorder %v7083_v9, 0.0  ;;  %v7165_v43 = vmul.f32 0.01, %v7083_v9  ;;  %7301 = vmatprep.mubr.f32.mxu1 %v10782_v41  ;;  %v10825_v29 = vld [vmem:[%s17654_s0 + $0x120] sm:$0xff]  ;;  %v10827_v54 = vld [vmem:[%s17654_s0 + $0x178] sm:$0xff]  ;;  %v10828_v37 = vld [vmem:[%s17654_s0 + $0x190] sm:$0xff] }
 0x931   : > { %10094 = vmatprep.subr.mxu1 %v10783_v38  ;;  %v10826_v48 = vld [vmem:[%s17654_s0 + $0x140] sm:$0xff]  ;;  %v10829_v22 = vld [vmem:[%s17654_s0 + $0x138] sm:$0xff]  ;;  %v10833_v41 = vld [vmem:[%s17654_s0 + $0x170] sm:$0xff] }
 0x932   : > { %v7082_v14 = vadd.f32 %v16184_v61, %v7041_v2  ;;  %v7206_v32 = vsel %vm7124_vm13, %v7083_v9, %v7165_v43  ;;  %v16525_v59 = vpop.permute.xlu1 %4780  ;;  %10095 = vmatpush3.msra.mxu1 %v10783_v38  ;;  %v10785_v61 = vld [vmem:[%s17654_s0 + $0x80] sm:$0xff]  ;;  %v10831_v2 = vld [vmem:[%s17654_s0 + $0x1a8] sm:$0xff]  ;;  %v10832_v43 = vld [vmem:[%s17654_s0 + $0x150] sm:$0xff]  ;;  %vm8930_vm13 = vcmask 130048  }
 0x933   : > { %9937 = vmatprep.subr.mxu0 %v7206_v32  ;;  %7302 = vmatmul.mubr.f32.gmra.mxu1 %v10784_v45  ;;  %v4784_v18 = vmul.f32 %v16525_v59, %v4772_v33  ;;  %v10824_v9 = vld [vmem:[%s17654_s0 + $0x160] sm:$0xff]  ;;  %v10834_v33 = vld [vmem:[%s17654_s0 + $0x168] sm:$0xff]  ;;  %v10838_v45 = vld [vmem:[%s17654_s0 + $0x198] sm:$0xff] }
 0x934   : > { %9938 = vmatpush3.msra.mxu0 %v7206_v32  ;;  %vm7123_vm15 = vcmp.gt.f32.partialorder %v7082_v14, 0.0  ;;  %v7164_v55 = vmul.f32 0.01, %v7082_v14  ;;  %7306 = vmatprep.mubr.f32.mxu1 %v10785_v61  ;;  %v10835_v38 = vld [vmem:[%s17654_s0 + $0x188] sm:$0xff]  ;;  %v10837_v32 = vld [vmem:[%s17654_s0 + $0x1a0] sm:$0xff] }
 0x935   : > { %v4786_v24 = vsel %vm4015_vm12, %v4784_v18, 0.0  ;;  %10096 = vmatprep.subr.mxu1 %v10786_v52 }
 0x936   : > { %v7205_v6 = vsel %vm7123_vm15, %v7082_v14, %v7164_v55  ;;  %v16537_v46 = vadd.f32 %v4786_v24, %v4785_v13  ;;  %10097 = vmatpush3.msra.mxu1 %v10786_v52  ;;  %v10836_v14 = vld [vmem:[%s17654_s0 + $0x180] sm:$0xff]  ;;  %vm9004_vm15 = vcmask 1024  }
 0x937   : > { %9939 = vmatprep.subr.mxu0 %v7205_v6  ;;  %7307 = vmatmul.mubr.f32.gmra.mxu1 %v10787_v58 }
 0x938   : > { %9940 = vmatpush3.msra.mxu0 %v7205_v6  ;;  %7311 = vmatprep.mubr.f32.mxu1 %v10788_v44 }
 0x939   : > { %9942 = vmatmul.mubr.msk.f32.vlgmr.msra.gmra.mxu0 %vm3646_vm14, %v10789_v8  ;;  %9968 = vmatprep.subr.mxu0 %v10790_v15 }
 0x93a   : > { %9944 = vmatprep.mubr.msk.f32.mxu0 %vm3646_vm14, %v10791_v20  ;;  %9969 = vmatpush3.msra.mxu0 %v10790_v15 }
 0x93b   : > { %7312 = vmatmul.mubr.f32.gmra.mxu1 %v10792_v39  ;;  %9970 = vmatprep.subr.mxu0 %v10793_v31 }
 0x93c   : > { %7316 = vmatprep.mubr.f32.mxu1 %v10794_v5  ;;  %9971 = vmatpush3.msra.mxu0 %v10793_v31 }
 0x93d   : > { %9945 = vmatmul.mubr.msk.f32.gmra.mxu0 %vm3646_vm14, %v10795_v49  ;;  %9972 = vmatprep.subr.mxu0 %v10796_v27 }
 0x93e   : > { %9947 = vmatprep.mubr.msk.f32.mxu0 %vm3646_vm14, %v10797_v53  ;;  %9973 = vmatpush3.msra.mxu0 %v10796_v27 }
 0x93f   : > { %7317 = vmatmul.mubr.f32.gmra.mxu1 %v10798_v60  ;;  %9974 = vmatprep.subr.mxu0 %v10799_v26 }
 0x940   : > { %7321 = vmatprep.mubr.f32.mxu1 %v10800_v1  ;;  %9975 = vmatpush3.msra.mxu0 %v10799_v26 }
 0x941   : > { %9948 = vmatmul.mubr.msk.f32.gmra.mxu0 %vm3646_vm14, %v10801_v12  ;;  %9976 = vmatprep.subr.mxu0 %v10802_v16 }
 0x942   : > { %9950 = vmatprep.mubr.msk.f32.mxu0 %vm3646_vm14, %v10803_v3  ;;  %9977 = vmatpush3.msra.mxu0 %v10802_v16 }
 0x943   : > { %7322 = vmatmul.mubr.f32.gmra.mxu1 %v10804_v10  ;;  %9978 = vmatprep.subr.mxu0 %v10805_v23 }
 0x944   : > { %7326 = vmatprep.mubr.f32.mxu1 %v10806_v35  ;;  %9979 = vmatpush3.msra.mxu0 %v10805_v23  ;;  %v10839_v35 = vld [vmem:[%s14454_s7 + $0x30] sm:$0xff] }
 0x945   : > { %9951 = vmatmul.mubr.msk.f32.gmra.mxu0 %vm3646_vm14, %v10807_v36  ;;  %9980 = vmatprep.subr.mxu0 %v10808_v19 }
 0x946   : > { %9953 = vmatprep.mubr.msk.f32.mxu0 %vm3646_vm14, %v10809_v40  ;;  %9981 = vmatpush3.msra.mxu0 %v10808_v19  ;;  %v10840_v40 = vld [vmem:[%s14454_s7 + $0x28] sm:$0xff] }
 0x947   : > { %7327 = vmatmul.mubr.f32.gmra.mxu1 %v10810_v17  ;;  %9982 = vmatprep.subr.mxu0 %v10811_v57 }
 0x948   : > { %7331 = vmatprep.mubr.f32.mxu1 %v10812_v62  ;;  %9983 = vmatpush3.msra.mxu0 %v10811_v57  ;;  %v10841_v62 = vld [vmem:[%s14454_s7 + $0x20] sm:$0xff] }
 0x949   : > { %9954 = vmatmul.mubr.msk.f32.gmra.mxu0 %vm3646_vm14, %v10813_v28  ;;  %9987 = vmatprep.subr.mxu0 %v16614_v30 }
 0x94a   : > { %9956 = vmatprep.mubr.msk.f32.mxu0 %vm3646_vm14, %v10815_v21  ;;  %10120 = vmatprep.subr.mxu1 %v16622_v25  ;;  %v10842_v21 = vld [vmem:[%s14454_s7 + $0x18] sm:$0xff] }
 0x94b   : > { %7332 = vmatmul.mubr.f32.gmra.mxu1 %v10817_v50 }
 0x94c   : > { %7336 = vmatprep.mubr.f32.mxu1 %v10818_v7 }
 0x94d   : > { %9957 = vmatmul.mubr.msk.f32.gmra.mxu0 %vm3646_vm14, %v10819_v56  ;;  %v10843_v56 = vld [vmem:[%s14454_s7 + $0x10] sm:$0xff] }
 0x94e   : > { %9959 = vmatprep.mubr.msk.f32.mxu0 %vm3646_vm14, %v10820_v0 }
 0x94f   : > { %7337 = vmatmul.mubr.f32.gmra.mxu1 %v10821_v34 }
 0x950   : > { %7341 = vmatprep.mubr.f32.mxu1 %v10822_v47  ;;  %v10844_v47 = vld [vmem:[%s14454_s7 + $0x8] sm:$0xff] }
 0x951   : > { %9960 = vmatmul.mubr.msk.f32.gmra.mxu0 %vm3646_vm14, %v10823_v51 }
 0x952   : > { %9962 = vmatprep.mubr.msk.f32.mxu0 %vm3646_vm14, %v10824_v9 }
 0x953   : > { %7342 = vmatmul.mubr.f32.gmra.mxu1 %v10825_v29 }
 0x954   : > { %7346 = vmatprep.mubr.f32.mxu1 %v10826_v48 }
 0x955   : > { %9963 = vmatmul.mubr.msk.f32.gmra.mxu0 %vm3646_vm14, %v10827_v54 }
 0x956   : > { %9965 = vmatprep.mubr.msk.f32.mxu0 %vm3646_vm14, %v10828_v37  ;;  %v10845_v37 = vld [vmem:[%s14454_s7] sm:$0xff] }
 0x957   : > { %7347 = vmatmul.mubr.f32.gmra.mxu1 %v10829_v22 }
 0x958   : > { %7351 = vmatprep.mubr.f32.mxu1 %v10830_v42 }
 0x959   : > { %9966 = vmatmul.mubr.msk.f32.gmra.mxu0 %vm3646_vm14, %v10831_v2  ;;  %v10846_v2 = vld [vmem:[%s14454_s7 + $0xb8] sm:$0xff]  ;;  %vm10911_vm14 = vmmov 0  }
 0x95b   : > { %7352 = vmatmul.mubr.f32.gmra.mxu1 %v10832_v43 }
 0x95c   : > { %7356 = vmatprep.mubr.f32.mxu1 %v10833_v41 }
 0x95f   : > { %7357 = vmatmul.mubr.f32.gmra.mxu1 %v10834_v33 }
 0x960   : > { %7361 = vmatprep.mubr.f32.mxu1 %v10835_v38  ;;  %v10847_v38 = vld [vmem:[%s14454_s7 + $0xb0] sm:$0xff] }
 0x963   : > { %7362 = vmatmul.mubr.f32.gmra.mxu1 %v10836_v14 }
 0x964   : > { %7366 = vmatprep.mubr.f32.mxu1 %v10837_v32  ;;  %v10848_v32 = vld [vmem:[%s14454_s7 + $0xa8] sm:$0xff] }
 0x967   : > { %7367 = vmatmul.mubr.f32.gmra.mxu1 %v10838_v45 }
 0x9e3   : > { %v7283_v18 = vpop.f32.mrf.mxu1 }
 0x9e5   : > { %v7285_v13 = vpop.f32.mrf.mxu1 }
 0x9e6   : > { %v10849_v13 = vld [vmem:[%s14454_s7 + $0xa0] sm:$0xff] }
 0x9e7   : > { %v7288_v55 = vpop.f32.mrf.mxu1 }
 0x9e9   : > { %v7290_v61 = vpop.f32.mrf.mxu1 }
 0x9ea   : > { %v10850_v61 = vld [vmem:[%s14454_s7 + $0x98] sm:$0xff] }
 0x9eb   : > { %v7293_v24 = vpop.f32.mrf.mxu1 }
 0x9ed   : > { %v7295_v52 = vpop.f32.mrf.mxu1 }
 0x9ef   : > { %v7298_v6 = vpop.f32.mrf.mxu1 }
 0x9f1   : > { %v7300_v58 = vpop.f32.mrf.mxu1 }
 0x9f2   : > { %v10852_v58 = vld [vmem:[%s14454_s7 + $0x90] sm:$0xff] }
 0x9f3   : > { %v7303_v44 = vpop.f32.mrf.mxu1 }
 0x9f5   : > { %v7305_v8 = vpop.f32.mrf.mxu1 }
 0x9f6   : > { %v10853_v8 = vld [vmem:[%s14454_s7 + $0x228] sm:$0xff] }
 0x9f7   : > { %v16698_v15 = vpop.f32.mrf.mxu1 }
 0x9f9   : > { %v9943_v20 = vpop.f32.mrf.mxu0  ;;  %v7310_v39 = vpop.f32.mrf.mxu1 }
 0x9fa   : > { %v7444_v54 = vadd.f32 %v9943_v20, %v7288_v55  ;;  %v10854_v20 = vld [vmem:[%s14454_s7 + $0x88] sm:$0xff] }
 0x9fb   : > { %v7438_v31 = vpop.f32.mrf.mxu0  ;;  %v16700_v5 = vpop.f32.mrf.mxu1 }
 0x9fc   : > { %v7439_v3 = vadd.f32 %v7438_v31, %v7283_v18 }
 0x9fd   : > { %v9946_v49 = vpop.f32.mrf.mxu0  ;;  %v7315_v27 = vpop.f32.mrf.mxu1 }
 0x9fe   : > { %v7454_v1 = vadd.f32 %v9946_v49, %v7298_v6  ;;  %v10851_v6 = vld [vmem:[%s14454_s7 + $0x230] sm:$0xff]  ;;  %v10855_v49 = vld [vmem:[%s14454_s7 + $0x220] sm:$0xff] }
 0x9ff   : > { %v7448_v53 = vpop.f32.mrf.mxu0  ;;  %v16702_v60 = vpop.f32.mrf.mxu1 }
 0xa00   : > { %v7449_v26 = vadd.f32 %v7448_v53, %v7293_v24  ;;  %v10856_v53 = vld [vmem:[%s14454_s7 + $0x80] sm:$0xff] }
 0xa01   : > { %v16704_v12 = vpop.f32.mrf.mxu0  ;;  %v7320_v16 = vpop.f32.mrf.mxu1 }
 0xa02   : > { %9984 = vmatprep.mubr.msk.f32.mxu0 %vm4015_vm12, %v7449_v26  ;;  %v7464_v27 = vadd.f32 %v16704_v12, %v16698_v15  ;;  %v10857_v16 = vld [vmem:[%s14454_s7 + $0x218] sm:$0xff]  ;;  %v10859_v15 = vld [vmem:[%s14454_s7 + $0xf0] sm:$0xff] }
 0xa03   : > { %9985 = vmatmul.mubr.msk.f32.vlgmr.msra.gmra.mxu0 %vm4015_vm12, %v7454_v1  ;;  %v7458_v10 = vpop.f32.mrf.mxu0  ;;  %v16708_v23 = vpop.f32.mrf.mxu1 }
 0xa04   : > { %9988 = vmatpush3.msra.mxu0 %v16614_v30  ;;  %10003 = vmatprep.mubr.msk.f32.mxu0 %vm4015_vm12, %v7439_v3  ;;  %v7459_v29 = vadd.f32 %v7458_v10, %v7303_v44  ;;  %v10858_v3 = vld [vmem:[%s14454_s7 + $0xf8] sm:$0xff] }
 0xa05   : > { %9989 = vmatprep.subr.mxu0 %v10839_v35  ;;  %v16713_v36 = vpop.f32.mrf.mxu0  ;;  %v7325_v19 = vpop.f32.mrf.mxu1 }
 0xa06   : > { %9990 = vmatpush3.msra.mxu0 %v10839_v35  ;;  %v10860_v35 = vld [vmem:[%s14454_s7 + $0x210] sm:$0xff]  ;;  %v10861_v19 = vld [vmem:[%s14454_s7 + $0xe8] sm:$0xff] }
 0xa07   : > { %9991 = vmatprep.subr.mxu0 %v10840_v40  ;;  %v16716_v17 = vpop.f32.mrf.mxu0  ;;  %v16718_v57 = vpop.f32.mrf.mxu1 }
 0xa08   : > { %9992 = vmatpush3.msra.mxu0 %v10840_v40  ;;  %v7469_v31 = vadd.f32 %v16716_v17, %v16700_v5 }
 0xa09   : > { %9993 = vmatprep.subr.mxu0 %v10841_v62  ;;  %v16721_v28 = vpop.f32.mrf.mxu0  ;;  %v7330_v30 = vpop.f32.mrf.mxu1 }
 0xa0a   : > { %9994 = vmatpush3.msra.mxu0 %v10841_v62  ;;  %v10862_v62 = vld [vmem:[%s14454_s7 + $0x208] sm:$0xff]  ;;  %v10863_v30 = vld [vmem:[%s14454_s7 + $0xe0] sm:$0xff] }
 0xa0b   : > { %9995 = vmatprep.subr.mxu0 %v10842_v21  ;;  %v16724_v50 = vpop.f32.mrf.mxu0  ;;  %v16726_v7 = vpop.f32.mrf.mxu1 }
 0xa0c   : > { %9996 = vmatpush3.msra.mxu0 %v10842_v21 }
 0xa0d   : > { %9997 = vmatprep.subr.mxu0 %v10843_v56  ;;  %v7335_v0 = vpop.f32.mrf.mxu1  ;;  %v9958_v34 = vpop.f32.mrf.mxu0 }
 0xa0e   : > { %9998 = vmatpush3.msra.mxu0 %v10843_v56  ;;  %v10864_v0 = vld [vmem:[%s14454_s7 + $0x200] sm:$0xff] }
 0xa0f   : > { %9999 = vmatprep.subr.mxu0 %v10844_v47  ;;  %v7338_v51 = vpop.f32.mrf.mxu1  ;;  %v16730_v9 = vpop.f32.mrf.mxu0 }
 0xa10   : > { %10000 = vmatpush3.msra.mxu0 %v10844_v47  ;;  %v16732_v48 = vadd.f32 %v9958_v34, %v7338_v51  ;;  %v10865_v34 = vld [vmem:[%s14454_s7 + $0xd8] sm:$0xff]  ;;  %v10866_v47 = vld [vmem:[%s14454_s7 + $0xd0] sm:$0xff]  ;;  %v10867_v51 = vld [vmem:[%s14454_s7 + $0xc8] sm:$0xff] }
 0xa11   : > { %10001 = vmatprep.subr.mxu0 %v10845_v37  ;;  %v7340_v22 = vpop.f32.mrf.mxu1  ;;  %v9961_v42 = vpop.f32.mrf.mxu0 }
 0xa12   : > { %10002 = vmatpush3.msra.mxu0 %v10845_v37  ;;  %v10868_v37 = vld [vmem:[%s14454_s7 + $0xc0] sm:$0xff]  ;;  %v10869_v22 = vld [vmem:[%s14454_s7 + $0x138] sm:$0xff] }
 0xa13   : > { %10004 = vmatmul.mubr.msk.f32.vlgmr.msra.gmra.mxu0 %vm4015_vm12, %v7444_v54  ;;  %10006 = vmatprep.subr.mxu0 %v10846_v2  ;;  %v7343_v43 = vpop.f32.mrf.mxu1  ;;  %v7498_v41 = vpop.f32.mrf.mxu0  ;;  %v7474_v54 = vadd.f32 %v16713_v36, %v16702_v60  ;;  %v10872_v60 = vld [vmem:[%s14454_s7 + $0x120] sm:$0xff]  ;;  %v10873_v36 = vld [vmem:[%s14454_s7 + $0x118] sm:$0xff] }
 0xa14   : > { %10007 = vmatpush3.msra.mxu0 %v10846_v2  ;;  %10022 = vmatprep.mubr.msk.f32.mxu0 %vm4015_vm12, %v7459_v29  ;;  %v7499_v33 = vadd.f32 %v7498_v41, %v7343_v43  ;;  %v7479_v29 = vadd.f32 %v16724_v50, %v16708_v23  ;;  %v10871_v23 = vld [vmem:[%s14454_s7 + $0x128] sm:$0xff]  ;;  %v10874_v50 = vld [vmem:[%s14454_s7 + $0x110] sm:$0xff]  ;;  %v7489_v43 = vadd.f32 %v16730_v9, %v16726_v7 }
 0xa15   : > { %10008 = vmatprep.subr.mxu0 %v10847_v38  ;;  %v7345_v14 = vpop.f32.mrf.mxu1  ;;  %v16747_v52 = vpop.f32.mrf.mxu0  ;;  %v10875_v2 = vld [vmem:[%s14454_s7 + $0x108] sm:$0xff]  ;;  %v7484_v41 = vadd.f32 %v16721_v28, %v16718_v57  ;;  %v10880_v57 = vld [vmem:[%s14454_s7 + $0x160] sm:$0xff]  ;;  %v10881_v28 = vld [vmem:[%s14454_s7 + $0x158] sm:$0xff] }
 0xa16   : > { %10009 = vmatpush3.msra.mxu0 %v10847_v38  ;;  %10098 = vmatprep.mubr.msk.f32.mxu1 %vm4015_vm12, %v7499_v33  ;;  %v10876_v33 = vld [vmem:[%s14454_s7 + $0x100] sm:$0xff]  ;;  %v10877_v38 = vld [vmem:[%s14454_s7 + $0x178] sm:$0xff]  ;;  %v10878_v14 = vld [vmem:[%s14454_s7 + $0x170] sm:$0xff] }
 0xa17   : > { %10010 = vmatprep.subr.mxu0 %v10848_v32  ;;  %v7348_v45 = vpop.f32.mrf.mxu1  ;;  %v10879_v7 = vld [vmem:[%s14454_s7 + $0x168] sm:$0xff]  ;;  %v10882_v9 = vld [vmem:[%s14454_s7 + $0x150] sm:$0xff] }
 0xa18   : > { %10011 = vmatpush3.msra.mxu0 %v10848_v32  ;;  %v7504_v18 = vadd.f32 %v9961_v42, %v7348_v45  ;;  %v10870_v42 = vld [vmem:[%s14454_s7 + $0x130] sm:$0xff]  ;;  %v10883_v32 = vld [vmem:[%s14454_s7 + $0x148] sm:$0xff] }
 0xa19   : > { %10012 = vmatprep.subr.mxu0 %v10849_v13  ;;  %v7350_v55 = vpop.f32.mrf.mxu1 }
 0xa1a   : > { %10013 = vmatpush3.msra.mxu0 %v10849_v13  ;;  %10099 = vmatmul.mubr.msk.f32.vlgmr.msra.gmra.mxu1 %vm4015_vm12, %v7504_v18  ;;  %v10884_v18 = vld [vmem:[%s14454_s7 + $0x140] sm:$0xff]  ;;  %v10885_v13 = vld [vmem:[%s14454_s7 + $0x1f8] sm:$0xff]  ;;  %v10886_v55 = vld [vmem:[%s14454_s7 + $0x1f0] sm:$0xff] }
 0xa1b   : > { %10014 = vmatprep.subr.mxu0 %v10850_v61  ;;  %v16744_v24 = vpop.f32.mrf.mxu1  ;;  %10121 = vmatpush3.msra.mxu1 %v16622_v25  ;;  %v16755_v25 = vpop.f32.mrf.mxu0 }
 0xa1c   : > { %10015 = vmatpush3.msra.mxu0 %v10850_v61  ;;  %10122 = vmatprep.subr.mxu1 %v10851_v6  ;;  %v7509_v45 = vadd.f32 %v16755_v25, %v16744_v24  ;;  %v10887_v61 = vld [vmem:[%s14454_s7 + $0x1e8] sm:$0xff]  ;;  %v10888_v24 = vld [vmem:[%s14454_s7 + $0x1e0] sm:$0xff]  ;;  %v8298_v25 = vld [vmem:[%s990_s4 + $0x30] sm:$0xff] }
 0xa1d   : > { %10016 = vmatprep.subr.mxu0 %v10852_v58  ;;  %v7355_v44 = vpop.f32.mrf.mxu1  ;;  %10123 = vmatpush3.msra.mxu1 %v10851_v6  ;;  %v9967_v1 = vpop.f32.mrf.mxu0  ;;  %v10889_v6 = vld [vmem:[%s14454_s7 + $0x1d8] sm:$0xff] }
 0xa1e   : > { %10017 = vmatpush3.msra.mxu0 %v10852_v58  ;;  %10124 = vmatprep.subr.mxu1 %v10853_v8  ;;  %v10891_v58 = vld [vmem:[%s14454_s7 + $0x1c8] sm:$0xff] }
 0xa1f   : > { %10018 = vmatprep.subr.mxu0 %v10854_v20  ;;  %v16753_v39 = vpop.f32.mrf.mxu1  ;;  %10125 = vmatpush3.msra.mxu1 %v10853_v8  ;;  %v7518_v10 = vpop.f32.mrf.mxu0  ;;  %v10892_v8 = vld [vmem:[%s14454_s7 + $0x1c0] sm:$0xff] }
 0xa20   : > { %10019 = vmatpush3.msra.mxu0 %v10854_v20  ;;  %10126 = vmatprep.subr.mxu1 %v10855_v49  ;;  %v7514_v44 = vadd.f32 %v16747_v52, %v16753_v39  ;;  %v8299_v20 = vld [vmem:[%s990_s4 + $0x38] sm:$0xff]  ;;  %v8297_v52 = vld [vmem:[%s990_s4 + $0x28] sm:$0xff]  ;;  %v8296_v39 = vld [vmem:[%s990_s4 + $0x20] sm:$0xff] }
 0xa21   : > { %10020 = vmatprep.subr.mxu0 %v10856_v53  ;;  %v7360_v26 = vpop.f32.mrf.mxu1  ;;  %10127 = vmatpush3.msra.mxu1 %v10855_v49  ;;  %v8294_v49 = vld [vmem:[%s990_s4 + $0x10] sm:$0xff] }
 0xa22   : > { %10021 = vmatpush3.msra.mxu0 %v10856_v53  ;;  %10128 = vmatprep.subr.mxu1 %v10857_v16  ;;  %v8292_v53 = vld [vmem:[%s990_s4] sm:$0xff]  ;;  %v8390_v26 = vld [vmem:[%s16848_s28 + $0x38] sm:$0xff] }
 0xa23   : > { %10023 = vmatmul.mubr.msk.f32.vlgmr.msra.gmra.mxu0 %vm4015_vm12, %v7464_v27  ;;  %10025 = vmatprep.subr.mxu0 %v10858_v3  ;;  %v7363_v5 = vpop.f32.mrf.mxu1  ;;  %v8293_v27 = vld [vmem:[%s990_s4 + $0x8] sm:$0xff] }
 0xa24   : > { %10026 = vmatpush3.msra.mxu0 %v10858_v3  ;;  %10041 = vmatprep.mubr.msk.f32.mxu0 %vm4015_vm12, %v7469_v31  ;;  %v7519_v17 = vadd.f32 %v7518_v10, %v7363_v5  ;;  %v8295_v31 = vld [vmem:[%s990_s4 + $0x18] sm:$0xff]  ;;  %v8387_v3 = vld [vmem:[%s16848_s28 + $0x20] sm:$0xff]  ;;  %s18016_s4 = sld [smem:[#allocation258_spill]] }
 0xa25   : > { %10027 = vmatprep.subr.mxu0 %v10859_v15  ;;  %10129 = vmatpush3.msra.mxu1 %v10857_v16  ;;  %v7365_v12 = vpop.f32.mrf.mxu1  ;;  %v8388_v16 = vld [vmem:[%s16848_s28 + $0x28] sm:$0xff]  ;;  %v8386_v5 = vld [vmem:[%s16848_s28 + $0x18] sm:$0xff] }
 0xa26   : > { %10028 = vmatpush3.msra.mxu0 %v10859_v15  ;;  %10130 = vmatprep.subr.mxu1 %v10860_v35 }
 0xa27   : > { %10029 = vmatprep.subr.mxu0 %v10861_v19  ;;  %10131 = vmatpush3.msra.mxu1 %v10860_v35  ;;  %v7368_v40 = vpop.f32.mrf.mxu1 }
 0xa28   : > { %10030 = vmatpush3.msra.mxu0 %v10861_v19  ;;  %10132 = vmatprep.subr.mxu1 %v10862_v62  ;;  %v7524_v21 = vadd.f32 %v9967_v1, %v7368_v40  ;;  %v8389_v1 = vld [vmem:[%s16848_s28 + $0x30] sm:$0xff] }
 0xa29   : > { %10031 = vmatprep.subr.mxu0 %v10863_v30  ;;  %10133 = vmatpush3.msra.mxu1 %v10862_v62  ;;  %v7370_v56 = vpop.f32.mrf.mxu1 }
 0xa2a   : > { %10032 = vmatpush3.msra.mxu0 %v10863_v30  ;;  %10134 = vmatprep.subr.mxu1 %v10864_v0 }
 0xa2b   : > { %10033 = vmatprep.subr.mxu0 %v10865_v34  ;;  %10135 = vmatpush3.msra.mxu1 %v10864_v0 }
 0xa2c   : > { %10034 = vmatpush3.msra.mxu0 %v10865_v34  ;;  %10136 = vmatprep.mubr.msk.f32.mxu1 %vm4015_vm12, %v7519_v17 }
 0xa2d   : > { %10035 = vmatprep.subr.mxu0 %v10866_v47  ;;  %10137 = vmatmul.mubr.msk.f32.vlgmr.msra.gmra.mxu1 %vm4015_vm12, %v7524_v21 }
 0xa2e   : > { %10036 = vmatpush3.msra.mxu0 %v10866_v47  ;;  %10158 = vmatprep.subr.mxu1 %v17853_v11 }
 0xa2f   : > { %10037 = vmatprep.subr.mxu0 %v10867_v51  ;;  %10174 = vmatprep.mubr.msk.f32.mxu1 %vm10911_vm14, %v17853_v11 }
 0xa30   : > { %10038 = vmatpush3.msra.mxu0 %v10867_v51  ;;  %10159 = vmatpush3.msra.mxu1 %v8390_v26 }
 0xa31   : > { %10039 = vmatprep.subr.mxu0 %v10868_v37  ;;  %10160 = vmatprep.subr.mxu1 %v17853_v11 }
 0xa32   : > { %10040 = vmatpush3.msra.mxu0 %v10868_v37  ;;  %10161 = vmatpush3.msra.mxu1 %v8389_v1  ;;  %v8291_v1 = vld [vmem:[%s18016_s4] sm:$0x3]  ;;  %s1040_s4 = scalar_lea.vmem %s17005_s21, %s18019_s26 }
 0xa33   : > { %10042 = vmatmul.mubr.msk.f32.vlgmr.msra.gmra.mxu0 %vm4015_vm12, %v7474_v54  ;;  %10044 = vmatprep.subr.mxu0 %v10869_v22 }
 0xa34   : > { %10045 = vmatpush3.msra.mxu0 %v10869_v22  ;;  %10060 = vmatprep.mubr.msk.f32.mxu0 %vm4015_vm12, %v7479_v29 }
 0xa35   : > { %10046 = vmatprep.subr.mxu0 %v10870_v42  ;;  %10162 = vmatprep.subr.mxu1 %v17853_v11 }
 0xa36   : > { %10047 = vmatpush3.msra.mxu0 %v10870_v42  ;;  %10163 = vmatpush3.msra.mxu1 %v8388_v16  ;;  %v8385_v16 = vld [vmem:[%s16848_s28 + $0x10] sm:$0xff] }
 0xa37   : > { %10048 = vmatprep.subr.mxu0 %v10871_v23  ;;  %10164 = vmatprep.subr.mxu1 %v17853_v11 }
 0xa38   : > { %10049 = vmatpush3.msra.mxu0 %v10871_v23  ;;  %10165 = vmatpush3.msra.mxu1 %v8387_v3  ;;  %v8384_v3 = vld [vmem:[%s16848_s28 + $0x8] sm:$0xff] }
 0xa39   : > { %10050 = vmatprep.subr.mxu0 %v10872_v60  ;;  %10166 = vmatprep.subr.mxu1 %v17853_v11 }
 0xa3a   : > { %10051 = vmatpush3.msra.mxu0 %v10872_v60  ;;  %10167 = vmatpush3.msra.mxu1 %v8386_v5  ;;  %v8383_v5 = vld [vmem:[%s16848_s28] sm:$0xff]  ;;  %s1013_s28 = scalar_lea.vmem %s16998_s14, %s16892_s29 }
 0xa3b   : > { %10052 = vmatprep.subr.mxu0 %v10873_v36  ;;  %10168 = vmatprep.subr.mxu1 %v17853_v11 }
 0xa3c   : > { %10053 = vmatpush3.msra.mxu0 %v10873_v36  ;;  %10169 = vmatpush3.msra.mxu1 %v8385_v16  ;;  %v9412_v16 = vld [vmem:[%s1040_s4] ss:$0 sm:$0xff] }
 0xa3d   : > { %10054 = vmatprep.subr.mxu0 %v10874_v50  ;;  %10170 = vmatprep.subr.mxu1 %v17853_v11 }
 0xa3e   : > { %10055 = vmatpush3.msra.mxu0 %v10874_v50  ;;  %10171 = vmatpush3.msra.mxu1 %v8384_v3 }
 0xa3f   : > { %10056 = vmatprep.subr.mxu0 %v10875_v2  ;;  %10172 = vmatprep.subr.mxu1 %v17853_v11 }
 0xa40   : > { %10057 = vmatpush3.msra.mxu0 %v10875_v2  ;;  %10173 = vmatpush3.msra.mxu1 %v8383_v5 }
 0xa41   : > { %10058 = vmatprep.subr.mxu0 %v10876_v33  ;;  %10182 = vmatprep.subr.mxu1 %v17853_v11 }
 0xa42   : > { %10059 = vmatpush3.msra.mxu0 %v10876_v33 }
 0xa43   : > { %10061 = vmatmul.mubr.msk.f32.vlgmr.msra.gmra.mxu0 %vm4015_vm12, %v7484_v41  ;;  %10063 = vmatprep.subr.mxu0 %v10877_v38 }
 0xa44   : > { %10064 = vmatpush3.msra.mxu0 %v10877_v38  ;;  %10079 = vmatprep.mubr.msk.f32.mxu0 %vm4015_vm12, %v7489_v43 }
 0xa45   : > { %10065 = vmatprep.subr.mxu0 %v10878_v14 }
 0xa46   : > { %10066 = vmatpush3.msra.mxu0 %v10878_v14 }
 0xa47   : > { %10067 = vmatprep.subr.mxu0 %v10879_v7 }
 0xa48   : > { %10068 = vmatpush3.msra.mxu0 %v10879_v7 }
 0xa49   : > { %10069 = vmatprep.subr.mxu0 %v10880_v57 }
 0xa4a   : > { %10070 = vmatpush3.msra.mxu0 %v10880_v57 }
 0xa4b   : > { %10071 = vmatprep.subr.mxu0 %v10881_v28 }
 0xa4c   : > { %10072 = vmatpush3.msra.mxu0 %v10881_v28 }
 0xa4d   : > { %10073 = vmatprep.subr.mxu0 %v10882_v9 }
 0xa4e   : > { %10074 = vmatpush3.msra.mxu0 %v10882_v9 }
 0xa4f   : > { %10075 = vmatprep.subr.mxu0 %v10883_v32 }
 0xa50   : > { %10076 = vmatpush3.msra.mxu0 %v10883_v32 }
 0xa51   : > { %10077 = vmatprep.subr.mxu0 %v10884_v18 }
 0xa52   : > { %10078 = vmatpush3.msra.mxu0 %v10884_v18 }
 0xa53   : > { %10080 = vmatmul.mubr.msk.f32.vlgmr.msra.gmra.mxu0 %vm4015_vm12, %v16732_v48  ;;  %10101 = vmatprep.subr.mxu0 %v10885_v13  ;;  %v10890_v48 = vld [vmem:[%s14454_s7 + $0x1d0] sm:$0xff]  ;;  %s1032_s7 = scalar_lea.vmem %s17003_s19, %s18019_s26 }
 0xa54   : > { %10102 = vmatpush3.msra.mxu0 %v10885_v13  ;;  %10117 = vmatprep.mubr.msk.f32.mxu0 %vm4015_vm12, %v7509_v45  ;;  %v4788_v45 = vrot.slane %v16537_v46, 4 }
 0xa55   : > { %10103 = vmatprep.subr.mxu0 %v10886_v55 }
 0xa56   : > { %10104 = vmatpush3.msra.mxu0 %v10886_v55 }
 0xa57   : > { %10105 = vmatprep.subr.mxu0 %v10887_v61 }
 0xa58   : > { %10106 = vmatpush3.msra.mxu0 %v10887_v61 }
 0xa59   : > { %10107 = vmatprep.subr.mxu0 %v10888_v24 }
 0xa5a   : > { %10108 = vmatpush3.msra.mxu0 %v10888_v24 }
 0xa5b   : > { %10109 = vmatprep.subr.mxu0 %v10889_v6 }
 0xa5c   : > { %10110 = vmatpush3.msra.mxu0 %v10889_v6  ;;  %v4789_v6 = vadd.f32 %v4788_v45, %v16537_v46  ;;  %v8474_v46 = vld [vmem:[%s1005_s3] sm:$0x3f]  ;;  %s1024_s3 = scalar_lea.vmem %s17001_s17, %s18019_s26 }
 0xa5d   : > { %10111 = vmatprep.subr.mxu0 %v10890_v48 }
 0xa5e   : > { %10112 = vmatpush3.msra.mxu0 %v10890_v48 }
 0xa5f   : > { %10113 = vmatprep.subr.mxu0 %v10891_v58 }
 0xa60   : > { %10114 = vmatpush3.msra.mxu0 %v10891_v58 }
 0xa61   : > { %10115 = vmatprep.subr.mxu0 %v10892_v8 }
 0xa62   : > { %10116 = vmatpush3.msra.mxu0 %v10892_v8 }
 0xa63   : > { %10118 = vmatmul.mubr.msk.f32.vlgmr.msra.gmra.mxu0 %vm4015_vm12, %v7514_v44  ;;  %10139 = vmatprep.subr.mxu0 %v17853_v11 }
 0xa64   : > { %10140 = vmatpush3.msra.mxu0 %v8299_v20  ;;  %10155 = vmatprep.mubr.msk.f32.mxu0 %vm10911_vm14, %v17853_v11  ;;  %v4790_v20 = vrot.slane %v4789_v6, 2 }
 0xa65   : > { %10141 = vmatprep.subr.mxu0 %v17853_v11 }
 0xa66   : > { %10142 = vmatpush3.msra.mxu0 %v8298_v25 }
 0xa67   : > { %10143 = vmatprep.subr.mxu0 %v17853_v11 }
 0xa68   : > { %10144 = vmatpush3.msra.mxu0 %v8297_v52 }
 0xa69   : > { %10145 = vmatprep.subr.mxu0 %v17853_v11 }
 0xa6a   : > { %10146 = vmatpush3.msra.mxu0 %v8296_v39  ;;  %v4791_v39 = vadd.f32 %v4790_v20, %v4789_v6 }
 0xa6b   : > { %10147 = vmatprep.subr.mxu0 %v17853_v11 }
 0xa6c   : > { %10148 = vmatpush3.msra.mxu0 %v8295_v31 }
 0xa6d   : > { %10149 = vmatprep.subr.mxu0 %v17853_v11 }
 0xa6e   : > { %10150 = vmatpush3.msra.mxu0 %v8294_v49  ;;  %v4792_v49 = vrot.slane %v4791_v39, 1 }
 0xa6f   : > { %10151 = vmatprep.subr.mxu0 %v17853_v11 }
 0xa70   : > { %10152 = vmatpush3.msra.mxu0 %v8293_v27 }
 0xa71   : > { %10153 = vmatprep.subr.mxu0 %v17853_v11 }
 0xa72   : > { %10154 = vmatpush3.msra.mxu0 %v8292_v53 }
 0xa73   : > { %10177 = vmatprep.subr.mxu0 %v17853_v11 }
 0xac3   : > { %v9986_v15 = vpop.f32.mrf.mxu0 }
 0xac5   : > { %v7599_v12 = vpop.f32.mrf.mxu0 }
 0xad3   : > { %v10005_v10 = vpop.f32.mrf.mxu0 }
 0xad4   : > { %v7686_v21 = vadd.f32 %v10005_v10, %v9986_v15  ;;  %v9399_v15 = vld [vmem:[%s993_s2] ss:$0 sm:$0xff]  ;;  %s1021_s2 = scalar_lea.vmem %s17000_s16, %s16892_s29  ;;  %s1001_s29 = scalar_lea.vmem %s16995_s11, %s18019_s26 }
 0xad5   : > { %v7680_v35 = vpop.f32.mrf.mxu0 }
 0xad6   : > { %v7681_v0 = vadd.f32 %v7680_v35, %v7599_v12 }
 0xada   : > { %v10100_v22 = vpop.f32.mrf.mxu1 }
 0xadc   : > { %v8093_v50 = vpop.f32.mrf.mxu1 }
 0xae3   : > { %v10024_v19 = vpop.f32.mrf.mxu0 }
 0xae4   : > { %v7771_v34 = vadd.f32 %v10024_v19, %v7686_v21  ;;  %v9403_v19 = vld [vmem:[%s1008_s1] ss:$0 sm:$0xff]  ;;  %s1016_s1 = scalar_lea.vmem %s16999_s15, %s18019_s26 }
 0xae5   : > { %v7761_v40 = vpop.f32.mrf.mxu0 }
 0xae6   : > { %v7770_v51 = vadd.f32 %v7761_v40, %v7681_v0  ;;  %v8565_v0 = vld [vmem:[%s1013_s28 + $0x10] sm:$0xff] }
 0xaed   : > { %v10138_v43 = vpop.f32.mrf.mxu1 }
 0xaef   : > { %v8259_v28 = vpop.f32.mrf.mxu1 }
 0xaf3   : > { %v10043_v17 = vpop.f32.mrf.mxu0 }
 0xaf4   : > { %v7854_v29 = vadd.f32 %v10043_v17, %v7771_v34  ;;  %v8564_v34 = vld [vmem:[%s1013_s28 + $0x8] sm:$0xff] }
 0xaf5   : > { %v7844_v62 = vpop.f32.mrf.mxu0 }
 0xaf6   : > { %v7853_v54 = vadd.f32 %v7844_v62, %v7770_v51  ;;  %v8566_v62 = vld [vmem:[%s1013_s28 + $0x18] sm:$0xff]  ;;  %v8563_v51 = vld [vmem:[%s1013_s28] sm:$0xff]  ;;  %s1029_s28 = scalar_lea.vmem %s17002_s18, %s16826_s6  ;;  %s1048_s6 = scalar_lea.vmem %s17007_s23, %s18019_s26 }
 0xaf7   : > { %v8743_v45 = vld [vmem:[%s1029_s28] sm:$0xff] }
 0xb03   : > { %v10062_v30 = vpop.f32.mrf.mxu0 }
 0xb04   : > { %v7937_v37 = vadd.f32 %v10062_v30, %v7854_v29 }
 0xb05   : > { %v7927_v56 = vpop.f32.mrf.mxu0 }
 0xb06   : > { %v7936_v23 = vadd.f32 %v7927_v56, %v7853_v54  ;;  %v8654_v54 = vld [vmem:[%s1021_s2 + $0x18] sm:$0xff] }
 0xb13   : > { %v10081_v47 = vpop.f32.mrf.mxu0 }
 0xb14   : > { %v8020_v60 = vadd.f32 %v10081_v47, %v7937_v37  ;;  %v8653_v37 = vld [vmem:[%s1021_s2 + $0x10] sm:$0xff] }
 0xb15   : > { %v8010_v42 = vpop.f32.mrf.mxu0 }
 0xb16   : > { %v8019_v36 = vadd.f32 %v8010_v42, %v7936_v23  ;;  %v8103_v2 = vadd.f32 %v10100_v22, %v8020_v60  ;;  %v8652_v22 = vld [vmem:[%s1021_s2 + $0x8] sm:$0xff]  ;;  %v8651_v42 = vld [vmem:[%s1021_s2] sm:$0xff] }
 0xb18   : > { %v8102_v38 = vadd.f32 %v8093_v50, %v8019_v36  ;;  %v9406_v36 = vld [vmem:[%s1016_s1] ss:$0 sm:$0xff]  ;;  %s10912_s1 = smov 32  }
 0xb23   : > { %v10119_v41 = vpop.f32.mrf.mxu0 }
 0xb24   : > { %v8186_v33 = vadd.f32 %v10119_v41, %v8103_v2 }
 0xb25   : > { %v8176_v14 = vpop.f32.mrf.mxu0 }
 0xb26   : > { %v8269_v7 = vadd.f32 %v10138_v43, %v8186_v33  ;;  %v8185_v57 = vadd.f32 %v8176_v14, %v8102_v38  ;;  %v8750_v38 = vld [vmem:[%s1029_s28 + $0x38] sm:$0xff]  ;;  %v8749_v14 = vld [vmem:[%s1029_s28 + $0x30] sm:$0xff] }
 0xb28   : > { %v8271_v9 = vadd.f32 %v16466_v4, %v8269_v7  ;;  %v8268_v32 = vadd.f32 %v8259_v28, %v8185_v57  ;;  %v8748_v7 = vld [vmem:[%s1029_s28 + $0x28] sm:$0xff]  ;;  %v8747_v57 = vld [vmem:[%s1029_s28 + $0x20] sm:$0xff]  ;;  %v8746_v28 = vld [vmem:[%s1029_s28 + $0x18] sm:$0xff] }
 0xb2a   : > { %vm8273_vm0 = vcmp.gt.f32.partialorder %v8271_v9, 0.0  ;;  %v8275_v18 = vmul.f32 0.01, %v8271_v9  ;;  %v8270_v13 = vadd.f32 %v16466_v4, %v8268_v32  ;;  %v8744_v32 = vld [vmem:[%s1029_s28 + $0x8] sm:$0xff] }
 0xb2c   : > { %v8277_v55 = vsel %vm8273_vm0, %v8271_v9, %v8275_v18  ;;  %vm8272_vm1 = vcmp.gt.f32.partialorder %v8270_v13, 0.0  ;;  %v8274_v61 = vmul.f32 0.01, %v8270_v13  ;;  %v8745_v9 = vld [vmem:[%s1029_s28 + $0x10] sm:$0xff]  ;;  %v8837_v18 = vld [vmem:[%s1037_s8 + $0x18] sm:$0xff] }
 0xb2d   : > { %v8279_v24 = vmul.f32 %v8277_v55, %v16525_v59 }
 0xb2e   : > { %v8276_v48 = vsel %vm8272_vm1, %v8270_v13, %v8274_v61  ;;  %v9408_v13 = vld [vmem:[%s1024_s3] ss:$0 sm:$0xff] }
 0xb2f   : > { %v8278_v58 = vmul.f32 %v8276_v48, %v16509_v63  ;;  %v8281_v44 = vsel %vm4015_vm12, %v8279_v24, 0.0  ;;  %v4793_v63 = vadd.f32 %v4792_v49, %v4791_v39  ;;  %v8836_v39 = vld [vmem:[%s1037_s8 + $0x10] sm:$0xff]  ;;  %v9410_v49 = vld [vmem:[%s1032_s7] ss:$0 sm:$0xff]  ;;  %s9280_s7 = sshll.u32 %s18019_s26, 1 }
 0xb30   : > { %s1052_s30 = scalar_lea.vmem %s17008_s24, %s9280_s7 }
 0xb31   : > { %v8280_v8 = vsel %vm4015_vm12, %v8278_v58, 0.0  ;;  %v9401_v58 = vld [vmem:[%s1001_s29] ss:$0 sm:$0xff] }
 0xb32   : > { %v8282_v25 = vadd.f32 %v8281_v44, %v8280_v8 }
 0xb34   : > { %v8283_v52 = vrot.slane %v8282_v25, 4 }
 0xb36   : > { %v8284_v4 = vadd.f32 %v8283_v52, %v8282_v25 }
 0xb38   : > { %v8285_v31 = vrot.slane %v8284_v4, 2 }
 0xb3a   : > { %v8286_v27 = vadd.f32 %v8285_v31, %v8284_v4  ;;  %v8835_v4 = vld [vmem:[%s1037_s8 + $0x8] sm:$0xff]  ;;  %v8834_v31 = vld [vmem:[%s1037_s8] sm:$0xff]  ;;  %s18017_s8 = sshll.u32 %s18019_s26, 4 }
 0xb3b   : > { %s1045_s3 = scalar_lea.vmem %s17006_s22, %s18017_s8 }
 0xb3c   : > { %v8287_v53 = vrot.slane %v8286_v27, 1 }
 0xb3e   : > { %v8288_v59 = vadd.f32 %v8287_v53, %v8286_v27 }
 0xb40   : > { %v8290_v26 = vsel %vm8289_vm2, %v4793_v63, %v8288_v59 }
 0xb41   : > { %10156 = vmatmul.mubr.msk.f32.vlgmr.msra.gmra.mxu0 %vm4015_vm12, %v8290_v26  ;;  %v8922_v26 = vld [vmem:[%s1045_s3 + $0x8] sm:$0xff] }
 0xb42   : > { %10178 = vmatpush3.msk.msra.mxu0 %vm8486_vm3, %v8474_v46  ;;  %10179 = vmatprep.mubr.msk.f32.mxu0 %vm10911_vm14, %v17853_v11 }
 0xb43   : > { %10193 = vmatprep.subr.mxu0 %v17853_v11 }
 0xb45   : > { %10180 = vmatmul.mubr.msk.f32.vlgmr.msra.gmra.mxu0 %vm8482_vm4, %v8291_v1  ;;  %v8921_v1 = vld [vmem:[%s1045_s3] sm:$0xff] }
 0xb46   : > { %10201 = vmatprep.mubr.msk.f32.mxu0 %vm10911_vm14, %v17853_v11  ;;  %10194 = vmatpush3.msra.mxu0 %v8654_v54 }
 0xb47   : > { %10195 = vmatprep.subr.mxu0 %v17853_v11 }
 0xb48   : > { %10196 = vmatpush3.msra.mxu0 %v8653_v37 }
 0xb49   : > { %10197 = vmatprep.subr.mxu0 %v17853_v11 }
 0xb4a   : > { %10198 = vmatpush3.msra.mxu0 %v8652_v22 }
 0xb4b   : > { %10199 = vmatprep.subr.mxu0 %v17853_v11 }
 0xb4c   : > { %10200 = vmatpush3.msra.mxu0 %v8651_v42 }
 0xb4d   : > { %10223 = vmatprep.subr.mxu0 %v17853_v11 }
 0xc01   : > { %v8376_v12 = vpop.f32.mrf.mxu0 }
 0xc02   : > { %v8377_v10 = vadd.f32 %v9399_v15, %v8376_v12 }
 0xc03   : > { %v10157_v35 = vpop.f32.mrf.mxu0 }
 0xc04   : > { %vm8380_vm5 = vcmp.gt.f32.partialorder %v8377_v10, 0.0  ;;  %v8381_v40 = vmul.f32 0.01, %v8377_v10 }
 0xc05   : > { %v8556_v17 = vpop.f32.mrf.mxu0 }
 0xc06   : > { %v8382_v30 = vsel %vm8380_vm5, %v8377_v10, %v8381_v40  ;;  %v8557_v21 = vadd.f32 %v9403_v19, %v8556_v17 }
 0xc07   : > { %10175 = vmatmul.mubr.msk.f32.vlgmr.msra.gmra.mxu1 %vm4015_vm12, %v8382_v30  ;;  %v10181_v56 = vpop.f32.mrf.mxu0 }
 0xc08   : > { %10183 = vmatpush3.msra.mxu1 %v8566_v62  ;;  %10190 = vmatprep.mubr.msk.f32.mxu1 %vm10911_vm14, %v17853_v11  ;;  %v8561_v47 = vmul.f32 0.01, %v8557_v21  ;;  %vm8560_vm6 = vcmp.gt.f32.partialorder %v8557_v21, 0.0 }
 0xc09   : > { %10184 = vmatprep.subr.mxu1 %v17853_v11 }
 0xc0a   : > { %10185 = vmatpush3.msra.mxu1 %v8565_v0  ;;  %v8562_v29 = vsel %vm8560_vm6, %v8557_v21, %v8561_v47 }
 0xc0b   : > { %10186 = vmatprep.subr.mxu1 %v17853_v11 }
 0xc0c   : > { %10187 = vmatpush3.msra.mxu1 %v8564_v34 }
 0xc0d   : > { %10188 = vmatprep.subr.mxu1 %v17853_v11 }
 0xc0e   : > { %10189 = vmatpush3.msra.mxu1 %v8563_v51 }
 0xc0f   : > { %10191 = vmatmul.mubr.msk.f32.vlgmr.msra.gmra.mxu1 %vm8574_vm7, %v8562_v29  ;;  %10204 = vmatprep.subr.mxu1 %v17853_v11 }
 0xc10   : > { %10220 = vmatprep.mubr.msk.f32.mxu1 %vm10911_vm14, %v17853_v11  ;;  %10205 = vmatpush3.msra.mxu1 %v8750_v38 }
 0xc11   : > { %10206 = vmatprep.subr.mxu1 %v17853_v11 }
 0xc12   : > { %10207 = vmatpush3.msra.mxu1 %v8749_v14 }
 0xc13   : > { %10208 = vmatprep.subr.mxu1 %v17853_v11 }
 0xc14   : > { %10209 = vmatpush3.msra.mxu1 %v8748_v7 }
 0xc15   : > { %10210 = vmatprep.subr.mxu1 %v17853_v11 }
 0xc16   : > { %10211 = vmatpush3.msra.mxu1 %v8747_v57 }
 0xc17   : > { %10212 = vmatprep.subr.mxu1 %v17853_v11 }
 0xc18   : > { %10213 = vmatpush3.msra.mxu1 %v8746_v28 }
 0xc19   : > { %10214 = vmatprep.subr.mxu1 %v17853_v11 }
 0xc1a   : > { %10215 = vmatpush3.msra.mxu1 %v8745_v9 }
 0xc1b   : > { %10216 = vmatprep.subr.mxu1 %v17853_v11 }
 0xc1c   : > { %10217 = vmatpush3.msra.mxu1 %v8744_v32 }
 0xc1d   : > { %10218 = vmatprep.subr.mxu1 %v17853_v11 }
 0xc1e   : > { %10219 = vmatpush3.msra.mxu1 %v8743_v45 }
 0xcc7   : > { %v8467_v23 = vpop.f32.mrf.mxu1 }
 0xcc8   : > { %v8468_v44 = vadd.f32 %v9401_v58, %v8467_v23 }
 0xcc9   : > { %v10176_v60 = vpop.f32.mrf.mxu1 }
 0xcca   : > { %v8472_v8 = vmul.f32 0.01, %v8468_v44  ;;  %vm8471_vm11 = vcmp.gt.f32.partialorder %v8468_v44, 0.0 }
 0xccc   : > { %v8473_v20 = vsel %vm8471_vm11, %v8468_v44, %v8472_v8 }
 0xccf   : > { %v8644_v50 = vpop.f32.mrf.mxu1 }
 0xcd0   : > { %v8645_v2 = vadd.f32 %v9406_v36, %v8644_v50 }
 0xcd1   : > { %v10192_v43 = vpop.f32.mrf.mxu1 }
 0xcd2   : > { %vm8648_vm8 = vcmp.gt.f32.partialorder %v8645_v2, 0.0  ;;  %v8649_v41 = vmul.f32 0.01, %v8645_v2 }
 0xcd4   : > { %v8650_v33 = vsel %vm8648_vm8, %v8645_v2, %v8649_v41 }
 0xcd5   : > { %10202 = vmatmul.mubr.msk.f32.vlgmr.msra.gmra.mxu0 %vm8574_vm7, %v8650_v33 }
 0xcd6   : > { %10231 = vmatprep.mubr.msk.f32.mxu0 %vm10911_vm14, %v17853_v11  ;;  %10224 = vmatpush3.msra.mxu0 %v8837_v18 }
 0xcd7   : > { %10225 = vmatprep.subr.mxu0 %v17853_v11 }
 0xcd8   : > { %10226 = vmatpush3.msra.mxu0 %v8836_v39 }
 0xcd9   : > { %10227 = vmatprep.subr.mxu0 %v17853_v11 }
 0xcda   : > { %10228 = vmatpush3.msra.mxu0 %v8835_v4 }
 0xcdb   : > { %10229 = vmatprep.subr.mxu0 %v17853_v11 }
 0xcdc   : > { %10230 = vmatpush3.msra.mxu0 %v8834_v31 }
 0xcdd   : > { %10234 = vmatprep.subr.mxu0 %v17853_v11 }
 0xd95   : > { %v8731_v55 = vpop.f32.mrf.mxu0 }
 0xd96   : > { %v8732_v61 = vadd.f32 %v9408_v13, %v8731_v55 }
 0xd97   : > { %v10203_v24 = vpop.f32.mrf.mxu0 }
 0xd98   : > { %vm8735_vm10 = vcmp.gt.f32.partialorder %v8732_v61, 0.0  ;;  %v8736_v6 = vmul.f32 0.01, %v8732_v61 }
 0xd9a   : > { %v8737_v48 = vsel %vm8735_vm10, %v8732_v61, %v8736_v6 }
 0xd9b   : > { %8739 = vrot.lane.b32.xlu1 %v8737_v48, %s10912_s1 }
 0xe0d   : > { %v8740_v25 = vpop.permute.xlu1 %8739 }
 0xe0e   : > { %v8742_v52 = vsel %vm8574_vm7, %v8473_v20, %v8740_v25 }
 0xe0f   : > { %10221 = vmatmul.mubr.msk.f32.vlgmr.msra.gmra.mxu1 %vm4015_vm12, %v8742_v52 }
 0xecf   : > { %v8827_v27 = vpop.f32.mrf.mxu1 }
 0xed0   : > { %v8828_v53 = vadd.f32 %v9410_v49, %v8827_v27 }
 0xed1   : > { %v10222_v63 = vpop.f32.mrf.mxu1 }
 0xed2   : > { %vm8831_vm12 = vcmp.gt.f32.partialorder %v8828_v53, 0.0  ;;  %v8832_v59 = vmul.f32 0.01, %v8828_v53 }
 0xed4   : > { %v8833_v46 = vsel %vm8831_vm12, %v8828_v53, %v8832_v59 }
 0xed5   : > { %10232 = vmatmul.mubr.msk.f32.vlgmr.msra.gmra.mxu0 %vm8574_vm7, %v8833_v46 }
 0xed6   : > { %10238 = vmatprep.mubr.msk.f32.mxu0 %vm10911_vm14, %v17853_v11  ;;  %10235 = vmatpush3.msra.mxu0 %v8922_v26 }
 0xed7   : > { %10236 = vmatprep.subr.mxu0 %v17853_v11  ;;  %v9414_v11 = vld [vmem:[%s1048_s6] ss:$0 sm:$0xff] }
 0xed8   : > { %10237 = vmatpush3.msra.mxu0 %v8921_v1 }
 0xf95   : > { %v8914_v3 = vpop.f32.mrf.mxu0 }
 0xf96   : > { %v8915_v5 = vadd.f32 %v9412_v16, %v8914_v3 }
 0xf97   : > { %v10233_v15 = vpop.f32.mrf.mxu0 }
 0xf98   : > { %vm8918_vm9 = vcmp.gt.f32.partialorder %v8915_v5, 0.0  ;;  %v8919_v12 = vmul.f32 0.01, %v8915_v5 }
 0xf9a   : > { %v8920_v10 = vsel %vm8918_vm9, %v8915_v5, %v8919_v12 }
 0xf9b   : > { %10239 = vmatmul.mubr.msk.f32.vlgmr.msra.gmra.mxu0 %vm8930_vm13, %v8920_v10 }
0x105b   : > { %v9000_v35 = vpop.f32.mrf.mxu0 }
0x105c   : > { %v9001_v19 = vadd.f32 %v9414_v11, %v9000_v35 }
0x105d   : > { %v10240_v40 = vpop.f32.mrf.mxu0 }
0x105e   : > { %9005 = vst.msk [vmem:[%s1052_s30] sm:$0x3] %vm9004_vm15, %v9001_v19 }
0x105f PF: > { %s34_s5 = sadd.s32 1, %s10899_s5  }
0x1060   : > { %p31_p4 = scmp.ge.s32.totalorder %s34_s5, 4  }
0x1062   :  { %33 = sbr.rel (!%p31_p4) target bundleno = 10 (0xa), region = 204 }

</bundles_post_ra>
